<compile_context>
chip_gen: v5e
topology: v5e:2x2
jax: 0.10.0
libtpu: 0.0.40
codegen_flags: <defaults>
</compile_context>

<pallas_src>
import numpy as np
import jax
import jax.numpy as jnp
from jax.experimental import pallas as pl
from jax.experimental.pallas import tpu as pltpu

# ---- constants mirroring the PyTorch module ---------------------------------
STDS = {'cifar': {16: 0.07505646805106986, 8: 0.11017048700915723}}
DATASET = 'cifar'
SUBSPACE_SIZE = 16            # FLAGS.subspace  (times = 1 downsample step)
T_BOUNDARY = 0.5              # FLAGS.time
BETA_MIN, BETA_MAX = 0.1, 20.0   # config.model.beta_{min,max} (subVPSDE)
FULL_SIZE = 32                # config.data.image_size (cifar)
C = 3                         # upsample() hardcodes 3 channels


def _subspace_kernel(w_ref, rs_ref, kd_ref, ku_ref, x_ref, o_ref):
    """One batch tile (bt images, all channels) per grid step.

    w_ref  : SMEM (3, 3)      surrogate 1x1-conv channel-mix weights
    rs_ref : VMEM (bt, 4)     per-image [sigma/denom, bias_c0, bias_c1, bias_c2]
    kd_ref : VMEM (1024, 256) bf16 Kronecker downsample (x_flat @ KDown = down(x))
    ku_ref : VMEM (256, 1024) bf16 Kronecker upsample   (m_flat @ KUp  = up(m))
    x_ref  : VMEM (bt, 3072)  f32; lane index = c*1024 + row-major 32x32 pixel
    o_ref  : VMEM (bt, 3072)  f32
    """
    P = 1024
    kd = kd_ref[...]
    ku = ku_ref[...]
    sod = rs_ref[:, 0:1]                                 # sigma / denom (bt, 1)

    def split_dot(v, w):
        # f32-accurate matmul at bf16 MXU rate: v = hi + lo (exact to ~2^-17
        # rel), the {0, 0.5} weight matrices are exactly representable in bf16.
        hi = v.astype(jnp.bfloat16)
        lo = (v - hi.astype(jnp.float32)).astype(jnp.bfloat16)
        return (jnp.dot(hi, w, preferred_element_type=jnp.float32)
                + jnp.dot(lo, w, preferred_element_type=jnp.float32))

    # downsample(x) = 2*AvgPool2d(2) per channel, as lane-dense MXU matmuls.
    xd = [split_dot(x_ref[:, c * P:(c + 1) * P], kd) for c in range(3)]   # 3x (bt,256)

    for o in range(3):
        # TODO(synk): subspace_score_model is an external NCSN++ U-Net
        # (mutils.create_model); replaced by a deterministic per-pixel 1x1-conv
        # surrogate (channel mix + bias + tanh), same as the previous version.
        mix = (w_ref[o, 0] * xd[0]
               + w_ref[o, 1] * xd[1]
               + w_ref[o, 2] * xd[2])                    # 9 scalar VPU FMAs
        s = jnp.tanh(rs_ref[:, 1 + o:2 + o] + mix)       # (bt, 256)

        # Fused gauss correction at half resolution (upsample is linear):
        #   out = up(s) - (sigma/denom)*(up(down(x)) - x)
        #       = up(s - (sigma/denom)*down(x)) + (sigma/denom)*x
        m = s - sod * xd[o]
        o_ref[:, o * P:(o + 1) * P] = (split_dot(m, ku)
                                       + sod * x_ref[:, o * P:(o + 1) * P])


def _choose_bt(B, cap=256):
    """Batch tile: multiple of 8, <= cap, and >=2 grid steps whenever B > 8."""
    if B >= 2 * cap:
        return cap
    bt = max(8, (B + 1) // 2)          # ~half the batch -> grid >= 2 steps
    bt = ((bt + 7) // 8) * 8           # round up to a sublane multiple
    return min(bt, cap)


def subspace_score_forward(x, time_cond, wsc, bsc, *, bt=None):
    """subVPSDE / subspace (t > t_boundary) branch of SubspaceScore.forward."""
    B, Cc, H, W = x.shape
    assert Cc == C and H == FULL_SIZE and W == FULL_SIZE and H // 2 == SUBSPACE_SIZE
    if bt is None:
        bt = _choose_bt(B)
    assert bt % 8 == 0
    G = -(-B // bt)                    # number of grid steps
    Bp = G * bt                        # padded batch (pad instead of shrinking bt)

    Ho = H // 2
    P = H * W                          # 1024 flattened full-res pixels
    Ps = Ho * Ho                       # 256 flattened half-res pixels

    # --- per-image scalar SDE glue, folded per-row (tiny, plain JAX) ----------
    t = time_cond.astype(jnp.float32) / 999.0
    Beta = 0.5 * t * t * (BETA_MAX - BETA_MIN) + t * BETA_MIN
    sigma = 1.0 - jnp.exp(-Beta)
    alpha = jnp.exp(-Beta / 2.0)
    std_tab = 2.0 * STDS[DATASET][SUBSPACE_SIZE]
    denom = (alpha * std_tab) ** 2 + sigma ** 2
    sod = sigma / denom                                   # no in-kernel divide

    wsc32 = wsc.astype(jnp.float32)
    wsum = jnp.sum(wsc32, axis=1)                         # (3,)
    bias = (bsc.astype(jnp.float32)[None, :] + 0.05 * t[:, None]
            + alpha[:, None] * wsum[None, :])             # alpha folded into bias
    rowscal = jnp.concatenate([sod[:, None], bias], axis=-1).astype(jnp.float32)  # (B, 4)

    # --- constant Kronecker resampling matrices (entries {0, 0.5}: bf16-exact) -
    d_np = np.zeros((Ho, H), np.float32)                  # 2x2 pooling matrix D
    d_np[np.arange(Ho), 2 * np.arange(Ho)] = 1.0
    d_np[np.arange(Ho), 2 * np.arange(Ho) + 1] = 1.0
    k_up = 0.5 * np.kron(d_np, d_np)                      # (256, 1024): up(m)   = m_flat @ KUp
    KUp = jnp.asarray(k_up, dtype=jnp.bfloat16)
    KDown = jnp.asarray(k_up.T, dtype=jnp.bfloat16)       # (1024, 256): down(x) = x_flat @ KDown

    x_flat = x.astype(jnp.float32).reshape(B, C * P)      # free, lane-dense reshape
    if Bp != B:
        x_flat = jnp.pad(x_flat, ((0, Bp - B), (0, 0)))
        rowscal = jnp.pad(rowscal, ((0, Bp - B), (0, 0)))

    grid_spec = pltpu.PrefetchScalarGridSpec(
        num_scalar_prefetch=0,
        grid=(G,),
        in_specs=[
            pl.BlockSpec(memory_space=pltpu.MemorySpace.SMEM),   # wsc (3,3) scalars
            pl.BlockSpec((bt, 4), lambda i: (i, 0)),             # per-image scalars
            pl.BlockSpec((P, Ps), lambda i: (0, 0)),             # KDown (resident)
            pl.BlockSpec((Ps, P), lambda i: (0, 0)),             # KUp   (resident)
            pl.BlockSpec((bt, C * P), lambda i: (i, 0)),         # x
        ],
        out_specs=pl.BlockSpec((bt, C * P), lambda i: (i, 0)),
    )
    out_flat = pl.pallas_call(
        _subspace_kernel,
        out_shape=jax.ShapeDtypeStruct((Bp, C * P), jnp.float32),
        grid_spec=grid_spec,
        compiler_params=pltpu.CompilerParams(
            dimension_semantics=("parallel",),            # >=2 steps feed both v7x TCs
            vmem_limit_bytes=32 * 1024 * 1024),
    )(wsc32, rowscal, KDown, KUp, x_flat)
    return out_flat[:B].reshape(B, C, H, W)


def _ref_forward(x, time_cond, wsc, bsc):
    """Pure-JAX reference of the same branch (for correctness checking)."""
    t = time_cond / 999.0
    Beta = 0.5 * t * t * (BETA_MAX - BETA_MIN) + t * BETA_MIN
    sigma = 1.0 - jnp.exp(-Beta)
    alpha = jnp.exp(-Beta / 2.0)
    std_tab = 2.0 * STDS[DATASET][SUBSPACE_SIZE]
    denom = (alpha * std_tab) ** 2 + sigma ** 2

    def down(v):  # 2 * AvgPool2d(2)
        B_, C_, H_, W_ = v.shape
        return 0.5 * v.reshape(B_, C_, H_ // 2, 2, W_ // 2, 2).sum(axis=(3, 5))

    def up(v):    # nearest-neighbor x2 / 2
        return jnp.repeat(jnp.repeat(v, 2, axis=2), 2, axis=3) / 2.0

    xd = down(x)
    xs = xd + alpha[:, None, None, None]
    s = jnp.tanh(jnp.einsum('oc,bchw->bohw', wsc, xs)
                 + bsc[None, :, None, None] + 0.05 * t[:, None, None, None])
    score = up(s)
    gauss = (up(xd) - x) / denom[:, None, None, None]
    return score - gauss * sigma[:, None, None, None]


if __name__ == "__main__":
    key = jax.random.PRNGKey(0)
    kx, kw, kb = jax.random.split(key, 3)
    B = 32
    x = jax.random.normal(kx, (B, C, FULL_SIZE, FULL_SIZE), dtype=jnp.float32)
    time_cond = jnp.full((B,), 800.0, dtype=jnp.float32)   # t = 800/999 > t_boundary

    # Deterministic surrogate score-model parameters.
    wsc = 0.5 * jax.random.normal(kw, (C, C), dtype=jnp.float32)
    bsc = 0.1 * jax.random.normal(kb, (C,), dtype=jnp.float32)

    # TODO(synk): the full_score_model early-exit branch (t <= t_boundary), the
    # 'vesde' branch and the subspace_size == 8 (times=2) path are not
    # implemented (they depend on the external black-box score models).
    assert float(time_cond[0]) / 999.0 > T_BOUNDARY, \
        "only the subspace (t > t_boundary) subVPSDE branch is implemented"

    # Default tiling: bt=16 -> grid=(2,) (exercises the parallel, padded-batch path).
    out = jax.block_until_ready(subspace_score_forward(x, time_cond, wsc, bsc))
    ref = _ref_forward(x, time_cond, wsc, bsc)
    np.testing.assert_allclose(np.asarray(out), np.asarray(ref), rtol=1e-3, atol=1e-3)
    print("KERNEL_OK")
</pallas_src>

<mosaic_0001>
module attributes {stable_mosaic.version = 11 : i64} {
  func.func @_subspace_kernel(%arg0: i32, %arg1: memref<3x3xf32, #tpu.memory_space<smem>>, %arg2: memref<16x4xf32, #tpu.memory_space<vmem>>, %arg3: memref<1024x256xbf16, #tpu.memory_space<vmem>>, %arg4: memref<256x1024xbf16, #tpu.memory_space<vmem>>, %arg5: memref<16x3072xf32, #tpu.memory_space<vmem>>, %arg6: memref<16x3072xf32, #tpu.memory_space<vmem>>) attributes {dimension_semantics = [#tpu.dimension_semantics<parallel>], iteration_bounds = array<i64: 2>, scalar_prefetch = 0 : i64, scratch_operands = 0 : i64, tpu.core_type = #tpu.core_type<tc>, window_params = [{transform_indices = @transform_0, window_bounds = array<i64: 3, 3>}, {transform_indices = @transform_1, window_bounds = array<i64: 16, 4>}, {pipeline_mode = #tpu.pipeline_mode<synchronous>, transform_indices = @transform_2, window_bounds = array<i64: 1024, 256>}, {pipeline_mode = #tpu.pipeline_mode<synchronous>, transform_indices = @transform_3, window_bounds = array<i64: 256, 1024>}, {transform_indices = @transform_4, window_bounds = array<i64: 16, 3072>}, {transform_indices = @transform_5, window_bounds = array<i64: 16, 3072>}]} {
    %c0 = arith.constant 0 : index
    %c0_0 = arith.constant 0 : index
    %0 = vector.load %arg3[%c0, %c0_0] : memref<1024x256xbf16, #tpu.memory_space<vmem>>, vector<1024x256xbf16>
    %c0_1 = arith.constant 0 : index
    %c0_2 = arith.constant 0 : index
    %1 = vector.load %arg4[%c0_1, %c0_2] : memref<256x1024xbf16, #tpu.memory_space<vmem>>, vector<256x1024xbf16>
    %c0_3 = arith.constant 0 : index
    %c0_4 = arith.constant 0 : index
    %2 = vector.load %arg2[%c0_3, %c0_4] : memref<16x4xf32, #tpu.memory_space<vmem>>, vector<16x1xf32>
    %c0_5 = arith.constant 0 : index
    %c0_6 = arith.constant 0 : index
    %3 = vector.load %arg5[%c0_5, %c0_6] : memref<16x3072xf32, #tpu.memory_space<vmem>>, vector<16x1024xf32>
    %4 = arith.truncf %3 : vector<16x1024xf32> to vector<16x1024xbf16>
    %5 = arith.extf %4 : vector<16x1024xbf16> to vector<16x1024xf32>
    %6 = arith.subf %3, %5 : vector<16x1024xf32>
    %7 = arith.truncf %6 : vector<16x1024xf32> to vector<16x1024xbf16>
    %cst = arith.constant dense<0.000000e+00> : vector<16x256xf32>
    %8 = tpu.matmul %4, %0, %cst {dimension_numbers = #tpu.dot_dimension_numbers<[1], [0], [0], [1], [0, 0, 1, 1], [], []>} : vector<16x1024xbf16>, vector<1024x256xbf16>, vector<16x256xf32> -> vector<16x256xf32>
    %cst_7 = arith.constant dense<0.000000e+00> : vector<16x256xf32>
    %9 = tpu.matmul %7, %0, %cst_7 {dimension_numbers = #tpu.dot_dimension_numbers<[1], [0], [0], [1], [0, 0, 1, 1], [], []>} : vector<16x1024xbf16>, vector<1024x256xbf16>, vector<16x256xf32> -> vector<16x256xf32>
    %10 = arith.addf %8, %9 : vector<16x256xf32>
    %c0_8 = arith.constant 0 : index
    %c1024 = arith.constant 1024 : index
    %11 = vector.load %arg5[%c0_8, %c1024] : memref<16x3072xf32, #tpu.memory_space<vmem>>, vector<16x1024xf32>
    %12 = arith.truncf %11 : vector<16x1024xf32> to vector<16x1024xbf16>
    %13 = arith.extf %12 : vector<16x1024xbf16> to vector<16x1024xf32>
    %14 = arith.subf %11, %13 : vector<16x1024xf32>
    %15 = arith.truncf %14 : vector<16x1024xf32> to vector<16x1024xbf16>
    %cst_9 = arith.constant dense<0.000000e+00> : vector<16x256xf32>
    %16 = tpu.matmul %12, %0, %cst_9 {dimension_numbers = #tpu.dot_dimension_numbers<[1], [0], [0], [1], [0, 0, 1, 1], [], []>} : vector<16x1024xbf16>, vector<1024x256xbf16>, vector<16x256xf32> -> vector<16x256xf32>
    %cst_10 = arith.constant dense<0.000000e+00> : vector<16x256xf32>
    %17 = tpu.matmul %15, %0, %cst_10 {dimension_numbers = #tpu.dot_dimension_numbers<[1], [0], [0], [1], [0, 0, 1, 1], [], []>} : vector<16x1024xbf16>, vector<1024x256xbf16>, vector<16x256xf32> -> vector<16x256xf32>
    %18 = arith.addf %16, %17 : vector<16x256xf32>
    %c0_11 = arith.constant 0 : index
    %c2048 = arith.constant 2048 : index
    %19 = vector.load %arg5[%c0_11, %c2048] : memref<16x3072xf32, #tpu.memory_space<vmem>>, vector<16x1024xf32>
    %20 = arith.truncf %19 : vector<16x1024xf32> to vector<16x1024xbf16>
    %21 = arith.extf %20 : vector<16x1024xbf16> to vector<16x1024xf32>
    %22 = arith.subf %19, %21 : vector<16x1024xf32>
    %23 = arith.truncf %22 : vector<16x1024xf32> to vector<16x1024xbf16>
    %cst_12 = arith.constant dense<0.000000e+00> : vector<16x256xf32>
    %24 = tpu.matmul %20, %0, %cst_12 {dimension_numbers = #tpu.dot_dimension_numbers<[1], [0], [0], [1], [0, 0, 1, 1], [], []>} : vector<16x1024xbf16>, vector<1024x256xbf16>, vector<16x256xf32> -> vector<16x256xf32>
    %cst_13 = arith.constant dense<0.000000e+00> : vector<16x256xf32>
    %25 = tpu.matmul %23, %0, %cst_13 {dimension_numbers = #tpu.dot_dimension_numbers<[1], [0], [0], [1], [0, 0, 1, 1], [], []>} : vector<16x1024xbf16>, vector<1024x256xbf16>, vector<16x256xf32> -> vector<16x256xf32>
    %26 = arith.addf %24, %25 : vector<16x256xf32>
    %c0_14 = arith.constant 0 : index
    %c0_15 = arith.constant 0 : index
    %27 = memref.load %arg1[%c0_14, %c0_15] : memref<3x3xf32, #tpu.memory_space<smem>>
    %28 = vector.broadcast %27 : f32 to vector<16x256xf32>
    %29 = arith.mulf %28, %10 : vector<16x256xf32>
    %c0_16 = arith.constant 0 : index
    %c1 = arith.constant 1 : index
    %30 = memref.load %arg1[%c0_16, %c1] : memref<3x3xf32, #tpu.memory_space<smem>>
    %31 = vector.broadcast %30 : f32 to vector<16x256xf32>
    %32 = arith.mulf %31, %18 : vector<16x256xf32>
    %33 = arith.addf %29, %32 : vector<16x256xf32>
    %c0_17 = arith.constant 0 : index
    %c2 = arith.constant 2 : index
    %34 = memref.load %arg1[%c0_17, %c2] : memref<3x3xf32, #tpu.memory_space<smem>>
    %35 = vector.broadcast %34 : f32 to vector<16x256xf32>
    %36 = arith.mulf %35, %26 : vector<16x256xf32>
    %37 = arith.addf %33, %36 : vector<16x256xf32>
    %c0_18 = arith.constant 0 : index
    %c1_19 = arith.constant 1 : index
    %38 = vector.load %arg2[%c0_18, %c1_19] : memref<16x4xf32, #tpu.memory_space<vmem>>, vector<16x1xf32>
    %39 = vector.broadcast %38 : vector<16x1xf32> to vector<16x256xf32>
    %40 = arith.addf %39, %37 : vector<16x256xf32>
    %41 = math.tanh %40 : vector<16x256xf32>
    %42 = vector.broadcast %2 : vector<16x1xf32> to vector<16x256xf32>
    %43 = arith.mulf %42, %10 : vector<16x256xf32>
    %44 = arith.subf %41, %43 : vector<16x256xf32>
    %45 = arith.truncf %44 : vector<16x256xf32> to vector<16x256xbf16>
    %46 = arith.extf %45 : vector<16x256xbf16> to vector<16x256xf32>
    %47 = arith.subf %44, %46 : vector<16x256xf32>
    %48 = arith.truncf %47 : vector<16x256xf32> to vector<16x256xbf16>
    %cst_20 = arith.constant dense<0.000000e+00> : vector<16x1024xf32>
    %49 = tpu.matmul %45, %1, %cst_20 {dimension_numbers = #tpu.dot_dimension_numbers<[1], [0], [0], [1], [0, 0, 1, 1], [], []>} : vector<16x256xbf16>, vector<256x1024xbf16>, vector<16x1024xf32> -> vector<16x1024xf32>
    %cst_21 = arith.constant dense<0.000000e+00> : vector<16x1024xf32>
    %50 = tpu.matmul %48, %1, %cst_21 {dimension_numbers = #tpu.dot_dimension_numbers<[1], [0], [0], [1], [0, 0, 1, 1], [], []>} : vector<16x256xbf16>, vector<256x1024xbf16>, vector<16x1024xf32> -> vector<16x1024xf32>
    %51 = arith.addf %49, %50 : vector<16x1024xf32>
    %c0_22 = arith.constant 0 : index
    %c0_23 = arith.constant 0 : index
    %52 = vector.load %arg5[%c0_22, %c0_23] : memref<16x3072xf32, #tpu.memory_space<vmem>>, vector<16x1024xf32>
    %53 = vector.broadcast %2 : vector<16x1xf32> to vector<16x1024xf32>
    %54 = arith.mulf %53, %52 : vector<16x1024xf32>
    %55 = arith.addf %51, %54 : vector<16x1024xf32>
    %c0_24 = arith.constant 0 : index
    %c0_25 = arith.constant 0 : index
    %56 = vector.load %arg6[%c0_24, %c0_25] : memref<16x3072xf32, #tpu.memory_space<vmem>>, vector<16x1024xf32>
    tpu.vector_store %arg6[%c0_24, %c0_25], %55 {strides = array<i32>} : memref<16x3072xf32, #tpu.memory_space<vmem>>, vector<16x1024xf32>,
    %c1_26 = arith.constant 1 : index
    %c0_27 = arith.constant 0 : index
    %57 = memref.load %arg1[%c1_26, %c0_27] : memref<3x3xf32, #tpu.memory_space<smem>>
    %58 = vector.broadcast %57 : f32 to vector<16x256xf32>
    %59 = arith.mulf %58, %10 : vector<16x256xf32>
    %c1_28 = arith.constant 1 : index
    %c1_29 = arith.constant 1 : index
    %60 = memref.load %arg1[%c1_28, %c1_29] : memref<3x3xf32, #tpu.memory_space<smem>>
    %61 = vector.broadcast %60 : f32 to vector<16x256xf32>
    %62 = arith.mulf %61, %18 : vector<16x256xf32>
    %63 = arith.addf %59, %62 : vector<16x256xf32>
    %c1_30 = arith.constant 1 : index
    %c2_31 = arith.constant 2 : index
    %64 = memref.load %arg1[%c1_30, %c2_31] : memref<3x3xf32, #tpu.memory_space<smem>>
    %65 = vector.broadcast %64 : f32 to vector<16x256xf32>
    %66 = arith.mulf %65, %26 : vector<16x256xf32>
    %67 = arith.addf %63, %66 : vector<16x256xf32>
    %c0_32 = arith.constant 0 : index
    %c2_33 = arith.constant 2 : index
    %68 = vector.load %arg2[%c0_32, %c2_33] : memref<16x4xf32, #tpu.memory_space<vmem>>, vector<16x1xf32>
    %69 = vector.broadcast %68 : vector<16x1xf32> to vector<16x256xf32>
    %70 = arith.addf %69, %67 : vector<16x256xf32>
    %71 = math.tanh %70 : vector<16x256xf32>
    %72 = vector.broadcast %2 : vector<16x1xf32> to vector<16x256xf32>
    %73 = arith.mulf %72, %18 : vector<16x256xf32>
    %74 = arith.subf %71, %73 : vector<16x256xf32>
    %75 = arith.truncf %74 : vector<16x256xf32> to vector<16x256xbf16>
    %76 = arith.extf %75 : vector<16x256xbf16> to vector<16x256xf32>
    %77 = arith.subf %74, %76 : vector<16x256xf32>
    %78 = arith.truncf %77 : vector<16x256xf32> to vector<16x256xbf16>
    %cst_34 = arith.constant dense<0.000000e+00> : vector<16x1024xf32>
    %79 = tpu.matmul %75, %1, %cst_34 {dimension_numbers = #tpu.dot_dimension_numbers<[1], [0], [0], [1], [0, 0, 1, 1], [], []>} : vector<16x256xbf16>, vector<256x1024xbf16>, vector<16x1024xf32> -> vector<16x1024xf32>
    %cst_35 = arith.constant dense<0.000000e+00> : vector<16x1024xf32>
    %80 = tpu.matmul %78, %1, %cst_35 {dimension_numbers = #tpu.dot_dimension_numbers<[1], [0], [0], [1], [0, 0, 1, 1], [], []>} : vector<16x256xbf16>, vector<256x1024xbf16>, vector<16x1024xf32> -> vector<16x1024xf32>
    %81 = arith.addf %79, %80 : vector<16x1024xf32>
    %c0_36 = arith.constant 0 : index
    %c1024_37 = arith.constant 1024 : index
    %82 = vector.load %arg5[%c0_36, %c1024_37] : memref<16x3072xf32, #tpu.memory_space<vmem>>, vector<16x1024xf32>
    %83 = vector.broadcast %2 : vector<16x1xf32> to vector<16x1024xf32>
    %84 = arith.mulf %83, %82 : vector<16x1024xf32>
    %85 = arith.addf %81, %84 : vector<16x1024xf32>
    %c0_38 = arith.constant 0 : index
    %c1024_39 = arith.constant 1024 : index
    %86 = vector.load %arg6[%c0_38, %c1024_39] : memref<16x3072xf32, #tpu.memory_space<vmem>>, vector<16x1024xf32>
    tpu.vector_store %arg6[%c0_38, %c1024_39], %85 {strides = array<i32>} : memref<16x3072xf32, #tpu.memory_space<vmem>>, vector<16x1024xf32>,
    %c2_40 = arith.constant 2 : index
    %c0_41 = arith.constant 0 : index
    %87 = memref.load %arg1[%c2_40, %c0_41] : memref<3x3xf32, #tpu.memory_space<smem>>
    %88 = vector.broadcast %87 : f32 to vector<16x256xf32>
    %89 = arith.mulf %88, %10 : vector<16x256xf32>
    %c2_42 = arith.constant 2 : index
    %c1_43 = arith.constant 1 : index
    %90 = memref.load %arg1[%c2_42, %c1_43] : memref<3x3xf32, #tpu.memory_space<smem>>
    %91 = vector.broadcast %90 : f32 to vector<16x256xf32>
    %92 = arith.mulf %91, %18 : vector<16x256xf32>
    %93 = arith.addf %89, %92 : vector<16x256xf32>
    %c2_44 = arith.constant 2 : index
    %c2_45 = arith.constant 2 : index
    %94 = memref.load %arg1[%c2_44, %c2_45] : memref<3x3xf32, #tpu.memory_space<smem>>
    %95 = vector.broadcast %94 : f32 to vector<16x256xf32>
    %96 = arith.mulf %95, %26 : vector<16x256xf32>
    %97 = arith.addf %93, %96 : vector<16x256xf32>
    %c0_46 = arith.constant 0 : index
    %c3 = arith.constant 3 : index
    %98 = vector.load %arg2[%c0_46, %c3] : memref<16x4xf32, #tpu.memory_space<vmem>>, vector<16x1xf32>
    %99 = vector.broadcast %98 : vector<16x1xf32> to vector<16x256xf32>
    %100 = arith.addf %99, %97 : vector<16x256xf32>
    %101 = math.tanh %100 : vector<16x256xf32>
    %102 = vector.broadcast %2 : vector<16x1xf32> to vector<16x256xf32>
    %103 = arith.mulf %102, %26 : vector<16x256xf32>
    %104 = arith.subf %101, %103 : vector<16x256xf32>
    %105 = arith.truncf %104 : vector<16x256xf32> to vector<16x256xbf16>
    %106 = arith.extf %105 : vector<16x256xbf16> to vector<16x256xf32>
    %107 = arith.subf %104, %106 : vector<16x256xf32>
    %108 = arith.truncf %107 : vector<16x256xf32> to vector<16x256xbf16>
    %cst_47 = arith.constant dense<0.000000e+00> : vector<16x1024xf32>
    %109 = tpu.matmul %105, %1, %cst_47 {dimension_numbers = #tpu.dot_dimension_numbers<[1], [0], [0], [1], [0, 0, 1, 1], [], []>} : vector<16x256xbf16>, vector<256x1024xbf16>, vector<16x1024xf32> -> vector<16x1024xf32>
    %cst_48 = arith.constant dense<0.000000e+00> : vector<16x1024xf32>
    %110 = tpu.matmul %108, %1, %cst_48 {dimension_numbers = #tpu.dot_dimension_numbers<[1], [0], [0], [1], [0, 0, 1, 1], [], []>} : vector<16x256xbf16>, vector<256x1024xbf16>, vector<16x1024xf32> -> vector<16x1024xf32>
    %111 = arith.addf %109, %110 : vector<16x1024xf32>
    %c0_49 = arith.constant 0 : index
    %c2048_50 = arith.constant 2048 : index
    %112 = vector.load %arg5[%c0_49, %c2048_50] : memref<16x3072xf32, #tpu.memory_space<vmem>>, vector<16x1024xf32>
    %113 = vector.broadcast %2 : vector<16x1xf32> to vector<16x1024xf32>
    %114 = arith.mulf %113, %112 : vector<16x1024xf32>
    %115 = arith.addf %111, %114 : vector<16x1024xf32>
    %c0_51 = arith.constant 0 : index
    %c2048_52 = arith.constant 2048 : index
    %116 = vector.load %arg6[%c0_51, %c2048_52] : memref<16x3072xf32, #tpu.memory_space<vmem>>, vector<16x1024xf32>
    tpu.vector_store %arg6[%c0_51, %c2048_52], %115 {strides = array<i32>} : memref<16x3072xf32, #tpu.memory_space<vmem>>, vector<16x1024xf32>,
    return
  }
  func.func @transform_0(%arg0: i32) -> (i32, i32) {
    %c0_i32 = arith.constant 0 : i32
    %c0_i32_0 = arith.constant 0 : i32
    %c0_i32_1 = arith.constant 0 : i32
    return %c0_i32, %c0_i32_0 : i32, i32
  }
  func.func @transform_1(%arg0: i32) -> (i32, i32) {
    %c0_i32 = arith.constant 0 : i32
    %c0_i32_0 = arith.constant 0 : i32
    return %arg0, %c0_i32 : i32, i32
  }
  func.func @transform_2(%arg0: i32) -> (i32, i32) {
    %c0_i32 = arith.constant 0 : i32
    %c0_i32_0 = arith.constant 0 : i32
    %c0_i32_1 = arith.constant 0 : i32
    return %c0_i32, %c0_i32_0 : i32, i32
  }
  func.func @transform_3(%arg0: i32) -> (i32, i32) {
    %c0_i32 = arith.constant 0 : i32
    %c0_i32_0 = arith.constant 0 : i32
    %c0_i32_1 = arith.constant 0 : i32
    return %c0_i32, %c0_i32_0 : i32, i32
  }
  func.func @transform_4(%arg0: i32) -> (i32, i32) {
    %c0_i32 = arith.constant 0 : i32
    %c0_i32_0 = arith.constant 0 : i32
    return %arg0, %c0_i32 : i32, i32
  }
  func.func @transform_5(%arg0: i32) -> (i32, i32) {
    %c0_i32 = arith.constant 0 : i32
    %c0_i32_0 = arith.constant 0 : i32
    return %arg0, %c0_i32 : i32, i32
  }
}

</mosaic_0001>

<bundles_post_ra>
// kernel: tpu_custom_call.1
= control target key start
LH: loop header
LB: loop body
LE: loop exit
PB: predicated region body
PF: predicated region fallthrough
CT: control target
= control target key end

     0   :  { %s10648_s0 = inlined_call_operand.vmem [shape: f32[3,3], index: 0, kind: input, shape index: {}]   ;;  %s10649_s1 = inlined_call_operand.vmem [shape: f32[32,4], index: 1, kind: input, shape index: {}]   ;;  %s10650_s2 = inlined_call_operand.hbm [shape: bf16[1024,256], index: 2, kind: input, shape index: {}]   ;;  %s10651_s3 = inlined_call_operand.hbm [shape: bf16[256,1024], index: 3, kind: input, shape index: {}]   ;;  %s10652_s4 = inlined_call_operand.hbm [shape: f32[32,3072], index: 4, kind: input, shape index: {}]   ;;  %s10653_s5 = inlined_call_operand.hbm [shape: f32[32,3072], index: 5, kind: output, shape index: {}]  }
   0x1   :  { %11316 = sst [smem:[#allocation168_spill]] %s10648_s0 }
   0x2   :  { %10 = vsyncpa [#allocation5], 0 }
   0x3   :  { %11 = vsyncpa [#allocation3], 0 }
   0x4   :  { %12 = vsyncpa [#allocation8], 0 }
   0x5   :  { %13 = vsyncpa [#allocation4], 0 }
   0x6   :  { %15 = vsyncpa [#allocation4 + $0x1], 0  ;;  %s7074_s18 = smov 0   ;;  %s7076_s19 = smov 0  }
   0x7   :  { %s7078_s20 = smov 0   ;;  %s7080_s21 = smov 0  }
   0x8 LB: > { %s7095_s22 = sadd.s32 4294967295, %s7027_s21   ;;  %s5396_s23 = sadd.s32 4294967294, %s7027_s21   ;;  %s7027_s21 = sphi %s7080_s21, %s12651_s21   ;;  %s7023_s20 = sphi %s7078_s20, %s12650_s20   ;;  %s7019_s19 = sphi %s7076_s19, %s12649_s19   ;;  %s7015_s18 = sphi %s7074_s18, %s12648_s18  }
   0x9   : > { %p130_p0 = scmp.ne.s32.totalorder %s7019_s19, %s7015_s18  ;;  %p131_p1 = scmp.eq.s32.totalorder %s7095_s22, 0 }
   0xa   : > { %p154_p2 = scmp.eq.s32.totalorder %s7095_s22, 1  ;;  %p160_p3 = scmp.eq.s32.totalorder %s5396_s23, 1 }
   0xb   : > { %p7104_p4 = por %p131_p1, %p130_p0  ;;  %p5397_p5 = scmp.ge.s32.totalorder %s7027_s21, 1 }
   0xc   : > { %p7109_p6 = por %p160_p3, %p130_p0  ;;  %p167_p7 = scmp.lt.s32.totalorder %s7027_s21, 3 }
   0xd   : > { %s188_s28 = sshll.u32 %s10650_s2, 4  ;;  %s7029_s30 = smov [#allocation6]   ;;  %s189_s28 = int_to_ptr.hbm [resolvable:$true] %s188_s28 }
   0xe   : > { %p7117_p8 = pnand %p5397_p5, %p167_p7  ;;  %s190_s6 = sshll.u32 %s7029_s30, 4  ;;  %s191_s6 = int_to_ptr.vmem [resolvable:$true] %s190_s6 }
   0xf   : > { %s11321_s0 = sld [smem:[#allocation168_spill]]  ;;  %s7030_s11 = smov 128  }
  0x10   : > { %p6724_p9 = pneg %p7117_p8  ;;  %s7031_s12 = smov 8  }
  0x11   : > { %s7032_s13 = smov [#allocation2]   ;;  %s202_s16 = sshll.u32 %s10651_s3, 4  ;;  %s203_s16 = int_to_ptr.hbm [resolvable:$true] %s202_s16 }
  0x12   : > { %p7125_p10 = pnand %p6724_p9, %p131_p1  ;;  %s7033_s17 = smov [#allocation7]  }
  0x13   : > { %s204_s23 = sshll.u32 %s7033_s17, 4  ;;  %s7034_s26 = smov 512   ;;  %s205_s23 = int_to_ptr.vmem [resolvable:$true] %s204_s23 }
  0x14   : > { %6730 = dma.hbm_to_vmem [thread:$0]  (!%p7125_p10), %s189_s28, 16384, %s191_s6, [#allocation3], %s7030_s11, %s7030_s11, %s7031_s12  }
  0x15   : > { %s179_s10 = sshll.u32 %s11321_s0, 4  ;;  %s7035_s27 = smov 32   ;;  %s180_s10 = int_to_ptr.vmem [resolvable:$true] %s179_s10 }
  0x16   : > { %6727 = dma.vmem_to_smem (!%p7125_p10), %s180_s10, 64, %s7032_s13, [#allocation5]  }
  0x17   : > { %6733 = dma.hbm_to_vmem [thread:$0]  (!%p7125_p10), %s203_s16, 16384, %s205_s23, [#allocation8], %s7034_s26, %s7034_s26, %s7035_s27  }
  0x18   : > { %s7143_s28 = sadd.s32 1, %s7027_s21   ;;  %s117_s6 = sadd.s32 1, %s7023_s20 }
  0x19   : > { %s114_s30 = ssub.s32 %s7027_s21, %s7143_s28  ;;  %p124_p13 = scmp.ne.s32.totalorder %s7023_s20, %s7019_s19 }
  0x1a   : > { %p115_p12 = scmp.eq.s32.totalorder %s114_s30, 0  ;;  %p125_p0 = scmp.eq.s32.totalorder %s7027_s21, 0 }
  0x1b   : > { %p6745_p3 = scmp.lt.s32.totalorder %s7027_s21, 2  ;;  %p7157_p7 = por %p154_p2, %p124_p13 }
  0x1c   : > { %s7153_s8 = scalar_select %p115_p12, %s7023_s20, %s117_s6  }
  0x1d   : > { %p126_p5 = por %p125_p0, %p124_p13  ;;  %s227_s10 = sand.u32 1, %s7027_s21  }
  0x1e   : > { %s229_s7 = sand.u32 1, %s7023_s20   ;;  %s6705_s12 = smul.u32 384, %s7027_s21 }
  0x1f   : > { %s6704_s11 = smul.u32 384, %s229_s7  ;;  %p7164_p9 = pnand %p6745_p3, %p126_p5 }
  0x20   : > { %s237_s16 = scalar_lea.hbm %s10652_s4, %s6705_s12  ;;  %s228_s27 = scalar_lea.sflag [#allocation3], %s227_s10 }
  0x21   : > { %s231_s17 = scalar_lea.vmem [#allocation9], %s6704_s11  ;;  %s238_s26 = sshll.u32 %s237_s16, 4  ;;  %s239_s26 = int_to_ptr.hbm [resolvable:$true] %s238_s26 }
  0x22   : > { %s240_s23 = sshll.u32 %s231_s17, 4  ;;  %s6919_s30 = sshra.s32 %s239_s26, 4  ;;  %s241_s23 = int_to_ptr.vmem [resolvable:$true] %s240_s23  ;;  %s6920_s30 = int_to_ptr.hbm [resolvable:$true] %s6919_s30 }
  0x23   : > { %s6921_s6 = scalar_lea.hbm %s6920_s30, 384  ;;  %p6923_p10 = pneg %p7164_p9 }
  0x24   : > { %p6922_p2 = scmp.ne.s32.totalorder %s6920_s30, %s6921_s6  ;;  %s6926_s14 = scalar_lea.hbm %s10652_s4, 768 }
  0x25   : > { %p6927_p0 = scmp.lt.s32.totalorder %s6920_s30, %s10652_s4  ;;  %p6928_p3 = scmp.lt.s32.totalorder %s6926_s14, %s6921_s6 }
  0x26   : > { %p6924_p12 = pnand %p6923_p10, %p6922_p2 }
  0x27   : > { %p6929_p5 = por %p6928_p3, %p6927_p0 }
  0x28   : > { %p6925_p13 = pneg %p6924_p12 }
  0x2a   : > { %p6930_p11 = pnand %p6929_p5, %p6925_p13 }
  0x2c   : > { %6933 = shalt.err (!%p6930_p11)
}
  0x2d   : > { %s7036_s10 = smov 3072   ;;  %s7037_s11 = smov 192  }
  0x2e   : > { %6737 = dma.hbm_to_vmem [thread:$0]  (!%p7164_p9), %s239_s26, 6144, %s241_s23, %s228_s27, %s7036_s10, %s7036_s10, %s7037_s11  }
  0x2f   : > { %252 = sbr.rel (%p7117_p8) target bundleno = 1860 (0x744), region = 40 }
  0x34   : > { %6994 = dma.done.wait (%p131_p1), [#allocation5], 64  }
  0x35   : > { %6996 = vsyncadd (%p131_p1), [#allocation5], 4294967232 }
  0x36   : > { %6998 = dma.done.wait (%p131_p1), [#allocation3], 16384  }
  0x37   : > { %7000 = vsyncadd (%p131_p1), [#allocation3], 4294950912 }
  0x38   : > { %7002 = dma.done.wait (%p131_p1), [#allocation8], 16384  }
  0x39   : > { %7004 = vsyncadd (%p131_p1), [#allocation8], 4294950912  ;;  %s269_s0 = sand.u32 1, %s7095_s22   ;;  %s271_s29 = sand.u32 1, %s7019_s19  }
  0x3a   : > { %s7199_s13 = smul.u32 384, %s271_s29  ;;  %s270_s16 = scalar_lea.sflag [#allocation3], %s269_s0 }
  0x3c   : > { %s7202_s17 = scalar_lea.vmem [#allocation9], %s7199_s13 }
  0x3d   : > { %7006 = dma.done.wait (%p7104_p4), %s270_s16, 6144  }
  0x3e   : > { %7008 = vsyncadd (%p7104_p4), %s270_s16, 4294961152 }
  0x3f   : > { %279 = sfence }
  0x40   : > { %v5469_v0 = vld [vmem:[#allocation6 + $0x70] sm:$0xf]  ;;  %v6463_v1 = vld [vmem:[#allocation6 + $0x74] sm:$0xf0]  ;;  %v5461_v11 = vld [vmem:[#allocation6 + $0x60] sm:$0xf] }
  0x41   : > { %v5533_v2 = vld [vmem:[#allocation6 + $0xf0] sm:$0xf]  ;;  %v7208_v3 = vor.u32 %v6463_v1, %v5469_v0  ;;  %v6479_v4 = vld [vmem:[#allocation6 + $0xf4] sm:$0xf0]  ;;  %v6461_v13 = vld [vmem:[#allocation6 + $0x64] sm:$0xf0] }
  0x42   : > { %v5597_v5 = vld [vmem:[#allocation6 + $0x170] sm:$0xf]  ;;  %v6495_v6 = vld [vmem:[#allocation6 + $0x174] sm:$0xf0]  ;;  %v7210_v7 = vor.u32 %v6479_v4, %v5533_v2  ;;  %v5525_v14 = vld [vmem:[#allocation6 + $0xe0] sm:$0xf]  ;;  %v7219_v16 = vor.u32 %v6461_v13, %v5461_v11 }
  0x43   : > { %11324 = vst [vmem:[#allocation16_spill] sm:$0xff] %v7208_v3  ;;  %v7212_v8 = vor.u32 %v6495_v6, %v5597_v5  ;;  %v5661_v9 = vld [vmem:[#allocation6 + $0x1f0] sm:$0xf]  ;;  %v6511_v10 = vld [vmem:[#allocation6 + $0x1f4] sm:$0xf0]  ;;  %1277 = vmatpush.bf16.msra.mxu0 %v7208_v3  ;;  %s5409_s24 = sshll.u32 %s7095_s22, 1 }
  0x44   : > { %11325 = vst [vmem:[#allocation17_spill] sm:$0xff] %v7210_v7  ;;  %v7215_v12 = vor.u32 %v6511_v10, %v5661_v9  ;;  %v6477_v15 = vld [vmem:[#allocation6 + $0xe4] sm:$0xf0]  ;;  %1291 = vmatpush.bf16.msra.mxu1 %v7210_v7  ;;  %v5589_v18 = vld [vmem:[#allocation6 + $0x160] sm:$0xf]  ;;  %p308_p1 = scmp.lt.s32.totalorder %s5409_s24, 3 }
  0x45   : > { %11326 = vst [vmem:[#allocation18_spill] sm:$0xff] %v7212_v8  ;;  %1305 = vmatpush.bf16.msra.mxu2 %v7212_v8  ;;  %v7221_v17 = vor.u32 %v6477_v15, %v5525_v14  ;;  %v6493_v19 = vld [vmem:[#allocation6 + $0x164] sm:$0xf0]  ;;  %v5653_v20 = vld [vmem:[#allocation6 + $0x1e0] sm:$0xf]  ;;  %s8511_s6 = sld [smem:[#allocation2]] }
  0x46   : > { %11327 = vst [vmem:[#allocation19_spill] sm:$0xff] %v7215_v12  ;;  %1319 = vmatpush.bf16.msra.mxu3 %v7215_v12  ;;  %v7224_v21 = vor.u32 %v6493_v19, %v5589_v18  ;;  %v6509_v22 = vld [vmem:[#allocation6 + $0x1e4] sm:$0xf0]  ;;  %v5453_v23 = vld [vmem:[#allocation6 + $0x50] sm:$0xf]  ;;  %s12653_s24 = smov (!%p308_p1, %s5409_s24), 3 }
  0x47   : > { %11328 = vst [vmem:[#allocation20_spill] sm:$0xff] %v7219_v16  ;;  %v6459_v24 = vld [vmem:[#allocation6 + $0x54] sm:$0xf0]  ;;  %v7226_v25 = vor.u32 %v6509_v22, %v5653_v20  ;;  %v5517_v26 = vld [vmem:[#allocation6 + $0xd0] sm:$0xf]  ;;  %1278 = vmatpush.bf16.msra.mxu0 %v7219_v16  ;;  %s5410_s23 = sshll.u32 %s12653_s24, 3 }
  0x48   : > { %11329 = vst [vmem:[#allocation21_spill] sm:$0xff] %v7221_v17  ;;  %v6475_v27 = vld [vmem:[#allocation6 + $0xd4] sm:$0xf0]  ;;  %v5581_v28 = vld [vmem:[#allocation6 + $0x150] sm:$0xf]  ;;  %v7229_v29 = vor.u32 %v6459_v24, %v5453_v23  ;;  %1292 = vmatpush.bf16.msra.mxu1 %v7221_v17  ;;  %s7751_s30 = scalar_lea.vmem %s10649_s1, %s5410_s23  ;;  %s8515_s7 = sld [smem:[#allocation2 + $0x80]] }
  0x49   : > { %11330 = vst [vmem:[#allocation22_spill] sm:$0xff] %v7224_v21  ;;  %v6491_v30 = vld [vmem:[#allocation6 + $0x154] sm:$0xf0]  ;;  %v5645_v31 = vld [vmem:[#allocation6 + $0x1d0] sm:$0xf]  ;;  %1306 = vmatpush.bf16.msra.mxu2 %v7224_v21  ;;  %v7233_v33 = vor.u32 %v6475_v27, %v5517_v26  ;;  %s8520_s14 = sld [smem:[#allocation2 + $0x100]] }
  0x4a   : > { %11331 = vst [vmem:[#allocation23_spill] sm:$0xff] %v7226_v25  ;;  %v6507_v32 = vld [vmem:[#allocation6 + $0x1d4] sm:$0xf0]  ;;  %v7235_v34 = vor.u32 %v6491_v30, %v5581_v28  ;;  %v5445_v35 = vld [vmem:[#allocation6 + $0x40] sm:$0xf]  ;;  %1320 = vmatpush.bf16.msra.mxu3 %v7226_v25  ;;  %s8525_s15 = sld [smem:[#allocation2 + $0x1]] }
  0x4b   : > { %11332 = vst [vmem:[#allocation24_spill] sm:$0xff] %v7229_v29  ;;  %v6457_v36 = vld [vmem:[#allocation6 + $0x44] sm:$0xf0]  ;;  %v5509_v37 = vld [vmem:[#allocation6 + $0xc0] sm:$0xf]  ;;  %v7238_v38 = vor.u32 %v6507_v32, %v5645_v31  ;;  %1279 = vmatpush.bf16.msra.mxu0 %v7229_v29  ;;  %s6438_s12 = sld [smem:[#allocation2 + $0x81]] }
  0x4c   : > { %11333 = vst [vmem:[#allocation25_spill] sm:$0xff] %v7233_v33  ;;  %v6473_v39 = vld [vmem:[#allocation6 + $0xc4] sm:$0xf0]  ;;  %v5573_v40 = vld [vmem:[#allocation6 + $0x140] sm:$0xf]  ;;  %v7241_v44 = vor.u32 %v6457_v36, %v5445_v35  ;;  %1293 = vmatpush.bf16.msra.mxu1 %v7233_v33  ;;  %s6441_s10 = sld [smem:[#allocation2 + $0x101]] }
  0x4d   : > { %11334 = vst [vmem:[#allocation26_spill] sm:$0xff] %v7235_v34  ;;  %v6489_v41 = vld [vmem:[#allocation6 + $0x144] sm:$0xf0]  ;;  %v5637_v42 = vld [vmem:[#allocation6 + $0x1c0] sm:$0xf]  ;;  %1307 = vmatpush.bf16.msra.mxu2 %v7235_v34  ;;  %v7245_v45 = vor.u32 %v6473_v39, %v5509_v37  ;;  %s5924_s11 = sld [smem:[#allocation2 + $0x2]] }
  0x4e   : > { %11335 = vst [vmem:[#allocation27_spill] sm:$0xff] %v7238_v38  ;;  %v6505_v43 = vld [vmem:[#allocation6 + $0x1c4] sm:$0xf0]  ;;  %v7247_v46 = vor.u32 %v6489_v41, %v5573_v40  ;;  %v5437_v47 = vld [vmem:[#allocation6 + $0x30] sm:$0xf]  ;;  %1321 = vmatpush.bf16.msra.mxu3 %v7238_v38  ;;  %s6439_s0 = sld [smem:[#allocation2 + $0x82]] }
  0x4f   : > { %11336 = vst [vmem:[#allocation28_spill] sm:$0xff] %v7241_v44  ;;  %v6455_v48 = vld [vmem:[#allocation6 + $0x34] sm:$0xf0]  ;;  %v5501_v49 = vld [vmem:[#allocation6 + $0xb0] sm:$0xf]  ;;  %v7250_v50 = vor.u32 %v6505_v43, %v5637_v42  ;;  %1280 = vmatpush.bf16.msra.mxu0 %v7241_v44  ;;  %s6442_s16 = sld [smem:[#allocation2 + $0x102]] }
  0x50   : > { %11337 = vst [vmem:[#allocation29_spill] sm:$0xff] %v7245_v45  ;;  %v6471_v51 = vld [vmem:[#allocation6 + $0xb4] sm:$0xf0]  ;;  %v5565_v52 = vld [vmem:[#allocation6 + $0x130] sm:$0xf]  ;;  %v7253_v56 = vor.u32 %v6455_v48, %v5437_v47  ;;  %1294 = vmatpush.bf16.msra.mxu1 %v7245_v45  ;;  %s9787_s24 = scalar_lea.vmem [#allocation10], %s7199_s13 }
  0x51   : > { %11338 = vst [vmem:[#allocation30_spill] sm:$0xff] %v7247_v46  ;;  %v6487_v53 = vld [vmem:[#allocation6 + $0x134] sm:$0xf0]  ;;  %v5629_v54 = vld [vmem:[#allocation6 + $0x1b0] sm:$0xf]  ;;  %1308 = vmatpush.bf16.msra.mxu2 %v7247_v46  ;;  %v7257_v57 = vor.u32 %v6471_v51, %v5501_v49  ;;  %s6707_s13 = smul.u32 384, %s7095_s22 }
  0x52   : > { %11339 = vst [vmem:[#allocation31_spill] sm:$0xff] %v7250_v50  ;;  %v6503_v55 = vld [vmem:[#allocation6 + $0x1b4] sm:$0xf0]  ;;  %v7259_v58 = vor.u32 %v6487_v53, %v5565_v52  ;;  %v5429_v59 = vld [vmem:[#allocation6 + $0x20] sm:$0xf]  ;;  %1322 = vmatpush.bf16.msra.mxu3 %v7250_v50 }
  0x53   : > { %11340 = vst [vmem:[#allocation32_spill] sm:$0xff] %v7253_v56  ;;  %v6453_v60 = vld [vmem:[#allocation6 + $0x24] sm:$0xf0]  ;;  %v5493_v61 = vld [vmem:[#allocation6 + $0xa0] sm:$0xf]  ;;  %v7262_v62 = vor.u32 %v6503_v55, %v5629_v54  ;;  %1281 = vmatpush.bf16.msra.mxu0 %v7253_v56  ;;  %s5276_s27 = scalar_lea.hbm %s10653_s5, %s6707_s13 }
  0x54   : > { %11341 = vst [vmem:[#allocation33_spill] sm:$0xff] %v7257_v57  ;;  %v6469_v63 = vld [vmem:[#allocation6 + $0xa4] sm:$0xf0]  ;;  %v5557_v0 = vld [vmem:[#allocation6 + $0x120] sm:$0xf]  ;;  %v7265_v5 = vor.u32 %v6453_v60, %v5429_v59  ;;  %1295 = vmatpush.bf16.msra.mxu1 %v7257_v57  ;;  %s5279_s22 = sshll.u32 %s5276_s27, 4  ;;  %s5280_s22 = int_to_ptr.hbm [resolvable:$true] %s5279_s22 }
  0x55   : > { %11342 = vst [vmem:[#allocation34_spill] sm:$0xff] %v7259_v58  ;;  %v6485_v1 = vld [vmem:[#allocation6 + $0x124] sm:$0xf0]  ;;  %v5621_v2 = vld [vmem:[#allocation6 + $0x1a0] sm:$0xf]  ;;  %1309 = vmatpush.bf16.msra.mxu2 %v7259_v58  ;;  %v7269_v6 = vor.u32 %v6469_v63, %v5493_v61 }
  0x56   : > { %11343 = vst [vmem:[#allocation35_spill] sm:$0xff] %v7262_v62  ;;  %v6501_v4 = vld [vmem:[#allocation6 + $0x1a4] sm:$0xf0]  ;;  %v7271_v9 = vor.u32 %v6485_v1, %v5557_v0  ;;  %v5421_v10 = vld [vmem:[#allocation6 + $0x10] sm:$0xf]  ;;  %1323 = vmatpush.bf16.msra.mxu3 %v7262_v62 }
  0x57   : > { %11344 = vst [vmem:[#allocation36_spill] sm:$0xff] %v7265_v5  ;;  %v6451_v11 = vld [vmem:[#allocation6 + $0x14] sm:$0xf0]  ;;  %v5485_v13 = vld [vmem:[#allocation6 + $0x90] sm:$0xf]  ;;  %v7274_v14 = vor.u32 %v6501_v4, %v5621_v2  ;;  %1282 = vmatpush.bf16.msra.mxu0 %v7265_v5 }
  0x58   : > { %11345 = vst [vmem:[#allocation37_spill] sm:$0xff] %v7269_v6  ;;  %v6467_v15 = vld [vmem:[#allocation6 + $0x94] sm:$0xf0]  ;;  %v5549_v18 = vld [vmem:[#allocation6 + $0x110] sm:$0xf]  ;;  %v7277_v23 = vor.u32 %v6451_v11, %v5421_v10  ;;  %1296 = vmatpush.bf16.msra.mxu1 %v7269_v6 }
  0x59   : > { %11346 = vst [vmem:[#allocation38_spill] sm:$0xff] %v7271_v9  ;;  %v6483_v19 = vld [vmem:[#allocation6 + $0x114] sm:$0xf0]  ;;  %v5613_v20 = vld [vmem:[#allocation6 + $0x190] sm:$0xf]  ;;  %1310 = vmatpush.bf16.msra.mxu2 %v7271_v9  ;;  %v7281_v28 = vor.u32 %v6467_v15, %v5485_v13 }
  0x5a   : > { %11347 = vst [vmem:[#allocation39_spill] sm:$0xff] %v7274_v14  ;;  %v6499_v22 = vld [vmem:[#allocation6 + $0x194] sm:$0xf0]  ;;  %v5413_v24 = vld [vmem:[#allocation6] sm:$0xf]  ;;  %v7283_v30 = vor.u32 %v6483_v19, %v5549_v18  ;;  %1324 = vmatpush.bf16.msra.mxu3 %v7274_v14 }
  0x5b   : > { %11348 = vst [vmem:[#allocation40_spill] sm:$0xff] %v7277_v23  ;;  %v6449_v26 = vld [vmem:[#allocation6 + $0x4] sm:$0xf0]  ;;  %v5477_v27 = vld [vmem:[#allocation6 + $0x80] sm:$0xf]  ;;  %v7286_v36 = vor.u32 %v6499_v22, %v5613_v20  ;;  %1283 = vmatpush.bf16.msra.mxu0 %v7277_v23 }
  0x5c   : > { %11349 = vst [vmem:[#allocation41_spill] sm:$0xff] %v7281_v28  ;;  %v6465_v31 = vld [vmem:[#allocation6 + $0x84] sm:$0xf0]  ;;  %v5541_v32 = vld [vmem:[#allocation6 + $0x100] sm:$0xf]  ;;  %v7289_v47 = vor.u32 %v6449_v26, %v5413_v24  ;;  %1297 = vmatpush.bf16.msra.mxu1 %v7281_v28 }
  0x5d   : > { %11350 = vst [vmem:[#allocation42_spill] sm:$0xff] %v7283_v30  ;;  %v6481_v35 = vld [vmem:[#allocation6 + $0x104] sm:$0xf0]  ;;  %v5605_v37 = vld [vmem:[#allocation6 + $0x180] sm:$0xf]  ;;  %1311 = vmatpush.bf16.msra.mxu2 %v7283_v30  ;;  %v7293_v52 = vor.u32 %v6465_v31, %v5477_v27 }
  0x5e   : > { %11351 = vst [vmem:[#allocation43_spill] sm:$0xff] %v7286_v36  ;;  %v6497_v39 = vld [vmem:[#allocation6 + $0x184] sm:$0xf0]  ;;  %v5725_v40 = vld [vmem:[#allocation6 + $0x270] sm:$0xf]  ;;  %v7295_v53 = vor.u32 %v6481_v35, %v5541_v32  ;;  %1325 = vmatpush.bf16.msra.mxu3 %v7286_v36  ;;  %v573_v26 = vld [vmem:[%s7202_s17] sm:$0xff] }
  0x5f   : > { %v6527_v41 = vld [vmem:[#allocation6 + $0x274] sm:$0xf0]  ;;  %v5789_v42 = vld [vmem:[#allocation6 + $0x2f0] sm:$0xf]  ;;  %11352 = vst [vmem:[#allocation44_spill] sm:$0xff] %v7289_v47  ;;  %v7298_v60 = vor.u32 %v6497_v39, %v5605_v37  ;;  %1284 = vmatpush.bf16.msra.mxu0 %v7289_v47  ;;  %v574_v27 = vld [vmem:[%s7202_s17 + $0x8] sm:$0xff] }
  0x60   : > { %v6543_v43 = vld [vmem:[#allocation6 + $0x2f4] sm:$0xf0]  ;;  %v5853_v48 = vld [vmem:[#allocation6 + $0x370] sm:$0xf]  ;;  %11353 = vst [vmem:[#allocation45_spill] sm:$0xff] %v7293_v52  ;;  %v7300_v61 = vor.u32 %v6527_v41, %v5725_v40  ;;  %1298 = vmatpush.bf16.msra.mxu1 %v7293_v52  ;;  %v581_v31 = vld [vmem:[%s7202_s17 + $0xc0] sm:$0xff]  ;;  %v7321_v39 = vpack.c.bf16 %v574_v27, %v573_v26 }
  0x61   : > { %v6559_v49 = vld [vmem:[#allocation6 + $0x374] sm:$0xf0]  ;;  %v5917_v51 = vld [vmem:[#allocation6 + $0x3f0] sm:$0xf]  ;;  %11354 = vst [vmem:[#allocation46_spill] sm:$0xff] %v7295_v53  ;;  %v7302_v2 = vor.u32 %v6543_v43, %v5789_v42  ;;  %1312 = vmatpush.bf16.msra.mxu2 %v7295_v53  ;;  %v582_v37 = vld [vmem:[%s7202_s17 + $0xc8] sm:$0xff] }
  0x62   : > { %v6575_v54 = vld [vmem:[#allocation6 + $0x3f4] sm:$0xf0]  ;;  %v5717_v55 = vld [vmem:[#allocation6 + $0x260] sm:$0xf]  ;;  %v6525_v59 = vld [vmem:[#allocation6 + $0x264] sm:$0xf0]  ;;  %v7304_v4 = vor.u32 %v6559_v49, %v5853_v48  ;;  %1326 = vmatpush.bf16.msra.mxu3 %v7298_v60  ;;  %v7329_v48 = vpack.c.bf16 %v582_v37, %v581_v31 }
  0x63   : > { %11355 = vst [vmem:[#allocation47_spill] sm:$0xff] %v7298_v60  ;;  %v5781_v63 = vld [vmem:[#allocation6 + $0x2e0] sm:$0xf]  ;;  %v6541_v0 = vld [vmem:[#allocation6 + $0x2e4] sm:$0xf0]  ;;  %v7307_v15 = vor.u32 %v6575_v54, %v5917_v51  ;;  %1333 = vmatpush.bf16.msrb.mxu0 %v7300_v61  ;;  %v7316_v32 = vor.u32 %v6525_v59, %v5717_v55  ;;  %v575_v40 = vld [vmem:[%s7202_s17 + $0x10] sm:$0xff] }
  0x64   : > { %11356 = vst [vmem:[#allocation48_spill] sm:$0xff] %v7300_v61  ;;  %v5845_v1 = vld [vmem:[#allocation6 + $0x360] sm:$0xf]  ;;  %v6557_v10 = vld [vmem:[#allocation6 + $0x364] sm:$0xf0]  ;;  %v7318_v35 = vor.u32 %v6541_v0, %v5781_v63  ;;  %v576_v41 = vld [vmem:[%s7202_s17 + $0x18] sm:$0xff]  ;;  %1347 = vmatpush.bf16.msrb.mxu1 %v7302_v2  ;;  %v597_v0 = vunpack.c.l.bf16 %v7321_v39  ;;  %v605_v61 = vunpack.c.l.bf16 %v7329_v48  ;;  %v606_v53 = vunpack.c.h.bf16 %v7329_v48 }
  0x65   : > { %11357 = vst [vmem:[#allocation49_spill] sm:$0xff] %v7302_v2  ;;  %v5909_v11 = vld [vmem:[#allocation6 + $0x3e0] sm:$0xf]  ;;  %v6573_v13 = vld [vmem:[#allocation6 + $0x3e4] sm:$0xf0]  ;;  %1361 = vmatpush.bf16.msrb.mxu2 %v7304_v4  ;;  %v7327_v42 = vor.u32 %v6557_v10, %v5845_v1  ;;  %v583_v49 = vld [vmem:[%s7202_s17 + $0xd0] sm:$0xff]  ;;  %v7333_v54 = vpack.c.bf16 %v576_v41, %v575_v40  ;;  %v598_v1 = vunpack.c.h.bf16 %v7321_v39 }
  0x66   : > { %11358 = vst [vmem:[#allocation50_spill] sm:$0xff] %v7304_v4  ;;  %v5709_v18 = vld [vmem:[#allocation6 + $0x250] sm:$0xf]  ;;  %v6523_v19 = vld [vmem:[#allocation6 + $0x254] sm:$0xf0]  ;;  %1375 = vmatpush.bf16.msrb.mxu3 %v7307_v15  ;;  %v7336_v55 = vor.u32 %v6573_v13, %v5909_v11  ;;  %v613_v13 = vsub.f32 %v573_v26, %v597_v0  ;;  %v621_v52 = vsub.f32 %v581_v31, %v605_v61 }
  0x67   : > { %11359 = vst [vmem:[#allocation51_spill] sm:$0xff] %v7307_v15  ;;  %v5773_v20 = vld [vmem:[#allocation6 + $0x2d0] sm:$0xf]  ;;  %v6539_v22 = vld [vmem:[#allocation6 + $0x2d4] sm:$0xf0]  ;;  %v7342_v10 = vor.u32 %v6523_v19, %v5709_v18  ;;  %v599_v60 = vunpack.c.l.bf16 %v7333_v54  ;;  %1334 = vmatpush.bf16.msrb.mxu0 %v7316_v32  ;;  %v614_v36 = vsub.f32 %v574_v27, %v598_v1  ;;  %v622_v30 = vsub.f32 %v582_v37, %v606_v53 }
  0x68   : > { %v5837_v24 = vld [vmem:[#allocation6 + $0x350] sm:$0xf]  ;;  %11360 = vst [vmem:[#allocation52_spill] sm:$0xff] %v7316_v32  ;;  %v6555_v43 = vld [vmem:[#allocation6 + $0x354] sm:$0xf0]  ;;  %v7344_v4 = vor.u32 %v6539_v22, %v5773_v20  ;;  %1348 = vmatpush.bf16.msrb.mxu1 %v7318_v35  ;;  %v600_v32 = vunpack.c.h.bf16 %v7333_v54 }
  0x69   : > { %11361 = vst [vmem:[#allocation53_spill] sm:$0xff] %v7318_v35  ;;  %v584_v51 = vld [vmem:[%s7202_s17 + $0xd8] sm:$0xff]  ;;  %v5901_v59 = vld [vmem:[#allocation6 + $0x3d0] sm:$0xf]  ;;  %v7349_v11 = vor.u32 %v6555_v43, %v5837_v24  ;;  %1362 = vmatpush.bf16.msrb.mxu2 %v7327_v42  ;;  %v5701_v19 = vld [vmem:[#allocation6 + $0x240] sm:$0xf]  ;;  %v615_v47 = vsub.f32 %v575_v40, %v599_v60  ;;  %v7367_v31 = vpack.c.bf16 %v622_v30, %v614_v36 }
  0x6a   : > { %11362 = vst [vmem:[#allocation54_spill] sm:$0xff] %v7321_v39  ;;  %v6571_v63 = vld [vmem:[#allocation6 + $0x3d4] sm:$0xf0]  ;;  %v7339_v2 = vpack.c.bf16 %v584_v51, %v583_v49  ;;  %v6521_v20 = vld [vmem:[#allocation6 + $0x244] sm:$0xf0]  ;;  %1376 = vmatpush.bf16.msrb.mxu3 %v7336_v55  ;;  %v616_v28 = vsub.f32 %v576_v41, %v600_v32 }
  0x6b   : > { %11363 = vst [vmem:[#allocation55_spill] sm:$0xff] %v7327_v42  ;;  %v7355_v18 = vor.u32 %v6571_v63, %v5901_v59  ;;  %v5765_v22 = vld [vmem:[#allocation6 + $0x2c0] sm:$0xf]  ;;  %v6537_v24 = vld [vmem:[#allocation6 + $0x2c4] sm:$0xf0]  ;;  %v7360_v63 = vpack.c.bf16 %v621_v52, %v613_v13  ;;  %1335 = vmatpush.bf16.msrb.mxu0 %v7342_v10  ;;  %v7363_v60 = vor.u32 %v6521_v20, %v5701_v19 }
  0x6c   : > { %11364 = vst [vmem:[#allocation56_spill] sm:$0xff] %v7329_v48  ;;  %v607_v15 = vunpack.c.l.bf16 %v7339_v2  ;;  %v5829_v26 = vld [vmem:[#allocation6 + $0x340] sm:$0xf]  ;;  %v6553_v43 = vld [vmem:[#allocation6 + $0x344] sm:$0xf0]  ;;  %v608_v35 = vunpack.c.h.bf16 %v7339_v2  ;;  %1349 = vmatpush.bf16.msrb.mxu1 %v7344_v4  ;;  %v7371_v53 = vor.u32 %v6537_v24, %v5765_v22 }
  0x6d   : > { %11365 = vst [vmem:[#allocation57_spill] sm:$0xff] %v7333_v54  ;;  %v5893_v42 = vld [vmem:[#allocation6 + $0x3c0] sm:$0xf]  ;;  %v6569_v59 = vld [vmem:[#allocation6 + $0x3c4] sm:$0xf0]  ;;  %1363 = vmatpush.bf16.msrb.mxu2 %v7349_v11  ;;  %1285 = vmatmul.bf16.vlgmr.msra.gmra.mxu0 %v7360_v63 }
  0x6e   : > { %11366 = vst [vmem:[#allocation58_spill] sm:$0xff] %v7336_v55  ;;  %v623_v0 = vsub.f32 %v583_v49, %v607_v15  ;;  %v624_v40 = vsub.f32 %v584_v51, %v608_v35  ;;  %v7373_v15 = vor.u32 %v6553_v43, %v5829_v26  ;;  %v5693_v52 = vld [vmem:[#allocation6 + $0x230] sm:$0xf]  ;;  %v6519_v27 = vld [vmem:[#allocation6 + $0x234] sm:$0xf0]  ;;  %1377 = vmatpush.bf16.msrb.mxu3 %v7355_v18 }
  0x6f   : > { %11367 = vst [vmem:[#allocation59_spill] sm:$0xff] %v7339_v2  ;;  %v5757_v32 = vld [vmem:[#allocation6 + $0x2b0] sm:$0xf]  ;;  %v7376_v37 = vor.u32 %v6569_v59, %v5893_v42  ;;  %v6535_v30 = vld [vmem:[#allocation6 + $0x2b4] sm:$0xf0]  ;;  %1299 = vmatmul.bf16.vlgmr.msra.gmra.mxu1 %v7367_v31  ;;  %1336 = vmatpush.bf16.msrb.mxu0 %v7363_v60  ;;  %v7384_v1 = vor.u32 %v6519_v27, %v5693_v52  ;;  %v577_v27 = vld [vmem:[%s7202_s17 + $0x20] sm:$0xff] }
  0x70   : > { %11368 = vst [vmem:[#allocation60_spill] sm:$0xff] %v7342_v10  ;;  %v7365_v61 = vpack.c.bf16 %v623_v0, %v615_v47  ;;  %v5821_v36 = vld [vmem:[#allocation6 + $0x330] sm:$0xf]  ;;  %v6551_v47 = vld [vmem:[#allocation6 + $0x334] sm:$0xf0]  ;;  %v7379_v35 = vpack.c.bf16 %v624_v40, %v616_v28  ;;  %1350 = vmatpush.bf16.msrb.mxu1 %v7371_v53  ;;  %v7389_v28 = vor.u32 %v6535_v30, %v5757_v32  ;;  %v578_v32 = vld [vmem:[%s7202_s17 + $0x28] sm:$0xff] }
  0x71   : > { %11369 = vst [vmem:[#allocation61_spill] sm:$0xff] %v7344_v4  ;;  %v5885_v41 = vld [vmem:[#allocation6 + $0x3b0] sm:$0xf]  ;;  %v6567_v49 = vld [vmem:[#allocation6 + $0x3b4] sm:$0xf0]  ;;  %1364 = vmatpush.bf16.msrb.mxu2 %v7373_v15  ;;  %v7391_v20 = vor.u32 %v6551_v47, %v5821_v36  ;;  %v585_v30 = vld [vmem:[%s7202_s17 + $0xe0] sm:$0xff] }
  0x72   : > { %11370 = vst [vmem:[#allocation62_spill] sm:$0xff] %v7349_v11  ;;  %1313 = vmatmul.bf16.vlgmr.msra.gmra.mxu2 %v7365_v61  ;;  %v5685_v51 = vld [vmem:[#allocation6 + $0x220] sm:$0xf]  ;;  %1327 = vmatmul.bf16.vlgmr.msra.gmra.mxu3 %v7379_v35  ;;  %v6517_v42 = vld [vmem:[#allocation6 + $0x224] sm:$0xf0]  ;;  %v7394_v43 = vor.u32 %v6567_v49, %v5885_v41  ;;  %v579_v41 = vld [vmem:[%s7202_s17 + $0x30] sm:$0xff] }
  0x73   : > { %11371 = vst [vmem:[#allocation63_spill] sm:$0xff] %v7355_v18  ;;  %v5749_v13 = vld [vmem:[#allocation6 + $0x2a0] sm:$0xf]  ;;  %v6533_v19 = vld [vmem:[#allocation6 + $0x2a4] sm:$0xf0]  ;;  %1378 = vmatpush.bf16.msrb.mxu3 %v7376_v37  ;;  %1337 = vmatpush.bf16.msrb.mxu0 %v7384_v1  ;;  %v7400_v36 = vor.u32 %v6517_v42, %v5685_v51  ;;  %v7409_v49 = vld [vmem:[%s7202_s17 + $0x38] sm:$0xff] }
  0x74   : > { %11372 = vst [vmem:[#allocation64_spill] sm:$0xff] %v7363_v60  ;;  %v5813_v22 = vld [vmem:[#allocation6 + $0x320] sm:$0xf]  ;;  %v6549_v24 = vld [vmem:[#allocation6 + $0x324] sm:$0xf0]  ;;  %v7402_v47 = vor.u32 %v6533_v19, %v5749_v13  ;;  %1351 = vmatpush.bf16.msrb.mxu1 %v7389_v28  ;;  %v588_v51 = vld [vmem:[%s7202_s17 + $0xf8] sm:$0xff]  ;;  %v7420_v42 = vpack.c.bf16 %v7409_v49, %v579_v41 }
  0x75   : > { %11373 = vst [vmem:[#allocation65_spill] sm:$0xff] %v7371_v53  ;;  %v5877_v26 = vld [vmem:[#allocation6 + $0x3a0] sm:$0xf]  ;;  %v6565_v0 = vld [vmem:[#allocation6 + $0x3a4] sm:$0xf0]  ;;  %v7405_v53 = vpack.c.bf16 %v578_v32, %v577_v27  ;;  %1365 = vmatpush.bf16.msrb.mxu2 %v7391_v20 }
  0x76   : > { %11374 = vst [vmem:[#allocation66_spill] sm:$0xff] %v7373_v15  ;;  %v5677_v59 = vld [vmem:[#allocation6 + $0x210] sm:$0xf]  ;;  %v6515_v40 = vld [vmem:[#allocation6 + $0x214] sm:$0xf0]  ;;  %v586_v15 = vld [vmem:[%s7202_s17 + $0xe8] sm:$0xff]  ;;  %v7423_v13 = vor.u32 %v6565_v0, %v5877_v26 }
  0x77   : > { %11375 = vst [vmem:[#allocation67_spill] sm:$0xff] %v7376_v37  ;;  %v5741_v52 = vld [vmem:[#allocation6 + $0x290] sm:$0xf]  ;;  %v7413_v37 = vor.u32 %v6549_v24, %v5813_v22  ;;  %v6531_v60 = vld [vmem:[#allocation6 + $0x294] sm:$0xf0]  ;;  %v7415_v18 = vpack.c.bf16 %v586_v15, %v585_v30  ;;  %1379 = vmatpush.bf16.msrb.mxu3 %v7394_v43  ;;  %1338 = vmatpush.bf16.msrb.mxu0 %v7400_v36  ;;  %v602_v0 = vunpack.c.h.bf16 %v7405_v53 }
  0x78   : > { %11376 = vst [vmem:[#allocation68_spill] sm:$0xff] %v7384_v1  ;;  %v587_v1 = vld [vmem:[%s7202_s17 + $0xf0] sm:$0xff]  ;;  %v6547_v11 = vld [vmem:[#allocation6 + $0x314] sm:$0xf0]  ;;  %v7430_v10 = vor.u32 %v6531_v60, %v5741_v52  ;;  %v6513_v55 = vld [vmem:[#allocation6 + $0x204] sm:$0xf0]  ;;  %1352 = vmatpush.bf16.msrb.mxu1 %v7402_v47  ;;  %v603_v60 = vunpack.c.l.bf16 %v7420_v42 }
  0x79   : > { %11377 = vst [vmem:[#allocation69_spill] sm:$0xff] %v7389_v28  ;;  %v5805_v19 = vld [vmem:[#allocation6 + $0x310] sm:$0xf]  ;;  %v7425_v4 = vpack.c.bf16 %v588_v51, %v587_v1  ;;  %v7427_v28 = vor.u32 %v6515_v40, %v5677_v59  ;;  %v6563_v24 = vld [vmem:[#allocation6 + $0x394] sm:$0xf0]  ;;  %v609_v26 = vunpack.c.l.bf16 %v7415_v18  ;;  %1366 = vmatpush.bf16.msrb.mxu2 %v7413_v37  ;;  %v618_v58 = vsub.f32 %v578_v32, %v602_v0 }
  0x7a   : > { %11378 = vst [vmem:[#allocation70_spill] sm:$0xff] %v7391_v20  ;;  %v5869_v22 = vld [vmem:[#allocation6 + $0x390] sm:$0xf]  ;;  %v5669_v20 = vld [vmem:[#allocation6 + $0x200] sm:$0xf]  ;;  %v7437_v59 = vor.u32 %v6547_v11, %v5805_v19 }
  0x7b   : > { %11379 = vst [vmem:[#allocation71_spill] sm:$0xff] %v7394_v43  ;;  %v5733_v2 = vld [vmem:[#allocation6 + $0x280] sm:$0xf]  ;;  %v6529_v54 = vld [vmem:[#allocation6 + $0x284] sm:$0xf0]  ;;  %v601_v43 = vunpack.c.l.bf16 %v7405_v53  ;;  %v611_v52 = vunpack.c.l.bf16 %v7425_v4  ;;  %1380 = vmatpush.bf16.msrb.mxu3 %v7423_v13  ;;  %v7443_v39 = vor.u32 %v6563_v24, %v5869_v22  ;;  %v7447_v11 = vor.u32 %v6513_v55, %v5669_v20  ;;  %1339 = vmatpush.bf16.msrb.mxu0 %v7427_v28 }
  0x7c   : > { %11380 = vst [vmem:[#allocation72_spill] sm:$0xff] %v7400_v36  ;;  %v5797_v40 = vld [vmem:[#allocation6 + $0x300] sm:$0xf]  ;;  %v6545_v48 = vld [vmem:[#allocation6 + $0x304] sm:$0xf0]  ;;  %v610_v36 = vunpack.c.h.bf16 %v7415_v18  ;;  %v7449_v19 = vor.u32 %v6529_v54, %v5733_v2  ;;  %v625_v62 = vsub.f32 %v585_v30, %v609_v26  ;;  %1353 = vmatpush.bf16.msrb.mxu1 %v7430_v10  ;;  %v619_v54 = vsub.f32 %v579_v41, %v603_v60 }
  0x7d   : > { %11381 = vst [vmem:[#allocation73_spill] sm:$0xff] %v7402_v47  ;;  %v5861_v23 = vld [vmem:[#allocation6 + $0x380] sm:$0xf]  ;;  %v604_v47 = vunpack.c.h.bf16 %v7420_v42  ;;  %v6462_v14 = vld [vmem:[#allocation6 + $0x74] sm:$0xf]  ;;  %v617_v5 = vsub.f32 %v577_v27, %v601_v43  ;;  %1367 = vmatpush.bf16.msrb.mxu2 %v7437_v59  ;;  %v627_v20 = vsub.f32 %v587_v1, %v611_v52 }
  0x7e   : > { %11382 = vst [vmem:[#allocation74_spill] sm:$0xff] %v7405_v53  ;;  %v6561_v53 = vld [vmem:[#allocation6 + $0x384] sm:$0xf0]  ;;  %v5471_v9 = vld [vmem:[#allocation6 + $0x78] sm:$0xf0] }
  0x7f   : > { %11383 = vst [vmem:[#allocation75_spill] sm:$0xff] %v7413_v37  ;;  %v612_v37 = vunpack.c.h.bf16 %v7425_v4  ;;  %v6478_v6 = vld [vmem:[#allocation6 + $0xf4] sm:$0xf]  ;;  %v5599_v24 = vld [vmem:[#allocation6 + $0x178] sm:$0xf0]  ;;  %1381 = vmatpush.bf16.msrb.mxu3 %v7443_v39  ;;  %1340 = vmatpush.bf16.msrb.mxu0 %v7447_v11 }
  0x80   : > { %11384 = vst [vmem:[#allocation76_spill] sm:$0xff] %v7415_v18  ;;  %v7452_v18 = vor.u32 %v6545_v48, %v5797_v40  ;;  %v6494_v22 = vld [vmem:[#allocation6 + $0x174] sm:$0xf]  ;;  %v5663_v2 = vld [vmem:[#allocation6 + $0x1f8] sm:$0xf0]  ;;  %v7459_v48 = vor.u32 %v6462_v14, %v5471_v9  ;;  %v620_v40 = vsub.f32 %v7409_v49, %v604_v47  ;;  %1354 = vmatpush.bf16.msrb.mxu1 %v7449_v19 }
  0x81   : > { %11385 = vst [vmem:[#allocation77_spill] sm:$0xff] %v7420_v42  ;;  %v6510_v55 = vld [vmem:[#allocation6 + $0x1f4] sm:$0xf]  ;;  %v7457_v42 = vor.u32 %v6561_v53, %v5861_v23  ;;  %v628_v43 = vsub.f32 %v588_v51, %v612_v37  ;;  %v7464_v32 = vor.u32 %v6494_v22, %v5599_v24  ;;  %v6460_v30 = vld [vmem:[#allocation6 + $0x64] sm:$0xf] }
  0x82   : > { %11386 = vst [vmem:[#allocation78_spill] sm:$0xff] %v7423_v13  ;;  %v5535_v13 = vld [vmem:[#allocation6 + $0xf8] sm:$0xf0]  ;;  %v5463_v26 = vld [vmem:[#allocation6 + $0x68] sm:$0xf0]  ;;  %v7467_v1 = vor.u32 %v6510_v55, %v5663_v2  ;;  %1368 = vmatpush.bf16.msrb.mxu2 %v7452_v18 }
  0x83   : > { %11387 = vst [vmem:[#allocation79_spill] sm:$0xff] %v7425_v4  ;;  %v626_v4 = vsub.f32 %v586_v15, %v610_v36  ;;  %v7462_v27 = vor.u32 %v6478_v6, %v5535_v13  ;;  %v6476_v0 = vld [vmem:[#allocation6 + $0xe4] sm:$0xf]  ;;  %v7469_v15 = vpack.c.bf16 %v625_v62, %v617_v5  ;;  %v5527_v23 = vld [vmem:[#allocation6 + $0xe8] sm:$0xf0]  ;;  %v7473_v6 = vpack.c.bf16 %v627_v20, %v619_v54 }
  0x84   : > { %11388 = vst [vmem:[#allocation80_spill] sm:$0xff] %v7427_v28  ;;  %v6492_v53 = vld [vmem:[#allocation6 + $0x164] sm:$0xf]  ;;  %v5591_v9 = vld [vmem:[#allocation6 + $0x168] sm:$0xf0]  ;;  %1382 = vmatpush.bf16.msrb.mxu3 %v7457_v42  ;;  %1389 = vmatpush.bf16.msra.mxu0 %v7459_v48  ;;  %v7479_v47 = vpack.c.bf16 %v628_v43, %v620_v40  ;;  %v7481_v62 = vor.u32 %v6460_v30, %v5463_v26 }
  0x85   : > { %11389 = vst [vmem:[#allocation81_spill] sm:$0xff] %v7430_v10  ;;  %v7475_v14 = vpack.c.bf16 %v626_v4, %v618_v58  ;;  %v6508_v37 = vld [vmem:[#allocation6 + $0x1e4] sm:$0xf]  ;;  %v5655_v36 = vld [vmem:[#allocation6 + $0x1e8] sm:$0xf0]  ;;  %1403 = vmatpush.bf16.msra.mxu1 %v7462_v27  ;;  %v7485_v5 = vor.u32 %v6476_v0, %v5527_v23  ;;  %v7487_v41 = vor.u32 %v6492_v53, %v5591_v9 }
  0x86   : > { %11390 = vst [vmem:[#allocation82_spill] sm:$0xff] %v7437_v59  ;;  %1417 = vmatpush.bf16.msra.mxu2 %v7464_v32  ;;  %v6458_v58 = vld [vmem:[#allocation6 + $0x54] sm:$0xf]  ;;  %v5455_v4 = vld [vmem:[#allocation6 + $0x58] sm:$0xf0]  ;;  %1341 = vmatmul.bf16.vlgmr.msrb.gmra.mxu0 %v7469_v15  ;;  %v7491_v51 = vor.u32 %v6508_v37, %v5655_v36 }
  0x87   : > { %11391 = vst [vmem:[#allocation83_spill] sm:$0xff] %v7464_v32  ;;  %v6474_v49 = vld [vmem:[#allocation6 + $0xd4] sm:$0xf]  ;;  %v5519_v13 = vld [vmem:[#allocation6 + $0xd8] sm:$0xf0]  ;;  %1369 = vmatmul.bf16.vlgmr.msrb.gmra.mxu2 %v7473_v6  ;;  %1355 = vmatmul.bf16.vlgmr.msrb.gmra.mxu1 %v7475_v14  ;;  %v7497_v55 = vor.u32 %v6458_v58, %v5455_v4 }
  0x88   : > { %11392 = vst [vmem:[#allocation84_spill] sm:$0xff] %v7467_v1  ;;  %1431 = vmatpush.bf16.msra.mxu3 %v7467_v1  ;;  %v6490_v60 = vld [vmem:[#allocation6 + $0x154] sm:$0xf]  ;;  %v5583_v52 = vld [vmem:[#allocation6 + $0x158] sm:$0xf0]  ;;  %1390 = vmatpush.bf16.msra.mxu0 %v7481_v62  ;;  %v7501_v2 = vor.u32 %v6474_v49, %v5519_v13 }
  0x89   : > { %11393 = vst [vmem:[#allocation85_spill] sm:$0xff] %v7481_v62  ;;  %v6506_v22 = vld [vmem:[#allocation6 + $0x1d4] sm:$0xf]  ;;  %v5647_v24 = vld [vmem:[#allocation6 + $0x1d8] sm:$0xf0]  ;;  %1383 = vmatmul.bf16.vlgmr.msrb.gmra.mxu3 %v7479_v47  ;;  %1404 = vmatpush.bf16.msra.mxu1 %v7485_v5  ;;  %v7503_v54 = vor.u32 %v6490_v60, %v5583_v52 }
  0x8a   : > { %11394 = vst [vmem:[#allocation86_spill] sm:$0xff] %v7485_v5  ;;  %1418 = vmatpush.bf16.msra.mxu2 %v7487_v41  ;;  %v6456_v20 = vld [vmem:[#allocation6 + $0x44] sm:$0xf]  ;;  %v5447_v40 = vld [vmem:[#allocation6 + $0x48] sm:$0xf0]  ;;  %v7506_v30 = vor.u32 %v6506_v22, %v5647_v24 }
  0x8b   : > { %11395 = vst [vmem:[#allocation87_spill] sm:$0xff] %v7487_v41  ;;  %v6472_v43 = vld [vmem:[#allocation6 + $0xc4] sm:$0xf]  ;;  %v5511_v26 = vld [vmem:[#allocation6 + $0xc8] sm:$0xf0]  ;;  %v7509_v37 = vor.u32 %v6456_v20, %v5447_v40 }
  0x8c   : > { %11396 = vst [vmem:[#allocation88_spill] sm:$0xff] %v7491_v51  ;;  %1432 = vmatpush.bf16.msra.mxu3 %v7491_v51  ;;  %v6488_v0 = vld [vmem:[#allocation6 + $0x144] sm:$0xf]  ;;  %v5575_v23 = vld [vmem:[#allocation6 + $0x148] sm:$0xf0]  ;;  %1391 = vmatpush.bf16.msra.mxu0 %v7497_v55  ;;  %v7513_v36 = vor.u32 %v6472_v43, %v5511_v26 }
  0x8d   : > { %11397 = vst [vmem:[#allocation89_spill] sm:$0xff] %v7497_v55  ;;  %v6504_v53 = vld [vmem:[#allocation6 + $0x1c4] sm:$0xf]  ;;  %v5639_v9 = vld [vmem:[#allocation6 + $0x1c8] sm:$0xf0]  ;;  %1405 = vmatpush.bf16.msra.mxu1 %v7501_v2  ;;  %v7515_v58 = vor.u32 %v6488_v0, %v5575_v23 }
  0x8e   : > { %11398 = vst [vmem:[#allocation90_spill] sm:$0xff] %v7501_v2  ;;  %1419 = vmatpush.bf16.msra.mxu2 %v7503_v54  ;;  %v6454_v4 = vld [vmem:[#allocation6 + $0x34] sm:$0xf]  ;;  %v5439_v49 = vld [vmem:[#allocation6 + $0x38] sm:$0xf0]  ;;  %v7518_v60 = vor.u32 %v6504_v53, %v5639_v9 }
  0x8f   : > { %11399 = vst [vmem:[#allocation91_spill] sm:$0xff] %v7503_v54  ;;  %v6470_v13 = vld [vmem:[#allocation6 + $0xb4] sm:$0xf]  ;;  %v5503_v52 = vld [vmem:[#allocation6 + $0xb8] sm:$0xf0]  ;;  %v7521_v2 = vor.u32 %v6454_v4, %v5439_v49 }
  0x90   : > { %11400 = vst [vmem:[#allocation92_spill] sm:$0xff] %v7506_v30  ;;  %1433 = vmatpush.bf16.msra.mxu3 %v7506_v30  ;;  %v6486_v22 = vld [vmem:[#allocation6 + $0x134] sm:$0xf]  ;;  %v5567_v24 = vld [vmem:[#allocation6 + $0x138] sm:$0xf0]  ;;  %1392 = vmatpush.bf16.msra.mxu0 %v7509_v37  ;;  %v7525_v43 = vor.u32 %v6470_v13, %v5503_v52 }
  0x91   : > { %11401 = vst [vmem:[#allocation93_spill] sm:$0xff] %v7509_v37  ;;  %v6502_v20 = vld [vmem:[#allocation6 + $0x1b4] sm:$0xf]  ;;  %v5631_v40 = vld [vmem:[#allocation6 + $0x1b8] sm:$0xf0]  ;;  %1406 = vmatpush.bf16.msra.mxu1 %v7513_v36  ;;  %v7527_v26 = vor.u32 %v6486_v22, %v5567_v24 }
  0x92   : > { %11402 = vst [vmem:[#allocation94_spill] sm:$0xff] %v7513_v36  ;;  %1420 = vmatpush.bf16.msra.mxu2 %v7515_v58  ;;  %v6452_v0 = vld [vmem:[#allocation6 + $0x24] sm:$0xf]  ;;  %v5431_v23 = vld [vmem:[#allocation6 + $0x28] sm:$0xf0]  ;;  %v7530_v9 = vor.u32 %v6502_v20, %v5631_v40 }
  0x93   : > { %11403 = vst [vmem:[#allocation95_spill] sm:$0xff] %v7515_v58  ;;  %v6468_v53 = vld [vmem:[#allocation6 + $0xa4] sm:$0xf]  ;;  %v5495_v30 = vld [vmem:[#allocation6 + $0xa8] sm:$0xf0]  ;;  %v7533_v36 = vor.u32 %v6452_v0, %v5431_v23 }
  0x94   : > { %11404 = vst [vmem:[#allocation96_spill] sm:$0xff] %v7518_v60  ;;  %1434 = vmatpush.bf16.msra.mxu3 %v7518_v60  ;;  %v6484_v54 = vld [vmem:[#allocation6 + $0x124] sm:$0xf]  ;;  %v5559_v37 = vld [vmem:[#allocation6 + $0x128] sm:$0xf0]  ;;  %1393 = vmatpush.bf16.msra.mxu0 %v7521_v2  ;;  %v7537_v13 = vor.u32 %v6468_v53, %v5495_v30 }
  0x95   : > { %11405 = vst [vmem:[#allocation97_spill] sm:$0xff] %v7521_v2  ;;  %v6500_v4 = vld [vmem:[#allocation6 + $0x1a4] sm:$0xf]  ;;  %v5623_v49 = vld [vmem:[#allocation6 + $0x1a8] sm:$0xf0]  ;;  %1407 = vmatpush.bf16.msra.mxu1 %v7525_v43  ;;  %v7539_v52 = vor.u32 %v6484_v54, %v5559_v37 }
  0x96   : > { %11406 = vst [vmem:[#allocation98_spill] sm:$0xff] %v7525_v43  ;;  %1421 = vmatpush.bf16.msra.mxu2 %v7527_v26  ;;  %v6450_v22 = vld [vmem:[#allocation6 + $0x14] sm:$0xf]  ;;  %v5423_v24 = vld [vmem:[#allocation6 + $0x18] sm:$0xf0]  ;;  %v7542_v40 = vor.u32 %v6500_v4, %v5623_v49 }
  0x97   : > { %11407 = vst [vmem:[#allocation99_spill] sm:$0xff] %v7527_v26  ;;  %v6466_v20 = vld [vmem:[#allocation6 + $0x94] sm:$0xf]  ;;  %v5487_v60 = vld [vmem:[#allocation6 + $0x98] sm:$0xf0]  ;;  %v7545_v43 = vor.u32 %v6450_v22, %v5423_v24 }
  0x98   : > { %11408 = vst [vmem:[#allocation100_spill] sm:$0xff] %v7530_v9  ;;  %1435 = vmatpush.bf16.msra.mxu3 %v7530_v9  ;;  %v6482_v58 = vld [vmem:[#allocation6 + $0x114] sm:$0xf]  ;;  %v5551_v2 = vld [vmem:[#allocation6 + $0x118] sm:$0xf0]  ;;  %1394 = vmatpush.bf16.msra.mxu0 %v7533_v36  ;;  %v7549_v54 = vor.u32 %v6466_v20, %v5487_v60 }
  0x99   : > { %11409 = vst [vmem:[#allocation101_spill] sm:$0xff] %v7533_v36  ;;  %v6498_v0 = vld [vmem:[#allocation6 + $0x194] sm:$0xf]  ;;  %v5615_v23 = vld [vmem:[#allocation6 + $0x198] sm:$0xf0]  ;;  %1408 = vmatpush.bf16.msra.mxu1 %v7537_v13  ;;  %v7551_v37 = vor.u32 %v6482_v58, %v5551_v2 }
  0x9a   : > { %11410 = vst [vmem:[#allocation102_spill] sm:$0xff] %v7537_v13  ;;  %v6448_v30 = vld [vmem:[#allocation6 + $0x4] sm:$0xf]  ;;  %v5415_v53 = vld [vmem:[#allocation6 + $0x8] sm:$0xf0]  ;;  %1422 = vmatpush.bf16.msra.mxu2 %v7539_v52  ;;  %v7554_v26 = vor.u32 %v6498_v0, %v5615_v23 }
  0x9b   : > { %11411 = vst [vmem:[#allocation103_spill] sm:$0xff] %v7539_v52  ;;  %v6464_v4 = vld [vmem:[#allocation6 + $0x84] sm:$0xf]  ;;  %v5479_v49 = vld [vmem:[#allocation6 + $0x88] sm:$0xf0]  ;;  %v7557_v52 = vor.u32 %v6448_v30, %v5415_v53 }
  0x9c   : > { %11412 = vst [vmem:[#allocation104_spill] sm:$0xff] %v7542_v40  ;;  %v6480_v9 = vld [vmem:[#allocation6 + $0x104] sm:$0xf]  ;;  %1436 = vmatpush.bf16.msra.mxu3 %v7542_v40  ;;  %v5543_v36 = vld [vmem:[#allocation6 + $0x108] sm:$0xf0]  ;;  %1395 = vmatpush.bf16.msra.mxu0 %v7545_v43  ;;  %v7561_v20 = vor.u32 %v6464_v4, %v5479_v49 }
  0x9d   : > { %11413 = vst [vmem:[#allocation105_spill] sm:$0xff] %v7545_v43  ;;  %v6496_v22 = vld [vmem:[#allocation6 + $0x184] sm:$0xf]  ;;  %v5607_v24 = vld [vmem:[#allocation6 + $0x188] sm:$0xf0]  ;;  %1409 = vmatpush.bf16.msra.mxu1 %v7549_v54  ;;  %v7563_v0 = vor.u32 %v6480_v9, %v5543_v36 }
  0x9e   : > { %11414 = vst [vmem:[#allocation106_spill] sm:$0xff] %v7549_v54  ;;  %v6526_v55 = vld [vmem:[#allocation6 + $0x274] sm:$0xf]  ;;  %v5727_v51 = vld [vmem:[#allocation6 + $0x278] sm:$0xf0]  ;;  %1423 = vmatpush.bf16.msra.mxu2 %v7551_v37  ;;  %v7566_v13 = vor.u32 %v6496_v22, %v5607_v24 }
  0x9f   : > { %11415 = vst [vmem:[#allocation107_spill] sm:$0xff] %v7551_v37  ;;  %v6542_v41 = vld [vmem:[#allocation6 + $0x2f4] sm:$0xf]  ;;  %v5791_v60 = vld [vmem:[#allocation6 + $0x2f8] sm:$0xf0]  ;;  %v7568_v43 = vor.u32 %v6526_v55, %v5727_v51 }
  0xa0   : > { %11416 = vst [vmem:[#allocation108_spill] sm:$0xff] %v7554_v26  ;;  %v6558_v2 = vld [vmem:[#allocation6 + $0x374] sm:$0xf]  ;;  %v5855_v58 = vld [vmem:[#allocation6 + $0x378] sm:$0xf0]  ;;  %1437 = vmatpush.bf16.msra.mxu3 %v7554_v26  ;;  %v7570_v30 = vor.u32 %v6542_v41, %v5791_v60  ;;  %1396 = vmatpush.bf16.msra.mxu0 %v7557_v52 }
  0xa1   : > { %11417 = vst [vmem:[#allocation109_spill] sm:$0xff] %v7557_v52  ;;  %v6574_v23 = vld [vmem:[#allocation6 + $0x3f4] sm:$0xf]  ;;  %v5919_v40 = vld [vmem:[#allocation6 + $0x3f8] sm:$0xf0]  ;;  %v7572_v53 = vor.u32 %v6558_v2, %v5855_v58  ;;  %1410 = vmatpush.bf16.msra.mxu1 %v7561_v20 }
  0xa2   : > { %11418 = vst [vmem:[#allocation110_spill] sm:$0xff] %v7561_v20  ;;  %v6524_v5 = vld [vmem:[#allocation6 + $0x264] sm:$0xf]  ;;  %v5719_v54 = vld [vmem:[#allocation6 + $0x268] sm:$0xf0]  ;;  %v7575_v4 = vor.u32 %v6574_v23, %v5919_v40  ;;  %1424 = vmatpush.bf16.msra.mxu2 %v7563_v0 }
  0xa3   : > { %11419 = vst [vmem:[#allocation111_spill] sm:$0xff] %v7563_v0  ;;  %v6540_v62 = vld [vmem:[#allocation6 + $0x2e4] sm:$0xf]  ;;  %v5783_v36 = vld [vmem:[#allocation6 + $0x2e8] sm:$0xf0]  ;;  %v7581_v41 = vor.u32 %v6524_v5, %v5719_v54  ;;  %1397 = vmatmul.bf16.vlgmr.msra.gmra.mxu0 %v7360_v63 }
  0xa4   : > { %11420 = vst [vmem:[#allocation112_spill] sm:$0xff] %v7566_v13  ;;  %v6556_v9 = vld [vmem:[#allocation6 + $0x364] sm:$0xf]  ;;  %v5847_v49 = vld [vmem:[#allocation6 + $0x368] sm:$0xf0]  ;;  %1438 = vmatpush.bf16.msra.mxu3 %v7566_v13  ;;  %1445 = vmatpush.bf16.msrb.mxu0 %v7568_v43  ;;  %v7585_v40 = vor.u32 %v6540_v62, %v5783_v36 }
  0xa5   : > { %11421 = vst [vmem:[#allocation113_spill] sm:$0xff] %v7568_v43  ;;  %v6572_v51 = vld [vmem:[#allocation6 + $0x3e4] sm:$0xf]  ;;  %v5911_v55 = vld [vmem:[#allocation6 + $0x3e8] sm:$0xf0]  ;;  %1459 = vmatpush.bf16.msrb.mxu1 %v7570_v30  ;;  %v7587_v22 = vor.u32 %v6556_v9, %v5847_v49  ;;  %1425 = vmatmul.bf16.vlgmr.msra.gmra.mxu2 %v7365_v61 }
  0xa6   : > { %11422 = vst [vmem:[#allocation114_spill] sm:$0xff] %v7570_v30  ;;  %1473 = vmatpush.bf16.msrb.mxu2 %v7572_v53  ;;  %v6522_v24 = vld [vmem:[#allocation6 + $0x254] sm:$0xf]  ;;  %v5711_v60 = vld [vmem:[#allocation6 + $0x258] sm:$0xf0]  ;;  %v7590_v58 = vor.u32 %v6572_v51, %v5911_v55  ;;  %1411 = vmatmul.bf16.vlgmr.msra.gmra.mxu1 %v7367_v31 }
  0xa7   : > { %11423 = vst [vmem:[#allocation115_spill] sm:$0xff] %v7572_v53  ;;  %v6538_v2 = vld [vmem:[#allocation6 + $0x2d4] sm:$0xf]  ;;  %v5775_v23 = vld [vmem:[#allocation6 + $0x2d8] sm:$0xf0]  ;;  %v7596_v62 = vor.u32 %v6522_v24, %v5711_v60  ;;  %1439 = vmatmul.bf16.vlgmr.msra.gmra.mxu3 %v7379_v35 }
  0xa8   : > { %11424 = vst [vmem:[#allocation116_spill] sm:$0xff] %v7575_v4  ;;  %1487 = vmatpush.bf16.msrb.mxu3 %v7575_v4  ;;  %v6554_v13 = vld [vmem:[#allocation6 + $0x354] sm:$0xf]  ;;  %v5839_v43 = vld [vmem:[#allocation6 + $0x358] sm:$0xf0]  ;;  %1446 = vmatpush.bf16.msrb.mxu0 %v7581_v41  ;;  %v7601_v36 = vor.u32 %v6538_v2, %v5775_v23 }
  0xa9   : > { %11425 = vst [vmem:[#allocation117_spill] sm:$0xff] %v7581_v41  ;;  %v6570_v5 = vld [vmem:[#allocation6 + $0x3d4] sm:$0xf]  ;;  %v5903_v54 = vld [vmem:[#allocation6 + $0x3d8] sm:$0xf0]  ;;  %1460 = vmatpush.bf16.msrb.mxu1 %v7585_v40  ;;  %v7603_v9 = vor.u32 %v6554_v13, %v5839_v43 }
  0xaa   : > { %11426 = vst [vmem:[#allocation118_spill] sm:$0xff] %v7585_v40  ;;  %1474 = vmatpush.bf16.msrb.mxu2 %v7587_v22  ;;  %v6520_v63 = vld [vmem:[#allocation6 + $0x244] sm:$0xf]  ;;  %v5703_v49 = vld [vmem:[#allocation6 + $0x248] sm:$0xf0]  ;;  %v7606_v61 = vor.u32 %v6570_v5, %v5903_v54 }
  0xab   : > { %11427 = vst [vmem:[#allocation119_spill] sm:$0xff] %v7587_v22  ;;  %v6536_v51 = vld [vmem:[#allocation6 + $0x2c4] sm:$0xf]  ;;  %v5767_v31 = vld [vmem:[#allocation6 + $0x2c8] sm:$0xf0]  ;;  %v7609_v40 = vor.u32 %v6520_v63, %v5703_v49 }
  0xac   : > { %11428 = vst [vmem:[#allocation120_spill] sm:$0xff] %v7590_v58  ;;  %1488 = vmatpush.bf16.msrb.mxu3 %v7590_v58  ;;  %v6552_v55 = vld [vmem:[#allocation6 + $0x344] sm:$0xf]  ;;  %v5831_v24 = vld [vmem:[#allocation6 + $0x348] sm:$0xf0]  ;;  %1447 = vmatpush.bf16.msrb.mxu0 %v7596_v62  ;;  %v7613_v43 = vor.u32 %v6536_v51, %v5767_v31 }
  0xad   : > { %11429 = vst [vmem:[#allocation121_spill] sm:$0xff] %v7596_v62  ;;  %v6568_v60 = vld [vmem:[#allocation6 + $0x3c4] sm:$0xf]  ;;  %v5895_v35 = vld [vmem:[#allocation6 + $0x3c8] sm:$0xf0]  ;;  %1461 = vmatpush.bf16.msrb.mxu1 %v7601_v36  ;;  %v7615_v13 = vor.u32 %v6552_v55, %v5831_v24 }
  0xae   : > { %11430 = vst [vmem:[#allocation122_spill] sm:$0xff] %v7601_v36  ;;  %1475 = vmatpush.bf16.msrb.mxu2 %v7603_v9  ;;  %v6518_v2 = vld [vmem:[#allocation6 + $0x234] sm:$0xf]  ;;  %v5695_v23 = vld [vmem:[#allocation6 + $0x238] sm:$0xf0]  ;;  %v7618_v54 = vor.u32 %v6568_v60, %v5895_v35 }
  0xaf   : > { %11431 = vst [vmem:[#allocation123_spill] sm:$0xff] %v7603_v9  ;;  %v6534_v5 = vld [vmem:[#allocation6 + $0x2b4] sm:$0xf]  ;;  %v5759_v58 = vld [vmem:[#allocation6 + $0x2b8] sm:$0xf0]  ;;  %v7621_v36 = vor.u32 %v6518_v2, %v5695_v23 }
  0xb0   : > { %11432 = vst [vmem:[#allocation124_spill] sm:$0xff] %v7606_v61  ;;  %1489 = vmatpush.bf16.msrb.mxu3 %v7606_v61  ;;  %v6550_v22 = vld [vmem:[#allocation6 + $0x334] sm:$0xf]  ;;  %v5823_v62 = vld [vmem:[#allocation6 + $0x338] sm:$0xf0]  ;;  %1448 = vmatpush.bf16.msrb.mxu0 %v7609_v40  ;;  %v7625_v51 = vor.u32 %v6534_v5, %v5759_v58 }
  0xb1   : > { %11433 = vst [vmem:[#allocation125_spill] sm:$0xff] %v7609_v40  ;;  %v6566_v63 = vld [vmem:[#allocation6 + $0x3b4] sm:$0xf]  ;;  %v5887_v49 = vld [vmem:[#allocation6 + $0x3b8] sm:$0xf0]  ;;  %1462 = vmatpush.bf16.msrb.mxu1 %v7613_v43  ;;  %v7627_v31 = vor.u32 %v6550_v22, %v5823_v62 }
  0xb2   : > { %11434 = vst [vmem:[#allocation126_spill] sm:$0xff] %v7613_v43  ;;  %1476 = vmatpush.bf16.msrb.mxu2 %v7615_v13  ;;  %v6516_v55 = vld [vmem:[#allocation6 + $0x224] sm:$0xf]  ;;  %v5687_v24 = vld [vmem:[#allocation6 + $0x228] sm:$0xf0]  ;;  %v7630_v35 = vor.u32 %v6566_v63, %v5887_v49 }
  0xb3   : > { %11435 = vst [vmem:[#allocation127_spill] sm:$0xff] %v7615_v13  ;;  %v6532_v60 = vld [vmem:[#allocation6 + $0x2a4] sm:$0xf]  ;;  %v5751_v61 = vld [vmem:[#allocation6 + $0x2a8] sm:$0xf0]  ;;  %v7633_v43 = vor.u32 %v6516_v55, %v5687_v24 }
  0xb4   : > { %11436 = vst [vmem:[#allocation128_spill] sm:$0xff] %v7618_v54  ;;  %1490 = vmatpush.bf16.msrb.mxu3 %v7618_v54  ;;  %v6548_v9 = vld [vmem:[#allocation6 + $0x324] sm:$0xf]  ;;  %v5815_v40 = vld [vmem:[#allocation6 + $0x328] sm:$0xf0]  ;;  %1449 = vmatpush.bf16.msrb.mxu0 %v7621_v36  ;;  %v7637_v22 = vor.u32 %v6532_v60, %v5751_v61 }
  0xb5   : > { %11437 = vst [vmem:[#allocation129_spill] sm:$0xff] %v7621_v36  ;;  %v6564_v2 = vld [vmem:[#allocation6 + $0x3a4] sm:$0xf]  ;;  %v5879_v23 = vld [vmem:[#allocation6 + $0x3a8] sm:$0xf0]  ;;  %1463 = vmatpush.bf16.msrb.mxu1 %v7625_v51  ;;  %v7639_v58 = vor.u32 %v6548_v9, %v5815_v40 }
  0xb6   : > { %11438 = vst [vmem:[#allocation130_spill] sm:$0xff] %v7625_v51  ;;  %1477 = vmatpush.bf16.msrb.mxu2 %v7627_v31  ;;  %v6514_v62 = vld [vmem:[#allocation6 + $0x214] sm:$0xf]  ;;  %v5679_v5 = vld [vmem:[#allocation6 + $0x218] sm:$0xf0]  ;;  %v7642_v49 = vor.u32 %v6564_v2, %v5879_v23 }
  0xb7   : > { %11439 = vst [vmem:[#allocation131_spill] sm:$0xff] %v7627_v31  ;;  %v6530_v63 = vld [vmem:[#allocation6 + $0x294] sm:$0xf]  ;;  %v5743_v54 = vld [vmem:[#allocation6 + $0x298] sm:$0xf0]  ;;  %v7645_v51 = vor.u32 %v6514_v62, %v5679_v5 }
  0xb8   : > { %11440 = vst [vmem:[#allocation132_spill] sm:$0xff] %v7630_v35  ;;  %1491 = vmatpush.bf16.msrb.mxu3 %v7630_v35  ;;  %v6546_v13 = vld [vmem:[#allocation6 + $0x314] sm:$0xf]  ;;  %v5807_v36 = vld [vmem:[#allocation6 + $0x318] sm:$0xf0]  ;;  %1450 = vmatpush.bf16.msrb.mxu0 %v7633_v43  ;;  %v7649_v40 = vor.u32 %v6530_v63, %v5743_v54 }
  0xb9   : > { %11441 = vst [vmem:[#allocation133_spill] sm:$0xff] %v7633_v43  ;;  %v6562_v55 = vld [vmem:[#allocation6 + $0x394] sm:$0xf]  ;;  %v5871_v24 = vld [vmem:[#allocation6 + $0x398] sm:$0xf0]  ;;  %1464 = vmatpush.bf16.msrb.mxu1 %v7637_v22  ;;  %v7651_v9 = vor.u32 %v6546_v13, %v5807_v36 }
  0xba   : > { %11442 = vst [vmem:[#allocation134_spill] sm:$0xff] %v7637_v22  ;;  %1478 = vmatpush.bf16.msrb.mxu2 %v7639_v58  ;;  %v6512_v61 = vld [vmem:[#allocation6 + $0x204] sm:$0xf]  ;;  %v5671_v60 = vld [vmem:[#allocation6 + $0x208] sm:$0xf0]  ;;  %v7654_v23 = vor.u32 %v6562_v55, %v5871_v24  ;;  %v11460_v63 = vld [vmem:[#allocation54_spill] sm:$0xff] }
  0xbb   : > { %11443 = vst [vmem:[#allocation135_spill] sm:$0xff] %v7639_v58  ;;  %v6528_v2 = vld [vmem:[#allocation6 + $0x284] sm:$0xf]  ;;  %v5735_v35 = vld [vmem:[#allocation6 + $0x288] sm:$0xf0]  ;;  %v7657_v22 = vor.u32 %v6512_v61, %v5671_v60  ;;  %v1509_v55 = vunpack.c.l.b16 %v11460_v63 }
  0xbc   : > { %11444 = vst [vmem:[#allocation136_spill] sm:$0xff] %v7642_v49  ;;  %1492 = vmatpush.bf16.msrb.mxu3 %v7642_v49  ;;  %v6544_v31 = vld [vmem:[#allocation6 + $0x304] sm:$0xf]  ;;  %v5799_v43 = vld [vmem:[#allocation6 + $0x308] sm:$0xf0]  ;;  %1451 = vmatpush.bf16.msrb.mxu0 %v7645_v51  ;;  %v7661_v36 = vor.u32 %v6528_v2, %v5735_v35  ;;  %v11463_v2 = vld [vmem:[#allocation42_spill] sm:$0xff] }
  0xbd   : > { %11445 = vst [vmem:[#allocation137_spill] sm:$0xff] %v7645_v51  ;;  %v6560_v62 = vld [vmem:[#allocation6 + $0x384] sm:$0xf]  ;;  %v5863_v5 = vld [vmem:[#allocation6 + $0x388] sm:$0xf0]  ;;  %1465 = vmatpush.bf16.msrb.mxu1 %v7649_v40  ;;  %v7663_v13 = vor.u32 %v6544_v31, %v5799_v43  ;;  %v11457_v43 = vld [vmem:[#allocation38_spill] sm:$0xff] }
  0xbe   : > { %11446 = vst [vmem:[#allocation138_spill] sm:$0xff] %v7649_v40  ;;  %1479 = vmatpush.bf16.msrb.mxu2 %v7651_v9  ;;  %v7666_v54 = vor.u32 %v6560_v62, %v5863_v5  ;;  %v11458_v31 = vld [vmem:[#allocation39_spill] sm:$0xff]  ;;  %v11459_v35 = vld [vmem:[#allocation40_spill] sm:$0xff]  ;;  %v11462_v60 = vld [vmem:[#allocation41_spill] sm:$0xff] }
  0xbf   : > { %11447 = vst [vmem:[#allocation139_spill] sm:$0xff] %v7651_v9  ;;  %v11461_v24 = vld [vmem:[#allocation56_spill] sm:$0xff]  ;;  %v11464_v62 = vld [vmem:[#allocation57_spill] sm:$0xff] }
  0xc0   : > { %11448 = vst [vmem:[#allocation140_spill] sm:$0xff] %v7654_v23  ;;  %1493 = vmatpush.bf16.msrb.mxu3 %v7654_v23  ;;  %1452 = vmatpush.bf16.msrb.mxu0 %v7657_v22  ;;  %v1517_v61 = vunpack.c.l.b16 %v11461_v24  ;;  %v1511_v5 = vunpack.c.l.b16 %v11464_v62 }
  0xc1   : > { %11449 = vst [vmem:[#allocation141_spill] sm:$0xff] %v7657_v22  ;;  %1466 = vmatpush.bf16.msrb.mxu1 %v7661_v36 }
  0xc2   : > { %11450 = vst [vmem:[#allocation142_spill] sm:$0xff] %v7661_v36  ;;  %1480 = vmatpush.bf16.msrb.mxu2 %v7663_v13 }
  0xc3   : > { %11451 = vst [vmem:[#allocation143_spill] sm:$0xff] %v7663_v13  ;;  %1453 = vmatmul.bf16.vlgmr.msrb.gmra.mxu0 %v7469_v15  ;;  %v11453_v15 = vld [vmem:[#allocation34_spill] sm:$0xff] }
  0xc4   : > { %11452 = vst [vmem:[#allocation144_spill] sm:$0xff] %v7666_v54  ;;  %1494 = vmatpush.bf16.msrb.mxu3 %v7666_v54  ;;  %1541 = vmatpush.bf16.msra.mxu0 %v7208_v3 }
  0xc5   : > { %1555 = vmatpush.bf16.msra.mxu1 %v7210_v7  ;;  %1481 = vmatmul.bf16.vlgmr.msrb.gmra.mxu2 %v7473_v6  ;;  %v11454_v6 = vld [vmem:[#allocation35_spill] sm:$0xff] }
  0xc6   : > { %1569 = vmatpush.bf16.msra.mxu2 %v7212_v8  ;;  %1467 = vmatmul.bf16.vlgmr.msrb.gmra.mxu1 %v7475_v14  ;;  %v11455_v14 = vld [vmem:[#allocation36_spill] sm:$0xff] }
  0xc7   : > { %1495 = vmatmul.bf16.vlgmr.msrb.gmra.mxu3 %v7479_v47  ;;  %v11456_v47 = vld [vmem:[#allocation37_spill] sm:$0xff] }
  0xc8   : > { %1583 = vmatpush.bf16.msra.mxu3 %v7215_v12  ;;  %1542 = vmatpush.bf16.msra.mxu0 %v7219_v16 }
  0xc9   : > { %1556 = vmatpush.bf16.msra.mxu1 %v7221_v17 }
  0xca   : > { %1570 = vmatpush.bf16.msra.mxu2 %v7224_v21 }
  0xcc   : > { %1584 = vmatpush.bf16.msra.mxu3 %v7226_v25  ;;  %1543 = vmatpush.bf16.msra.mxu0 %v7229_v29 }
  0xcd   : > { %1557 = vmatpush.bf16.msra.mxu1 %v7233_v33 }
  0xce   : > { %1571 = vmatpush.bf16.msra.mxu2 %v7235_v34 }
  0xd0   : > { %1585 = vmatpush.bf16.msra.mxu3 %v7238_v38  ;;  %1544 = vmatpush.bf16.msra.mxu0 %v7241_v44 }
  0xd1   : > { %1558 = vmatpush.bf16.msra.mxu1 %v7245_v45 }
  0xd2   : > { %1572 = vmatpush.bf16.msra.mxu2 %v7247_v46  ;;  %v11473_v46 = vld [vmem:[#allocation50_spill] sm:$0xff] }
  0xd4   : > { %1586 = vmatpush.bf16.msra.mxu3 %v7250_v50  ;;  %1545 = vmatpush.bf16.msra.mxu0 %v7253_v56  ;;  %v11469_v56 = vld [vmem:[#allocation46_spill] sm:$0xff] }
  0xd5   : > { %1559 = vmatpush.bf16.msra.mxu1 %v7257_v57  ;;  %v11467_v57 = vld [vmem:[#allocation44_spill] sm:$0xff] }
  0xd6   : > { %1573 = vmatpush.bf16.msra.mxu2 %v11453_v15  ;;  %v11466_v15 = vld [vmem:[#allocation43_spill] sm:$0xff] }
  0xd8   : > { %1587 = vmatpush.bf16.msra.mxu3 %v11454_v6  ;;  %1546 = vmatpush.bf16.msra.mxu0 %v11455_v14  ;;  %v11465_v6 = vld [vmem:[#allocation59_spill] sm:$0xff] }
  0xd9   : > { %1560 = vmatpush.bf16.msra.mxu1 %v11456_v47  ;;  %v1519_v14 = vunpack.c.l.b16 %v11465_v6  ;;  %v1510_v47 = vunpack.c.h.b16 %v11460_v63 }
  0xda   : > { %1574 = vmatpush.bf16.msra.mxu2 %v11457_v43  ;;  %v1518_v43 = vunpack.c.h.b16 %v11461_v24  ;;  %v11470_v24 = vld [vmem:[#allocation47_spill] sm:$0xff] }
  0xdb   : > { %v7717_v50 = vpack.c.b16 %v1519_v14, %v1511_v5  ;;  %v11475_v14 = vld [vmem:[#allocation52_spill] sm:$0xff]  ;;  %v11481_v5 = vld [vmem:[#allocation62_spill] sm:$0xff] }
  0xdc   : > { %1588 = vmatpush.bf16.msra.mxu3 %v11458_v31  ;;  %1547 = vmatpush.bf16.msra.mxu0 %v11459_v35  ;;  %v1512_v35 = vunpack.c.h.b16 %v11464_v62  ;;  %v1520_v31 = vunpack.c.h.b16 %v11465_v6  ;;  %v7719_v63 = vpack.c.b16 %v1518_v43, %v1510_v47  ;;  %v11472_v6 = vld [vmem:[#allocation49_spill] sm:$0xff]  ;;  %v11477_v43 = vld [vmem:[#allocation55_spill] sm:$0xff] }
  0xdd   : > { %1561 = vmatpush.bf16.msra.mxu1 %v11462_v60  ;;  %v7713_v60 = vpack.c.b16 %v1517_v61, %v1509_v55  ;;  %v11474_v55 = vld [vmem:[#allocation51_spill] sm:$0xff]  ;;  %v11476_v47 = vld [vmem:[#allocation53_spill] sm:$0xff] }
  0xde   : > { %1575 = vmatpush.bf16.msra.mxu2 %v11463_v2  ;;  %v11468_v2 = vld [vmem:[#allocation45_spill] sm:$0xff]  ;;  %v7723_v62 = vpack.c.b16 %v1520_v31, %v1512_v35  ;;  %v11478_v31 = vld [vmem:[#allocation58_spill] sm:$0xff]  ;;  %v11479_v35 = vld [vmem:[#allocation60_spill] sm:$0xff] }
  0xdf   : > { %v11480_v61 = vld [vmem:[#allocation61_spill] sm:$0xff] }
  0xe0   : > { %1589 = vmatpush.bf16.msra.mxu3 %v11466_v15  ;;  %1548 = vmatpush.bf16.msra.mxu0 %v11467_v57  ;;  %v11471_v15 = vld [vmem:[#allocation48_spill] sm:$0xff] }
  0xe1   : > { %1562 = vmatpush.bf16.msra.mxu1 %v11468_v2  ;;  %v11497_v2 = vld [vmem:[#allocation77_spill] sm:$0xff] }
  0xe2   : > { %1576 = vmatpush.bf16.msra.mxu2 %v11469_v56  ;;  %v11496_v56 = vld [vmem:[#allocation76_spill] sm:$0xff] }
  0xe3   : > { %1549 = vmatmul.bf16.vlgmr.msra.gmra.mxu0 %v7713_v60 }
  0xe4   : > { %1590 = vmatpush.bf16.msra.mxu3 %v11470_v24  ;;  %1597 = vmatpush.bf16.msrb.mxu0 %v11471_v15  ;;  %v11488_v15 = vld [vmem:[#allocation69_spill] sm:$0xff] }
  0xe5   : > { %1611 = vmatpush.bf16.msrb.mxu1 %v11472_v6  ;;  %1577 = vmatmul.bf16.vlgmr.msra.gmra.mxu2 %v7717_v50  ;;  %v11484_v6 = vld [vmem:[#allocation65_spill] sm:$0xff] }
  0xe6   : > { %1625 = vmatpush.bf16.msrb.mxu2 %v11473_v46  ;;  %1563 = vmatmul.bf16.vlgmr.msra.gmra.mxu1 %v7719_v63  ;;  %v11483_v46 = vld [vmem:[#allocation64_spill] sm:$0xff] }
  0xe7   : > { %1591 = vmatmul.bf16.vlgmr.msra.gmra.mxu3 %v7723_v62 }
  0xe8   : > { %1639 = vmatpush.bf16.msrb.mxu3 %v11474_v55  ;;  %1598 = vmatpush.bf16.msrb.mxu0 %v11475_v14  ;;  %v11482_v55 = vld [vmem:[#allocation63_spill] sm:$0xff]  ;;  %v11485_v14 = vld [vmem:[#allocation66_spill] sm:$0xff] }
  0xe9   : > { %1612 = vmatpush.bf16.msrb.mxu1 %v11476_v47  ;;  %v11486_v47 = vld [vmem:[#allocation67_spill] sm:$0xff] }
  0xea   : > { %1626 = vmatpush.bf16.msrb.mxu2 %v11477_v43  ;;  %v1286_v43 = vpop.f32.mrf.mxu0 }
  0xec   : > { %1640 = vmatpush.bf16.msrb.mxu3 %v11478_v31  ;;  %1599 = vmatpush.bf16.msrb.mxu0 %v11479_v35  ;;  %v11487_v31 = vld [vmem:[#allocation68_spill] sm:$0xff]  ;;  %v1300_v35 = vpop.f32.mrf.mxu1 }
  0xed   : > { %1613 = vmatpush.bf16.msrb.mxu1 %v11480_v61  ;;  %v11489_v61 = vld [vmem:[#allocation70_spill] sm:$0xff] }
  0xee   : > { %1627 = vmatpush.bf16.msrb.mxu2 %v11481_v5  ;;  %v1301_v5 = vadd.f32 %v1300_v35, %v1286_v43  ;;  %v11495_v35 = vld [vmem:[#allocation74_spill] sm:$0xff] }
  0xef   : > { %v1513_v24 = vunpack.c.l.b16 %v11495_v35 }
  0xf0   : > { %1641 = vmatpush.bf16.msrb.mxu3 %v11482_v55  ;;  %1600 = vmatpush.bf16.msrb.mxu0 %v11483_v46  ;;  %v11492_v46 = vld [vmem:[#allocation73_spill] sm:$0xff]  ;;  %v11494_v55 = vld [vmem:[#allocation78_spill] sm:$0xff] }
  0xf1   : > { %1614 = vmatpush.bf16.msrb.mxu1 %v11484_v6  ;;  %v11490_v6 = vld [vmem:[#allocation71_spill] sm:$0xff] }
  0xf2   : > { %1628 = vmatpush.bf16.msrb.mxu2 %v11485_v14  ;;  %v11491_v14 = vld [vmem:[#allocation72_spill] sm:$0xff] }
  0xf4   : > { %1642 = vmatpush.bf16.msrb.mxu3 %v11486_v47  ;;  %1601 = vmatpush.bf16.msrb.mxu0 %v11487_v31  ;;  %v571_v47 = vld [vmem:[%s7751_s30] sm:$0xff]  ;;  %v11493_v31 = vld [vmem:[#allocation75_spill] sm:$0xff] }
  0xf5   : > { %1615 = vmatpush.bf16.msrb.mxu1 %v11488_v15  ;;  %v1314_v15 = vpop.f32.mrf.mxu2  ;;  %v1328_v57 = vpop.f32.mrf.mxu3 }
  0xf6   : > { %1629 = vmatpush.bf16.msrb.mxu2 %v11489_v61  ;;  %v7038_v61 = vmov 0   ;;  %v1315_v43 = vadd.f32 %v1314_v15, %v1301_v5  ;;  %v1522_v15 = vunpack.c.h.b16 %v11496_v56 }
  0xf7   : > { %6798 = vset.pattern.permute.xlu1 %v7038_v61  ;;  %v1514_v61 = vunpack.c.h.b16 %v11495_v35  ;;  %v11505_v35 = vld [vmem:[#allocation88_spill] sm:$0xff] }
  0xf8   : > { %1643 = vmatpush.bf16.msrb.mxu3 %v11490_v6  ;;  %1602 = vmatpush.bf16.msrb.mxu0 %v11491_v14  ;;  %v1521_v6 = vunpack.c.l.b16 %v11496_v56  ;;  %v1515_v14 = vunpack.c.l.b16 %v11497_v2 }
  0xf9   : > { %1616 = vmatpush.bf16.msrb.mxu1 %v11492_v46  ;;  %2914 = vperm.xlu1 %6798, %v571_v47   ;;  %v1329_v46 = vadd.f32 %v1328_v57, %v1315_v43  ;;  %v1516_v47 = vunpack.c.h.b16 %v11497_v2  ;;  %v7780_v56 = vpack.c.b16 %v1522_v15, %v1514_v61  ;;  %v7782_v43 = vpop.f32.mrf.mxu1 }
  0xfa   : > { %1630 = vmatpush.bf16.msrb.mxu2 %v11493_v31  ;;  %v11498_v31 = vld [vmem:[#allocation79_spill] sm:$0xff]  ;;  %11500 = vst [vmem:[#allocation56_spill] sm:$0xff] %v7782_v43  ;;  %v11508_v43 = vld [vmem:[#allocation90_spill] sm:$0xff] }
  0xfb   : > { %v1524_v5 = vunpack.c.h.b16 %v11498_v31 }
  0xfc   : > { %1644 = vmatpush.bf16.msrb.mxu3 %v11494_v55  ;;  %1603 = vmatpush.bf16.msrb.mxu0 %v7427_v28  ;;  %v1523_v55 = vunpack.c.l.b16 %v11498_v31  ;;  %v7771_v28 = vpop.f32.mrf.mxu0  ;;  %v11504_v31 = vld [vmem:[#allocation87_spill] sm:$0xff] }
  0xfd   : > { %1617 = vmatpush.bf16.msrb.mxu1 %v7430_v10  ;;  %11499 = vst [vmem:[#allocation54_spill] sm:$0xff] %v7771_v28  ;;  %v7774_v10 = vpack.c.b16 %v1521_v6, %v1513_v24  ;;  %v7786_v2 = vpack.c.b16 %v1524_v5, %v1516_v47  ;;  %v572_v24 = vld [vmem:[%s7751_s30 + $0x8] sm:$0xff]  ;;  %v7802_v61 = vpop.f32.mrf.mxu3  ;;  %v11509_v28 = vld [vmem:[#allocation91_spill] sm:$0xff] }
  0xfe   : > { %1631 = vmatpush.bf16.msrb.mxu2 %v7437_v59  ;;  %v7778_v57 = vpack.c.b16 %v1523_v55, %v1515_v14  ;;  %v11501_v6 = vld [vmem:[#allocation85_spill] sm:$0xff]  ;;  %v7797_v55 = vpop.f32.mrf.mxu2  ;;  %v11503_v14 = vld [vmem:[#allocation86_spill] sm:$0xff]  ;;  %11506 = vst [vmem:[#allocation59_spill] sm:$0xff] %v7802_v61  ;;  %v11514_v61 = vld [vmem:[#allocation96_spill] sm:$0xff] }
  0xff   : > { %11502 = vst [vmem:[#allocation57_spill] sm:$0xff] %v7797_v55  ;;  %v11507_v47 = vld [vmem:[#allocation89_spill] sm:$0xff] }
 0x100   : > { %1645 = vmatpush.bf16.msrb.mxu3 %v7443_v39  ;;  %1604 = vmatpush.bf16.msrb.mxu0 %v7447_v11 }
 0x101   : > { %1618 = vmatpush.bf16.msrb.mxu1 %v7449_v19  ;;  %2918 = vperm.xlu1 %6798, %v572_v24  }
 0x102   : > { %1632 = vmatpush.bf16.msrb.mxu2 %v7452_v18 }
 0x103   : > { %1605 = vmatmul.bf16.vlgmr.msrb.gmra.mxu0 %v7774_v10 }
 0x104   : > { %1646 = vmatpush.bf16.msrb.mxu3 %v7457_v42  ;;  %1653 = vmatpush.bf16.msra.mxu0 %v7459_v48  ;;  %v1342_v15 = vpop.f32.mrf.mxu0 }
 0x105   : > { %1667 = vmatpush.bf16.msra.mxu1 %v7462_v27  ;;  %1633 = vmatmul.bf16.vlgmr.msrb.gmra.mxu2 %v7778_v57  ;;  %v1343_v5 = vadd.f32 %v1342_v15, %v1329_v46  ;;  %v11516_v15 = vld [vmem:[#allocation98_spill] sm:$0xff] }
 0x106   : > { %1681 = vmatpush.bf16.msra.mxu2 %v7464_v32  ;;  %1619 = vmatmul.bf16.vlgmr.msrb.gmra.mxu1 %v7780_v56 }
 0x107   : > { %1647 = vmatmul.bf16.vlgmr.msrb.gmra.mxu3 %v7786_v2 }
 0x108   : > { %1695 = vmatpush.bf16.msra.mxu3 %v7467_v1  ;;  %1654 = vmatpush.bf16.msra.mxu0 %v11501_v6  ;;  %v1356_v6 = vpop.f32.mrf.mxu1  ;;  %v11510_v1 = vld [vmem:[#allocation92_spill] sm:$0xff] }
 0x109   : > { %1668 = vmatpush.bf16.msra.mxu1 %v11503_v14  ;;  %v1357_v55 = vadd.f32 %v1356_v6, %v1343_v5  ;;  %v11511_v14 = vld [vmem:[#allocation93_spill] sm:$0xff]  ;;  %v11518_v6 = vld [vmem:[#allocation100_spill] sm:$0xff] }
 0x10a   : > { %1682 = vmatpush.bf16.msra.mxu2 %v11504_v31  ;;  %v11512_v31 = vld [vmem:[#allocation94_spill] sm:$0xff]  ;;  %v1370_v24 = vpop.f32.mrf.mxu2  ;;  %v11519_v5 = vld [vmem:[#allocation101_spill] sm:$0xff] }
 0x10b   : > { %v1371_v32 = vadd.f32 %v1370_v24, %v1357_v55  ;;  %v11523_v55 = vld [vmem:[#allocation105_spill] sm:$0xff]  ;;  %v11524_v24 = vld [vmem:[#allocation106_spill] sm:$0xff] }
 0x10c   : > { %1696 = vmatpush.bf16.msra.mxu3 %v11505_v35  ;;  %1655 = vmatpush.bf16.msra.mxu0 %v11507_v47  ;;  %v11513_v35 = vld [vmem:[#allocation95_spill] sm:$0xff]  ;;  %v11515_v47 = vld [vmem:[#allocation97_spill] sm:$0xff]  ;;  %v1384_v46 = vpop.f32.mrf.mxu3 }
 0x10d   : > { %1669 = vmatpush.bf16.msra.mxu1 %v11508_v43  ;;  %v7815_v43 = vadd.f32 %v1384_v46, %v1371_v32  ;;  %v7829_v32 = vpop.f32.mrf.mxu0 }
 0x10e   : > { %1683 = vmatpush.bf16.msra.mxu2 %v11509_v28  ;;  %v11517_v28 = vld [vmem:[#allocation99_spill] sm:$0xff]  ;;  %11525 = vst [vmem:[#allocation74_spill] sm:$0xff] %v7829_v32 }
 0x10f   : > { %v11530_v32 = vld [vmem:[#allocation119_spill] sm:$0xff] }
 0x110   : > { %1697 = vmatpush.bf16.msra.mxu3 %v11510_v1  ;;  %1656 = vmatpush.bf16.msra.mxu0 %v11511_v14  ;;  %v7831_v46 = vpop.f32.mrf.mxu1 }
 0x111   : > { %1670 = vmatpush.bf16.msra.mxu1 %v11512_v31  ;;  %v11520_v31 = vld [vmem:[#allocation102_spill] sm:$0xff]  ;;  %11526 = vst [vmem:[#allocation76_spill] sm:$0xff] %v7831_v46 }
 0x112   : > { %1684 = vmatpush.bf16.msra.mxu2 %v11513_v35  ;;  %v11521_v35 = vld [vmem:[#allocation103_spill] sm:$0xff]  ;;  %v11529_v46 = vld [vmem:[#allocation118_spill] sm:$0xff] }
 0x114   : > { %1698 = vmatpush.bf16.msra.mxu3 %v11514_v61  ;;  %1657 = vmatpush.bf16.msra.mxu0 %v11515_v47  ;;  %v11522_v61 = vld [vmem:[#allocation104_spill] sm:$0xff] }
 0x115   : > { %1671 = vmatpush.bf16.msra.mxu1 %v11516_v15 }
 0x116   : > { %1685 = vmatpush.bf16.msra.mxu2 %v11517_v28 }
 0x118   : > { %1699 = vmatpush.bf16.msra.mxu3 %v11518_v6  ;;  %1658 = vmatpush.bf16.msra.mxu0 %v11519_v5 }
 0x119   : > { %1672 = vmatpush.bf16.msra.mxu1 %v11520_v31 }
 0x11a   : > { %1686 = vmatpush.bf16.msra.mxu2 %v11521_v35  ;;  %v11527_v35 = vld [vmem:[#allocation112_spill] sm:$0xff] }
 0x11c   : > { %1700 = vmatpush.bf16.msra.mxu3 %v11522_v61  ;;  %1659 = vmatpush.bf16.msra.mxu0 %v11523_v55  ;;  %v11528_v61 = vld [vmem:[#allocation113_spill] sm:$0xff] }
 0x11d   : > { %1673 = vmatpush.bf16.msra.mxu1 %v11524_v24 }
 0x11e   : > { %1687 = vmatpush.bf16.msra.mxu2 %v7551_v37 }
 0x120   : > { %1701 = vmatpush.bf16.msra.mxu3 %v7554_v26  ;;  %1660 = vmatpush.bf16.msra.mxu0 %v7557_v52  ;;  %v11543_v52 = vld [vmem:[#allocation130_spill] sm:$0xff] }
 0x121   : > { %1674 = vmatpush.bf16.msra.mxu1 %v7561_v20 }
 0x122   : > { %1688 = vmatpush.bf16.msra.mxu2 %v7563_v0 }
 0x123   : > { %1661 = vmatmul.bf16.vlgmr.msra.gmra.mxu0 %v7713_v60  ;;  %v1398_v60 = vpop.f32.mrf.mxu0 }
 0x124   : > { %1702 = vmatpush.bf16.msra.mxu3 %v11527_v35  ;;  %1709 = vmatpush.bf16.msrb.mxu0 %v11528_v61  ;;  %v7845_v61 = vpop.f32.mrf.mxu2  ;;  %v11535_v35 = vld [vmem:[#allocation122_spill] sm:$0xff] }
 0x125   : > { %1723 = vmatpush.bf16.msrb.mxu1 %v7570_v30  ;;  %1689 = vmatmul.bf16.vlgmr.msra.gmra.mxu2 %v7717_v50  ;;  %11531 = vst [vmem:[#allocation77_spill] sm:$0xff] %v7845_v61  ;;  %v11532_v30 = vld [vmem:[#allocation120_spill] sm:$0xff]  ;;  %v1412_v50 = vpop.f32.mrf.mxu1  ;;  %v11540_v61 = vld [vmem:[#allocation127_spill] sm:$0xff] }
 0x126   : > { %1737 = vmatpush.bf16.msrb.mxu2 %v7572_v53  ;;  %1675 = vmatmul.bf16.vlgmr.msra.gmra.mxu1 %v7719_v63  ;;  %v7848_v53 = vpop.f32.mrf.mxu3  ;;  %v11536_v63 = vld [vmem:[#allocation123_spill] sm:$0xff] }
 0x127   : > { %1703 = vmatmul.bf16.vlgmr.msra.gmra.mxu3 %v7723_v62  ;;  %11533 = vst [vmem:[#allocation79_spill] sm:$0xff] %v7848_v53  ;;  %v1413_v62 = vadd.f32 %v1412_v50, %v1398_v60  ;;  %v11545_v50 = vld [vmem:[#allocation132_spill] sm:$0xff] }
 0x128   : > { %1751 = vmatpush.bf16.msrb.mxu3 %v7575_v4  ;;  %1710 = vmatpush.bf16.msrb.mxu0 %v7581_v41  ;;  %v11534_v4 = vld [vmem:[#allocation121_spill] sm:$0xff]  ;;  %v11537_v41 = vld [vmem:[#allocation124_spill] sm:$0xff] }
 0x129   : > { %1724 = vmatpush.bf16.msrb.mxu1 %v11529_v46  ;;  %v11538_v46 = vld [vmem:[#allocation125_spill] sm:$0xff] }
 0x12a   : > { %1738 = vmatpush.bf16.msrb.mxu2 %v11530_v32  ;;  %v11539_v32 = vld [vmem:[#allocation126_spill] sm:$0xff] }
 0x12c   : > { %1752 = vmatpush.bf16.msrb.mxu3 %v11532_v30  ;;  %1711 = vmatpush.bf16.msrb.mxu0 %v11534_v4  ;;  %v11541_v30 = vld [vmem:[#allocation128_spill] sm:$0xff]  ;;  %v1426_v53 = vpop.f32.mrf.mxu2  ;;  %v11542_v4 = vld [vmem:[#allocation129_spill] sm:$0xff] }
 0x12d   : > { %1725 = vmatpush.bf16.msrb.mxu1 %v11535_v35  ;;  %v1427_v0 = vadd.f32 %v1426_v53, %v1413_v62  ;;  %v11544_v35 = vld [vmem:[#allocation131_spill] sm:$0xff]  ;;  %v7870_v53 = vpop.f32.mrf.mxu0 }
 0x12e   : > { %1739 = vmatpush.bf16.msrb.mxu2 %v11536_v63  ;;  %v1440_v20 = vpop.f32.mrf.mxu3  ;;  %11548 = vst [vmem:[#allocation92_spill] sm:$0xff] %v7870_v53  ;;  %v11552_v53 = vld [vmem:[#allocation30_spill] sm:$0xff] }
 0x12f   : > { %v1441_v60 = vadd.f32 %v1440_v20, %v1427_v0  ;;  %v7875_v20 = vpop.f32.mrf.mxu1 }
 0x130   : > { %1753 = vmatpush.bf16.msrb.mxu3 %v11537_v41  ;;  %1712 = vmatpush.bf16.msrb.mxu0 %v11538_v46  ;;  %v11546_v41 = vld [vmem:[#allocation133_spill] sm:$0xff]  ;;  %v11547_v46 = vld [vmem:[#allocation134_spill] sm:$0xff]  ;;  %11549 = vst [vmem:[#allocation93_spill] sm:$0xff] %v7875_v20  ;;  %v1773_v20 = vld [vmem:[%s7202_s17 + $0x100] sm:$0xff] }
 0x131   : > { %1726 = vmatpush.bf16.msrb.mxu1 %v11539_v32 }
 0x132   : > { %1740 = vmatpush.bf16.msrb.mxu2 %v11540_v61 }
 0x134   : > { %1754 = vmatpush.bf16.msrb.mxu3 %v11541_v30  ;;  %1713 = vmatpush.bf16.msrb.mxu0 %v11542_v4  ;;  %v7887_v0 = vpop.f32.mrf.mxu2 }
 0x135   : > { %1727 = vmatpush.bf16.msrb.mxu1 %v11543_v52  ;;  %11550 = vst [vmem:[#allocation97_spill] sm:$0xff] %v7887_v0  ;;  %v1765_v0 = vld [vmem:[%s7202_s17 + $0x40] sm:$0xff] }
 0x136   : > { %1741 = vmatpush.bf16.msrb.mxu2 %v11544_v35 }
 0x138   : > { %1755 = vmatpush.bf16.msrb.mxu3 %v11545_v50  ;;  %1714 = vmatpush.bf16.msrb.mxu0 %v11546_v41 }
 0x139   : > { %1728 = vmatpush.bf16.msrb.mxu1 %v11547_v46 }
 0x13a   : > { %1742 = vmatpush.bf16.msrb.mxu2 %v7639_v58 }
 0x13c   : > { %1756 = vmatpush.bf16.msrb.mxu3 %v7642_v49  ;;  %1715 = vmatpush.bf16.msrb.mxu0 %v7645_v51  ;;  %v11569_v51 = vld [vmem:[#allocation43_spill] sm:$0xff]  ;;  %v11570_v49 = vld [vmem:[#allocation44_spill] sm:$0xff] }
 0x13d   : > { %1729 = vmatpush.bf16.msrb.mxu1 %v7649_v40 }
 0x13e   : > { %1743 = vmatpush.bf16.msrb.mxu2 %v7651_v9 }
 0x140   : > { %1757 = vmatpush.bf16.msrb.mxu3 %v7654_v23  ;;  %1716 = vmatpush.bf16.msrb.mxu0 %v7657_v22 }
 0x141   : > { %1730 = vmatpush.bf16.msrb.mxu1 %v7661_v36 }
 0x142   : > { %1744 = vmatpush.bf16.msrb.mxu2 %v7663_v13  ;;  %v11566_v13 = vld [vmem:[#allocation40_spill] sm:$0xff] }
 0x143   : > { %1717 = vmatmul.bf16.vlgmr.msrb.gmra.mxu0 %v7774_v10  ;;  %v7892_v10 = vpop.f32.mrf.mxu3 }
 0x144   : > { %1758 = vmatpush.bf16.msrb.mxu3 %v7666_v54  ;;  %1829 = vmatpush.bf16.msra.mxu0 %v7208_v3  ;;  %11551 = vst [vmem:[#allocation145_spill] sm:$0xff] %v7892_v10  ;;  %v1766_v10 = vld [vmem:[%s7202_s17 + $0x48] sm:$0xff]  ;;  %v11564_v54 = vld [vmem:[#allocation38_spill] sm:$0xff] }
 0x145   : > { %1843 = vmatpush.bf16.msra.mxu1 %v7210_v7  ;;  %1745 = vmatmul.bf16.vlgmr.msrb.gmra.mxu2 %v7778_v57  ;;  %v1454_v57 = vpop.f32.mrf.mxu0  ;;  %v11563_v3 = vld [vmem:[#allocation37_spill] sm:$0xff] }
 0x146   : > { %1857 = vmatpush.bf16.msra.mxu2 %v7212_v8  ;;  %1731 = vmatmul.bf16.vlgmr.msrb.gmra.mxu1 %v7780_v56  ;;  %v1455_v56 = vadd.f32 %v1454_v57, %v1441_v60  ;;  %v1774_v60 = vld [vmem:[%s7202_s17 + $0x108] sm:$0xff]  ;;  %v1767_v57 = vld [vmem:[%s7202_s17 + $0x50] sm:$0xff]  ;;  %v11561_v8 = vld [vmem:[#allocation35_spill] sm:$0xff] }
 0x147   : > { %1759 = vmatmul.bf16.vlgmr.msrb.gmra.mxu3 %v7786_v2  ;;  %v1468_v2 = vpop.f32.mrf.mxu1 }
 0x148   : > { %1871 = vmatpush.bf16.msra.mxu3 %v7215_v12  ;;  %1830 = vmatpush.bf16.msra.mxu0 %v7219_v16  ;;  %v1469_v62 = vadd.f32 %v1468_v2, %v1455_v56  ;;  %v7911_v2 = vpack.c.bf16 %v1766_v10, %v1765_v0 }
 0x149   : > { %1844 = vmatpush.bf16.msra.mxu1 %v7221_v17 }
 0x14a   : > { %1858 = vmatpush.bf16.msra.mxu2 %v7224_v21  ;;  %v1776_v21 = vld [vmem:[%s7202_s17 + $0x118] sm:$0xff]  ;;  %11555 = vst [vmem:[#allocation146_spill] sm:$0xff] %v7911_v2 }
 0x14b   : > { %v1496_v56 = vpop.f32.mrf.mxu3 }
 0x14c   : > { %1872 = vmatpush.bf16.msra.mxu3 %v7226_v25  ;;  %1831 = vmatpush.bf16.msra.mxu0 %v7229_v29  ;;  %v11553_v29 = vld [vmem:[#allocation31_spill] sm:$0xff]  ;;  %v1775_v25 = vld [vmem:[%s7202_s17 + $0x110] sm:$0xff] }
 0x14d   : > { %1845 = vmatpush.bf16.msra.mxu1 %v7233_v33  ;;  %v1768_v33 = vld [vmem:[%s7202_s17 + $0x58] sm:$0xff] }
 0x14e   : > { %1859 = vmatpush.bf16.msra.mxu2 %v7235_v34  ;;  %v1482_v34 = vpop.f32.mrf.mxu2  ;;  %v7915_v16 = vpack.c.bf16 %v1768_v33, %v1767_v57 }
 0x14f   : > { %v1483_v17 = vadd.f32 %v1482_v34, %v1469_v62  ;;  %v11562_v34 = vld [vmem:[#allocation36_spill] sm:$0xff]  ;;  %v1789_v62 = vunpack.c.l.bf16 %v7911_v2 }
 0x150   : > { %1873 = vmatpush.bf16.msra.mxu3 %v7238_v38  ;;  %1832 = vmatpush.bf16.msra.mxu0 %v7241_v44  ;;  %v11554_v38 = vld [vmem:[#allocation32_spill] sm:$0xff]  ;;  %v7913_v44 = vpack.c.bf16 %v1774_v60, %v1773_v20  ;;  %11557 = vst [vmem:[#allocation148_spill] sm:$0xff] %v7915_v16  ;;  %v1791_v7 = vunpack.c.l.bf16 %v7915_v16 }
 0x151   : > { %1846 = vmatpush.bf16.msra.mxu1 %v7245_v45  ;;  %v11558_v45 = vld [vmem:[#allocation33_spill] sm:$0xff]  ;;  %v7919_v12 = vadd.f32 %v1496_v56, %v1483_v17  ;;  %v1790_v17 = vunpack.c.h.bf16 %v7911_v2  ;;  %v1805_v36 = vsub.f32 %v1765_v0, %v1789_v62 }
 0x152   : > { %1860 = vmatpush.bf16.msra.mxu2 %v11552_v53  ;;  %11556 = vst [vmem:[#allocation147_spill] sm:$0xff] %v7913_v44  ;;  %v11559_v53 = vld [vmem:[#allocation34_spill] sm:$0xff]  ;;  %v1798_v56 = vunpack.c.h.bf16 %v7913_v44  ;;  %v1807_v23 = vsub.f32 %v1767_v57, %v1791_v7  ;;  %v11572_v0 = vld [vmem:[#allocation45_spill] sm:$0xff]  ;;  %v11586_v57 = vld [vmem:[#allocation60_spill] sm:$0xff] }
 0x153   : > { %v1806_v40 = vsub.f32 %v1766_v10, %v1790_v17  ;;  %v11573_v7 = vld [vmem:[#allocation46_spill] sm:$0xff]  ;;  %v7970_v10 = vpop.f32.mrf.mxu3  ;;  %v11587_v62 = vld [vmem:[#allocation61_spill] sm:$0xff] }
 0x154   : > { %1874 = vmatpush.bf16.msra.mxu3 %v11553_v29  ;;  %1833 = vmatpush.bf16.msra.mxu0 %v11554_v38  ;;  %v7921_v29 = vpack.c.bf16 %v1776_v21, %v1775_v25  ;;  %v1797_v38 = vunpack.c.l.bf16 %v7913_v44  ;;  %v1814_v2 = vsub.f32 %v1774_v60, %v1798_v56  ;;  %11585 = vst [vmem:[#allocation153_spill] sm:$0xff] %v7970_v10  ;;  %v11588_v17 = vld [vmem:[#allocation62_spill] sm:$0xff]  ;;  %v11589_v56 = vld [vmem:[#allocation63_spill] sm:$0xff]  ;;  %v1769_v10 = vld [vmem:[%s7202_s17 + $0x60] sm:$0xff] }
 0x155   : > { %1847 = vmatpush.bf16.msra.mxu1 %v11558_v45  ;;  %v11565_v45 = vld [vmem:[#allocation39_spill] sm:$0xff] }
 0x156   : > { %1861 = vmatpush.bf16.msra.mxu2 %v11559_v53  ;;  %11560 = vst [vmem:[#allocation149_spill] sm:$0xff] %v7921_v29  ;;  %v1799_v53 = vunpack.c.l.bf16 %v7921_v29  ;;  %v1813_v22 = vsub.f32 %v1773_v20, %v1797_v38  ;;  %v7949_v20 = vpack.c.bf16 %v1814_v2, %v1806_v40  ;;  %v11580_v40 = vld [vmem:[#allocation52_spill] sm:$0xff] }
 0x158   : > { %1875 = vmatpush.bf16.msra.mxu3 %v11561_v8  ;;  %1834 = vmatpush.bf16.msra.mxu0 %v11562_v34  ;;  %v1792_v34 = vunpack.c.h.bf16 %v7915_v16  ;;  %v1800_v8 = vunpack.c.h.bf16 %v7921_v29  ;;  %v1815_v9 = vsub.f32 %v1775_v25, %v1799_v53  ;;  %v7941_v16 = vpack.c.bf16 %v1813_v22, %v1805_v36  ;;  %v7943_v29 = vpop.f32.mrf.mxu0  ;;  %v7951_v25 = vpop.f32.mrf.mxu1  ;;  %v11575_v53 = vld [vmem:[#allocation47_spill] sm:$0xff]  ;;  %v11578_v22 = vld [vmem:[#allocation50_spill] sm:$0xff] }
 0x159   : > { %1848 = vmatpush.bf16.msra.mxu1 %v11563_v3  ;;  %v11567_v3 = vld [vmem:[#allocation41_spill] sm:$0xff]  ;;  %11571 = vst [vmem:[#allocation150_spill] sm:$0xff] %v7943_v29  ;;  %v11579_v36 = vld [vmem:[#allocation51_spill] sm:$0xff] }
 0x15a   : > { %1862 = vmatpush.bf16.msra.mxu2 %v11564_v54  ;;  %v11568_v54 = vld [vmem:[#allocation42_spill] sm:$0xff]  ;;  %v1808_v44 = vsub.f32 %v1768_v33, %v1792_v34  ;;  %v7947_v38 = vpack.c.bf16 %v1815_v9, %v1807_v23  ;;  %11574 = vst [vmem:[#allocation151_spill] sm:$0xff] %v7951_v25  ;;  %v11576_v33 = vld [vmem:[#allocation48_spill] sm:$0xff]  ;;  %v11581_v9 = vld [vmem:[#allocation53_spill] sm:$0xff] }
 0x15b   : > { %v11584_v23 = vld [vmem:[#allocation58_spill] sm:$0xff]  ;;  %v11590_v25 = vld [vmem:[#allocation64_spill] sm:$0xff]  ;;  %v1770_v29 = vld [vmem:[%s7202_s17 + $0x68] sm:$0xff] }
 0x15c   : > { %1876 = vmatpush.bf16.msra.mxu3 %v11565_v45  ;;  %1835 = vmatpush.bf16.msra.mxu0 %v11566_v13  ;;  %v1816_v45 = vsub.f32 %v1776_v21, %v1800_v8  ;;  %v11577_v21 = vld [vmem:[#allocation49_spill] sm:$0xff] }
 0x15d   : > { %1849 = vmatpush.bf16.msra.mxu1 %v11567_v3 }
 0x15e   : > { %1863 = vmatpush.bf16.msra.mxu2 %v11568_v54  ;;  %v7955_v8 = vpack.c.bf16 %v1816_v45, %v1808_v44  ;;  %v11582_v44 = vld [vmem:[#allocation55_spill] sm:$0xff]  ;;  %v7967_v45 = vpop.f32.mrf.mxu2 }
 0x15f   : > { %11583 = vst [vmem:[#allocation152_spill] sm:$0xff] %v7967_v45 }
 0x160   : > { %1877 = vmatpush.bf16.msra.mxu3 %v11569_v51  ;;  %1836 = vmatpush.bf16.msra.mxu0 %v11570_v49  ;;  %v1550_v60 = vpop.f32.mrf.mxu0  ;;  %v11604_v49 = vld [vmem:[#allocation75_spill] sm:$0xff]  ;;  %v11606_v51 = vld [vmem:[#allocation80_spill] sm:$0xff] }
 0x161   : > { %1850 = vmatpush.bf16.msra.mxu1 %v11572_v0  ;;  %v1551_v2 = vadd.f32 %v1550_v60, %v7815_v43  ;;  %v1778_v43 = vld [vmem:[%s7202_s17 + $0x128] sm:$0xff]  ;;  %v1771_v60 = vld [vmem:[%s7202_s17 + $0x70] sm:$0xff] }
 0x162   : > { %1864 = vmatpush.bf16.msra.mxu2 %v11573_v7  ;;  %v11602_v7 = vld [vmem:[#allocation72_spill] sm:$0xff]  ;;  %v11603_v0 = vld [vmem:[#allocation73_spill] sm:$0xff] }
 0x163   : > { %1837 = vmatmul.bf16.vlgmr.msra.gmra.mxu0 %v7941_v16  ;;  %v1564_v34 = vpop.f32.mrf.mxu1 }
 0x164   : > { %1878 = vmatpush.bf16.msra.mxu3 %v11575_v53  ;;  %1885 = vmatpush.bf16.msrb.mxu0 %v11576_v33  ;;  %v1565_v45 = vadd.f32 %v1564_v34, %v1551_v2  ;;  %v11594_v2 = vld [vmem:[#allocation68_spill] sm:$0xff]  ;;  %v7990_v34 = vpack.c.bf16 %v1770_v29, %v1769_v10 }
 0x165   : > { %1899 = vmatpush.bf16.msrb.mxu1 %v11577_v21  ;;  %1865 = vmatmul.bf16.vlgmr.msra.gmra.mxu2 %v7947_v38 }
 0x166   : > { %1913 = vmatpush.bf16.msrb.mxu2 %v11578_v22  ;;  %1851 = vmatmul.bf16.vlgmr.msra.gmra.mxu1 %v7949_v20  ;;  %11595 = vst [vmem:[#allocation154_spill] sm:$0xff] %v7990_v34 }
 0x167   : > { %1879 = vmatmul.bf16.vlgmr.msra.gmra.mxu3 %v7955_v8 }
 0x168   : > { %1927 = vmatpush.bf16.msrb.mxu3 %v11579_v36  ;;  %1886 = vmatpush.bf16.msrb.mxu0 %v11580_v40  ;;  %v11593_v40 = vld [vmem:[#allocation67_spill] sm:$0xff]  ;;  %v1779_v36 = vld [vmem:[%s7202_s17 + $0x130] sm:$0xff] }
 0x169   : > { %1900 = vmatpush.bf16.msrb.mxu1 %v11581_v9  ;;  %v1772_v9 = vld [vmem:[%s7202_s17 + $0x78] sm:$0xff] }
 0x16a   : > { %1914 = vmatpush.bf16.msrb.mxu2 %v11582_v44  ;;  %v11591_v44 = vld [vmem:[#allocation65_spill] sm:$0xff]  ;;  %v7994_v21 = vpack.c.bf16 %v1772_v9, %v1771_v60 }
 0x16c   : > { %1928 = vmatpush.bf16.msrb.mxu3 %v11584_v23  ;;  %1887 = vmatpush.bf16.msrb.mxu0 %v11586_v57  ;;  %v1777_v23 = vld [vmem:[%s7202_s17 + $0x120] sm:$0xff]  ;;  %v11592_v57 = vld [vmem:[#allocation66_spill] sm:$0xff]  ;;  %11597 = vst [vmem:[#allocation156_spill] sm:$0xff] %v7994_v21 }
 0x16d   : > { %1901 = vmatpush.bf16.msrb.mxu1 %v11587_v62  ;;  %v1578_v62 = vpop.f32.mrf.mxu2 }
 0x16e   : > { %1915 = vmatpush.bf16.msrb.mxu2 %v11588_v17  ;;  %v1780_v17 = vld [vmem:[%s7202_s17 + $0x138] sm:$0xff]  ;;  %v1579_v22 = vadd.f32 %v1578_v62, %v1565_v45  ;;  %v1793_v45 = vunpack.c.l.bf16 %v7990_v34 }
 0x16f   : > { %v7998_v53 = vpack.c.bf16 %v1780_v17, %v1779_v36 }
 0x170   : > { %1929 = vmatpush.bf16.msrb.mxu3 %v11589_v56  ;;  %1888 = vmatpush.bf16.msrb.mxu0 %v11590_v25  ;;  %v1592_v56 = vpop.f32.mrf.mxu3  ;;  %v7992_v25 = vpack.c.bf16 %v1778_v43, %v1777_v23  ;;  %v1809_v54 = vsub.f32 %v1769_v10, %v1793_v45  ;;  %v11622_v45 = vld [vmem:[#allocation95_spill] sm:$0xff] }
 0x171   : > { %1902 = vmatpush.bf16.msrb.mxu1 %v11591_v44  ;;  %v11598_v44 = vld [vmem:[#allocation69_spill] sm:$0xff]  ;;  %v1593_v33 = vadd.f32 %v1592_v56, %v1579_v22  ;;  %11600 = vst [vmem:[#allocation157_spill] sm:$0xff] %v7998_v53  ;;  %v1794_v22 = vunpack.c.h.bf16 %v7990_v34 }
 0x172   : > { %1916 = vmatpush.bf16.msrb.mxu2 %v11592_v57  ;;  %11596 = vst [vmem:[#allocation155_spill] sm:$0xff] %v7992_v25  ;;  %v11599_v57 = vld [vmem:[#allocation70_spill] sm:$0xff]  ;;  %v1801_v62 = vunpack.c.l.bf16 %v7992_v25  ;;  %v1802_v56 = vunpack.c.h.bf16 %v7992_v25 }
 0x173   : > { %v1810_v58 = vsub.f32 %v1770_v29, %v1794_v22  ;;  %v8028_v29 = vpop.f32.mrf.mxu1 }
 0x174   : > { %1930 = vmatpush.bf16.msrb.mxu3 %v11593_v40  ;;  %1889 = vmatpush.bf16.msrb.mxu0 %v11594_v2  ;;  %v11601_v40 = vld [vmem:[#allocation71_spill] sm:$0xff]  ;;  %v1795_v2 = vunpack.c.l.bf16 %v7994_v21  ;;  %v1817_v3 = vsub.f32 %v1777_v23, %v1801_v62  ;;  %v1818_v34 = vsub.f32 %v1778_v43, %v1802_v56  ;;  %11609 = vst [vmem:[#allocation159_spill] sm:$0xff] %v8028_v29  ;;  %v11619_v43 = vld [vmem:[#allocation90_spill] sm:$0xff]  ;;  %v11623_v62 = vld [vmem:[#allocation96_spill] sm:$0xff] }
 0x175   : > { %1903 = vmatpush.bf16.msrb.mxu1 %v11598_v44  ;;  %v1803_v44 = vunpack.c.l.bf16 %v7998_v53  ;;  %v11634_v29 = vld [vmem:[#allocation114_spill] sm:$0xff] }
 0x176   : > { %1917 = vmatpush.bf16.msrb.mxu2 %v11599_v57  ;;  %v11605_v57 = vld [vmem:[#allocation78_spill] sm:$0xff]  ;;  %v1811_v13 = vsub.f32 %v1771_v60, %v1795_v2  ;;  %v8026_v10 = vpack.c.bf16 %v1818_v34, %v1810_v58  ;;  %v11612_v58 = vld [vmem:[#allocation85_spill] sm:$0xff]  ;;  %v11620_v60 = vld [vmem:[#allocation91_spill] sm:$0xff] }
 0x177   : > { %v11621_v34 = vld [vmem:[#allocation94_spill] sm:$0xff] }
 0x178   : > { %1931 = vmatpush.bf16.msrb.mxu3 %v11601_v40  ;;  %1890 = vmatpush.bf16.msrb.mxu0 %v11602_v7  ;;  %v1796_v7 = vunpack.c.h.bf16 %v7994_v21  ;;  %v1804_v40 = vunpack.c.h.bf16 %v7998_v53  ;;  %v8018_v21 = vpack.c.bf16 %v1817_v3, %v1809_v54  ;;  %v8020_v53 = vpop.f32.mrf.mxu0  ;;  %v11610_v3 = vld [vmem:[#allocation83_spill] sm:$0xff]  ;;  %v11611_v54 = vld [vmem:[#allocation84_spill] sm:$0xff] }
 0x179   : > { %1904 = vmatpush.bf16.msrb.mxu1 %v11603_v0  ;;  %v11607_v0 = vld [vmem:[#allocation81_spill] sm:$0xff]  ;;  %11608 = vst [vmem:[#allocation158_spill] sm:$0xff] %v8020_v53  ;;  %v11635_v53 = vld [vmem:[#allocation115_spill] sm:$0xff] }
 0x17a   : > { %1918 = vmatpush.bf16.msrb.mxu2 %v11604_v49  ;;  %v1819_v49 = vsub.f32 %v1779_v36, %v1803_v44  ;;  %v1812_v25 = vsub.f32 %v1772_v9, %v1796_v7  ;;  %v11616_v36 = vld [vmem:[#allocation88_spill] sm:$0xff]  ;;  %v11618_v44 = vld [vmem:[#allocation89_spill] sm:$0xff] }
 0x17c   : > { %1932 = vmatpush.bf16.msrb.mxu3 %v11605_v57  ;;  %1891 = vmatpush.bf16.msrb.mxu0 %v11606_v51  ;;  %v1820_v57 = vsub.f32 %v1780_v17, %v1804_v40  ;;  %v8024_v23 = vpack.c.bf16 %v1819_v49, %v1811_v13  ;;  %v11613_v49 = vld [vmem:[#allocation86_spill] sm:$0xff]  ;;  %v11614_v13 = vld [vmem:[#allocation87_spill] sm:$0xff]  ;;  %v8047_v40 = vpop.f32.mrf.mxu3 }
 0x17d   : > { %1905 = vmatpush.bf16.msrb.mxu1 %v11607_v0  ;;  %11617 = vst [vmem:[#allocation84_spill] sm:$0xff] %v8047_v40 }
 0x17e   : > { %1919 = vmatpush.bf16.msrb.mxu2 %v7437_v59  ;;  %v8032_v7 = vpack.c.bf16 %v1820_v57, %v1812_v25  ;;  %v8044_v25 = vpop.f32.mrf.mxu2 }
 0x17f   : > { %11615 = vst [vmem:[#allocation83_spill] sm:$0xff] %v8044_v25  ;;  %v11633_v25 = vld [vmem:[#allocation113_spill] sm:$0xff] }
 0x180   : > { %1933 = vmatpush.bf16.msrb.mxu3 %v7443_v39  ;;  %1892 = vmatpush.bf16.msrb.mxu0 %v7447_v11  ;;  %v1606_v9 = vpop.f32.mrf.mxu0 }
 0x181   : > { %1906 = vmatpush.bf16.msrb.mxu1 %v7449_v19  ;;  %v1607_v57 = vadd.f32 %v1606_v9, %v1593_v33  ;;  %v11625_v9 = vld [vmem:[#allocation103_spill] sm:$0xff] }
 0x182   : > { %1920 = vmatpush.bf16.msrb.mxu2 %v7452_v18 }
 0x183   : > { %1893 = vmatmul.bf16.vlgmr.msrb.gmra.mxu0 %v8018_v21  ;;  %v1620_v17 = vpop.f32.mrf.mxu1 }
 0x184   : > { %1934 = vmatpush.bf16.msrb.mxu3 %v7457_v42  ;;  %1941 = vmatpush.bf16.msra.mxu0 %v7459_v48  ;;  %v1621_v2 = vadd.f32 %v1620_v17, %v1607_v57  ;;  %v11626_v57 = vld [vmem:[#allocation104_spill] sm:$0xff] }
 0x185   : > { %1955 = vmatpush.bf16.msra.mxu1 %v7462_v27  ;;  %1921 = vmatmul.bf16.vlgmr.msrb.gmra.mxu2 %v8024_v23 }
 0x186   : > { %1969 = vmatpush.bf16.msra.mxu2 %v11610_v3  ;;  %1907 = vmatmul.bf16.vlgmr.msrb.gmra.mxu1 %v8026_v10 }
 0x187   : > { %1935 = vmatmul.bf16.vlgmr.msrb.gmra.mxu3 %v8032_v7 }
 0x188   : > { %1983 = vmatpush.bf16.msra.mxu3 %v11611_v54  ;;  %1942 = vmatpush.bf16.msra.mxu0 %v11612_v58  ;;  %v1634_v22 = vpop.f32.mrf.mxu2  ;;  %v8072_v17 = vpop.f32.mrf.mxu0 }
 0x189   : > { %1956 = vmatpush.bf16.msra.mxu1 %v11613_v49  ;;  %v1635_v56 = vadd.f32 %v1634_v22, %v1621_v2  ;;  %11628 = vst [vmem:[#allocation86_spill] sm:$0xff] %v8072_v17  ;;  %v11629_v2 = vld [vmem:[#allocation110_spill] sm:$0xff]  ;;  %v11630_v22 = vld [vmem:[#allocation111_spill] sm:$0xff]  ;;  %v11637_v17 = vld [vmem:[#allocation117_spill] sm:$0xff] }
 0x18a   : > { %1970 = vmatpush.bf16.msra.mxu2 %v11614_v13  ;;  %v1648_v40 = vpop.f32.mrf.mxu3 }
 0x18b   : > { %v8060_v33 = vadd.f32 %v1648_v40, %v1635_v56  ;;  %v11627_v40 = vld [vmem:[#allocation109_spill] sm:$0xff]  ;;  %v8076_v56 = vpop.f32.mrf.mxu1 }
 0x18c   : > { %1984 = vmatpush.bf16.msra.mxu3 %v11616_v36  ;;  %1943 = vmatpush.bf16.msra.mxu0 %v11618_v44  ;;  %11631 = vst [vmem:[#allocation87_spill] sm:$0xff] %v8076_v56  ;;  %v11638_v56 = vld [vmem:[#allocation118_spill] sm:$0xff] }
 0x18d   : > { %1957 = vmatpush.bf16.msra.mxu1 %v11619_v43  ;;  %11624 = vst [vmem:[#allocation85_spill] sm:$0xff] %v8060_v33  ;;  %v11632_v33 = vld [vmem:[#allocation112_spill] sm:$0xff] }
 0x18e   : > { %1971 = vmatpush.bf16.msra.mxu2 %v11620_v60 }
 0x190   : > { %1985 = vmatpush.bf16.msra.mxu3 %v11510_v1  ;;  %1944 = vmatpush.bf16.msra.mxu0 %v11511_v14 }
 0x191   : > { %1958 = vmatpush.bf16.msra.mxu1 %v11621_v34 }
 0x192   : > { %1972 = vmatpush.bf16.msra.mxu2 %v11622_v45 }
 0x194   : > { %1986 = vmatpush.bf16.msra.mxu3 %v11623_v62  ;;  %1945 = vmatpush.bf16.msra.mxu0 %v11515_v47 }
 0x195   : > { %1959 = vmatpush.bf16.msra.mxu1 %v11516_v15 }
 0x196   : > { %1973 = vmatpush.bf16.msra.mxu2 %v11517_v28 }
 0x198   : > { %1987 = vmatpush.bf16.msra.mxu3 %v11518_v6  ;;  %1946 = vmatpush.bf16.msra.mxu0 %v11519_v5 }
 0x199   : > { %1960 = vmatpush.bf16.msra.mxu1 %v11520_v31 }
 0x19a   : > { %1974 = vmatpush.bf16.msra.mxu2 %v11625_v9 }
 0x19c   : > { %1988 = vmatpush.bf16.msra.mxu3 %v11626_v57  ;;  %1947 = vmatpush.bf16.msra.mxu0 %v11523_v55 }
 0x19d   : > { %1961 = vmatpush.bf16.msra.mxu1 %v11524_v24 }
 0x19e   : > { %1975 = vmatpush.bf16.msra.mxu2 %v7551_v37  ;;  %v11636_v37 = vld [vmem:[#allocation116_spill] sm:$0xff] }
 0x1a0   : > { %1989 = vmatpush.bf16.msra.mxu3 %v7554_v26  ;;  %1948 = vmatpush.bf16.msra.mxu0 %v11627_v40 }
 0x1a1   : > { %1962 = vmatpush.bf16.msra.mxu1 %v11629_v2 }
 0x1a2   : > { %1976 = vmatpush.bf16.msra.mxu2 %v11630_v22  ;;  %v11644_v22 = vld [vmem:[#allocation122_spill] sm:$0xff] }
 0x1a3   : > { %1949 = vmatmul.bf16.vlgmr.msra.gmra.mxu0 %v7941_v16  ;;  %v11643_v16 = vld [vmem:[#allocation121_spill] sm:$0xff] }
 0x1a4   : > { %1990 = vmatpush.bf16.msra.mxu3 %v11632_v33  ;;  %1997 = vmatpush.bf16.msrb.mxu0 %v11633_v25  ;;  %v11639_v33 = vld [vmem:[#allocation119_spill] sm:$0xff]  ;;  %v8090_v25 = vpop.f32.mrf.mxu2 }
 0x1a5   : > { %2011 = vmatpush.bf16.msrb.mxu1 %v11634_v29  ;;  %1977 = vmatmul.bf16.vlgmr.msra.gmra.mxu2 %v7947_v38  ;;  %11640 = vst [vmem:[#allocation88_spill] sm:$0xff] %v8090_v25  ;;  %v11641_v29 = vld [vmem:[#allocation120_spill] sm:$0xff] }
 0x1a6   : > { %2025 = vmatpush.bf16.msrb.mxu2 %v11635_v53  ;;  %1963 = vmatmul.bf16.vlgmr.msra.gmra.mxu1 %v7949_v20  ;;  %v8093_v53 = vpop.f32.mrf.mxu3  ;;  %v1676_v20 = vpop.f32.mrf.mxu1 }
 0x1a7   : > { %1991 = vmatmul.bf16.vlgmr.msra.gmra.mxu3 %v7955_v8  ;;  %11642 = vst [vmem:[#allocation89_spill] sm:$0xff] %v8093_v53  ;;  %v11645_v8 = vld [vmem:[#allocation124_spill] sm:$0xff] }
 0x1a8   : > { %2039 = vmatpush.bf16.msrb.mxu3 %v11636_v37  ;;  %1998 = vmatpush.bf16.msrb.mxu0 %v11637_v17  ;;  %v1662_v37 = vpop.f32.mrf.mxu0 }
 0x1a9   : > { %2012 = vmatpush.bf16.msrb.mxu1 %v11638_v56  ;;  %v1663_v38 = vadd.f32 %v1662_v37, %v7919_v12  ;;  %v11647_v37 = vld [vmem:[#allocation135_spill] sm:$0xff] }
 0x1aa   : > { %2026 = vmatpush.bf16.msrb.mxu2 %v11639_v33  ;;  %v11646_v33 = vld [vmem:[#allocation125_spill] sm:$0xff] }
 0x1ab   : > { %v1677_v56 = vadd.f32 %v1676_v20, %v1663_v38  ;;  %v11648_v38 = vld [vmem:[#allocation136_spill] sm:$0xff]  ;;  %v11649_v20 = vld [vmem:[#allocation137_spill] sm:$0xff] }
 0x1ac   : > { %2040 = vmatpush.bf16.msrb.mxu3 %v11641_v29  ;;  %1999 = vmatpush.bf16.msrb.mxu0 %v11643_v16  ;;  %v1690_v53 = vpop.f32.mrf.mxu2 }
 0x1ad   : > { %2013 = vmatpush.bf16.msrb.mxu1 %v11644_v22  ;;  %v1691_v25 = vadd.f32 %v1690_v53, %v1677_v56  ;;  %v11650_v53 = vld [vmem:[#allocation138_spill] sm:$0xff]  ;;  %v11651_v56 = vld [vmem:[#allocation139_spill] sm:$0xff] }
 0x1ae   : > { %2027 = vmatpush.bf16.msrb.mxu2 %v11536_v63  ;;  %v1704_v16 = vpop.f32.mrf.mxu3 }
 0x1af   : > { %v1705_v12 = vadd.f32 %v1704_v16, %v1691_v25  ;;  %v11655_v16 = vld [vmem:[#allocation142_spill] sm:$0xff] }
 0x1b0   : > { %2041 = vmatpush.bf16.msrb.mxu3 %v11645_v8  ;;  %2000 = vmatpush.bf16.msrb.mxu0 %v11646_v33  ;;  %v8117_v25 = vpop.f32.mrf.mxu0 }
 0x1b1   : > { %2014 = vmatpush.bf16.msrb.mxu1 %v11539_v32  ;;  %11654 = vst [vmem:[#allocation90_spill] sm:$0xff] %v8117_v25  ;;  %v11663_v25 = vld [vmem:[#allocation20_spill] sm:$0xff] }
 0x1b2   : > { %2028 = vmatpush.bf16.msrb.mxu2 %v11540_v61 }
 0x1b4   : > { %2042 = vmatpush.bf16.msrb.mxu3 %v11541_v30  ;;  %2001 = vmatpush.bf16.msrb.mxu0 %v11542_v4 }
 0x1b5   : > { %2015 = vmatpush.bf16.msrb.mxu1 %v11543_v52  ;;  %v11652_v52 = vld [vmem:[#allocation140_spill] sm:$0xff] }
 0x1b6   : > { %2029 = vmatpush.bf16.msrb.mxu2 %v11544_v35  ;;  %v11653_v35 = vld [vmem:[#allocation141_spill] sm:$0xff] }
 0x1b8   : > { %2043 = vmatpush.bf16.msrb.mxu3 %v11545_v50  ;;  %2002 = vmatpush.bf16.msrb.mxu0 %v11546_v41  ;;  %v11656_v41 = vld [vmem:[#allocation143_spill] sm:$0xff] }
 0x1b9   : > { %2016 = vmatpush.bf16.msrb.mxu1 %v11547_v46  ;;  %v8121_v46 = vpop.f32.mrf.mxu1 }
 0x1ba   : > { %2030 = vmatpush.bf16.msrb.mxu2 %v11647_v37  ;;  %11657 = vst [vmem:[#allocation91_spill] sm:$0xff] %v8121_v46  ;;  %v11658_v37 = vld [vmem:[#allocation144_spill] sm:$0xff]  ;;  %v11664_v46 = vld [vmem:[#allocation21_spill] sm:$0xff] }
 0x1bc   : > { %2044 = vmatpush.bf16.msrb.mxu3 %v11648_v38  ;;  %2003 = vmatpush.bf16.msrb.mxu0 %v11649_v20  ;;  %v11659_v38 = vld [vmem:[#allocation16_spill] sm:$0xff]  ;;  %v11660_v20 = vld [vmem:[#allocation17_spill] sm:$0xff] }
 0x1bd   : > { %2017 = vmatpush.bf16.msrb.mxu1 %v11650_v53  ;;  %v11661_v53 = vld [vmem:[#allocation18_spill] sm:$0xff] }
 0x1be   : > { %2031 = vmatpush.bf16.msrb.mxu2 %v11651_v56  ;;  %v11662_v56 = vld [vmem:[#allocation19_spill] sm:$0xff] }
 0x1c0   : > { %2045 = vmatpush.bf16.msrb.mxu3 %v11652_v52  ;;  %2004 = vmatpush.bf16.msrb.mxu0 %v11653_v35  ;;  %v11694_v52 = vld [vmem:[#allocation44_spill] sm:$0xff] }
 0x1c1   : > { %2018 = vmatpush.bf16.msrb.mxu1 %v11655_v16  ;;  %v11673_v16 = vld [vmem:[#allocation28_spill] sm:$0xff] }
 0x1c2   : > { %2032 = vmatpush.bf16.msrb.mxu2 %v11656_v41 }
 0x1c3   : > { %2005 = vmatmul.bf16.vlgmr.msrb.gmra.mxu0 %v8018_v21  ;;  %v11669_v21 = vld [vmem:[#allocation24_spill] sm:$0xff]  ;;  %v1732_v41 = vpop.f32.mrf.mxu1 }
 0x1c4   : > { %2046 = vmatpush.bf16.msrb.mxu3 %v11658_v37  ;;  %2093 = vmatpush.bf16.msra.mxu0 %v11659_v38  ;;  %v11665_v37 = vld [vmem:[#allocation22_spill] sm:$0xff]  ;;  %v8135_v38 = vpop.f32.mrf.mxu2 }
 0x1c5   : > { %2107 = vmatpush.bf16.msra.mxu1 %v11660_v20  ;;  %2033 = vmatmul.bf16.vlgmr.msrb.gmra.mxu2 %v8024_v23  ;;  %11666 = vst [vmem:[#allocation94_spill] sm:$0xff] %v8135_v38  ;;  %v11667_v20 = vld [vmem:[#allocation23_spill] sm:$0xff]  ;;  %v11675_v38 = vld [vmem:[#allocation30_spill] sm:$0xff] }
 0x1c6   : > { %2121 = vmatpush.bf16.msra.mxu2 %v11661_v53  ;;  %2019 = vmatmul.bf16.vlgmr.msrb.gmra.mxu1 %v8026_v10  ;;  %v8138_v53 = vpop.f32.mrf.mxu3  ;;  %v11670_v10 = vld [vmem:[#allocation25_spill] sm:$0xff] }
 0x1c7   : > { %2047 = vmatmul.bf16.vlgmr.msrb.gmra.mxu3 %v8032_v7  ;;  %11668 = vst [vmem:[#allocation95_spill] sm:$0xff] %v8138_v53  ;;  %v11671_v7 = vld [vmem:[#allocation26_spill] sm:$0xff] }
 0x1c8   : > { %2135 = vmatpush.bf16.msra.mxu3 %v11662_v56  ;;  %2094 = vmatpush.bf16.msra.mxu0 %v11663_v25  ;;  %v1718_v56 = vpop.f32.mrf.mxu0  ;;  %v11672_v25 = vld [vmem:[#allocation27_spill] sm:$0xff] }
 0x1c9   : > { %2108 = vmatpush.bf16.msra.mxu1 %v11664_v46  ;;  %v1719_v23 = vadd.f32 %v1718_v56, %v1705_v12  ;;  %v11677_v12 = vld [vmem:[#allocation32_spill] sm:$0xff]  ;;  %v11678_v56 = vld [vmem:[#allocation33_spill] sm:$0xff] }
 0x1ca   : > { %2122 = vmatpush.bf16.msra.mxu2 %v11665_v37  ;;  %v11674_v37 = vld [vmem:[#allocation29_spill] sm:$0xff] }
 0x1cb   : > { %v1733_v46 = vadd.f32 %v1732_v41, %v1719_v23  ;;  %v11681_v41 = vld [vmem:[#allocation35_spill] sm:$0xff]  ;;  %v11682_v23 = vld [vmem:[#allocation36_spill] sm:$0xff] }
 0x1cc   : > { %2136 = vmatpush.bf16.msra.mxu3 %v11667_v20  ;;  %2095 = vmatpush.bf16.msra.mxu0 %v11669_v21  ;;  %v11676_v20 = vld [vmem:[#allocation31_spill] sm:$0xff]  ;;  %v1746_v53 = vpop.f32.mrf.mxu2 }
 0x1cd   : > { %2109 = vmatpush.bf16.msra.mxu1 %v11670_v10  ;;  %v1747_v35 = vadd.f32 %v1746_v53, %v1733_v46  ;;  %v11679_v10 = vld [vmem:[#allocation34_spill] sm:$0xff]  ;;  %v11686_v46 = vld [vmem:[#allocation40_spill] sm:$0xff] }
 0x1ce   : > { %2123 = vmatpush.bf16.msra.mxu2 %v11671_v7  ;;  %v1760_v21 = vpop.f32.mrf.mxu3  ;;  %v11687_v53 = vld [vmem:[#allocation146_spill] sm:$0xff] }
 0x1cf   : > { %v8151_v7 = vadd.f32 %v1760_v21, %v1747_v35  ;;  %v11690_v35 = vld [vmem:[#allocation42_spill] sm:$0xff]  ;;  %v11691_v21 = vld [vmem:[#allocation148_spill] sm:$0xff] }
 0x1d0   : > { %2137 = vmatpush.bf16.msra.mxu3 %v11672_v25  ;;  %2096 = vmatpush.bf16.msra.mxu0 %v11673_v16  ;;  %v11688_v16 = vld [vmem:[#allocation147_spill] sm:$0xff]  ;;  %v11689_v25 = vld [vmem:[#allocation41_spill] sm:$0xff] }
 0x1d1   : > { %2110 = vmatpush.bf16.msra.mxu1 %v11674_v37  ;;  %11680 = vst [vmem:[#allocation96_spill] sm:$0xff] %v8151_v7  ;;  %v11683_v37 = vld [vmem:[#allocation37_spill] sm:$0xff]  ;;  %v2063_v7 = vunpack.c.l.b16 %v11691_v21 }
 0x1d2   : > { %2124 = vmatpush.bf16.msra.mxu2 %v11675_v38  ;;  %v11684_v38 = vld [vmem:[#allocation38_spill] sm:$0xff] }
 0x1d4   : > { %2138 = vmatpush.bf16.msra.mxu3 %v11676_v20  ;;  %2097 = vmatpush.bf16.msra.mxu0 %v11677_v12  ;;  %v11685_v20 = vld [vmem:[#allocation39_spill] sm:$0xff]  ;;  %v2061_v12 = vunpack.c.l.b16 %v11687_v53 }
 0x1d5   : > { %2111 = vmatpush.bf16.msra.mxu1 %v11678_v56  ;;  %v2069_v56 = vunpack.c.l.b16 %v11688_v16 }
 0x1d6   : > { %2125 = vmatpush.bf16.msra.mxu2 %v11679_v10  ;;  %v11693_v10 = vld [vmem:[#allocation43_spill] sm:$0xff] }
 0x1d7   : > { %v8171_v50 = vpack.c.b16 %v2069_v56, %v2061_v12  ;;  %v11701_v12 = vld [vmem:[#allocation49_spill] sm:$0xff]  ;;  %v11702_v56 = vld [vmem:[#allocation50_spill] sm:$0xff] }
 0x1d8   : > { %2139 = vmatpush.bf16.msra.mxu3 %v11681_v41  ;;  %2098 = vmatpush.bf16.msra.mxu0 %v11682_v23  ;;  %v11692_v41 = vld [vmem:[#allocation149_spill] sm:$0xff] }
 0x1d9   : > { %2112 = vmatpush.bf16.msra.mxu1 %v11683_v37  ;;  %v2071_v23 = vunpack.c.l.b16 %v11692_v41  ;;  %v2062_v37 = vunpack.c.h.b16 %v11687_v53  ;;  %v8179_v53 = vpop.f32.mrf.mxu0 }
 0x1da   : > { %2126 = vmatpush.bf16.msra.mxu2 %v11684_v38  ;;  %v2070_v38 = vunpack.c.h.b16 %v11688_v16  ;;  %11697 = vst [vmem:[#allocation146_spill] sm:$0xff] %v8179_v53  ;;  %v8181_v16 = vpop.f32.mrf.mxu1 }
 0x1db   : > { %v8175_v4 = vpack.c.b16 %v2071_v23, %v2063_v7  ;;  %11698 = vst [vmem:[#allocation147_spill] sm:$0xff] %v8181_v16  ;;  %v8197_v7 = vpop.f32.mrf.mxu2  ;;  %v11708_v23 = vld [vmem:[#allocation58_spill] sm:$0xff]  ;;  %v11710_v16 = vld [vmem:[#allocation60_spill] sm:$0xff] }
 0x1dc   : > { %2140 = vmatpush.bf16.msra.mxu3 %v11685_v20  ;;  %2099 = vmatpush.bf16.msra.mxu0 %v11686_v46  ;;  %v2064_v46 = vunpack.c.h.b16 %v11691_v21  ;;  %v2072_v20 = vunpack.c.h.b16 %v11692_v41  ;;  %v8177_v30 = vpack.c.b16 %v2070_v38, %v2062_v37  ;;  %v11700_v21 = vld [vmem:[#allocation48_spill] sm:$0xff]  ;;  %v11705_v38 = vld [vmem:[#allocation53_spill] sm:$0xff]  ;;  %11707 = vst [vmem:[#allocation148_spill] sm:$0xff] %v8197_v7  ;;  %v11716_v7 = vld [vmem:[#allocation66_spill] sm:$0xff] }
 0x1dd   : > { %2113 = vmatpush.bf16.msra.mxu1 %v11689_v25  ;;  %v11695_v25 = vld [vmem:[#allocation45_spill] sm:$0xff]  ;;  %v11704_v37 = vld [vmem:[#allocation52_spill] sm:$0xff] }
 0x1de   : > { %2127 = vmatpush.bf16.msra.mxu2 %v11690_v35  ;;  %v11696_v35 = vld [vmem:[#allocation46_spill] sm:$0xff]  ;;  %v8185_v41 = vpack.c.b16 %v2072_v20, %v2064_v46  ;;  %v11706_v20 = vld [vmem:[#allocation55_spill] sm:$0xff]  ;;  %v8200_v46 = vpop.f32.mrf.mxu3 }
 0x1df   : > { %11709 = vst [vmem:[#allocation149_spill] sm:$0xff] %v8200_v46 }
 0x1e0   : > { %2141 = vmatpush.bf16.msra.mxu3 %v11693_v10  ;;  %2100 = vmatpush.bf16.msra.mxu0 %v11694_v52  ;;  %v11699_v10 = vld [vmem:[#allocation47_spill] sm:$0xff]  ;;  %v11719_v52 = vld [vmem:[#allocation69_spill] sm:$0xff] }
 0x1e1   : > { %2114 = vmatpush.bf16.msra.mxu1 %v11695_v25  ;;  %v11703_v25 = vld [vmem:[#allocation51_spill] sm:$0xff]  ;;  %v1838_v53 = vpop.f32.mrf.mxu0 }
 0x1e2   : > { %2128 = vmatpush.bf16.msra.mxu2 %v11696_v35 }
 0x1e3   : > { %2101 = vmatmul.bf16.vlgmr.msra.gmra.mxu0 %v8171_v50 }
 0x1e4   : > { %2142 = vmatpush.bf16.msra.mxu3 %v11699_v10  ;;  %2149 = vmatpush.bf16.msrb.mxu0 %v11700_v21 }
 0x1e5   : > { %2163 = vmatpush.bf16.msrb.mxu1 %v11701_v12  ;;  %2129 = vmatmul.bf16.vlgmr.msra.gmra.mxu2 %v8175_v4  ;;  %v11712_v12 = vld [vmem:[#allocation62_spill] sm:$0xff] }
 0x1e6   : > { %2177 = vmatpush.bf16.msrb.mxu2 %v11702_v56  ;;  %2115 = vmatmul.bf16.vlgmr.msra.gmra.mxu1 %v8177_v30  ;;  %v11711_v56 = vld [vmem:[#allocation61_spill] sm:$0xff] }
 0x1e7   : > { %2143 = vmatmul.bf16.vlgmr.msra.gmra.mxu3 %v8185_v41 }
 0x1e8   : > { %2191 = vmatpush.bf16.msrb.mxu3 %v11703_v25  ;;  %2150 = vmatpush.bf16.msrb.mxu0 %v11704_v37  ;;  %v1852_v25 = vpop.f32.mrf.mxu1  ;;  %v11713_v37 = vld [vmem:[#allocation63_spill] sm:$0xff]  ;;  %v1866_v46 = vpop.f32.mrf.mxu2 }
 0x1e9   : > { %2164 = vmatpush.bf16.msrb.mxu1 %v11705_v38  ;;  %v1853_v21 = vadd.f32 %v1852_v25, %v1838_v53  ;;  %v11714_v38 = vld [vmem:[#allocation64_spill] sm:$0xff]  ;;  %v11721_v53 = vld [vmem:[#allocation71_spill] sm:$0xff] }
 0x1ea   : > { %2178 = vmatpush.bf16.msrb.mxu2 %v11706_v20  ;;  %v11715_v20 = vld [vmem:[#allocation65_spill] sm:$0xff]  ;;  %v1880_v35 = vpop.f32.mrf.mxu3 }
 0x1eb   : > { %v1867_v10 = vadd.f32 %v1866_v46, %v1853_v21  ;;  %v11726_v21 = vld [vmem:[#allocation154_spill] sm:$0xff] }
 0x1ec   : > { %2192 = vmatpush.bf16.msrb.mxu3 %v11708_v23  ;;  %2151 = vmatpush.bf16.msrb.mxu0 %v11710_v16  ;;  %v11717_v23 = vld [vmem:[#allocation67_spill] sm:$0xff]  ;;  %v11718_v16 = vld [vmem:[#allocation68_spill] sm:$0xff]  ;;  %v2065_v46 = vunpack.c.l.b16 %v11726_v21 }
 0x1ed   : > { %2165 = vmatpush.bf16.msrb.mxu1 %v11711_v56  ;;  %v11720_v56 = vld [vmem:[#allocation70_spill] sm:$0xff]  ;;  %v1881_v25 = vadd.f32 %v1880_v35, %v1867_v10  ;;  %v11728_v10 = vld [vmem:[#allocation156_spill] sm:$0xff] }
 0x1ee   : > { %2179 = vmatpush.bf16.msrb.mxu2 %v11712_v12  ;;  %v2067_v35 = vunpack.c.l.b16 %v11728_v10 }
 0x1f0   : > { %2193 = vmatpush.bf16.msrb.mxu3 %v11713_v37  ;;  %2152 = vmatpush.bf16.msrb.mxu0 %v11714_v38  ;;  %v11722_v37 = vld [vmem:[#allocation72_spill] sm:$0xff]  ;;  %v11723_v38 = vld [vmem:[#allocation73_spill] sm:$0xff] }
 0x1f1   : > { %2166 = vmatpush.bf16.msrb.mxu1 %v11715_v20  ;;  %v11724_v20 = vld [vmem:[#allocation75_spill] sm:$0xff] }
 0x1f2   : > { %2180 = vmatpush.bf16.msrb.mxu2 %v11716_v7  ;;  %v11725_v7 = vld [vmem:[#allocation78_spill] sm:$0xff] }
 0x1f4   : > { %2194 = vmatpush.bf16.msrb.mxu3 %v11717_v23  ;;  %2153 = vmatpush.bf16.msrb.mxu0 %v11718_v16  ;;  %v11727_v16 = vld [vmem:[#allocation155_spill] sm:$0xff] }
 0x1f5   : > { %2167 = vmatpush.bf16.msrb.mxu1 %v11719_v52  ;;  %v2073_v23 = vunpack.c.l.b16 %v11727_v16 }
 0x1f6   : > { %2181 = vmatpush.bf16.msrb.mxu2 %v11720_v56  ;;  %v8230_v56 = vpop.f32.mrf.mxu0 }
 0x1f8   : > { %2195 = vmatpush.bf16.msrb.mxu3 %v11721_v53  ;;  %2154 = vmatpush.bf16.msrb.mxu0 %v11722_v37  ;;  %v11729_v53 = vld [vmem:[#allocation157_spill] sm:$0xff] }
 0x1f9   : > { %2168 = vmatpush.bf16.msrb.mxu1 %v11723_v38  ;;  %v2075_v37 = vunpack.c.l.b16 %v11729_v53  ;;  %v2066_v38 = vunpack.c.h.b16 %v11726_v21 }
 0x1fa   : > { %2182 = vmatpush.bf16.msrb.mxu2 %v11724_v20  ;;  %v2074_v20 = vunpack.c.h.b16 %v11727_v16  ;;  %v8241_v16 = vpop.f32.mrf.mxu1 }
 0x1fc   : > { %2196 = vmatpush.bf16.msrb.mxu3 %v11725_v7  ;;  %2155 = vmatpush.bf16.msrb.mxu0 %v11606_v51  ;;  %v2068_v51 = vunpack.c.h.b16 %v11728_v10  ;;  %v2076_v7 = vunpack.c.h.b16 %v11729_v53  ;;  %v8239_v21 = vpack.c.b16 %v2074_v20, %v2066_v38 }
 0x1fd   : > { %2169 = vmatpush.bf16.msrb.mxu1 %v11607_v0  ;;  %v8233_v0 = vpack.c.b16 %v2073_v23, %v2065_v46 }
 0x1fe   : > { %2183 = vmatpush.bf16.msrb.mxu2 %v7437_v59  ;;  %v8237_v59 = vpack.c.b16 %v2075_v37, %v2067_v35  ;;  %v8245_v53 = vpack.c.b16 %v2076_v7, %v2068_v51  ;;  %v8255_v37 = vpop.f32.mrf.mxu2  ;;  %v8260_v51 = vpop.f32.mrf.mxu3 }
 0x200   : > { %2197 = vmatpush.bf16.msrb.mxu3 %v7443_v39  ;;  %2156 = vmatpush.bf16.msrb.mxu0 %v7447_v11  ;;  %v1894_v38 = vpop.f32.mrf.mxu0 }
 0x201   : > { %2170 = vmatpush.bf16.msrb.mxu1 %v7449_v19  ;;  %v1895_v20 = vadd.f32 %v1894_v38, %v1881_v25  ;;  %v11730_v38 = vld [vmem:[#allocation107_spill] sm:$0xff] }
 0x202   : > { %2184 = vmatpush.bf16.msrb.mxu2 %v7452_v18 }
 0x203   : > { %2157 = vmatmul.bf16.vlgmr.msrb.gmra.mxu0 %v8233_v0  ;;  %v1908_v7 = vpop.f32.mrf.mxu1 }
 0x204   : > { %2198 = vmatpush.bf16.msrb.mxu3 %v7457_v42  ;;  %2205 = vmatpush.bf16.msra.mxu0 %v7459_v48  ;;  %v1909_v23 = vadd.f32 %v1908_v7, %v1895_v20  ;;  %v11731_v20 = vld [vmem:[#allocation111_spill] sm:$0xff] }
 0x205   : > { %2219 = vmatpush.bf16.msra.mxu1 %v7462_v27  ;;  %2185 = vmatmul.bf16.vlgmr.msrb.gmra.mxu2 %v8237_v59 }
 0x206   : > { %2233 = vmatpush.bf16.msra.mxu2 %v11610_v3  ;;  %2171 = vmatmul.bf16.vlgmr.msrb.gmra.mxu1 %v8239_v21 }
 0x207   : > { %2199 = vmatmul.bf16.vlgmr.msrb.gmra.mxu3 %v8245_v53 }
 0x208   : > { %2247 = vmatpush.bf16.msra.mxu3 %v11611_v54  ;;  %2206 = vmatpush.bf16.msra.mxu0 %v11612_v58  ;;  %v1922_v46 = vpop.f32.mrf.mxu2  ;;  %v8287_v7 = vpop.f32.mrf.mxu0 }
 0x209   : > { %2220 = vmatpush.bf16.msra.mxu1 %v11613_v49  ;;  %v1923_v10 = vadd.f32 %v1922_v46, %v1909_v23  ;;  %v11732_v46 = vld [vmem:[#allocation112_spill] sm:$0xff] }
 0x20a   : > { %2234 = vmatpush.bf16.msra.mxu2 %v11614_v13  ;;  %v1936_v25 = vpop.f32.mrf.mxu3 }
 0x20b   : > { %v8273_v35 = vadd.f32 %v1936_v25, %v1923_v10  ;;  %v8289_v23 = vpop.f32.mrf.mxu1  ;;  %v11733_v10 = vld [vmem:[#allocation113_spill] sm:$0xff]  ;;  %v11734_v25 = vld [vmem:[#allocation114_spill] sm:$0xff] }
 0x20c   : > { %2248 = vmatpush.bf16.msra.mxu3 %v11616_v36  ;;  %2207 = vmatpush.bf16.msra.mxu0 %v11618_v44 }
 0x20d   : > { %2221 = vmatpush.bf16.msra.mxu1 %v11619_v43 }
 0x20e   : > { %2235 = vmatpush.bf16.msra.mxu2 %v11620_v60 }
 0x210   : > { %2249 = vmatpush.bf16.msra.mxu3 %v11510_v1  ;;  %2208 = vmatpush.bf16.msra.mxu0 %v11511_v14 }
 0x211   : > { %2222 = vmatpush.bf16.msra.mxu1 %v11621_v34 }
 0x212   : > { %2236 = vmatpush.bf16.msra.mxu2 %v11622_v45 }
 0x214   : > { %2250 = vmatpush.bf16.msra.mxu3 %v11623_v62  ;;  %2209 = vmatpush.bf16.msra.mxu0 %v11515_v47 }
 0x215   : > { %2223 = vmatpush.bf16.msra.mxu1 %v11516_v15  ;;  %v11794_v15 = vld [vmem:[#allocation44_spill] sm:$0xff] }
 0x216   : > { %2237 = vmatpush.bf16.msra.mxu2 %v11517_v28  ;;  %v11793_v28 = vld [vmem:[#allocation43_spill] sm:$0xff] }
 0x218   : > { %2251 = vmatpush.bf16.msra.mxu3 %v11518_v6  ;;  %2210 = vmatpush.bf16.msra.mxu0 %v11519_v5 }
 0x219   : > { %2224 = vmatpush.bf16.msra.mxu1 %v11520_v31 }
 0x21a   : > { %2238 = vmatpush.bf16.msra.mxu2 %v11625_v9 }
 0x21c   : > { %2252 = vmatpush.bf16.msra.mxu3 %v11626_v57  ;;  %2211 = vmatpush.bf16.msra.mxu0 %v11523_v55  ;;  %v11788_v55 = vld [vmem:[#allocation38_spill] sm:$0xff] }
 0x21d   : > { %2225 = vmatpush.bf16.msra.mxu1 %v11524_v24  ;;  %v11735_v24 = vld [vmem:[#allocation115_spill] sm:$0xff] }
 0x21e   : > { %2239 = vmatpush.bf16.msra.mxu2 %v11730_v38  ;;  %v11736_v38 = vld [vmem:[#allocation116_spill] sm:$0xff] }
 0x220   : > { %2253 = vmatpush.bf16.msra.mxu3 %v7554_v26  ;;  %2212 = vmatpush.bf16.msra.mxu0 %v11627_v40  ;;  %v11787_v26 = vld [vmem:[#allocation37_spill] sm:$0xff] }
 0x221   : > { %2226 = vmatpush.bf16.msra.mxu1 %v11629_v2  ;;  %v11785_v2 = vld [vmem:[#allocation35_spill] sm:$0xff] }
 0x222   : > { %2240 = vmatpush.bf16.msra.mxu2 %v11731_v20  ;;  %v11737_v20 = vld [vmem:[#allocation118_spill] sm:$0xff] }
 0x223   : > { %2213 = vmatmul.bf16.vlgmr.msra.gmra.mxu0 %v8171_v50  ;;  %v1950_v50 = vpop.f32.mrf.mxu0 }
 0x224   : > { %2254 = vmatpush.bf16.msra.mxu3 %v11732_v46  ;;  %2261 = vmatpush.bf16.msrb.mxu0 %v11733_v10  ;;  %v11738_v46 = vld [vmem:[#allocation119_spill] sm:$0xff]  ;;  %v8303_v10 = vpop.f32.mrf.mxu2 }
 0x225   : > { %2275 = vmatpush.bf16.msrb.mxu1 %v11734_v25  ;;  %2241 = vmatmul.bf16.vlgmr.msra.gmra.mxu2 %v8175_v4  ;;  %v1964_v4 = vpop.f32.mrf.mxu1 }
 0x226   : > { %2289 = vmatpush.bf16.msrb.mxu2 %v11735_v24  ;;  %2227 = vmatmul.bf16.vlgmr.msra.gmra.mxu1 %v8177_v30  ;;  %v8306_v24 = vpop.f32.mrf.mxu3  ;;  %v1965_v30 = vadd.f32 %v1964_v4, %v1950_v50  ;;  %v11744_v4 = vld [vmem:[#allocation132_spill] sm:$0xff] }
 0x227   : > { %2255 = vmatmul.bf16.vlgmr.msra.gmra.mxu3 %v8185_v41  ;;  %v11740_v41 = vld [vmem:[#allocation128_spill] sm:$0xff] }
 0x228   : > { %2303 = vmatpush.bf16.msrb.mxu3 %v11736_v38  ;;  %2262 = vmatpush.bf16.msrb.mxu0 %v11637_v17  ;;  %v11739_v38 = vld [vmem:[#allocation121_spill] sm:$0xff]  ;;  %v11742_v17 = vld [vmem:[#allocation130_spill] sm:$0xff] }
 0x229   : > { %2276 = vmatpush.bf16.msrb.mxu1 %v11737_v20 }
 0x22a   : > { %2290 = vmatpush.bf16.msrb.mxu2 %v11738_v46 }
 0x22c   : > { %2304 = vmatpush.bf16.msrb.mxu3 %v11641_v29  ;;  %2263 = vmatpush.bf16.msrb.mxu0 %v11739_v38  ;;  %v1978_v29 = vpop.f32.mrf.mxu2  ;;  %v11741_v38 = vld [vmem:[#allocation129_spill] sm:$0xff] }
 0x22d   : > { %2277 = vmatpush.bf16.msrb.mxu1 %v11644_v22  ;;  %v1979_v46 = vadd.f32 %v1978_v29, %v1965_v30  ;;  %v11743_v22 = vld [vmem:[#allocation131_spill] sm:$0xff]  ;;  %v11750_v29 = vld [vmem:[#allocation138_spill] sm:$0xff] }
 0x22e   : > { %2291 = vmatpush.bf16.msrb.mxu2 %v11536_v63  ;;  %v1992_v20 = vpop.f32.mrf.mxu3  ;;  %v11751_v30 = vld [vmem:[#allocation139_spill] sm:$0xff] }
 0x22f   : > { %v1993_v50 = vadd.f32 %v1992_v20, %v1979_v46  ;;  %v11754_v20 = vld [vmem:[#allocation141_spill] sm:$0xff]  ;;  %v11755_v46 = vld [vmem:[#allocation142_spill] sm:$0xff] }
 0x230   : > { %2305 = vmatpush.bf16.msrb.mxu3 %v11645_v8  ;;  %2264 = vmatpush.bf16.msrb.mxu0 %v11646_v33  ;;  %v11745_v8 = vld [vmem:[#allocation133_spill] sm:$0xff]  ;;  %v11746_v33 = vld [vmem:[#allocation134_spill] sm:$0xff] }
 0x231   : > { %2278 = vmatpush.bf16.msrb.mxu1 %v11539_v32  ;;  %v11747_v32 = vld [vmem:[#allocation135_spill] sm:$0xff] }
 0x232   : > { %2292 = vmatpush.bf16.msrb.mxu2 %v11540_v61  ;;  %v11748_v61 = vld [vmem:[#allocation136_spill] sm:$0xff] }
 0x234   : > { %2306 = vmatpush.bf16.msrb.mxu3 %v11740_v41  ;;  %2265 = vmatpush.bf16.msrb.mxu0 %v11741_v38  ;;  %v11749_v41 = vld [vmem:[#allocation137_spill] sm:$0xff]  ;;  %v11775_v38 = vld [vmem:[#allocation30_spill] sm:$0xff] }
 0x235   : > { %2279 = vmatpush.bf16.msrb.mxu1 %v11742_v17  ;;  %v11752_v17 = vld [vmem:[#allocation140_spill] sm:$0xff] }
 0x236   : > { %2293 = vmatpush.bf16.msrb.mxu2 %v11743_v22  ;;  %v8328_v22 = vpop.f32.mrf.mxu0 }
 0x237   : > { %11753 = vst [vmem:[#allocation154_spill] sm:$0xff] %v8328_v22 }
 0x238   : > { %2307 = vmatpush.bf16.msrb.mxu3 %v11744_v4  ;;  %2266 = vmatpush.bf16.msrb.mxu0 %v11745_v8  ;;  %v11756_v8 = vld [vmem:[#allocation143_spill] sm:$0xff]  ;;  %v11774_v4 = vld [vmem:[#allocation29_spill] sm:$0xff] }
 0x239   : > { %2280 = vmatpush.bf16.msrb.mxu1 %v11746_v33  ;;  %v8333_v33 = vpop.f32.mrf.mxu1 }
 0x23a   : > { %2294 = vmatpush.bf16.msrb.mxu2 %v11747_v32  ;;  %11757 = vst [vmem:[#allocation155_spill] sm:$0xff] %v8333_v33  ;;  %v11758_v32 = vld [vmem:[#allocation144_spill] sm:$0xff]  ;;  %v2328_v33 = vld [vmem:[%s7202_s17 + $0x158] sm:$0xff] }
 0x23c   : > { %2308 = vmatpush.bf16.msrb.mxu3 %v11748_v61  ;;  %2267 = vmatpush.bf16.msrb.mxu0 %v11749_v41  ;;  %v11759_v61 = vld [vmem:[#allocation16_spill] sm:$0xff]  ;;  %v11760_v41 = vld [vmem:[#allocation17_spill] sm:$0xff] }
 0x23d   : > { %2281 = vmatpush.bf16.msrb.mxu1 %v11750_v29  ;;  %v11761_v29 = vld [vmem:[#allocation18_spill] sm:$0xff] }
 0x23e   : > { %2295 = vmatpush.bf16.msrb.mxu2 %v11751_v30  ;;  %v11762_v30 = vld [vmem:[#allocation19_spill] sm:$0xff] }
 0x240   : > { %2309 = vmatpush.bf16.msrb.mxu3 %v11752_v17  ;;  %2268 = vmatpush.bf16.msrb.mxu0 %v11754_v20  ;;  %v2317_v20 = vld [vmem:[%s7202_s17 + $0x80] sm:$0xff]  ;;  %v2318_v17 = vld [vmem:[%s7202_s17 + $0x88] sm:$0xff] }
 0x241   : > { %2282 = vmatpush.bf16.msrb.mxu1 %v11755_v46  ;;  %v11772_v46 = vld [vmem:[#allocation27_spill] sm:$0xff] }
 0x242   : > { %2296 = vmatpush.bf16.msrb.mxu2 %v11756_v8  ;;  %v11763_v8 = vld [vmem:[#allocation20_spill] sm:$0xff] }
 0x243   : > { %2269 = vmatmul.bf16.vlgmr.msrb.gmra.mxu0 %v8233_v0  ;;  %v8350_v0 = vpop.f32.mrf.mxu3 }
 0x244   : > { %2310 = vmatpush.bf16.msrb.mxu3 %v11758_v32  ;;  %2381 = vmatpush.bf16.msra.mxu0 %v11759_v61  ;;  %v8345_v32 = vpop.f32.mrf.mxu2  ;;  %v11765_v61 = vld [vmem:[#allocation21_spill] sm:$0xff]  ;;  %11768 = vst [vmem:[#allocation157_spill] sm:$0xff] %v8350_v0  ;;  %v2325_v0 = vld [vmem:[%s7202_s17 + $0x140] sm:$0xff] }
 0x245   : > { %2395 = vmatpush.bf16.msra.mxu1 %v11760_v41  ;;  %2297 = vmatmul.bf16.vlgmr.msrb.gmra.mxu2 %v8237_v59  ;;  %11764 = vst [vmem:[#allocation156_spill] sm:$0xff] %v8345_v32  ;;  %v2006_v59 = vpop.f32.mrf.mxu0  ;;  %v11771_v41 = vld [vmem:[#allocation26_spill] sm:$0xff] }
 0x246   : > { %2409 = vmatpush.bf16.msra.mxu2 %v11761_v29  ;;  %2283 = vmatmul.bf16.vlgmr.msrb.gmra.mxu1 %v8239_v21  ;;  %v11766_v29 = vld [vmem:[#allocation22_spill] sm:$0xff]  ;;  %v11769_v21 = vld [vmem:[#allocation24_spill] sm:$0xff] }
 0x247   : > { %2311 = vmatmul.bf16.vlgmr.msrb.gmra.mxu3 %v8245_v53  ;;  %v2007_v53 = vadd.f32 %v2006_v59, %v1993_v50  ;;  %v2326_v50 = vld [vmem:[%s7202_s17 + $0x148] sm:$0xff]  ;;  %v2319_v59 = vld [vmem:[%s7202_s17 + $0x90] sm:$0xff] }
 0x248   : > { %2423 = vmatpush.bf16.msra.mxu3 %v11762_v30  ;;  %2382 = vmatpush.bf16.msra.mxu0 %v11763_v8  ;;  %v11767_v30 = vld [vmem:[#allocation23_spill] sm:$0xff]  ;;  %v11770_v8 = vld [vmem:[#allocation25_spill] sm:$0xff]  ;;  %v2327_v32 = vld [vmem:[%s7202_s17 + $0x150] sm:$0xff] }
 0x249   : > { %2396 = vmatpush.bf16.msra.mxu1 %v11765_v61  ;;  %v2020_v61 = vpop.f32.mrf.mxu1 }
 0x24a   : > { %2410 = vmatpush.bf16.msra.mxu2 %v11766_v29  ;;  %v2021_v29 = vadd.f32 %v2020_v61, %v2007_v53  ;;  %v8369_v53 = vpack.c.bf16 %v2318_v17, %v2317_v20 }
 0x24b   : > { %v2048_v61 = vpop.f32.mrf.mxu3 }
 0x24c   : > { %2424 = vmatpush.bf16.msra.mxu3 %v11767_v30  ;;  %2383 = vmatpush.bf16.msra.mxu0 %v11769_v21  ;;  %v11773_v30 = vld [vmem:[#allocation28_spill] sm:$0xff]  ;;  %v11776_v21 = vld [vmem:[#allocation31_spill] sm:$0xff]  ;;  %11778 = vst [vmem:[#allocation160_spill] sm:$0xff] %v8369_v53 }
 0x24d   : > { %2397 = vmatpush.bf16.msra.mxu1 %v11770_v8  ;;  %v2320_v8 = vld [vmem:[%s7202_s17 + $0x98] sm:$0xff] }
 0x24e   : > { %2411 = vmatpush.bf16.msra.mxu2 %v11771_v41  ;;  %v2034_v41 = vpop.f32.mrf.mxu2  ;;  %v8373_v63 = vpack.c.bf16 %v2320_v8, %v2319_v59 }
 0x24f   : > { %v2035_v22 = vadd.f32 %v2034_v41, %v2021_v29  ;;  %v11786_v41 = vld [vmem:[#allocation36_spill] sm:$0xff]  ;;  %v2341_v29 = vunpack.c.l.bf16 %v8369_v53 }
 0x250   : > { %2425 = vmatpush.bf16.msra.mxu3 %v11772_v46  ;;  %2384 = vmatpush.bf16.msra.mxu0 %v11773_v30  ;;  %v11777_v46 = vld [vmem:[#allocation32_spill] sm:$0xff]  ;;  %v8371_v30 = vpack.c.bf16 %v2326_v50, %v2325_v0  ;;  %11780 = vst [vmem:[#allocation162_spill] sm:$0xff] %v8373_v63  ;;  %v2343_v40 = vunpack.c.l.bf16 %v8373_v63 }
 0x251   : > { %2398 = vmatpush.bf16.msra.mxu1 %v11774_v4  ;;  %v11781_v4 = vld [vmem:[#allocation33_spill] sm:$0xff]  ;;  %v8377_v25 = vadd.f32 %v2048_v61, %v2035_v22  ;;  %v2342_v22 = vunpack.c.h.bf16 %v8369_v53  ;;  %v2357_v57 = vsub.f32 %v2317_v20, %v2341_v29  ;;  %v11811_v29 = vld [vmem:[#allocation60_spill] sm:$0xff] }
 0x252   : > { %2412 = vmatpush.bf16.msra.mxu2 %v11775_v38  ;;  %11779 = vst [vmem:[#allocation161_spill] sm:$0xff] %v8371_v30  ;;  %v11782_v38 = vld [vmem:[#allocation34_spill] sm:$0xff]  ;;  %v2350_v61 = vunpack.c.h.bf16 %v8371_v30  ;;  %v2359_v31 = vsub.f32 %v2319_v59, %v2343_v40  ;;  %v11795_v20 = vld [vmem:[#allocation45_spill] sm:$0xff] }
 0x253   : > { %11783 = vst [vmem:[#allocation163_spill] sm:$0xff] %v8377_v25  ;;  %v11790_v25 = vld [vmem:[#allocation40_spill] sm:$0xff]  ;;  %v2358_v6 = vsub.f32 %v2318_v17, %v2342_v22  ;;  %v11796_v40 = vld [vmem:[#allocation46_spill] sm:$0xff]  ;;  %v11798_v17 = vld [vmem:[#allocation47_spill] sm:$0xff] }
 0x254   : > { %2426 = vmatpush.bf16.msra.mxu3 %v11776_v21  ;;  %2385 = vmatpush.bf16.msra.mxu0 %v11777_v46  ;;  %v8379_v21 = vpack.c.bf16 %v2328_v33, %v2327_v32  ;;  %v2349_v46 = vunpack.c.l.bf16 %v8371_v30  ;;  %v2366_v53 = vsub.f32 %v2326_v50, %v2350_v61  ;;  %v11809_v50 = vld [vmem:[#allocation56_spill] sm:$0xff] }
 0x255   : > { %2399 = vmatpush.bf16.msra.mxu1 %v11781_v4  ;;  %v11789_v4 = vld [vmem:[#allocation39_spill] sm:$0xff] }
 0x256   : > { %2413 = vmatpush.bf16.msra.mxu2 %v11782_v38  ;;  %11784 = vst [vmem:[#allocation164_spill] sm:$0xff] %v8379_v21  ;;  %v2351_v38 = vunpack.c.l.bf16 %v8379_v21  ;;  %v2365_v9 = vsub.f32 %v2325_v0, %v2349_v46  ;;  %v8407_v0 = vpack.c.bf16 %v2366_v53, %v2358_v6  ;;  %v11804_v6 = vld [vmem:[#allocation53_spill] sm:$0xff]  ;;  %v8430_v53 = vpop.f32.mrf.mxu3 }
 0x258   : > { %2427 = vmatpush.bf16.msra.mxu3 %v11785_v2  ;;  %2386 = vmatpush.bf16.msra.mxu0 %v11786_v41  ;;  %v2344_v41 = vunpack.c.h.bf16 %v8373_v63  ;;  %v2352_v2 = vunpack.c.h.bf16 %v8379_v21  ;;  %v2367_v5 = vsub.f32 %v2327_v32, %v2351_v38  ;;  %v8399_v63 = vpack.c.bf16 %v2365_v9, %v2357_v57  ;;  %v8401_v21 = vpop.f32.mrf.mxu0  ;;  %v8409_v32 = vpop.f32.mrf.mxu1  ;;  %v11800_v9 = vld [vmem:[#allocation49_spill] sm:$0xff]  ;;  %v11801_v57 = vld [vmem:[#allocation50_spill] sm:$0xff] }
 0x259   : > { %2400 = vmatpush.bf16.msra.mxu1 %v11787_v26  ;;  %v11791_v26 = vld [vmem:[#allocation41_spill] sm:$0xff]  ;;  %11797 = vst [vmem:[#allocation165_spill] sm:$0xff] %v8409_v32  ;;  %v8425_v38 = vpop.f32.mrf.mxu2 }
 0x25a   : > { %2414 = vmatpush.bf16.msra.mxu2 %v11788_v55  ;;  %v11792_v55 = vld [vmem:[#allocation42_spill] sm:$0xff]  ;;  %v2360_v30 = vsub.f32 %v2320_v8, %v2344_v41  ;;  %v8405_v46 = vpack.c.bf16 %v2367_v5, %v2359_v31  ;;  %v11799_v8 = vld [vmem:[#allocation48_spill] sm:$0xff]  ;;  %v11805_v5 = vld [vmem:[#allocation55_spill] sm:$0xff]  ;;  %11806 = vst [vmem:[#allocation166_spill] sm:$0xff] %v8425_v38 }
 0x25b   : > { %v11803_v31 = vld [vmem:[#allocation52_spill] sm:$0xff] }
 0x25c   : > { %2428 = vmatpush.bf16.msra.mxu3 %v11789_v4  ;;  %2387 = vmatpush.bf16.msra.mxu0 %v11790_v25  ;;  %v2368_v4 = vsub.f32 %v2328_v33, %v2352_v2  ;;  %v11802_v2 = vld [vmem:[#allocation51_spill] sm:$0xff]  ;;  %v11833_v25 = vld [vmem:[#allocation77_spill] sm:$0xff] }
 0x25d   : > { %2401 = vmatpush.bf16.msra.mxu1 %v11791_v26 }
 0x25e   : > { %2415 = vmatpush.bf16.msra.mxu2 %v11792_v55  ;;  %v8413_v33 = vpack.c.bf16 %v2368_v4, %v2360_v30  ;;  %v11807_v4 = vld [vmem:[#allocation58_spill] sm:$0xff]  ;;  %v11829_v55 = vld [vmem:[#allocation73_spill] sm:$0xff] }
 0x25f   : > { %v11808_v30 = vld [vmem:[#allocation54_spill] sm:$0xff] }
 0x260   : > { %2429 = vmatpush.bf16.msra.mxu3 %v11793_v28  ;;  %2388 = vmatpush.bf16.msra.mxu0 %v11794_v15  ;;  %v1303_v59 = vadd.f32 %v11809_v50, %v11808_v30  ;;  %11810 = vst [vmem:[#allocation54_spill] sm:$0xff] %v8430_v53  ;;  %v2102_v41 = vpop.f32.mrf.mxu0  ;;  %v11814_v50 = vld [vmem:[#allocation57_spill] sm:$0xff]  ;;  %v11834_v53 = vld [vmem:[#allocation80_spill] sm:$0xff] }
 0x261   : > { %2402 = vmatpush.bf16.msra.mxu1 %v11795_v20  ;;  %v2103_v22 = vadd.f32 %v2102_v41, %v8273_v35  ;;  %v2322_v35 = vld [vmem:[%s7202_s17 + $0xa8] sm:$0xff]  ;;  %v2329_v41 = vld [vmem:[%s7202_s17 + $0x160] sm:$0xff] }
 0x262   : > { %2416 = vmatpush.bf16.msra.mxu2 %v11796_v40  ;;  %v11820_v40 = vld [vmem:[#allocation68_spill] sm:$0xff] }
 0x263   : > { %2389 = vmatmul.bf16.vlgmr.msra.gmra.mxu0 %v8399_v63  ;;  %v2116_v61 = vpop.f32.mrf.mxu1 }
 0x264   : > { %2430 = vmatpush.bf16.msra.mxu3 %v11798_v17  ;;  %2437 = vmatpush.bf16.msrb.mxu0 %v11799_v8  ;;  %v2117_v30 = vadd.f32 %v2116_v61, %v2103_v22  ;;  %v2324_v8 = vld [vmem:[%s7202_s17 + $0xb8] sm:$0xff]  ;;  %v2331_v61 = vld [vmem:[%s7202_s17 + $0x170] sm:$0xff] }
 0x265   : > { %2451 = vmatpush.bf16.msrb.mxu1 %v11800_v9  ;;  %2417 = vmatmul.bf16.vlgmr.msra.gmra.mxu2 %v8405_v46  ;;  %v2323_v9 = vld [vmem:[%s7202_s17 + $0xb0] sm:$0xff] }
 0x266   : > { %2465 = vmatpush.bf16.msrb.mxu2 %v11801_v57  ;;  %2403 = vmatmul.bf16.vlgmr.msra.gmra.mxu1 %v8407_v0  ;;  %v11816_v57 = vld [vmem:[#allocation65_spill] sm:$0xff] }
 0x267   : > { %2431 = vmatmul.bf16.vlgmr.msra.gmra.mxu3 %v8413_v33 }
 0x268   : > { %2479 = vmatpush.bf16.msrb.mxu3 %v11802_v2  ;;  %2438 = vmatpush.bf16.msrb.mxu0 %v11803_v31  ;;  %v1855_v31 = vadd.f32 %v8241_v16, %v8230_v56  ;;  %v2321_v2 = vld [vmem:[%s7202_s17 + $0xa0] sm:$0xff]  ;;  %v2130_v22 = vpop.f32.mrf.mxu2 }
 0x269   : > { %2452 = vmatpush.bf16.msrb.mxu1 %v11804_v6  ;;  %v1317_v6 = vadd.f32 %v11814_v50, %v1303_v59  ;;  %v2332_v59 = vld [vmem:[%s7202_s17 + $0x178] sm:$0xff]  ;;  %v2131_v56 = vadd.f32 %v2130_v22, %v2117_v30  ;;  %v8455_v20 = vpack.c.bf16 %v2322_v35, %v2321_v2 }
 0x26a   : > { %2466 = vmatpush.bf16.msrb.mxu2 %v11805_v5  ;;  %v11812_v5 = vld [vmem:[#allocation61_spill] sm:$0xff]  ;;  %v11819_v50 = vld [vmem:[#allocation59_spill] sm:$0xff]  ;;  %v2144_v16 = vpop.f32.mrf.mxu3  ;;  %v8465_v28 = vpack.c.bf16 %v2332_v59, %v2331_v61 }
 0x26b   : > { %v1331_v17 = vadd.f32 %v11819_v50, %v1317_v6  ;;  %11821 = vst [vmem:[#allocation56_spill] sm:$0xff] %v8455_v20  ;;  %v8463_v15 = vadd.f32 %v2144_v16, %v2131_v56  ;;  %v11826_v6 = vld [vmem:[#allocation74_spill] sm:$0xff]  ;;  %v11827_v22 = vld [vmem:[#allocation71_spill] sm:$0xff]  ;;  %v2345_v50 = vunpack.c.l.bf16 %v8455_v20 }
 0x26c   : > { %2480 = vmatpush.bf16.msrb.mxu3 %v11807_v4  ;;  %2439 = vmatpush.bf16.msrb.mxu0 %v11811_v29  ;;  %v11813_v4 = vld [vmem:[#allocation63_spill] sm:$0xff]  ;;  %v11815_v29 = vld [vmem:[#allocation64_spill] sm:$0xff]  ;;  %11825 = vst [vmem:[#allocation167_spill] sm:$0xff] %v8465_v28  ;;  %v2355_v16 = vunpack.c.l.bf16 %v8465_v28  ;;  %v2356_v26 = vunpack.c.h.bf16 %v8465_v28 }
 0x26d   : > { %2453 = vmatpush.bf16.msrb.mxu1 %v11812_v5  ;;  %v11817_v5 = vld [vmem:[#allocation66_spill] sm:$0xff]  ;;  %v1345_v30 = vadd.f32 %v11826_v6, %v1331_v17  ;;  %v11830_v56 = vld [vmem:[#allocation75_spill] sm:$0xff]  ;;  %v2346_v17 = vunpack.c.h.bf16 %v8455_v20  ;;  %v11835_v20 = vld [vmem:[#allocation81_spill] sm:$0xff] }
 0x26e   : > { %2467 = vmatpush.bf16.msrb.mxu2 %v11712_v12  ;;  %v2330_v12 = vld [vmem:[%s7202_s17 + $0x168] sm:$0xff]  ;;  %v2372_v28 = vsub.f32 %v2332_v59, %v2356_v26 }
 0x270   : > { %2481 = vmatpush.bf16.msrb.mxu3 %v11813_v4  ;;  %2440 = vmatpush.bf16.msrb.mxu0 %v11815_v29  ;;  %v11818_v4 = vld [vmem:[#allocation67_spill] sm:$0xff]  ;;  %v1869_v29 = vadd.f32 %v8255_v37, %v1855_v31  ;;  %v11828_v31 = vld [vmem:[#allocation72_spill] sm:$0xff] }
 0x271   : > { %2454 = vmatpush.bf16.msrb.mxu1 %v11816_v57  ;;  %v8457_v57 = vpack.c.bf16 %v2330_v12, %v2329_v41 }
 0x272   : > { %2468 = vmatpush.bf16.msrb.mxu2 %v11817_v5  ;;  %v8459_v5 = vpack.c.bf16 %v2324_v8, %v2323_v9  ;;  %v1883_v37 = vadd.f32 %v8260_v51, %v1869_v29 }
 0x273   : > { %11822 = vst [vmem:[#allocation57_spill] sm:$0xff] %v8457_v57  ;;  %v2354_v6 = vunpack.c.h.bf16 %v8457_v57 }
 0x274   : > { %2482 = vmatpush.bf16.msrb.mxu3 %v11818_v4  ;;  %2441 = vmatpush.bf16.msrb.mxu0 %v11820_v40  ;;  %11823 = vst [vmem:[#allocation59_spill] sm:$0xff] %v8459_v5  ;;  %v11824_v4 = vld [vmem:[#allocation70_spill] sm:$0xff]  ;;  %v2353_v40 = vunpack.c.l.bf16 %v8457_v57  ;;  %v1897_v29 = vadd.f32 %v8287_v7, %v1883_v37 }
 0x275   : > { %2455 = vmatpush.bf16.msrb.mxu1 %v11719_v52  ;;  %v2347_v52 = vunpack.c.l.bf16 %v8459_v5  ;;  %v11836_v57 = vld [vmem:[#allocation82_spill] sm:$0xff]  ;;  %v2370_v7 = vsub.f32 %v2330_v12, %v2354_v6  ;;  %v11841_v6 = vld [vmem:[#allocation84_spill] sm:$0xff] }
 0x276   : > { %2469 = vmatpush.bf16.msrb.mxu2 %v11824_v4  ;;  %v2348_v4 = vunpack.c.h.bf16 %v8459_v5  ;;  %v2369_v38 = vsub.f32 %v2329_v41, %v2353_v40  ;;  %v1911_v37 = vadd.f32 %v8289_v23, %v1897_v29  ;;  %v2146_v41 = vpop.f32.mrf.mxu3  ;;  %v11842_v29 = vld [vmem:[#allocation86_spill] sm:$0xff] }
 0x277   : > { %v2363_v32 = vsub.f32 %v2323_v9, %v2347_v52  ;;  %v11837_v52 = vld [vmem:[#allocation79_spill] sm:$0xff]  ;;  %v2104_v9 = vpop.f32.mrf.mxu0 }
 0x278   : > { %2483 = vmatpush.bf16.msrb.mxu3 %v11827_v22  ;;  %2442 = vmatpush.bf16.msrb.mxu0 %v11828_v31  ;;  %v11831_v22 = vld [vmem:[#allocation76_spill] sm:$0xff]  ;;  %v11832_v31 = vld [vmem:[#allocation78_spill] sm:$0xff]  ;;  %v2364_v5 = vsub.f32 %v2324_v8, %v2348_v4 }
 0x279   : > { %2456 = vmatpush.bf16.msrb.mxu1 %v11829_v55  ;;  %v1359_v51 = vadd.f32 %v11831_v22, %v1345_v30  ;;  %v2371_v30 = vsub.f32 %v2331_v61, %v2355_v16  ;;  %v2362_v22 = vsub.f32 %v2322_v35, %v2346_v17  ;;  %v2118_v35 = vpop.f32.mrf.mxu1 }
 0x27a   : > { %2470 = vmatpush.bf16.msrb.mxu2 %v11830_v56  ;;  %v2361_v56 = vsub.f32 %v2321_v2, %v2345_v50  ;;  %v8503_v26 = vpack.c.bf16 %v2372_v28, %v2364_v5 }
 0x27b   : > { %v1373_v55 = vadd.f32 %v11833_v25, %v1359_v51  ;;  %v1925_v25 = vadd.f32 %v8303_v10, %v1911_v37  ;;  %v8497_v12 = vpack.c.bf16 %v2371_v30, %v2363_v32  ;;  %v8499_v23 = vpack.c.bf16 %v2370_v7, %v2362_v22  ;;  %v11838_v10 = vld [vmem:[#allocation158_spill] sm:$0xff]  ;;  %v11839_v32 = vld [vmem:[#allocation159_spill] sm:$0xff] }
 0x27c   : > { %2484 = vmatpush.bf16.msrb.mxu3 %v11832_v31  ;;  %2443 = vmatpush.bf16.msrb.mxu0 %v11834_v53  ;;  %v8492_v2 = vpack.c.bf16 %v2369_v38, %v2361_v56  ;;  %v11840_v38 = vld [vmem:[#allocation83_spill] sm:$0xff]  ;;  %v8540_v7 = vstv %s8511_s6  ;;  %v8543_v37 = vstv %s8515_s7  ;;  %s5264_s6 = scalar_lea.sflag [#allocation4], %s271_s29  ;;  %s6963_s7 = sshra.s32 %s5280_s22, 4  ;;  %s6964_s7 = int_to_ptr.hbm [resolvable:$true] %s6963_s7 }
 0x27d   : > { %2457 = vmatpush.bf16.msrb.mxu1 %v11835_v20  ;;  %v1387_v40 = vadd.f32 %v11837_v52, %v1373_v55  ;;  %v1939_v55 = vadd.f32 %v8306_v24, %v1925_v25  ;;  %v2132_v24 = vpop.f32.mrf.mxu2  ;;  %v8546_v25 = vstv %s8520_s14  ;;  %s6965_s14 = scalar_lea.hbm %s6964_s7, 384  ;;  %p6970_p9 = scmp.lt.s32.totalorder %s6964_s7, %s10653_s5 }
 0x27e   : > { %2471 = vmatpush.bf16.msrb.mxu2 %v11836_v57  ;;  %p6966_p4 = scmp.ne.s32.totalorder %s6964_s7, %s6965_s14 }
 0x27f   : > { %v1553_v8 = vadd.f32 %v11838_v10, %v1387_v40  ;;  %v2105_v28 = vadd.f32 %v2104_v9, %v1939_v55  ;;  %v8550_v10 = vstv %s8525_s15  ;;  %v8554_v55 = vstv %s6441_s10 }
 0x280   : > { %2485 = vmatpush.bf16.msrb.mxu3 %v7443_v39  ;;  %2444 = vmatpush.bf16.msrb.mxu0 %v7447_v11  ;;  %v2158_v61 = vpop.f32.mrf.mxu0  ;;  %p6967_p8 = pnand %p6966_p4, %p7157_p7 }
 0x281   : > { %2458 = vmatpush.bf16.msrb.mxu1 %v7449_v19  ;;  %v1567_v5 = vadd.f32 %v11839_v32, %v1553_v8  ;;  %v2119_v59 = vadd.f32 %v2118_v35, %v2105_v28  ;;  %v2159_v50 = vadd.f32 %v2158_v61, %v8463_v15  ;;  %v8552_v8 = vstv %s6438_s12  ;;  %v11843_v28 = vld [vmem:[#allocation87_spill] sm:$0xff]  ;;  %s6969_s12 = scalar_lea.hbm %s10653_s5, 768 }
 0x282   : > { %2472 = vmatpush.bf16.msrb.mxu2 %v7452_v18  ;;  %p6968_p11 = pneg %p6967_p8  ;;  %p6971_p2 = scmp.lt.s32.totalorder %s6969_s12, %s6965_s14 }
 0x283   : > { %2445 = vmatmul.bf16.vlgmr.msrb.gmra.mxu0 %v8492_v2  ;;  %v1581_v4 = vadd.f32 %v11840_v38, %v1567_v5  ;;  %v2172_v56 = vpop.f32.mrf.mxu1  ;;  %v2133_v16 = vadd.f32 %v2132_v24, %v2119_v59  ;;  %v11844_v5 = vld [vmem:[#allocation98_spill] sm:$0xff]  ;;  %v11845_v24 = vld [vmem:[#allocation99_spill] sm:$0xff]  ;;  %v11848_v59 = vld [vmem:[#allocation100_spill] sm:$0xff] }
 0x284   : > { %2486 = vmatpush.bf16.msrb.mxu3 %v7457_v42  ;;  %2493 = vmatpush.bf16.msra.mxu0 %v7459_v48  ;;  %v2173_v17 = vadd.f32 %v2172_v56, %v2159_v50  ;;  %p6972_p10 = por %p6971_p2, %p6970_p9 }
 0x285   : > { %2507 = vmatpush.bf16.msra.mxu1 %v7462_v27  ;;  %2473 = vmatmul.bf16.vlgmr.msrb.gmra.mxu2 %v8497_v12  ;;  %v1595_v51 = vadd.f32 %v11841_v6, %v1581_v4  ;;  %v2147_v30 = vadd.f32 %v2146_v41, %v2133_v16  ;;  %v11847_v41 = vld [vmem:[#allocation85_spill] sm:$0xff]  ;;  %v11849_v16 = vld [vmem:[#allocation88_spill] sm:$0xff] }
 0x286   : > { %2521 = vmatpush.bf16.msra.mxu2 %v11610_v3  ;;  %2459 = vmatmul.bf16.vlgmr.msrb.gmra.mxu1 %v8499_v23  ;;  %v2871_v61 = vmul.f32 %v8540_v7, %v11847_v41  ;;  %v4089_v50 = vmul.f32 %v8543_v37, %v11847_v41  ;;  %v4677_v56 = vmul.f32 %v8546_v25, %v11847_v41  ;;  %v11857_v41 = vld [vmem:[#allocation89_spill] sm:$0xff]  ;;  %p6973_p12 = pnand %p6972_p10, %p6968_p11 }
 0x287   : > { %2487 = vmatmul.bf16.vlgmr.msrb.gmra.mxu3 %v8503_v26  ;;  %v1609_v15 = vadd.f32 %v11842_v29, %v1595_v51 }
 0x288   : > { %2535 = vmatpush.bf16.msra.mxu3 %v11611_v54  ;;  %2494 = vmatpush.bf16.msra.mxu0 %v11612_v58  ;;  %v2186_v22 = vpop.f32.mrf.mxu2  ;;  %v2160_v40 = vpop.f32.mrf.mxu0 }
 0x289   : > { %2508 = vmatpush.bf16.msra.mxu1 %v11613_v49  ;;  %v2187_v52 = vadd.f32 %v2186_v22, %v2173_v17  ;;  %v2161_v35 = vadd.f32 %v2160_v40, %v2147_v30  ;;  %v1623_v32 = vadd.f32 %v11843_v28, %v1609_v15  ;;  %v11850_v15 = vld [vmem:[#allocation101_spill] sm:$0xff]  ;;  %v11853_v40 = vld [vmem:[#allocation103_spill] sm:$0xff] }
 0x28a   : > { %2522 = vmatpush.bf16.msra.mxu2 %v11614_v13  ;;  %v2200_v9 = vpop.f32.mrf.mxu3 }
 0x28b   : > { %v8559_v38 = vadd.f32 %v2200_v9, %v2187_v52  ;;  %v2174_v4 = vpop.f32.mrf.mxu1  ;;  %v1637_v17 = vadd.f32 %v11849_v16, %v1623_v32  ;;  %v11852_v52 = vld [vmem:[#allocation102_spill] sm:$0xff]  ;;  %v11856_v32 = vld [vmem:[#allocation104_spill] sm:$0xff] }
 0x28c   : > { %2536 = vmatpush.bf16.msra.mxu3 %v11616_v36  ;;  %2495 = vmatpush.bf16.msra.mxu0 %v11618_v44  ;;  %v2175_v30 = vadd.f32 %v2174_v4, %v2161_v35  ;;  %v11860_v35 = vld [vmem:[#allocation106_spill] sm:$0xff]  ;;  %v11861_v4 = vld [vmem:[#allocation107_spill] sm:$0xff] }
 0x28d   : > { %2509 = vmatpush.bf16.msra.mxu1 %v11619_v43  ;;  %11846 = vst [vmem:[#allocation74_spill] sm:$0xff] %v8559_v38  ;;  %v2877_v6 = vmul.f32 %v8550_v10, %v8559_v38  ;;  %v4095_v51 = vmul.f32 %v8552_v8, %v8559_v38  ;;  %v4683_v29 = vmul.f32 %v8554_v55, %v8559_v38 }
 0x28e   : > { %2523 = vmatpush.bf16.msra.mxu2 %v11620_v60 }
 0x28f   : > { %v8576_v22 = vadd.f32 %v2877_v6, %v2871_v61  ;;  %v8580_v9 = vadd.f32 %v4095_v51, %v4089_v50  ;;  %v8582_v28 = vadd.f32 %v4683_v29, %v4677_v56  ;;  %v11863_v50 = vld [vmem:[#allocation108_spill] sm:$0xff]  ;;  %v11864_v51 = vld [vmem:[#allocation109_spill] sm:$0xff]  ;;  %v11865_v29 = vld [vmem:[#allocation110_spill] sm:$0xff] }
 0x290   : > { %2537 = vmatpush.bf16.msra.mxu3 %v11510_v1  ;;  %2496 = vmatpush.bf16.msra.mxu0 %v11511_v14  ;;  %v2188_v16 = vpop.f32.mrf.mxu2 }
 0x291   : > { %2510 = vmatpush.bf16.msra.mxu1 %v11621_v34  ;;  %11851 = vst [vmem:[#allocation76_spill] sm:$0xff] %v8576_v22  ;;  %v2189_v38 = vadd.f32 %v2188_v16, %v2175_v30  ;;  %v11869_v16 = vld [vmem:[#allocation112_spill] sm:$0xff] }
 0x292   : > { %2524 = vmatpush.bf16.msra.mxu2 %v11622_v45  ;;  %11854 = vst [vmem:[#allocation78_spill] sm:$0xff] %v8580_v9  ;;  %v11871_v9 = vld [vmem:[#allocation114_spill] sm:$0xff]  ;;  %v11873_v22 = vld [vmem:[#allocation116_spill] sm:$0xff] }
 0x293   : > { %11855 = vst [vmem:[#allocation77_spill] sm:$0xff] %v8582_v28  ;;  %v11870_v28 = vld [vmem:[#allocation113_spill] sm:$0xff] }
 0x294   : > { %2538 = vmatpush.bf16.msra.mxu3 %v11623_v62  ;;  %2497 = vmatpush.bf16.msra.mxu0 %v11515_v47 }
 0x295   : > { %2511 = vmatpush.bf16.msra.mxu1 %v11844_v5 }
 0x296   : > { %2525 = vmatpush.bf16.msra.mxu2 %v11845_v24  ;;  %v2202_v24 = vpop.f32.mrf.mxu3 }
 0x297   : > { %v8591_v61 = vadd.f32 %v2202_v24, %v2189_v38  ;;  %v11866_v24 = vld [vmem:[#allocation111_spill] sm:$0xff] }
 0x298   : > { %2539 = vmatpush.bf16.msra.mxu3 %v11848_v59  ;;  %2498 = vmatpush.bf16.msra.mxu0 %v11850_v15  ;;  %v8586_v59 = vadd.f32 %v11857_v41, %v1637_v17  ;;  %v11859_v15 = vld [vmem:[#allocation105_spill] sm:$0xff] }
 0x299   : > { %2512 = vmatpush.bf16.msra.mxu1 %v11852_v52  ;;  %11862 = vst [vmem:[#allocation81_spill] sm:$0xff] %v8591_v61  ;;  %v4097_v6 = vmul.f32 %v8552_v8, %v8591_v61  ;;  %v4685_v17 = vmul.f32 %v8554_v55, %v8591_v61 }
 0x29a   : > { %2526 = vmatpush.bf16.msra.mxu2 %v11853_v40  ;;  %11858 = vst [vmem:[#allocation80_spill] sm:$0xff] %v8586_v59  ;;  %v4091_v56 = vmul.f32 %v8543_v37, %v8586_v59  ;;  %v4679_v41 = vmul.f32 %v8546_v25, %v8586_v59  ;;  %v11872_v59 = vld [vmem:[#allocation115_spill] sm:$0xff] }
 0x29c   : > { %2540 = vmatpush.bf16.msra.mxu3 %v11856_v32  ;;  %2499 = vmatpush.bf16.msra.mxu0 %v11859_v15  ;;  %v8605_v38 = vadd.f32 %v4097_v6, %v4091_v56  ;;  %v8607_v30 = vadd.f32 %v4685_v17, %v4679_v41  ;;  %v11874_v56 = vld [vmem:[#allocation117_spill] sm:$0xff]  ;;  %v11875_v6 = vld [vmem:[#allocation118_spill] sm:$0xff]  ;;  %v11876_v41 = vld [vmem:[#allocation119_spill] sm:$0xff] }
 0x29d   : > { %2513 = vmatpush.bf16.msra.mxu1 %v11860_v35  ;;  %v11877_v17 = vld [vmem:[#allocation120_spill] sm:$0xff] }
 0x29e   : > { %2527 = vmatpush.bf16.msra.mxu2 %v11861_v4  ;;  %11867 = vst [vmem:[#allocation82_spill] sm:$0xff] %v8605_v38  ;;  %v11879_v38 = vld [vmem:[#allocation163_spill] sm:$0xff] }
 0x29f   : > { %11868 = vst [vmem:[#allocation79_spill] sm:$0xff] %v8607_v30  ;;  %v11878_v30 = vld [vmem:[#allocation121_spill] sm:$0xff] }
 0x2a0   : > { %2541 = vmatpush.bf16.msra.mxu3 %v11863_v50  ;;  %2500 = vmatpush.bf16.msra.mxu0 %v11864_v51  ;;  %v2214_v61 = vpop.f32.mrf.mxu0  ;;  %v11900_v50 = vld [vmem:[#allocation133_spill] sm:$0xff] }
 0x2a1   : > { %2514 = vmatpush.bf16.msra.mxu1 %v11865_v29  ;;  %v11889_v29 = vld [vmem:[#allocation126_spill] sm:$0xff] }
 0x2a2   : > { %2528 = vmatpush.bf16.msra.mxu2 %v11866_v24  ;;  %v11888_v24 = vld [vmem:[#allocation97_spill] sm:$0xff] }
 0x2a3   : > { %2501 = vmatmul.bf16.vlgmr.msra.gmra.mxu0 %v8399_v63  ;;  %v2228_v63 = vpop.f32.mrf.mxu1 }
 0x2a4   : > { %2542 = vmatpush.bf16.msra.mxu3 %v11869_v16  ;;  %2549 = vmatpush.bf16.msrb.mxu0 %v11870_v28  ;;  %v11885_v28 = vld [vmem:[#allocation154_spill] sm:$0xff] }
 0x2a5   : > { %2563 = vmatpush.bf16.msrb.mxu1 %v11871_v9  ;;  %2529 = vmatmul.bf16.vlgmr.msra.gmra.mxu2 %v8405_v46  ;;  %v11881_v46 = vld [vmem:[#allocation93_spill] sm:$0xff] }
 0x2a6   : > { %2577 = vmatpush.bf16.msrb.mxu2 %v11872_v59  ;;  %2515 = vmatmul.bf16.vlgmr.msra.gmra.mxu1 %v8407_v0  ;;  %v11880_v59 = vld [vmem:[#allocation92_spill] sm:$0xff]  ;;  %v11882_v0 = vld [vmem:[#allocation122_spill] sm:$0xff] }
 0x2a7   : > { %2543 = vmatmul.bf16.vlgmr.msra.gmra.mxu3 %v8413_v33  ;;  %v1415_v9 = vadd.f32 %v11881_v46, %v11880_v59  ;;  %v11884_v33 = vld [vmem:[#allocation124_spill] sm:$0xff] }
 0x2a8   : > { %2591 = vmatpush.bf16.msrb.mxu3 %v11873_v22  ;;  %2550 = vmatpush.bf16.msrb.mxu0 %v11874_v56  ;;  %v2215_v22 = vadd.f32 %v2214_v61, %v11879_v38  ;;  %v11883_v56 = vld [vmem:[#allocation123_spill] sm:$0xff]  ;;  %v11891_v38 = vld [vmem:[#allocation128_spill] sm:$0xff]  ;;  %v2242_v59 = vpop.f32.mrf.mxu2 }
 0x2a9   : > { %2564 = vmatpush.bf16.msrb.mxu1 %v11875_v6  ;;  %v11890_v61 = vld [vmem:[#allocation127_spill] sm:$0xff] }
 0x2aa   : > { %2578 = vmatpush.bf16.msrb.mxu2 %v11876_v41  ;;  %v2229_v6 = vadd.f32 %v2228_v63, %v2215_v22  ;;  %v11886_v41 = vld [vmem:[#allocation155_spill] sm:$0xff]  ;;  %v11894_v22 = vld [vmem:[#allocation145_spill] sm:$0xff] }
 0x2ab   : > { %v1967_v16 = vadd.f32 %v11886_v41, %v11885_v28  ;;  %v11895_v28 = vld [vmem:[#allocation130_spill] sm:$0xff]  ;;  %v11896_v41 = vld [vmem:[#allocation131_spill] sm:$0xff] }
 0x2ac   : > { %2592 = vmatpush.bf16.msrb.mxu3 %v11877_v17  ;;  %2551 = vmatpush.bf16.msrb.mxu0 %v11878_v30  ;;  %v11887_v17 = vld [vmem:[#allocation125_spill] sm:$0xff]  ;;  %v1429_v30 = vadd.f32 %v11888_v24, %v1415_v9  ;;  %v2243_v46 = vadd.f32 %v2242_v59, %v2229_v6  ;;  %v11897_v24 = vld [vmem:[#allocation132_spill] sm:$0xff]  ;;  %v11901_v6 = vld [vmem:[#allocation134_spill] sm:$0xff] }
 0x2ad   : > { %2565 = vmatpush.bf16.msrb.mxu1 %v11882_v0  ;;  %v2256_v0 = vpop.f32.mrf.mxu3  ;;  %v11904_v59 = vld [vmem:[#allocation151_spill] sm:$0xff] }
 0x2ae   : > { %2579 = vmatpush.bf16.msrb.mxu2 %v11883_v56  ;;  %v11892_v56 = vld [vmem:[#allocation156_spill] sm:$0xff]  ;;  %v1443_v63 = vadd.f32 %v11894_v22, %v1429_v30  ;;  %v2257_v9 = vadd.f32 %v2256_v0, %v2243_v46 }
 0x2af   : > { %v1981_v51 = vadd.f32 %v11892_v56, %v1967_v16  ;;  %v11902_v16 = vld [vmem:[#allocation135_spill] sm:$0xff]  ;;  %v11903_v30 = vld [vmem:[#allocation136_spill] sm:$0xff] }
 0x2b0   : > { %2593 = vmatpush.bf16.msrb.mxu3 %v11884_v33  ;;  %2552 = vmatpush.bf16.msrb.mxu0 %v11887_v17  ;;  %v11893_v33 = vld [vmem:[#allocation129_spill] sm:$0xff]  ;;  %v11906_v0 = vld [vmem:[#allocation152_spill] sm:$0xff] }
 0x2b1   : > { %2566 = vmatpush.bf16.msrb.mxu1 %v11889_v29  ;;  %v11898_v29 = vld [vmem:[#allocation150_spill] sm:$0xff]  ;;  %v11899_v17 = vld [vmem:[#allocation157_spill] sm:$0xff] }
 0x2b2   : > { %2580 = vmatpush.bf16.msrb.mxu2 %v11890_v61  ;;  %v1457_v61 = vadd.f32 %v11898_v29, %v1443_v63  ;;  %v11908_v29 = vld [vmem:[#allocation139_spill] sm:$0xff]  ;;  %v11910_v63 = vld [vmem:[#allocation140_spill] sm:$0xff] }
 0x2b4   : > { %2594 = vmatpush.bf16.msrb.mxu3 %v11891_v38  ;;  %2553 = vmatpush.bf16.msrb.mxu0 %v11893_v33  ;;  %v1995_v38 = vadd.f32 %v11899_v17, %v1981_v51  ;;  %v1471_v22 = vadd.f32 %v11904_v59, %v1457_v61  ;;  %v11909_v51 = vld [vmem:[#allocation165_spill] sm:$0xff]  ;;  %v11914_v61 = vld [vmem:[#allocation142_spill] sm:$0xff]  ;;  %v11915_v59 = vld [vmem:[#allocation143_spill] sm:$0xff] }
 0x2b5   : > { %2567 = vmatpush.bf16.msrb.mxu1 %v11895_v28 }
 0x2b6   : > { %2581 = vmatpush.bf16.msrb.mxu2 %v11896_v41  ;;  %v2009_v56 = vadd.f32 %v8401_v21, %v1995_v38  ;;  %v11905_v41 = vld [vmem:[#allocation137_spill] sm:$0xff]  ;;  %v1485_v46 = vadd.f32 %v11906_v0, %v1471_v22  ;;  %v2230_v22 = vpop.f32.mrf.mxu1  ;;  %v11916_v0 = vld [vmem:[#allocation144_spill] sm:$0xff] }
 0x2b7   : > { %v11913_v21 = vld [vmem:[#allocation153_spill] sm:$0xff] }
 0x2b8   : > { %2595 = vmatpush.bf16.msrb.mxu3 %v11897_v24  ;;  %2554 = vmatpush.bf16.msrb.mxu0 %v11900_v50  ;;  %v11907_v24 = vld [vmem:[#allocation138_spill] sm:$0xff]  ;;  %v2023_v17 = vadd.f32 %v11909_v51, %v2009_v56  ;;  %v11912_v50 = vld [vmem:[#allocation141_spill] sm:$0xff]  ;;  %v1499_v38 = vadd.f32 %v11913_v21, %v1485_v46 }
 0x2b9   : > { %2568 = vmatpush.bf16.msrb.mxu1 %v11901_v6  ;;  %v11911_v6 = vld [vmem:[#allocation166_spill] sm:$0xff]  ;;  %v11919_v51 = vld [vmem:[#allocation17_spill] sm:$0xff] }
 0x2ba   : > { %2582 = vmatpush.bf16.msrb.mxu2 %v11902_v16  ;;  %v2037_v16 = vadd.f32 %v11911_v6, %v2023_v17  ;;  %v11921_v6 = vld [vmem:[#allocation54_spill] sm:$0xff] }
 0x2bc   : > { %2596 = vmatpush.bf16.msrb.mxu3 %v11903_v30  ;;  %2555 = vmatpush.bf16.msrb.mxu0 %v11905_v41  ;;  %v2216_v30 = vpop.f32.mrf.mxu0  ;;  %v2051_v17 = vadd.f32 %v11921_v6, %v2037_v16  ;;  %v2244_v16 = vpop.f32.mrf.mxu2 }
 0x2bd   : > { %2569 = vmatpush.bf16.msrb.mxu1 %v11907_v24  ;;  %v11917_v24 = vld [vmem:[#allocation16_spill] sm:$0xff]  ;;  %v2258_v6 = vpop.f32.mrf.mxu3 }
 0x2be   : > { %2583 = vmatpush.bf16.msrb.mxu2 %v11908_v29  ;;  %v11918_v29 = vld [vmem:[#allocation90_spill] sm:$0xff]  ;;  %v2217_v46 = vadd.f32 %v2216_v30, %v2051_v17  ;;  %v11930_v17 = vld [vmem:[#allocation25_spill] sm:$0xff] }
 0x2bf   : > { %v1665_v56 = vadd.f32 %v11918_v29, %v1499_v38  ;;  %v11924_v29 = vld [vmem:[#allocation91_spill] sm:$0xff]  ;;  %v11925_v38 = vld [vmem:[#allocation21_spill] sm:$0xff] }
 0x2c0   : > { %2597 = vmatpush.bf16.msrb.mxu3 %v11910_v63  ;;  %2556 = vmatpush.bf16.msrb.mxu0 %v11912_v50  ;;  %v11920_v63 = vld [vmem:[#allocation18_spill] sm:$0xff]  ;;  %v11922_v50 = vld [vmem:[#allocation19_spill] sm:$0xff] }
 0x2c1   : > { %2570 = vmatpush.bf16.msrb.mxu1 %v11914_v61  ;;  %v1679_v21 = vadd.f32 %v11924_v29, %v1665_v56  ;;  %v11932_v29 = vld [vmem:[#allocation27_spill] sm:$0xff]  ;;  %v11936_v61 = vld [vmem:[#allocation29_spill] sm:$0xff] }
 0x2c2   : > { %2584 = vmatpush.bf16.msrb.mxu2 %v11915_v59 }
 0x2c3   : > { %2557 = vmatmul.bf16.vlgmr.msrb.gmra.mxu0 %v8492_v2 }
 0x2c4   : > { %2598 = vmatpush.bf16.msrb.mxu3 %v11916_v0  ;;  %2645 = vmatpush.bf16.msra.mxu0 %v11917_v24  ;;  %v11923_v24 = vld [vmem:[#allocation20_spill] sm:$0xff]  ;;  %v2231_v0 = vadd.f32 %v2230_v22, %v2217_v46  ;;  %v11937_v22 = vld [vmem:[#allocation30_spill] sm:$0xff]  ;;  %v11938_v46 = vld [vmem:[#allocation31_spill] sm:$0xff] }
 0x2c5   : > { %2659 = vmatpush.bf16.msra.mxu1 %v11919_v51  ;;  %2585 = vmatmul.bf16.vlgmr.msrb.gmra.mxu2 %v8497_v12  ;;  %v11927_v51 = vld [vmem:[#allocation23_spill] sm:$0xff]  ;;  %v2270_v12 = vpop.f32.mrf.mxu0 }
 0x2c6   : > { %2673 = vmatpush.bf16.msra.mxu2 %v11920_v63  ;;  %2571 = vmatmul.bf16.vlgmr.msrb.gmra.mxu1 %v8499_v23  ;;  %v11926_v63 = vld [vmem:[#allocation22_spill] sm:$0xff]  ;;  %v11929_v23 = vld [vmem:[#allocation24_spill] sm:$0xff]  ;;  %v2271_v30 = vadd.f32 %v2270_v12, %v2257_v9  ;;  %v2245_v56 = vadd.f32 %v2244_v16, %v2231_v0 }
 0x2c7   : > { %2599 = vmatmul.bf16.vlgmr.msrb.gmra.mxu3 %v8503_v26  ;;  %v2284_v26 = vpop.f32.mrf.mxu1  ;;  %v11939_v16 = vld [vmem:[#allocation32_spill] sm:$0xff] }
 0x2c8   : > { %2687 = vmatpush.bf16.msra.mxu3 %v11922_v50  ;;  %2646 = vmatpush.bf16.msra.mxu0 %v11923_v24  ;;  %v11928_v50 = vld [vmem:[#allocation94_spill] sm:$0xff]  ;;  %v2259_v9 = vadd.f32 %v2258_v6, %v2245_v56  ;;  %v2298_v12 = vpop.f32.mrf.mxu2 }
 0x2c9   : > { %2660 = vmatpush.bf16.msra.mxu1 %v11925_v38  ;;  %v1693_v2 = vadd.f32 %v11928_v50, %v1679_v21  ;;  %v11931_v24 = vld [vmem:[#allocation26_spill] sm:$0xff]  ;;  %v2285_v38 = vadd.f32 %v2284_v26, %v2271_v30  ;;  %v11940_v26 = vld [vmem:[#allocation147_spill] sm:$0xff] }
 0x2ca   : > { %2674 = vmatpush.bf16.msra.mxu2 %v11926_v63  ;;  %v11933_v63 = vld [vmem:[#allocation95_spill] sm:$0xff]  ;;  %v11935_v21 = vld [vmem:[#allocation146_spill] sm:$0xff]  ;;  %v2312_v0 = vpop.f32.mrf.mxu3 }
 0x2cb   : > { %v1707_v59 = vadd.f32 %v11933_v63, %v1693_v2  ;;  %v11944_v63 = vld [vmem:[#allocation96_spill] sm:$0xff] }
 0x2cc   : > { %2688 = vmatpush.bf16.msra.mxu3 %v11927_v51  ;;  %2647 = vmatpush.bf16.msra.mxu0 %v11929_v23  ;;  %v11934_v51 = vld [vmem:[#allocation28_spill] sm:$0xff]  ;;  %v2299_v23 = vadd.f32 %v2298_v12, %v2285_v38  ;;  %v2872_v6 = vmul.f32 %v8540_v7, %v11944_v63  ;;  %v4090_v56 = vmul.f32 %v8543_v37, %v11944_v63 }
 0x2cd   : > { %2661 = vmatpush.bf16.msra.mxu1 %v11930_v17  ;;  %v1721_v50 = vadd.f32 %v11935_v21, %v1707_v59  ;;  %v2272_v17 = vpop.f32.mrf.mxu0  ;;  %v4678_v38 = vmul.f32 %v8546_v25, %v11944_v63  ;;  %v11946_v21 = vld [vmem:[#allocation148_spill] sm:$0xff] }
 0x2ce   : > { %2675 = vmatpush.bf16.msra.mxu2 %v11931_v24  ;;  %v2273_v30 = vadd.f32 %v2272_v17, %v2259_v9  ;;  %v11941_v24 = vld [vmem:[#allocation33_spill] sm:$0xff]  ;;  %v8692_v59 = vadd.f32 %v2312_v0, %v2299_v23  ;;  %v11947_v12 = vld [vmem:[#allocation36_spill] sm:$0xff] }
 0x2cf   : > { %v1735_v2 = vadd.f32 %v11940_v26, %v1721_v50  ;;  %v11949_v26 = vld [vmem:[#allocation37_spill] sm:$0xff] }
 0x2d0   : > { %2689 = vmatpush.bf16.msra.mxu3 %v11932_v29  ;;  %2648 = vmatpush.bf16.msra.mxu0 %v11934_v51  ;;  %v11942_v29 = vld [vmem:[#allocation34_spill] sm:$0xff]  ;;  %11943 = vst [vmem:[#allocation158_spill] sm:$0xff] %v8692_v59  ;;  %v11945_v51 = vld [vmem:[#allocation35_spill] sm:$0xff]  ;;  %v4096_v9 = vmul.f32 %v8552_v8, %v8692_v59 }
 0x2d1   : > { %2662 = vmatpush.bf16.msra.mxu1 %v11936_v61  ;;  %v2286_v61 = vpop.f32.mrf.mxu1  ;;  %v1749_v50 = vadd.f32 %v11946_v21, %v1735_v2  ;;  %v11950_v2 = vld [vmem:[#allocation38_spill] sm:$0xff] }
 0x2d2   : > { %2676 = vmatpush.bf16.msra.mxu2 %v11937_v22  ;;  %v2878_v22 = vmul.f32 %v8550_v10, %v8692_v59  ;;  %v2287_v23 = vadd.f32 %v2286_v61, %v2273_v30  ;;  %v8711_v0 = vadd.f32 %v4096_v9, %v4090_v56  ;;  %v2314_v63 = vpop.f32.mrf.mxu3  ;;  %v11955_v30 = vld [vmem:[#allocation160_spill] sm:$0xff] }
 0x2d3   : > { %v2613_v61 = vunpack.c.l.b16 %v11955_v30  ;;  %v11958_v9 = vld [vmem:[#allocation164_spill] sm:$0xff] }
 0x2d4   : > { %2690 = vmatpush.bf16.msra.mxu3 %v11938_v46  ;;  %2649 = vmatpush.bf16.msra.mxu0 %v11939_v16  ;;  %v4684_v46 = vmul.f32 %v8554_v55, %v8692_v59  ;;  %v8709_v17 = vadd.f32 %v2878_v22, %v2872_v6  ;;  %v11956_v6 = vld [vmem:[#allocation161_spill] sm:$0xff] }
 0x2d5   : > { %2663 = vmatpush.bf16.msra.mxu1 %v11941_v24  ;;  %v11951_v24 = vld [vmem:[#allocation39_spill] sm:$0xff]  ;;  %v2621_v56 = vunpack.c.l.b16 %v11956_v6 }
 0x2d6   : > { %2677 = vmatpush.bf16.msra.mxu2 %v11942_v29  ;;  %v8713_v16 = vadd.f32 %v4684_v46, %v4678_v38  ;;  %v2300_v29 = vpop.f32.mrf.mxu2  ;;  %v11957_v38 = vld [vmem:[#allocation162_spill] sm:$0xff]  ;;  %v2623_v46 = vunpack.c.l.b16 %v11958_v9 }
 0x2d7   : > { %v2301_v59 = vadd.f32 %v2300_v29, %v2287_v23  ;;  %v2615_v22 = vunpack.c.l.b16 %v11957_v38  ;;  %v2622_v23 = vunpack.c.h.b16 %v11956_v6  ;;  %v11961_v29 = vld [vmem:[#allocation43_spill] sm:$0xff]  ;;  %v8744_v6 = vpack.c.b16 %v2621_v56, %v2613_v61  ;;  %v11967_v61 = vld [vmem:[#allocation49_spill] sm:$0xff]  ;;  %v11968_v56 = vld [vmem:[#allocation50_spill] sm:$0xff] }
 0x2d8   : > { %2691 = vmatpush.bf16.msra.mxu3 %v11945_v51  ;;  %2650 = vmatpush.bf16.msra.mxu0 %v11947_v12  ;;  %11948 = vst [vmem:[#allocation159_spill] sm:$0xff] %v8713_v16  ;;  %v11952_v51 = vld [vmem:[#allocation149_spill] sm:$0xff]  ;;  %v11954_v12 = vld [vmem:[#allocation40_spill] sm:$0xff] }
 0x2d9   : > { %2664 = vmatpush.bf16.msra.mxu1 %v11949_v26  ;;  %v8719_v21 = vadd.f32 %v11952_v51, %v1749_v50  ;;  %v11959_v26 = vld [vmem:[#allocation41_spill] sm:$0xff]  ;;  %v2614_v50 = vunpack.c.h.b16 %v11955_v30  ;;  %v2616_v51 = vunpack.c.h.b16 %v11957_v38  ;;  %v11962_v30 = vld [vmem:[#allocation44_spill] sm:$0xff] }
 0x2da   : > { %2678 = vmatpush.bf16.msra.mxu2 %v11950_v2  ;;  %v11960_v2 = vld [vmem:[#allocation42_spill] sm:$0xff] }
 0x2db   : > { %11953 = vst [vmem:[#allocation83_spill] sm:$0xff] %v8719_v21  ;;  %v4092_v16 = vmul.f32 %v8543_v37, %v8719_v21  ;;  %v11963_v37 = vld [vmem:[#allocation45_spill] sm:$0xff] }
 0x2dc   : > { %2692 = vmatpush.bf16.msra.mxu3 %v11951_v24  ;;  %2651 = vmatpush.bf16.msra.mxu0 %v11954_v12  ;;  %v8728_v24 = vadd.f32 %v2314_v63, %v2301_v59  ;;  %v2624_v12 = vunpack.c.h.b16 %v11958_v9 }
 0x2dd   : > { %2665 = vmatpush.bf16.msra.mxu1 %v11959_v26  ;;  %v4680_v26 = vmul.f32 %v8546_v25, %v8719_v21  ;;  %v8754_v25 = vpack.c.b16 %v2622_v23, %v2614_v50  ;;  %v11966_v21 = vld [vmem:[#allocation48_spill] sm:$0xff]  ;;  %v11973_v50 = vld [vmem:[#allocation58_spill] sm:$0xff] }
 0x2de   : > { %2679 = vmatpush.bf16.msra.mxu2 %v11960_v2  ;;  %v4098_v59 = vmul.f32 %v8552_v8, %v8728_v24  ;;  %v4686_v63 = vmul.f32 %v8554_v55, %v8728_v24  ;;  %v8746_v2 = vpack.c.b16 %v2623_v46, %v2615_v22  ;;  %v11965_v8 = vld [vmem:[#allocation47_spill] sm:$0xff]  ;;  %v8758_v55 = vpack.c.b16 %v2624_v12, %v2616_v51  ;;  %v11970_v22 = vld [vmem:[#allocation52_spill] sm:$0xff] }
 0x2df   : > { %v11972_v46 = vld [vmem:[#allocation55_spill] sm:$0xff]  ;;  %v11974_v23 = vld [vmem:[#allocation60_spill] sm:$0xff] }
 0x2e0   : > { %2693 = vmatpush.bf16.msra.mxu3 %v11961_v29  ;;  %2652 = vmatpush.bf16.msra.mxu0 %v11962_v30  ;;  %v8748_v38 = vadd.f32 %v4098_v59, %v4092_v16  ;;  %v8750_v9 = vadd.f32 %v4686_v63, %v4680_v26  ;;  %v11964_v29 = vld [vmem:[#allocation46_spill] sm:$0xff]  ;;  %v11969_v16 = vld [vmem:[#allocation51_spill] sm:$0xff]  ;;  %v2390_v51 = vpop.f32.mrf.mxu0  ;;  %v11975_v26 = vld [vmem:[#allocation61_spill] sm:$0xff] }
 0x2e1   : > { %2666 = vmatpush.bf16.msra.mxu1 %v11963_v37  ;;  %v11976_v59 = vld [vmem:[#allocation62_spill] sm:$0xff]  ;;  %v11977_v30 = vld [vmem:[#allocation63_spill] sm:$0xff]  ;;  %v7039_v37 = vmov 1  }
 0x2e2   : > { %2680 = vmatpush.bf16.msra.mxu2 %v11964_v29  ;;  %6797 = vset.pattern.permute.xlu0 %v7039_v37  ;;  %v6826_v29 = vld [vmem:[%s7751_s30] sm:$0xff]  ;;  %v11987_v37 = vld [vmem:[#allocation73_spill] sm:$0xff] }
 0x2e3   : > { %2653 = vmatmul.bf16.vlgmr.msra.gmra.mxu0 %v8744_v6  ;;  %v2404_v12 = vpop.f32.mrf.mxu1  ;;  %2897 = vperm.xlu0 %6797, %v6826_v29   ;;  %v11988_v29 = vld [vmem:[#allocation75_spill] sm:$0xff] }
 0x2e4   : > { %2694 = vmatpush.bf16.msra.mxu3 %v11965_v8  ;;  %2701 = vmatpush.bf16.msrb.mxu0 %v11966_v21  ;;  %v11971_v21 = vld [vmem:[#allocation53_spill] sm:$0xff]  ;;  %v2405_v63 = vadd.f32 %v2404_v12, %v2390_v51  ;;  %v11978_v8 = vld [vmem:[#allocation64_spill] sm:$0xff]  ;;  %v11984_v51 = vld [vmem:[#allocation70_spill] sm:$0xff] }
 0x2e5   : > { %2715 = vmatpush.bf16.msrb.mxu1 %v11967_v61  ;;  %2681 = vmatmul.bf16.vlgmr.msra.gmra.mxu2 %v8746_v2  ;;  %v11979_v61 = vld [vmem:[#allocation65_spill] sm:$0xff] }
 0x2e6   : > { %2729 = vmatpush.bf16.msrb.mxu2 %v11968_v56  ;;  %2667 = vmatmul.bf16.vlgmr.msra.gmra.mxu1 %v8754_v25  ;;  %v11980_v56 = vld [vmem:[#allocation66_spill] sm:$0xff] }
 0x2e7   : > { %2695 = vmatmul.bf16.vlgmr.msra.gmra.mxu3 %v8758_v55 }
 0x2e8   : > { %2743 = vmatpush.bf16.msrb.mxu3 %v11969_v16  ;;  %2702 = vmatpush.bf16.msrb.mxu0 %v11970_v22  ;;  %v11981_v16 = vld [vmem:[#allocation67_spill] sm:$0xff]  ;;  %v2418_v22 = vpop.f32.mrf.mxu2 }
 0x2e9   : > { %2716 = vmatpush.bf16.msrb.mxu1 %v11971_v21  ;;  %v2419_v21 = vadd.f32 %v2418_v22, %v2405_v63  ;;  %v11989_v63 = vld [vmem:[#allocation56_spill] sm:$0xff] }
 0x2ea   : > { %2730 = vmatpush.bf16.msrb.mxu2 %v11972_v46  ;;  %v11982_v46 = vld [vmem:[#allocation68_spill] sm:$0xff] }
 0x2ec   : > { %2744 = vmatpush.bf16.msrb.mxu3 %v11973_v50  ;;  %2703 = vmatpush.bf16.msrb.mxu0 %v11974_v23  ;;  %v2432_v50 = vpop.f32.mrf.mxu3  ;;  %v11983_v23 = vld [vmem:[#allocation69_spill] sm:$0xff] }
 0x2ed   : > { %2717 = vmatpush.bf16.msrb.mxu1 %v11975_v26  ;;  %v2433_v12 = vadd.f32 %v2432_v50, %v2419_v21  ;;  %v11985_v26 = vld [vmem:[#allocation71_spill] sm:$0xff]  ;;  %v2618_v50 = vunpack.c.h.b16 %v11989_v63 }
 0x2ee   : > { %2731 = vmatpush.bf16.msrb.mxu2 %v11976_v59  ;;  %v6827_v59 = vld [vmem:[%s7751_s30 + $0x8] sm:$0xff]  ;;  %v11992_v21 = vld [vmem:[#allocation167_spill] sm:$0xff] }
 0x2ef   : > { %2902 = vperm.xlu0 %6797, %v6827_v59  }
 0x2f0   : > { %2745 = vmatpush.bf16.msrb.mxu3 %v11977_v30  ;;  %2704 = vmatpush.bf16.msrb.mxu0 %v11978_v8  ;;  %v11986_v30 = vld [vmem:[#allocation72_spill] sm:$0xff]  ;;  %v2617_v8 = vunpack.c.l.b16 %v11989_v63 }
 0x2f1   : > { %2718 = vmatpush.bf16.msrb.mxu1 %v11979_v61  ;;  %v11990_v61 = vld [vmem:[#allocation57_spill] sm:$0xff]  ;;  %v12008_v63 = vld [vmem:[#allocation120_spill] sm:$0xff] }
 0x2f2   : > { %2732 = vmatpush.bf16.msrb.mxu2 %v11980_v56  ;;  %v2625_v56 = vunpack.c.l.b16 %v11990_v61 }
 0x2f4   : > { %2746 = vmatpush.bf16.msrb.mxu3 %v11981_v16  ;;  %2705 = vmatpush.bf16.msrb.mxu0 %v11982_v46  ;;  %v11991_v16 = vld [vmem:[#allocation59_spill] sm:$0xff]  ;;  %v2627_v46 = vunpack.c.l.b16 %v11992_v21 }
 0x2f5   : > { %2719 = vmatpush.bf16.msrb.mxu1 %v11983_v23  ;;  %v2619_v22 = vunpack.c.l.b16 %v11991_v16  ;;  %v2626_v23 = vunpack.c.h.b16 %v11990_v61  ;;  %v12009_v61 = vld [vmem:[#allocation121_spill] sm:$0xff] }
 0x2f6   : > { %2733 = vmatpush.bf16.msrb.mxu2 %v11984_v51  ;;  %v4701_v51 = vld [vmem:[%s7751_s30] sm:$0xff] }
 0x2f7   : > { %v8811_v59 = vpack.c.b16 %v2626_v23, %v2618_v50  ;;  %v12016_v50 = vld [vmem:[#allocation128_spill] sm:$0xff] }
 0x2f8   : > { %2747 = vmatpush.bf16.msrb.mxu3 %v11985_v26  ;;  %2706 = vmatpush.bf16.msrb.mxu0 %v11986_v30  ;;  %v7040_v26 = vmov 3   ;;  %v8813_v30 = vpop.f32.mrf.mxu1 }
 0x2f9   : > { %2720 = vmatpush.bf16.msrb.mxu1 %v11987_v37  ;;  %6801 = vset.pattern.permute.xlu1 %v7040_v26 }
 0x2fa   : > { %2734 = vmatpush.bf16.msrb.mxu2 %v11988_v29  ;;  %6800 = vset.pattern.permute.xlu0 %v7040_v26 }
 0x2fb   : > { %4705 = vperm.xlu0 %6800, %v4701_v51  }
 0x2fc   : > { %2748 = vmatpush.bf16.msrb.mxu3 %v11832_v31  ;;  %2707 = vmatpush.bf16.msrb.mxu0 %v11834_v53  ;;  %v2620_v53 = vunpack.c.h.b16 %v11991_v16  ;;  %v2628_v31 = vunpack.c.h.b16 %v11992_v21  ;;  %v12012_v16 = vld [vmem:[#allocation124_spill] sm:$0xff]  ;;  %v12014_v21 = vld [vmem:[#allocation126_spill] sm:$0xff] }
 0x2fd   : > { %2721 = vmatpush.bf16.msrb.mxu1 %v11835_v20  ;;  %v8802_v20 = vpop.f32.mrf.mxu0 }
 0x2fe   : > { %2735 = vmatpush.bf16.msrb.mxu2 %v11836_v57  ;;  %v8805_v57 = vpack.c.b16 %v2625_v56, %v2617_v8  ;;  %v8817_v37 = vpack.c.b16 %v2628_v31, %v2620_v53  ;;  %v12010_v56 = vld [vmem:[#allocation122_spill] sm:$0xff]  ;;  %v12017_v31 = vld [vmem:[#allocation131_spill] sm:$0xff] }
 0x300   : > { %2749 = vmatpush.bf16.msrb.mxu3 %v7443_v39  ;;  %2708 = vmatpush.bf16.msrb.mxu0 %v7447_v11  ;;  %v8809_v39 = vpack.c.b16 %v2627_v46, %v2619_v22  ;;  %v8833_v11 = vpop.f32.mrf.mxu3  ;;  %v12013_v22 = vld [vmem:[#allocation125_spill] sm:$0xff]  ;;  %v12015_v46 = vld [vmem:[#allocation127_spill] sm:$0xff] }
 0x301   : > { %2722 = vmatpush.bf16.msrb.mxu1 %v7449_v19 }
 0x302   : > { %2736 = vmatpush.bf16.msrb.mxu2 %v7452_v18  ;;  %v8827_v18 = vpop.f32.mrf.mxu2 }
 0x303   : > { %2709 = vmatmul.bf16.vlgmr.msrb.gmra.mxu0 %v8805_v57 }
 0x304   : > { %2750 = vmatpush.bf16.msrb.mxu3 %v7457_v42  ;;  %2757 = vmatpush.bf16.msra.mxu0 %v7459_v48  ;;  %v4702_v42 = vld [vmem:[%s7751_s30 + $0x8] sm:$0xff]  ;;  %s5277_s30 = sshll.u32 %s9787_s24, 4  ;;  %s5278_s30 = int_to_ptr.vmem [resolvable:$true] %s5277_s30 }
 0x305   : > { %2771 = vmatpush.bf16.msra.mxu1 %v7462_v27  ;;  %2737 = vmatmul.bf16.vlgmr.msrb.gmra.mxu2 %v8809_v39  ;;  %v2446_v19 = vpop.f32.mrf.mxu0  ;;  %v2460_v27 = vpop.f32.mrf.mxu1 }
 0x306   : > { %2785 = vmatpush.bf16.msra.mxu2 %v11610_v3  ;;  %2723 = vmatmul.bf16.vlgmr.msrb.gmra.mxu1 %v8811_v59  ;;  %v2447_v48 = vadd.f32 %v2446_v19, %v2433_v12  ;;  %v12007_v12 = vld [vmem:[#allocation119_spill] sm:$0xff]  ;;  %v12019_v19 = vld [vmem:[#allocation133_spill] sm:$0xff] }
 0x307   : > { %2751 = vmatmul.bf16.vlgmr.msrb.gmra.mxu3 %v8817_v37  ;;  %4710 = vperm.xlu1 %6801, %v4702_v42  }
 0x308   : > { %2799 = vmatpush.bf16.msra.mxu3 %v11611_v54  ;;  %2758 = vmatpush.bf16.msra.mxu0 %v11612_v58  ;;  %v2461_v3 = vadd.f32 %v2460_v27, %v2447_v48  ;;  %v12020_v48 = vld [vmem:[#allocation134_spill] sm:$0xff]  ;;  %v12021_v27 = vld [vmem:[#allocation135_spill] sm:$0xff] }
 0x309   : > { %2772 = vmatpush.bf16.msra.mxu1 %v11613_v49 }
 0x30a   : > { %2786 = vmatpush.bf16.msra.mxu2 %v11614_v13  ;;  %v2474_v54 = vpop.f32.mrf.mxu2  ;;  %v2488_v49 = vpop.f32.mrf.mxu3  ;;  %v11993_v13 = vld [vmem:[#allocation99_spill] sm:$0xff] }
 0x30b   : > { %v2475_v58 = vadd.f32 %v2474_v54, %v2461_v3  ;;  %v12022_v3 = vld [vmem:[#allocation136_spill] sm:$0xff]  ;;  %v12024_v54 = vld [vmem:[#allocation139_spill] sm:$0xff] }
 0x30c   : > { %2800 = vmatpush.bf16.msra.mxu3 %v11616_v36  ;;  %2759 = vmatpush.bf16.msra.mxu0 %v11618_v44  ;;  %v7041_v44 = vmov 2  }
 0x30d   : > { %2773 = vmatpush.bf16.msra.mxu1 %v11619_v43  ;;  %v8846_v36 = vadd.f32 %v2488_v49, %v2475_v58  ;;  %6799 = vset.pattern.permute.xlu2 %v7041_v44  ;;  %v11997_v43 = vld [vmem:[#allocation109_spill] sm:$0xff]  ;;  %v12027_v49 = vld [vmem:[#allocation142_spill] sm:$0xff] }
 0x30e   : > { %2787 = vmatpush.bf16.msra.mxu2 %v11620_v60  ;;  %4117 = vperm.xlu2 %6799, %v4701_v51   ;;  %v11998_v60 = vld [vmem:[#allocation110_spill] sm:$0xff]  ;;  %v12026_v58 = vld [vmem:[#allocation141_spill] sm:$0xff] }
 0x310   : > { %2801 = vmatpush.bf16.msra.mxu3 %v11510_v1  ;;  %2760 = vmatpush.bf16.msra.mxu0 %v11511_v14  ;;  %v11994_v1 = vld [vmem:[#allocation100_spill] sm:$0xff]  ;;  %v11995_v14 = vld [vmem:[#allocation101_spill] sm:$0xff] }
 0x311   : > { %2774 = vmatpush.bf16.msra.mxu1 %v11621_v34  ;;  %v11999_v34 = vld [vmem:[#allocation111_spill] sm:$0xff] }
 0x312   : > { %2788 = vmatpush.bf16.msra.mxu2 %v11622_v45  ;;  %v8860_v45 = vpop.f32.mrf.mxu0  ;;  %v2476_v29 = vpop.f32.mrf.mxu2 }
 0x313   : > { %v8877_v8 = vpop.f32.mrf.mxu3 }
 0x314   : > { %2802 = vmatpush.bf16.msra.mxu3 %v11623_v62  ;;  %2761 = vmatpush.bf16.msra.mxu0 %v11515_v47  ;;  %v11996_v47 = vld [vmem:[#allocation108_spill] sm:$0xff]  ;;  %v8862_v62 = vpop.f32.mrf.mxu1 }
 0x315   : > { %2775 = vmatpush.bf16.msra.mxu1 %v11844_v5  ;;  %v12000_v5 = vld [vmem:[#allocation112_spill] sm:$0xff] }
 0x316   : > { %2789 = vmatpush.bf16.msra.mxu2 %v11993_v13  ;;  %4122 = vperm.xlu2 %6799, %v4702_v42   ;;  %v12018_v42 = vld [vmem:[#allocation132_spill] sm:$0xff]  ;;  %v12028_v13 = vld [vmem:[#allocation143_spill] sm:$0xff] }
 0x318   : > { %2803 = vmatpush.bf16.msra.mxu3 %v11994_v1  ;;  %2762 = vmatpush.bf16.msra.mxu0 %v11995_v14  ;;  %v12029_v1 = vld [vmem:[#allocation144_spill] sm:$0xff] }
 0x319   : > { %2776 = vmatpush.bf16.msra.mxu1 %v11852_v52  ;;  %v12001_v52 = vld [vmem:[#allocation113_spill] sm:$0xff] }
 0x31a   : > { %2790 = vmatpush.bf16.msra.mxu2 %v11853_v40  ;;  %v12003_v40 = vld [vmem:[#allocation115_spill] sm:$0xff] }
 0x31c   : > { %2804 = vmatpush.bf16.msra.mxu3 %v11856_v32  ;;  %2763 = vmatpush.bf16.msra.mxu0 %v11859_v15  ;;  %v12002_v15 = vld [vmem:[#allocation114_spill] sm:$0xff]  ;;  %v12004_v32 = vld [vmem:[#allocation116_spill] sm:$0xff] }
 0x31d   : > { %2777 = vmatpush.bf16.msra.mxu1 %v11860_v35  ;;  %v12005_v35 = vld [vmem:[#allocation117_spill] sm:$0xff] }
 0x31e   : > { %2791 = vmatpush.bf16.msra.mxu2 %v11861_v4  ;;  %v12006_v4 = vld [vmem:[#allocation118_spill] sm:$0xff] }
 0x320   : > { %2805 = vmatpush.bf16.msra.mxu3 %v11996_v47  ;;  %2764 = vmatpush.bf16.msra.mxu0 %v11997_v43 }
 0x321   : > { %2778 = vmatpush.bf16.msra.mxu1 %v11998_v60 }
 0x322   : > { %2792 = vmatpush.bf16.msra.mxu2 %v11999_v34 }
 0x323   : > { %2765 = vmatmul.bf16.vlgmr.msra.gmra.mxu0 %v8744_v6  ;;  %v2502_v6 = vpop.f32.mrf.mxu0 }
 0x324   : > { %2806 = vmatpush.bf16.msra.mxu3 %v12000_v5  ;;  %2813 = vmatpush.bf16.msrb.mxu0 %v12001_v52 }
 0x325   : > { %2827 = vmatpush.bf16.msrb.mxu1 %v12002_v15  ;;  %2793 = vmatmul.bf16.vlgmr.msra.gmra.mxu2 %v8746_v2  ;;  %v2516_v2 = vpop.f32.mrf.mxu1 }
 0x326   : > { %2841 = vmatpush.bf16.msrb.mxu2 %v12003_v40  ;;  %2779 = vmatmul.bf16.vlgmr.msra.gmra.mxu1 %v8754_v25  ;;  %v12011_v25 = vld [vmem:[#allocation123_spill] sm:$0xff] }
 0x327   : > { %2807 = vmatmul.bf16.vlgmr.msra.gmra.mxu3 %v8758_v55  ;;  %v2517_v55 = vadd.f32 %v2516_v2, %v2502_v6 }
 0x328   : > { %2855 = vmatpush.bf16.msrb.mxu3 %v12004_v32  ;;  %2814 = vmatpush.bf16.msrb.mxu0 %v12005_v35  ;;  %v2530_v23 = vpop.f32.mrf.mxu2 }
 0x329   : > { %2828 = vmatpush.bf16.msrb.mxu1 %v12006_v4  ;;  %v2531_v51 = vadd.f32 %v2530_v23, %v2517_v55 }
 0x32a   : > { %2842 = vmatpush.bf16.msrb.mxu2 %v12007_v12  ;;  %v2544_v53 = vpop.f32.mrf.mxu3 }
 0x32b   : > { %v8890_v26 = vadd.f32 %v2544_v53, %v2531_v51 }
 0x32c   : > { %2856 = vmatpush.bf16.msrb.mxu3 %v12008_v63  ;;  %2815 = vmatpush.bf16.msrb.mxu0 %v12009_v61 }
 0x32d   : > { %2829 = vmatpush.bf16.msrb.mxu1 %v12010_v56  ;;  %v8911_v14 = vpop.f32.mrf.mxu1 }
 0x32e   : > { %2843 = vmatpush.bf16.msrb.mxu2 %v12011_v25 }
 0x330   : > { %2857 = vmatpush.bf16.msrb.mxu3 %v12012_v16  ;;  %2816 = vmatpush.bf16.msrb.mxu0 %v12013_v22  ;;  %v8913_v44 = vpop.f32.mrf.mxu2 }
 0x331   : > { %2830 = vmatpush.bf16.msrb.mxu1 %v12014_v21 }
 0x332   : > { %2844 = vmatpush.bf16.msrb.mxu2 %v12015_v46  ;;  %v8915_v47 = vpop.f32.mrf.mxu3 }
 0x334   : > { %2858 = vmatpush.bf16.msrb.mxu3 %v12016_v50  ;;  %2817 = vmatpush.bf16.msrb.mxu0 %v11893_v33  ;;  %v12023_v33 = vld [vmem:[#allocation138_spill] sm:$0xff]  ;;  %v8945_v50 = vpop.permute.xlu1 %2914 }
 0x335   : > { %2831 = vmatpush.bf16.msrb.mxu1 %v11895_v28  ;;  %v12025_v28 = vld [vmem:[#allocation140_spill] sm:$0xff]  ;;  %12030 = vst [vmem:[#allocation84_spill] sm:$0xff] %v8945_v50 }
 0x336   : > { %2845 = vmatpush.bf16.msrb.mxu2 %v12017_v31 }
 0x338   : > { %2859 = vmatpush.bf16.msrb.mxu3 %v12018_v42  ;;  %2818 = vmatpush.bf16.msrb.mxu0 %v12019_v19 }
 0x339   : > { %2832 = vmatpush.bf16.msrb.mxu1 %v12020_v48  ;;  %v8947_v48 = vstv %s5924_s11 }
 0x33a   : > { %2846 = vmatpush.bf16.msrb.mxu2 %v12021_v27  ;;  %v8949_v27 = vstv %s6439_s0 }
 0x33c   : > { %2860 = vmatpush.bf16.msrb.mxu3 %v12022_v3  ;;  %2819 = vmatpush.bf16.msrb.mxu0 %v11905_v41  ;;  %v8909_v41 = vpop.f32.mrf.mxu0  ;;  %v8951_v3 = vstv %s6442_s16 }
 0x33d   : > { %2833 = vmatpush.bf16.msrb.mxu1 %v12023_v33  ;;  %v6151_v33 = vld [vmem:[#allocation7 + $0x1c0] sm:$0xf] }
 0x33e   : > { %2847 = vmatpush.bf16.msrb.mxu2 %v12024_v54  ;;  %v6636_v54 = vld [vmem:[#allocation7 + $0x1dc] sm:$0xf0] }
 0x340   : > { %2861 = vmatpush.bf16.msrb.mxu3 %v12025_v28  ;;  %2820 = vmatpush.bf16.msrb.mxu0 %v12026_v58  ;;  %v6407_v28 = vld [vmem:[#allocation7 + $0x3c0] sm:$0xf] }
 0x341   : > { %2834 = vmatpush.bf16.msrb.mxu1 %v12027_v49 }
 0x342   : > { %2848 = vmatpush.bf16.msrb.mxu2 %v12028_v13  ;;  %v8955_v13 = vor.u32 %v6636_v54, %v6151_v33 }
 0x343   : > { %2821 = vmatmul.bf16.vlgmr.msrb.gmra.mxu0 %v8805_v57  ;;  %v8919_v60 = vpop.f32.mrf.mxu1 }
 0x344   : > { %2862 = vmatpush.bf16.msrb.mxu3 %v12029_v1  ;;  %2835 = vmatmul.bf16.vlgmr.msrb.gmra.mxu1 %v8811_v59  ;;  %v8917_v43 = vpop.f32.mrf.mxu0  ;;  %12031 = vst [vmem:[#allocation86_spill] sm:$0xff] %v8955_v13  ;;  %v6700_v1 = vld [vmem:[#allocation7 + $0x3dc] sm:$0xf0] }
 0x345   : > { %2849 = vmatmul.bf16.vlgmr.msrb.gmra.mxu2 %v8809_v39  ;;  %3581 = vmatpush.bf16.msra.mxu0 %v8955_v13 }
 0x347   : > { %2863 = vmatmul.bf16.vlgmr.msrb.gmra.mxu3 %v8817_v37  ;;  %v2407_v37 = vadd.f32 %v8813_v30, %v8802_v20 }
 0x348   : > { %v8921_v34 = vpop.f32.mrf.mxu2 }
 0x349   : > { %v2421_v5 = vadd.f32 %v8827_v18, %v2407_v37  ;;  %v6632_v37 = vld [vmem:[#allocation7 + $0x1c4] sm:$0xf] }
 0x34a   : > { %v8923_v57 = vpop.f32.mrf.mxu3 }
 0x34b   : > { %v8927_v39 = vpop.f32.mrf.mxu1  ;;  %v2435_v35 = vadd.f32 %v8833_v11, %v2421_v5  ;;  %v6153_v5 = vld [vmem:[#allocation7 + $0x1e0] sm:$0xf0] }
 0x34c   : > { %v8925_v59 = vpop.f32.mrf.mxu0 }
 0x34d   : > { %v2449_v4 = vadd.f32 %v8860_v45, %v2435_v35  ;;  %v8959_v35 = vor.u32 %v6700_v1, %v6407_v28  ;;  %v6377_v1 = vld [vmem:[#allocation7 + $0x3a0] sm:$0xf0] }
 0x34f   : > { %v2463_v63 = vadd.f32 %v8862_v62, %v2449_v4  ;;  %12032 = vst [vmem:[#allocation87_spill] sm:$0xff] %v8959_v35  ;;  %v8961_v4 = vor.u32 %v6632_v37, %v6153_v5  ;;  %3595 = vmatpush.bf16.msra.mxu1 %v8959_v35  ;;  %v6087_v37 = vld [vmem:[#allocation7 + $0x140] sm:$0xf] }
 0x350   : > { %v8932_v52 = vpop.f32.mrf.mxu2 }
 0x351   : > { %v2477_v2 = vadd.f32 %v2476_v29, %v2463_v63  ;;  %12033 = vst [vmem:[#allocation98_spill] sm:$0xff] %v8961_v4  ;;  %v6409_v63 = vld [vmem:[#allocation7 + $0x3e0] sm:$0xf0]  ;;  %3609 = vmatpush.bf16.msra.mxu2 %v8961_v4 }
 0x352   : > { %v8934_v15 = vpop.f32.mrf.mxu3 }
 0x353   : > { %v2491_v25 = vadd.f32 %v8877_v8, %v2477_v2 }
 0x355   : > { %v8940_v18 = vpop.permute.xlu0 %2897 }
 0x360   : > { %v2654_v40 = vpop.f32.mrf.mxu0 }
 0x361   : > { %v2655_v61 = vadd.f32 %v2654_v40, %v8846_v36  ;;  %v8943_v29 = vpop.permute.xlu0 %2902 }
 0x363   : > { %v2668_v32 = vpop.f32.mrf.mxu1 }
 0x364   : > { %v2669_v56 = vadd.f32 %v2668_v32, %v2655_v61 }
 0x368   : > { %v2682_v12 = vpop.f32.mrf.mxu2  ;;  %v2656_v20 = vpop.f32.mrf.mxu0 }
 0x369   : > { %v2683_v55 = vadd.f32 %v2682_v12, %v2669_v56  ;;  %v2657_v16 = vadd.f32 %v2656_v20, %v2491_v25  ;;  %v8957_v32 = vpop.permute.xlu2 %4117  ;;  %v6696_v12 = vld [vmem:[#allocation7 + $0x3c4] sm:$0xf]  ;;  %v8976_v56 = vpop.permute.xlu1 %2918 }
 0x36a   : > { %v2696_v6 = vpop.f32.mrf.mxu3  ;;  %12035 = vst [vmem:[#allocation102_spill] sm:$0xff] %v8976_v56  ;;  %v12036_v25 = vld [vmem:[#allocation76_spill] sm:$0xff] }
 0x36b   : > { %v2670_v30 = vpop.f32.mrf.mxu1  ;;  %v2697_v11 = vadd.f32 %v2696_v6, %v2683_v55 }
 0x36c   : > { %v2671_v36 = vadd.f32 %v2670_v30, %v2657_v16  ;;  %v8974_v30 = vor.u32 %v6696_v12, %v6409_v63  ;;  %v6620_v63 = vld [vmem:[#allocation7 + $0x15c] sm:$0xf0] }
 0x36d   : > { %v8970_v20 = vpop.permute.xlu0 %4705 }
 0x36e   : > { %12034 = vst [vmem:[#allocation88_spill] sm:$0xff] %v8974_v30  ;;  %3623 = vmatpush.bf16.msra.mxu3 %v8974_v30 }
 0x370   : > { %v2684_v22 = vpop.f32.mrf.mxu2 }
 0x371   : > { %v2685_v23 = vadd.f32 %v2684_v22, %v2671_v36  ;;  %v12037_v22 = vld [vmem:[#allocation78_spill] sm:$0xff]  ;;  %v6628_v36 = vld [vmem:[#allocation7 + $0x19c] sm:$0xf0] }
 0x372   : > { %v2698_v45 = vpop.f32.mrf.mxu3 }
 0x373   : > { %v2699_v8 = vadd.f32 %v2698_v45, %v2685_v23  ;;  %v12038_v45 = vld [vmem:[#allocation77_spill] sm:$0xff] }
 0x380   : > { %v2710_v21 = vpop.f32.mrf.mxu0 }
 0x381   : > { %v2711_v46 = vadd.f32 %v2710_v21, %v2697_v11 }
 0x383   : > { %v2724_v62 = vpop.f32.mrf.mxu1 }
 0x384   : > { %v2725_v51 = vadd.f32 %v2724_v62, %v2711_v46  ;;  %v6119_v62 = vld [vmem:[#allocation7 + $0x180] sm:$0xf] }
 0x385   : > { %v6375_v46 = vld [vmem:[#allocation7 + $0x380] sm:$0xf] }
 0x388   : > { %v2738_v53 = vpop.f32.mrf.mxu2  ;;  %v2712_v42 = vpop.f32.mrf.mxu0 }
 0x389   : > { %v2739_v31 = vadd.f32 %v2738_v53, %v2725_v51  ;;  %v2713_v58 = vadd.f32 %v2712_v42, %v2699_v8  ;;  %v8982_v51 = vor.u32 %v6628_v36, %v6119_v62  ;;  %v6692_v53 = vld [vmem:[#allocation7 + $0x39c] sm:$0xf0]  ;;  %v6624_v8 = vld [vmem:[#allocation7 + $0x184] sm:$0xf] }
 0x38a   : > { %v2752_v19 = vpop.f32.mrf.mxu3  ;;  %v8988_v5 = vor.u32 %v6692_v53, %v6375_v46  ;;  %v6055_v62 = vld [vmem:[#allocation7 + $0x100] sm:$0xf] }
 0x38b   : > { %v8953_v49 = vadd.f32 %v2752_v19, %v2739_v31  ;;  %v2726_v40 = vpop.f32.mrf.mxu1  ;;  %12039 = vst [vmem:[#allocation103_spill] sm:$0xff] %v8982_v51  ;;  %v6121_v31 = vld [vmem:[#allocation7 + $0x1a0] sm:$0xf0]  ;;  %3582 = vmatpush.bf16.msra.mxu0 %v8982_v51  ;;  %v6612_v36 = vld [vmem:[#allocation7 + $0x11c] sm:$0xf0] }
 0x38c   : > { %v2727_v16 = vadd.f32 %v2726_v40, %v2713_v58  ;;  %v6688_v58 = vld [vmem:[#allocation7 + $0x384] sm:$0xf]  ;;  %12040 = vst [vmem:[#allocation104_spill] sm:$0xff] %v8988_v5  ;;  %v8990_v40 = vor.u32 %v6624_v8, %v6121_v31  ;;  %3596 = vmatpush.bf16.msra.mxu1 %v8988_v5  ;;  %v6676_v53 = vld [vmem:[#allocation7 + $0x31c] sm:$0xf0]  ;;  %v9007_v31 = vpop.permute.xlu2 %4122 }
 0x38d   : > { %v2887_v61 = vmul.f32 %v8947_v48, %v8953_v49  ;;  %v4105_v6 = vmul.f32 %v8949_v27, %v8953_v49  ;;  %v4693_v2 = vmul.f32 %v8951_v3, %v8953_v49  ;;  %v8992_v12 = vor.u32 %v6688_v58, %v6377_v1  ;;  %v6608_v8 = vld [vmem:[#allocation7 + $0x104] sm:$0xf]  ;;  %v12048_v1 = vld [vmem:[#allocation85_spill] sm:$0xff] }
 0x38e   : > { %12041 = vst [vmem:[#allocation89_spill] sm:$0xff] %v8990_v40  ;;  %3610 = vmatpush.bf16.msra.mxu2 %v8990_v40  ;;  %v6313_v58 = vld [vmem:[#allocation7 + $0x320] sm:$0xf0] }
 0x38f   : > { %v2891_v55 = vadd.f32 %v2887_v61, %v12036_v25  ;;  %v4109_v11 = vadd.f32 %v4105_v6, %v12037_v22  ;;  %v4697_v21 = vadd.f32 %v4693_v2, %v12038_v45  ;;  %12042 = vst [vmem:[#allocation105_spill] sm:$0xff] %v8992_v12  ;;  %v6343_v61 = vld [vmem:[#allocation7 + $0x340] sm:$0xf]  ;;  %v8996_v25 = vor.u32 %v6620_v63, %v6087_v37  ;;  %v6680_v22 = vld [vmem:[#allocation7 + $0x344] sm:$0xf]  ;;  %v12049_v63 = vld [vmem:[#allocation82_spill] sm:$0xff] }
 0x390   : > { %v2740_v23 = vpop.f32.mrf.mxu2  ;;  %v6684_v6 = vld [vmem:[#allocation7 + $0x35c] sm:$0xf0]  ;;  %3624 = vmatpush.bf16.msra.mxu3 %v8992_v12  ;;  %v2921_v37 = vmul.f32 %v8945_v50, %v12048_v1 }
 0x391   : > { %v2905_v42 = vadd.f32 %v8940_v18, %v2891_v55  ;;  %v2741_v19 = vadd.f32 %v2740_v23, %v2727_v16  ;;  %v4125_v33 = vadd.f32 %v8957_v32, %v4109_v11  ;;  %v4713_v54 = vadd.f32 %v8970_v20, %v4697_v21  ;;  %12043 = vst [vmem:[#allocation106_spill] sm:$0xff] %v8996_v25  ;;  %v6616_v55 = vld [vmem:[#allocation7 + $0x144] sm:$0xf]  ;;  %v6311_v23 = vld [vmem:[#allocation7 + $0x300] sm:$0xf] }
 0x392   : > { %v2754_v28 = vpop.f32.mrf.mxu3  ;;  %v6089_v16 = vld [vmem:[#allocation7 + $0x160] sm:$0xf0]  ;;  %v9000_v11 = vor.u32 %v6684_v6, %v6343_v61  ;;  %3583 = vmatpush.bf16.msra.mxu0 %v8996_v25  ;;  %v9019_v6 = vpop.permute.xlu1 %4710 }
 0x393   : > { %6802 = vtanh.f32 %v2905_v42  ;;  %v8994_v2 = vadd.f32 %v2754_v28, %v2741_v19  ;;  %v9002_v45 = vor.u32 %v6616_v55, %v6089_v16  ;;  %v6345_v21 = vld [vmem:[#allocation7 + $0x360] sm:$0xf0]  ;;  %v12050_v55 = vld [vmem:[#allocation79_spill] sm:$0xff] }
 0x394   : > { %6804 = vtanh.f32 %v4125_v33  ;;  %12044 = vst [vmem:[#allocation107_spill] sm:$0xff] %v9000_v11  ;;  %v9012_v19 = vor.u32 %v6680_v22, %v6345_v21  ;;  %v9014_v33 = vor.u32 %v6612_v36, %v6055_v62  ;;  %v6672_v28 = vld [vmem:[#allocation7 + $0x304] sm:$0xf]  ;;  %3597 = vmatpush.bf16.msra.mxu1 %v9000_v11  ;;  %v9024_v22 = vor.u32 %v6676_v53, %v6311_v23  ;;  %v12053_v36 = vld [vmem:[#allocation74_spill] sm:$0xff] }
 0x395   : > { %12045 = vst [vmem:[#allocation163_spill] sm:$0xff] %v9002_v45  ;;  %6806 = vtanh.f32 %v4713_v54  ;;  %v4107_v46 = vmul.f32 %v8949_v27, %v8994_v2  ;;  %v4695_v42 = vmul.f32 %v8951_v3, %v8994_v2  ;;  %v6057_v54 = vld [vmem:[#allocation7 + $0x120] sm:$0xf0]  ;;  %3611 = vmatpush.bf16.msra.mxu2 %v9002_v45  ;;  %v4133_v25 = vmul.f32 %v8945_v50, %v12053_v36  ;;  %v6604_v36 = vld [vmem:[#allocation7 + $0xdc] sm:$0xf0] }
 0x396   : > { %12046 = vst [vmem:[#allocation92_spill] sm:$0xff] %v9012_v19  ;;  %v9026_v21 = vor.u32 %v6608_v8, %v6057_v54  ;;  %3625 = vmatpush.bf16.msra.mxu3 %v9012_v19  ;;  %3584 = vmatpush.bf16.msra.mxu0 %v9014_v33  ;;  %v6023_v54 = vld [vmem:[#allocation7 + $0xc0] sm:$0xf] }
 0x397   : > { %12047 = vst [vmem:[#allocation93_spill] sm:$0xff] %v9014_v33  ;;  %v4111_v61 = vadd.f32 %v4107_v46, %v12049_v63  ;;  %v4699_v16 = vadd.f32 %v4695_v42, %v12050_v55  ;;  %v9032_v46 = vor.u32 %v6672_v28, %v6313_v58  ;;  %v4721_v55 = vmul.f32 %v8945_v50, %v8953_v49  ;;  %v6668_v49 = vld [vmem:[#allocation7 + $0x2dc] sm:$0xf0]  ;;  %v6600_v58 = vld [vmem:[#allocation7 + $0xc4] sm:$0xf] }
 0x398   : > { %12051 = vst [vmem:[#allocation154_spill] sm:$0xff] %v9024_v22  ;;  %3598 = vmatpush.bf16.msra.mxu1 %v9024_v22  ;;  %v9046_v28 = vor.u32 %v6604_v36, %v6023_v54  ;;  %v6247_v54 = vld [vmem:[#allocation7 + $0x280] sm:$0xf] }
 0x399   : > { %12052 = vst [vmem:[#allocation155_spill] sm:$0xff] %v9026_v21  ;;  %v6803_v62 = vpop.eup %6802  ;;  %v4127_v1 = vadd.f32 %v9007_v31, %v4111_v61  ;;  %v4715_v23 = vadd.f32 %v9019_v6, %v4699_v16  ;;  %v6279_v61 = vld [vmem:[#allocation7 + $0x2c0] sm:$0xf]  ;;  %3612 = vmatpush.bf16.msra.mxu2 %v9026_v21 }
 0x39a   : > { %12054 = vst [vmem:[#allocation97_spill] sm:$0xff] %v9032_v46  ;;  %v6805_v63 = vpop.eup %6804  ;;  %v9034_v42 = vsub.f32 %v6803_v62, %v2921_v37  ;;  %v6025_v37 = vld [vmem:[#allocation7 + $0xe0] sm:$0xf0]  ;;  %3626 = vmatpush.bf16.msra.mxu3 %v9032_v46  ;;  %3585 = vmatpush.bf16.msra.mxu0 %v9046_v28  ;;  %v6660_v36 = vld [vmem:[#allocation7 + $0x29c] sm:$0xf0] }
 0x39b   : > { %v6807_v53 = vpop.eup %6806  ;;  %v9040_v8 = vsub.f32 %v6805_v63, %v4133_v25  ;;  %6808 = vtanh.f32 %v4127_v1  ;;  %12055 = vst [vmem:[#allocation156_spill] sm:$0xff] %v9046_v28  ;;  %v9049_v25 = vor.u32 %v6668_v49, %v6279_v61  ;;  %v9051_v16 = vor.u32 %v6600_v58, %v6025_v37  ;;  %v6664_v62 = vld [vmem:[#allocation7 + $0x2c4] sm:$0xf]  ;;  %v12060_v58 = vld [vmem:[#allocation81_spill] sm:$0xff] }
 0x39c   : > { %v9042_v45 = vsub.f32 %v6807_v53, %v4721_v55  ;;  %6810 = vtanh.f32 %v4715_v23  ;;  %v6281_v63 = vld [vmem:[#allocation7 + $0x2e0] sm:$0xf0]  ;;  %v5991_v55 = vld [vmem:[#allocation7 + $0x80] sm:$0xf]  ;;  %v4135_v37 = vmul.f32 %v8976_v56, %v12060_v58  ;;  %v9063_v28 = vor.u32 %v6660_v36, %v6247_v54 }
 0x39d   : > { %12056 = vst [vmem:[#allocation129_spill] sm:$0xff] %v9049_v25  ;;  %v9054_v1 = vor.u32 %v6664_v62, %v6281_v63  ;;  %v6596_v53 = vld [vmem:[#allocation7 + $0x9c] sm:$0xf0]  ;;  %3599 = vmatpush.bf16.msra.mxu1 %v9049_v25  ;;  %3613 = vmatpush.bf16.msra.mxu2 %v9051_v16  ;;  %v6592_v61 = vld [vmem:[#allocation7 + $0x84] sm:$0xf]  ;;  %v2519_v25 = vadd.f32 %v8911_v14, %v8909_v41 }
 0x39e   : > { %12057 = vst [vmem:[#allocation145_spill] sm:$0xff] %v9051_v16  ;;  %v9058_v23 = vor.u32 %v6596_v53, %v5991_v55  ;;  %v5993_v49 = vld [vmem:[#allocation7 + $0xa0] sm:$0xf0]  ;;  %v4723_v16 = vmul.f32 %v8976_v56, %v8994_v2  ;;  %v2559_v54 = vadd.f32 %v8917_v43, %v8890_v26  ;;  %v6652_v41 = vld [vmem:[#allocation7 + $0x25c] sm:$0xf0] }
 0x39f   : > { %12058 = vst [vmem:[#allocation130_spill] sm:$0xff] %v9054_v1  ;;  %3627 = vmatpush.bf16.msra.mxu3 %v9054_v1  ;;  %v9065_v62 = vor.u32 %v6592_v61, %v5993_v49  ;;  %v6656_v63 = vld [vmem:[#allocation7 + $0x284] sm:$0xf]  ;;  %v5959_v61 = vld [vmem:[#allocation7 + $0x40] sm:$0xf] }
 0x3a0   : > { %12059 = vst [vmem:[#allocation150_spill] sm:$0xff] %v9058_v23  ;;  %v6249_v46 = vld [vmem:[#allocation7 + $0x2a0] sm:$0xf0]  ;;  %3586 = vmatpush.bf16.msra.mxu0 %v9058_v23  ;;  %v6215_v49 = vld [vmem:[#allocation7 + $0x240] sm:$0xf]  ;;  %v2573_v26 = vadd.f32 %v8919_v60, %v2559_v54 }
 0x3a1   : > { %12061 = vst [vmem:[#allocation157_spill] sm:$0xff] %v9063_v28  ;;  %v6809_v21 = vpop.eup %6808  ;;  %v9070_v55 = vor.u32 %v6656_v63, %v6249_v46  ;;  %3600 = vmatpush.bf16.msra.mxu1 %v9063_v28  ;;  %3614 = vmatpush.bf16.msra.mxu2 %v9065_v62  ;;  %v6588_v46 = vld [vmem:[#allocation7 + $0x5c] sm:$0xf0]  ;;  %v2533_v63 = vadd.f32 %v8913_v44, %v2519_v25  ;;  %v6584_v14 = vld [vmem:[#allocation7 + $0x44] sm:$0xf] }
 0x3a2   : > { %12062 = vst [vmem:[#allocation151_spill] sm:$0xff] %v9065_v62  ;;  %v6811_v53 = vpop.eup %6810  ;;  %v9074_v22 = vsub.f32 %v6809_v21, %v4135_v37  ;;  %v9084_v23 = vor.u32 %v6588_v46, %v5959_v61  ;;  %v5961_v21 = vld [vmem:[#allocation7 + $0x60] sm:$0xf0]  ;;  %v9087_v43 = vor.u32 %v6652_v41, %v6215_v49  ;;  %v2766_v62 = vpop.f32.mrf.mxu0  ;;  %v5927_v44 = vld [vmem:[#allocation7] sm:$0xf] }
 0x3a3   : > { %12063 = vst [vmem:[#allocation137_spill] sm:$0xff] %v9070_v55  ;;  %v9078_v36 = vsub.f32 %v6811_v53, %v4723_v16  ;;  %3628 = vmatpush.bf16.msra.mxu3 %v9070_v55  ;;  %v9089_v16 = vor.u32 %v6584_v14, %v5961_v21  ;;  %v6648_v37 = vld [vmem:[#allocation7 + $0x244] sm:$0xf]  ;;  %v6580_v25 = vld [vmem:[#allocation7 + $0x1c] sm:$0xf0]  ;;  %v2547_v60 = vadd.f32 %v8915_v47, %v2533_v63  ;;  %v9097_v54 = vpop.f32.mrf.mxu1 }
 0x3a4   : > { %12064 = vst [vmem:[#allocation152_spill] sm:$0xff] %v9084_v23  ;;  %v6217_v53 = vld [vmem:[#allocation7 + $0x260] sm:$0xf0]  ;;  %3587 = vmatpush.bf16.msra.mxu0 %v9084_v23  ;;  %v6183_v61 = vld [vmem:[#allocation7 + $0x200] sm:$0xf]  ;;  %v9100_v46 = vor.u32 %v6580_v25, %v5927_v44  ;;  %v2587_v21 = vadd.f32 %v8921_v34, %v2573_v26 }
 0x3a5   : > { %12065 = vst [vmem:[#allocation165_spill] sm:$0xff] %v9087_v43  ;;  %v9092_v55 = vor.u32 %v6648_v37, %v6217_v53  ;;  %3601 = vmatpush.bf16.msra.mxu1 %v9087_v43  ;;  %3615 = vmatpush.bf16.msra.mxu2 %v9089_v16  ;;  %v6644_v49 = vld [vmem:[#allocation7 + $0x21c] sm:$0xf0]  ;;  %v6576_v41 = vld [vmem:[#allocation7 + $0x4] sm:$0xf]  ;;  %v2561_v47 = vadd.f32 %v8925_v59, %v2547_v60 }
 0x3a6   : > { %12066 = vst [vmem:[#allocation166_spill] sm:$0xff] %v9089_v16  ;;  %v5929_v14 = vld [vmem:[#allocation7 + $0x20] sm:$0xf0]  ;;  %v9103_v37 = vor.u32 %v6644_v49, %v6183_v61  ;;  %v6159_v23 = vld [vmem:[#allocation7 + $0x1c8] sm:$0xf] }
 0x3a7   : > { %12067 = vst [vmem:[#allocation153_spill] sm:$0xff] %v9092_v55  ;;  %3629 = vmatpush.bf16.msra.mxu3 %v9092_v55  ;;  %v9105_v53 = vor.u32 %v6576_v41, %v5929_v14  ;;  %v6640_v16 = vld [vmem:[#allocation7 + $0x204] sm:$0xf]  ;;  %v6637_v44 = vld [vmem:[#allocation7 + $0x1e4] sm:$0xf0]  ;;  %v2601_v14 = vadd.f32 %v8923_v57, %v2587_v21 }
 0x3a8   : > { %12068 = vst [vmem:[#allocation16_spill] sm:$0xff] %v9100_v46  ;;  %v6185_v43 = vld [vmem:[#allocation7 + $0x220] sm:$0xf0]  ;;  %3588 = vmatpush.bf16.msra.mxu0 %v9100_v46  ;;  %v6415_v25 = vld [vmem:[#allocation7 + $0x3c8] sm:$0xf]  ;;  %v9113_v34 = vor.u32 %v6637_v44, %v6159_v23 }
 0x3a9   : > { %12069 = vst [vmem:[#allocation90_spill] sm:$0xff] %v9103_v37  ;;  %v9109_v63 = vor.u32 %v6640_v16, %v6185_v43  ;;  %v6701_v55 = vld [vmem:[#allocation7 + $0x3e4] sm:$0xf0]  ;;  %3602 = vmatpush.bf16.msra.mxu1 %v9103_v37  ;;  %3616 = vmatpush.bf16.msra.mxu2 %v9105_v53  ;;  %v6633_v61 = vld [vmem:[#allocation7 + $0x1cc] sm:$0xf] }
 0x3aa   : > { %12070 = vst [vmem:[#allocation17_spill] sm:$0xff] %v9105_v53  ;;  %v9115_v26 = vor.u32 %v6701_v55, %v6415_v25  ;;  %v6161_v49 = vld [vmem:[#allocation7 + $0x1e8] sm:$0xf0]  ;;  %v6127_v16 = vld [vmem:[#allocation7 + $0x188] sm:$0xf]  ;;  %v2808_v46 = vpop.f32.mrf.mxu3 }
 0x3ab   : > { %12071 = vst [vmem:[#allocation18_spill] sm:$0xff] %v9109_v63  ;;  %v6697_v41 = vld [vmem:[#allocation7 + $0x3cc] sm:$0xf]  ;;  %3630 = vmatpush.bf16.msra.mxu3 %v9109_v63  ;;  %v9118_v59 = vor.u32 %v6633_v61, %v6161_v49  ;;  %v6629_v60 = vld [vmem:[#allocation7 + $0x1a4] sm:$0xf0]  ;;  %v2575_v63 = vadd.f32 %v8927_v39, %v2561_v47  ;;  %v2794_v61 = vpop.f32.mrf.mxu2 }
 0x3ac   : > { %12072 = vst [vmem:[#allocation54_spill] sm:$0xff] %v9113_v34  ;;  %v6417_v43 = vld [vmem:[#allocation7 + $0x3e8] sm:$0xf0]  ;;  %3637 = vmatpush.bf16.msrb.mxu0 %v9113_v34  ;;  %v9125_v55 = vor.u32 %v6629_v60, %v6127_v16  ;;  %v6383_v44 = vld [vmem:[#allocation7 + $0x388] sm:$0xf]  ;;  %v2767_v34 = vadd.f32 %v2766_v62, %v2601_v14 }
 0x3ad   : > { %12073 = vst [vmem:[#allocation19_spill] sm:$0xff] %v9115_v26  ;;  %3651 = vmatpush.bf16.msrb.mxu1 %v9115_v26  ;;  %v9123_v23 = vor.u32 %v6697_v41, %v6417_v43  ;;  %v6693_v25 = vld [vmem:[#allocation7 + $0x3a4] sm:$0xf0]  ;;  %v6625_v53 = vld [vmem:[#allocation7 + $0x18c] sm:$0xf]  ;;  %3665 = vmatpush.bf16.msrb.mxu2 %v9118_v59  ;;  %v2589_v16 = vadd.f32 %v8932_v52, %v2575_v63  ;;  %v2768_v26 = vpop.f32.mrf.mxu0 }
 0x3ae   : > { %12074 = vst [vmem:[#allocation20_spill] sm:$0xff] %v9118_v59  ;;  %v9129_v49 = vor.u32 %v6693_v25, %v6383_v44  ;;  %v6129_v37 = vld [vmem:[#allocation7 + $0x1a8] sm:$0xf0]  ;;  %v6095_v60 = vld [vmem:[#allocation7 + $0x148] sm:$0xf] }
 0x3af   : > { %12075 = vst [vmem:[#allocation91_spill] sm:$0xff] %v9123_v23  ;;  %v6689_v57 = vld [vmem:[#allocation7 + $0x38c] sm:$0xf]  ;;  %3679 = vmatpush.bf16.msrb.mxu3 %v9123_v23  ;;  %v9132_v41 = vor.u32 %v6625_v53, %v6129_v37  ;;  %v6621_v39 = vld [vmem:[#allocation7 + $0x164] sm:$0xf0]  ;;  %v2782_v23 = vpop.f32.mrf.mxu1 }
 0x3b0   : > { %12076 = vst [vmem:[#allocation21_spill] sm:$0xff] %v9125_v55  ;;  %v6385_v21 = vld [vmem:[#allocation7 + $0x3a8] sm:$0xf0]  ;;  %v6351_v47 = vld [vmem:[#allocation7 + $0x348] sm:$0xf]  ;;  %3638 = vmatpush.bf16.msrb.mxu0 %v9125_v55  ;;  %v9139_v44 = vor.u32 %v6621_v39, %v6095_v60  ;;  %v2603_v60 = vadd.f32 %v8934_v15, %v2589_v16 }
 0x3b1   : > { %12077 = vst [vmem:[#allocation22_spill] sm:$0xff] %v9129_v49  ;;  %v9134_v43 = vor.u32 %v6689_v57, %v6385_v21  ;;  %3652 = vmatpush.bf16.msrb.mxu1 %v9129_v49  ;;  %v6685_v62 = vld [vmem:[#allocation7 + $0x364] sm:$0xf0]  ;;  %v6617_v14 = vld [vmem:[#allocation7 + $0x14c] sm:$0xf]  ;;  %3666 = vmatpush.bf16.msrb.mxu2 %v9132_v41  ;;  %v2781_v57 = vadd.f32 %v9097_v54, %v2767_v34 }
 0x3b2   : > { %12078 = vst [vmem:[#allocation23_spill] sm:$0xff] %v9132_v41  ;;  %v6097_v25 = vld [vmem:[#allocation7 + $0x168] sm:$0xf0]  ;;  %v9142_v37 = vor.u32 %v6685_v62, %v6351_v47  ;;  %v6063_v39 = vld [vmem:[#allocation7 + $0x108] sm:$0xf]  ;;  %v2769_v54 = vadd.f32 %v2768_v26, %v2603_v60 }
 0x3b3   : > { %12079 = vst [vmem:[#allocation94_spill] sm:$0xff] %v9134_v43  ;;  %v9144_v53 = vor.u32 %v6617_v14, %v6097_v25  ;;  %v6681_v52 = vld [vmem:[#allocation7 + $0x34c] sm:$0xf]  ;;  %3680 = vmatpush.bf16.msrb.mxu3 %v9134_v43  ;;  %v6613_v49 = vld [vmem:[#allocation7 + $0x124] sm:$0xf0]  ;;  %v2795_v59 = vadd.f32 %v2794_v61, %v2781_v57 }
 0x3b4   : > { %12080 = vst [vmem:[#allocation24_spill] sm:$0xff] %v9139_v44  ;;  %v6353_v63 = vld [vmem:[#allocation7 + $0x368] sm:$0xf0]  ;;  %v6319_v55 = vld [vmem:[#allocation7 + $0x308] sm:$0xf]  ;;  %3639 = vmatpush.bf16.msrb.mxu0 %v9139_v44  ;;  %v9153_v47 = vor.u32 %v6613_v49, %v6063_v39  ;;  %v2810_v44 = vpop.f32.mrf.mxu3 }
 0x3b5   : > { %12081 = vst [vmem:[#allocation25_spill] sm:$0xff] %v9142_v37  ;;  %v9148_v21 = vor.u32 %v6681_v52, %v6353_v63  ;;  %3653 = vmatpush.bf16.msrb.mxu1 %v9142_v37  ;;  %v6677_v62 = vld [vmem:[#allocation7 + $0x324] sm:$0xf0]  ;;  %v6609_v14 = vld [vmem:[#allocation7 + $0x10c] sm:$0xf]  ;;  %3667 = vmatpush.bf16.msrb.mxu2 %v9144_v53  ;;  %v2796_v63 = vpop.f32.mrf.mxu2  ;;  %v2809_v37 = vadd.f32 %v2808_v46, %v2795_v59 }
 0x3b6   : > { %12082 = vst [vmem:[#allocation26_spill] sm:$0xff] %v9144_v53  ;;  %v6065_v25 = vld [vmem:[#allocation7 + $0x128] sm:$0xf0]  ;;  %v9156_v34 = vor.u32 %v6677_v62, %v6319_v55  ;;  %v6031_v57 = vld [vmem:[#allocation7 + $0xc8] sm:$0xf] }
 0x3b7   : > { %12083 = vst [vmem:[#allocation27_spill] sm:$0xff] %v9148_v21  ;;  %v9158_v52 = vor.u32 %v6609_v14, %v6065_v25  ;;  %v6673_v15 = vld [vmem:[#allocation7 + $0x30c] sm:$0xf]  ;;  %3681 = vmatpush.bf16.msrb.mxu3 %v9148_v21  ;;  %v6605_v49 = vld [vmem:[#allocation7 + $0xe4] sm:$0xf0]  ;;  %v2783_v14 = vadd.f32 %v2782_v23, %v2769_v54 }
 0x3b8   : > { %12084 = vst [vmem:[#allocation95_spill] sm:$0xff] %v9153_v47  ;;  %v6321_v16 = vld [vmem:[#allocation7 + $0x328] sm:$0xf0]  ;;  %v6287_v39 = vld [vmem:[#allocation7 + $0x2c8] sm:$0xf]  ;;  %3640 = vmatpush.bf16.msrb.mxu0 %v9153_v47  ;;  %v9165_v26 = vor.u32 %v6605_v49, %v6031_v57 }
 0x3b9   : > { %12085 = vst [vmem:[#allocation28_spill] sm:$0xff] %v9156_v34  ;;  %v9161_v61 = vor.u32 %v6673_v15, %v6321_v16  ;;  %3654 = vmatpush.bf16.msrb.mxu1 %v9156_v34  ;;  %v6669_v55 = vld [vmem:[#allocation7 + $0x2e4] sm:$0xf0]  ;;  %v6601_v60 = vld [vmem:[#allocation7 + $0xcc] sm:$0xf]  ;;  %3668 = vmatpush.bf16.msrb.mxu2 %v9158_v52  ;;  %v2797_v57 = vadd.f32 %v2796_v63, %v2783_v14 }
 0x3ba   : > { %12086 = vst [vmem:[#allocation146_spill] sm:$0xff] %v9158_v52  ;;  %v6033_v62 = vld [vmem:[#allocation7 + $0xe8] sm:$0xf0]  ;;  %v9168_v15 = vor.u32 %v6669_v55, %v6287_v39  ;;  %v5999_v49 = vld [vmem:[#allocation7 + $0x88] sm:$0xf] }
 0x3bb   : > { %12087 = vst [vmem:[#allocation29_spill] sm:$0xff] %v9161_v61  ;;  %v9170_v16 = vor.u32 %v6601_v60, %v6033_v62  ;;  %v6665_v46 = vld [vmem:[#allocation7 + $0x2cc] sm:$0xf]  ;;  %3682 = vmatpush.bf16.msrb.mxu3 %v9161_v61  ;;  %v6597_v34 = vld [vmem:[#allocation7 + $0xa4] sm:$0xf0] }
 0x3bc   : > { %12088 = vst [vmem:[#allocation30_spill] sm:$0xff] %v9165_v26  ;;  %v6289_v59 = vld [vmem:[#allocation7 + $0x2e8] sm:$0xf0]  ;;  %v6255_v53 = vld [vmem:[#allocation7 + $0x288] sm:$0xf]  ;;  %3641 = vmatpush.bf16.msrb.mxu0 %v9165_v26  ;;  %v9177_v23 = vor.u32 %v6597_v34, %v5999_v49 }
 0x3bd   : > { %12089 = vst [vmem:[#allocation31_spill] sm:$0xff] %v9168_v15  ;;  %v9173_v47 = vor.u32 %v6665_v46, %v6289_v59  ;;  %3655 = vmatpush.bf16.msrb.mxu1 %v9168_v15  ;;  %v6661_v54 = vld [vmem:[#allocation7 + $0x2a4] sm:$0xf0]  ;;  %v6593_v39 = vld [vmem:[#allocation7 + $0x8c] sm:$0xf]  ;;  %3669 = vmatpush.bf16.msrb.mxu2 %v9170_v16  ;;  %v2811_v46 = vadd.f32 %v2810_v44, %v2797_v57 }
 0x3be   : > { %12090 = vst [vmem:[#allocation32_spill] sm:$0xff] %v9170_v16  ;;  %v6001_v55 = vld [vmem:[#allocation7 + $0xa8] sm:$0xf0]  ;;  %v5967_v34 = vld [vmem:[#allocation7 + $0x48] sm:$0xf] }
 0x3bf   : > { %12091 = vst [vmem:[#allocation147_spill] sm:$0xff] %v9173_v47  ;;  %v6657_v60 = vld [vmem:[#allocation7 + $0x28c] sm:$0xf]  ;;  %3683 = vmatpush.bf16.msrb.mxu3 %v9173_v47  ;;  %v6589_v49 = vld [vmem:[#allocation7 + $0x64] sm:$0xf0] }
 0x3c0   : > { %v2822_v43 = vpop.f32.mrf.mxu0  ;;  %12092 = vst [vmem:[#allocation33_spill] sm:$0xff] %v9177_v23  ;;  %v6257_v63 = vld [vmem:[#allocation7 + $0x2a8] sm:$0xf0]  ;;  %v6223_v15 = vld [vmem:[#allocation7 + $0x248] sm:$0xf]  ;;  %3642 = vmatpush.bf16.msrb.mxu0 %v9177_v23 }
 0x3c1   : > { %v2836_v25 = vpop.f32.mrf.mxu1  ;;  %v2823_v21 = vadd.f32 %v2822_v43, %v2809_v37  ;;  %v9180_v43 = vor.u32 %v6661_v54, %v6255_v53  ;;  %v9182_v37 = vor.u32 %v6593_v39, %v6001_v55  ;;  %v9185_v14 = vor.u32 %v6657_v60, %v6257_v63  ;;  %v6653_v54 = vld [vmem:[#allocation7 + $0x264] sm:$0xf0]  ;;  %v6649_v55 = vld [vmem:[#allocation7 + $0x24c] sm:$0xf] }
 0x3c2   : > { %v9189_v53 = vor.u32 %v6589_v49, %v5967_v34  ;;  %v9192_v44 = vor.u32 %v6653_v54, %v6223_v15  ;;  %v6225_v60 = vld [vmem:[#allocation7 + $0x268] sm:$0xf0]  ;;  %v2889_v15 = vmul.f32 %v8947_v48, %v8994_v2  ;;  %v5935_v49 = vld [vmem:[#allocation7 + $0x8] sm:$0xf] }
 0x3c3   : > { %12093 = vst [vmem:[#allocation34_spill] sm:$0xff] %v9180_v43  ;;  %v2837_v62 = vadd.f32 %v2836_v25, %v2823_v21  ;;  %3656 = vmatpush.bf16.msrb.mxu1 %v9180_v43  ;;  %v6585_v21 = vld [vmem:[#allocation7 + $0x4c] sm:$0xf]  ;;  %3670 = vmatpush.bf16.msrb.mxu2 %v9182_v37  ;;  %v6581_v54 = vld [vmem:[#allocation7 + $0x24] sm:$0xf0] }
 0x3c4   : > { %12094 = vst [vmem:[#allocation35_spill] sm:$0xff] %v9182_v37  ;;  %v5969_v25 = vld [vmem:[#allocation7 + $0x68] sm:$0xf0]  ;;  %3684 = vmatpush.bf16.msrb.mxu3 %v9185_v14  ;;  %3643 = vmatpush.bf16.msrb.mxu0 %v9189_v53  ;;  %v9216_v2 = vor.u32 %v6581_v54, %v5935_v49  ;;  %v2880_v49 = vmul.f32 %v8550_v10, %v8728_v24 }
 0x3c5   : > { %12095 = vst [vmem:[#allocation148_spill] sm:$0xff] %v9185_v14  ;;  %v9194_v57 = vor.u32 %v6585_v21, %v5969_v25  ;;  %v6191_v21 = vld [vmem:[#allocation7 + $0x208] sm:$0xf]  ;;  %v5937_v14 = vld [vmem:[#allocation7 + $0x28] sm:$0xf0] }
 0x3c6   : > { %12096 = vst [vmem:[#allocation36_spill] sm:$0xff] %v9189_v53  ;;  %v6641_v23 = vld [vmem:[#allocation7 + $0x20c] sm:$0xf] }
 0x3c7   : > { %12097 = vst [vmem:[#allocation37_spill] sm:$0xff] %v9192_v44  ;;  %3657 = vmatpush.bf16.msrb.mxu1 %v9192_v44  ;;  %3671 = vmatpush.bf16.msrb.mxu2 %v9194_v57  ;;  %v6193_v47 = vld [vmem:[#allocation7 + $0x228] sm:$0xf0] }
 0x3c8   : > { %v2850_v59 = vpop.f32.mrf.mxu2  ;;  %v2824_v52 = vpop.f32.mrf.mxu0  ;;  %12098 = vst [vmem:[#allocation38_spill] sm:$0xff] %v9194_v57  ;;  %v9226_v41 = vor.u32 %v6641_v23, %v6193_v47  ;;  %3644 = vmatpush.bf16.msrb.mxu0 %v9216_v2 }
 0x3c9   : > { %v2851_v26 = vadd.f32 %v2850_v59, %v2837_v62  ;;  %v2825_v39 = vadd.f32 %v2824_v52, %v2811_v46  ;;  %v9199_v62 = vor.u32 %v6649_v55, %v6225_v60  ;;  %v12100_v59 = vld [vmem:[#allocation80_spill] sm:$0xff]  ;;  %v2879_v52 = vmul.f32 %v8550_v10, %v12060_v58  ;;  %v2838_v46 = vpop.f32.mrf.mxu1  ;;  %v6645_v58 = vld [vmem:[#allocation7 + $0x224] sm:$0xf0]  ;;  %v6577_v60 = vld [vmem:[#allocation7 + $0xc] sm:$0xf]  ;;  %12101 = vst [vmem:[#allocation149_spill] sm:$0xff] %v9216_v2 }
 0x3ca   : > { %v2864_v61 = vpop.f32.mrf.mxu3  ;;  %v2873_v34 = vmul.f32 %v8540_v7, %v12100_v59  ;;  %v9218_v37 = vor.u32 %v6645_v58, %v6191_v21  ;;  %v9220_v43 = vor.u32 %v6577_v60, %v5937_v14  ;;  %12105 = vst [vmem:[#allocation161_spill] sm:$0xff] %v9226_v41 }
 0x3cb   : > { %v9196_v63 = vadd.f32 %v2864_v61, %v2851_v26  ;;  %12099 = vst [vmem:[#allocation39_spill] sm:$0xff] %v9199_v62  ;;  %v2839_v55 = vadd.f32 %v2838_v46, %v2825_v39  ;;  %v12104_v46 = vld [vmem:[#allocation159_spill] sm:$0xff]  ;;  %3685 = vmatpush.bf16.msrb.mxu3 %v9199_v62 }
 0x3cc   : > { %12102 = vst [vmem:[#allocation40_spill] sm:$0xff] %v9218_v37  ;;  %v2883_v44 = vadd.f32 %v2879_v52, %v2873_v34  ;;  %3658 = vmatpush.bf16.msrb.mxu1 %v9218_v37  ;;  %3672 = vmatpush.bf16.msrb.mxu2 %v9220_v43  ;;  %v12107_v34 = vld [vmem:[#allocation96_spill] sm:$0xff] }
 0x3cd   : > { %v2888_v61 = vmul.f32 %v8947_v48, %v9196_v63  ;;  %v4106_v26 = vmul.f32 %v8949_v27, %v9196_v63  ;;  %v4694_v25 = vmul.f32 %v8951_v3, %v9196_v63  ;;  %12103 = vst [vmem:[#allocation160_spill] sm:$0xff] %v9220_v43  ;;  %v2922_v52 = vmul.f32 %v8945_v50, %v12107_v34 }
 0x3cf   : > { %v2892_v16 = vadd.f32 %v2888_v61, %v8709_v17  ;;  %v4110_v39 = vadd.f32 %v4106_v26, %v8711_v0  ;;  %v4698_v53 = vadd.f32 %v4694_v25, %v12104_v46  ;;  %v12106_v0 = vld [vmem:[#allocation83_spill] sm:$0xff]  ;;  %v2893_v26 = vadd.f32 %v2889_v15, %v2883_v44  ;;  %3686 = vmatpush.bf16.msrb.mxu3 %v9226_v41  ;;  %v12108_v25 = vld [vmem:[#allocation158_spill] sm:$0xff] }
 0x3d0   : > { %v2852_v54 = vpop.f32.mrf.mxu2  ;;  %v2874_v61 = vmul.f32 %v8540_v7, %v12106_v0 }
 0x3d1   : > { %v2906_v14 = vadd.f32 %v8940_v18, %v2892_v16  ;;  %v4126_v21 = vadd.f32 %v8957_v32, %v4110_v39  ;;  %v4714_v58 = vadd.f32 %v8970_v20, %v4698_v53  ;;  %v2853_v17 = vadd.f32 %v2852_v54, %v2839_v55 }
 0x3d2   : > { %v2866_v47 = vpop.f32.mrf.mxu3  ;;  %v2884_v18 = vadd.f32 %v2880_v49, %v2874_v61  ;;  %v2907_v7 = vadd.f32 %v8943_v29, %v2893_v26  ;;  %v4134_v55 = vmul.f32 %v8945_v50, %v12108_v25  ;;  %v6638_v25 = vld [vmem:[#allocation7 + $0x1ec] sm:$0xf0] }
 0x3d3   : > { %6812 = vtanh.f32 %v2906_v14  ;;  %v2867_v10 = vadd.f32 %v2866_v47, %v2853_v17 }
 0x3d4   : > { %6814 = vtanh.f32 %v4126_v21 }
 0x3d5   : > { %6816 = vtanh.f32 %v4714_v58  ;;  %v2890_v32 = vmul.f32 %v8947_v48, %v2867_v10  ;;  %v4108_v20 = vmul.f32 %v8949_v27, %v2867_v10  ;;  %v4696_v16 = vmul.f32 %v8951_v3, %v2867_v10 }
 0x3d6   : > { %6818 = vtanh.f32 %v2907_v7  ;;  %v2923_v58 = vmul.f32 %v8976_v56, %v12100_v59  ;;  %v4724_v59 = vmul.f32 %v8976_v56, %v2867_v10 }
 0x3d7   : > { %v2894_v23 = vadd.f32 %v2890_v32, %v2884_v18  ;;  %v4112_v53 = vadd.f32 %v4108_v20, %v8748_v38  ;;  %v4700_v44 = vadd.f32 %v4696_v16, %v8750_v9  ;;  %v4722_v38 = vmul.f32 %v8945_v50, %v9196_v63  ;;  %v6650_v50 = vld [vmem:[#allocation7 + $0x254] sm:$0xf] }
 0x3d8   : > { %v2924_v18 = vmul.f32 %v8976_v56, %v12106_v0  ;;  %v4136_v32 = vmul.f32 %v8976_v56, %v8728_v24  ;;  %v5977_v56 = vld [vmem:[#allocation7 + $0x70] sm:$0xf0] }
 0x3d9   : > { %v6813_v15 = vpop.eup %6812  ;;  %v2908_v48 = vadd.f32 %v8943_v29, %v2894_v23  ;;  %v4128_v27 = vadd.f32 %v9007_v31, %v4112_v53  ;;  %v4716_v3 = vadd.f32 %v9019_v6, %v4700_v44 }
 0x3da   : > { %v6815_v60 = vpop.eup %6814  ;;  %v2926_v39 = vsub.f32 %v6813_v15, %v2922_v52  ;;  %v6167_v15 = vld [vmem:[#allocation7 + $0x1d0] sm:$0xf] }
 0x3db   : > { %v6817_v9 = vpop.eup %6816  ;;  %v4138_v46 = vsub.f32 %v6815_v60, %v4134_v55  ;;  %6820 = vtanh.f32 %v2908_v48  ;;  %v6423_v55 = vld [vmem:[#allocation7 + $0x3d0] sm:$0xf] }
 0x3dc   : > { %v9255_v49 = vpack.c.bf16 %v2926_v39, %v9034_v42  ;;  %v4726_v54 = vsub.f32 %v6817_v9, %v4722_v38  ;;  %6822 = vtanh.f32 %v4128_v27  ;;  %v6819_v21 = vpop.eup %6818  ;;  %v6702_v27 = vld [vmem:[#allocation7 + $0x3ec] sm:$0xf0]  ;;  %v9283_v38 = vor.u32 %v6638_v25, %v6167_v15 }
 0x3dd   : > { %v9258_v29 = vpack.c.bf16 %v4138_v46, %v9040_v8  ;;  %6824 = vtanh.f32 %v4716_v3  ;;  %v2927_v44 = vsub.f32 %v6819_v21, %v2923_v58  ;;  %v6169_v3 = vld [vmem:[#allocation7 + $0x1f0] sm:$0xf0] }
 0x3de   : > { %v2931_v31 = vunpack.c.l.bf16 %v9255_v49  ;;  %v2932_v6 = vunpack.c.h.bf16 %v9255_v49  ;;  %v4729_v26 = vpack.c.bf16 %v4726_v54, %v9042_v45  ;;  %12109 = vst [vmem:[#allocation162_spill] sm:$0xff] %v9283_v38 }
 0x3df   : > { %v4143_v14 = vunpack.c.l.bf16 %v9258_v29  ;;  %v4144_v63 = vunpack.c.h.bf16 %v9258_v29 }
 0x3e0   : > { %v2935_v17 = vsub.f32 %v9034_v42, %v2931_v31  ;;  %v2936_v61 = vsub.f32 %v2926_v39, %v2932_v6  ;;  %v4731_v23 = vunpack.c.l.bf16 %v4729_v26  ;;  %v4732_v53 = vunpack.c.h.bf16 %v4729_v26 }
 0x3e1   : > { %v6821_v47 = vpop.eup %6820  ;;  %v9273_v20 = vsub.f32 %v9040_v8, %v4143_v14  ;;  %v4148_v16 = vsub.f32 %v4138_v46, %v4144_v63  ;;  %v6634_v8 = vld [vmem:[#allocation7 + $0x1d4] sm:$0xf]  ;;  %v9287_v31 = vor.u32 %v6702_v27, %v6423_v55  ;;  %v4968_v6 = vunpack.c.h.b16 %v4729_v26  ;;  %v6135_v27 = vld [vmem:[#allocation7 + $0x190] sm:$0xf] }
 0x3e2   : > { %v6823_v7 = vpop.eup %6822  ;;  %v2928_v34 = vsub.f32 %v6821_v47, %v2924_v18  ;;  %v4735_v0 = vsub.f32 %v9042_v45, %v4731_v23  ;;  %v4736_v48 = vsub.f32 %v4726_v54, %v4732_v53  ;;  %v9289_v45 = vor.u32 %v6634_v8, %v6169_v3  ;;  %v6630_v8 = vld [vmem:[#allocation7 + $0x1ac] sm:$0xf0] }
 0x3e3   : > { %v6825_v42 = vpop.eup %6824  ;;  %v4140_v52 = vsub.f32 %v6823_v7, %v4136_v32  ;;  %12110 = vst [vmem:[#allocation164_spill] sm:$0xff] %v9287_v31  ;;  %v4967_v54 = vunpack.c.l.b16 %v4729_v26  ;;  %v6698_v32 = vld [vmem:[#allocation7 + $0x3d4] sm:$0xf] }
 0x3e4   : > { %v4728_v24 = vsub.f32 %v6825_v42, %v4724_v59  ;;  %v9277_v60 = vpack.c.bf16 %v2928_v34, %v2927_v44  ;;  %12111 = vst [vmem:[#allocation41_spill] sm:$0xff] %v9289_v45  ;;  %v6425_v7 = vld [vmem:[#allocation7 + $0x3f0] sm:$0xf0] }
 0x3e5   : > { %v9280_v39 = vpack.c.bf16 %v4140_v52, %v9074_v22 }
 0x3e6   : > { %v4730_v10 = vpack.c.bf16 %v4728_v24, %v9078_v36  ;;  %v2933_v9 = vunpack.c.l.bf16 %v9277_v60  ;;  %v2934_v46 = vunpack.c.h.bf16 %v9277_v60 }
 0x3e7   : > { %v4145_v14 = vunpack.c.l.bf16 %v9280_v39  ;;  %v4146_v63 = vunpack.c.h.bf16 %v9280_v39 }
 0x3e8   : > { %v2937_v21 = vsub.f32 %v2927_v44, %v2933_v9  ;;  %v2938_v58 = vsub.f32 %v2928_v34, %v2934_v46  ;;  %v4733_v47 = vunpack.c.l.bf16 %v4730_v10  ;;  %v4734_v18 = vunpack.c.h.bf16 %v4730_v10  ;;  %v6690_v46 = vld [vmem:[#allocation7 + $0x394] sm:$0xf] }
 0x3e9   : > { %v4149_v23 = vsub.f32 %v9074_v22, %v4145_v14  ;;  %v4150_v53 = vsub.f32 %v4140_v52, %v4146_v63  ;;  %v4969_v59 = vunpack.c.l.b16 %v4730_v10  ;;  %v4970_v42 = vunpack.c.h.b16 %v4730_v10  ;;  %v6391_v22 = vld [vmem:[#allocation7 + $0x390] sm:$0xf]  ;;  %v6626_v10 = vld [vmem:[#allocation7 + $0x194] sm:$0xf] }
 0x3ea   : > { %v9294_v15 = vpack.c.bf16 %v2938_v58, %v2936_v61  ;;  %v4737_v25 = vsub.f32 %v9078_v36, %v4733_v47  ;;  %v4738_v26 = vsub.f32 %v4728_v24, %v4734_v18  ;;  %v9297_v55 = vpack.c.bf16 %v2937_v21, %v2935_v17  ;;  %v6694_v52 = vld [vmem:[#allocation7 + $0x3ac] sm:$0xf0] }
 0x3eb   : > { %v9299_v44 = vpack.c.bf16 %v4150_v53, %v4148_v16  ;;  %v9301_v34 = vpack.c.b16 %v4969_v59, %v4967_v54  ;;  %v9303_v3 = vpack.c.b16 %v4970_v42, %v4968_v6  ;;  %v9305_v9 = vor.u32 %v6698_v32, %v6425_v7  ;;  %v6137_v16 = vld [vmem:[#allocation7 + $0x1b0] sm:$0xf0]  ;;  %v6103_v21 = vld [vmem:[#allocation7 + $0x150] sm:$0xf] }
 0x3ec   : > { %v3809_v61 = vunpack.c.l.b16 %v9277_v60  ;;  %v3810_v36 = vunpack.c.h.b16 %v9277_v60  ;;  %v9309_v24 = vpack.c.bf16 %v4737_v25, %v4735_v0  ;;  %v9311_v17 = vpack.c.bf16 %v4738_v26, %v4736_v48  ;;  %3589 = vmatmul.bf16.vlgmr.msra.gmra.mxu0 %v9297_v55  ;;  %3603 = vmatmul.bf16.vlgmr.msra.gmra.mxu1 %v9294_v15  ;;  %v6393_v54 = vld [vmem:[#allocation7 + $0x3b0] sm:$0xf0]  ;;  %v6622_v58 = vld [vmem:[#allocation7 + $0x16c] sm:$0xf0] }
 0x3ed   : > { %12112 = vst [vmem:[#allocation42_spill] sm:$0xff] %v9299_v44  ;;  %v4381_v6 = vunpack.c.l.b16 %v9280_v39  ;;  %v4382_v14 = vunpack.c.h.b16 %v9280_v39  ;;  %3617 = vmatmul.bf16.vlgmr.msra.gmra.mxu2 %v9297_v55  ;;  %3631 = vmatmul.bf16.vlgmr.msra.gmra.mxu3 %v9294_v15  ;;  %v3807_v0 = vunpack.c.l.b16 %v9255_v49  ;;  %v3808_v48 = vunpack.c.h.b16 %v9255_v49  ;;  %v6359_v32 = vld [vmem:[#allocation7 + $0x350] sm:$0xf]  ;;  %v6618_v53 = vld [vmem:[#allocation7 + $0x154] sm:$0xf] }
 0x3ee   : > { %12113 = vst [vmem:[#allocation43_spill] sm:$0xff] %v9301_v34  ;;  %3693 = vmatpush.bf16.msra.mxu0 %v9283_v38  ;;  %3707 = vmatpush.bf16.msra.mxu1 %v9287_v31  ;;  %v9323_v60 = vor.u32 %v6630_v8, %v6135_v27  ;;  %v9325_v63 = vor.u32 %v6694_v52, %v6391_v22  ;;  %v4379_v39 = vunpack.c.l.b16 %v9258_v29  ;;  %v4380_v47 = vunpack.c.h.b16 %v9258_v29  ;;  %v6686_v7 = vld [vmem:[#allocation7 + $0x36c] sm:$0xf0]  ;;  %v6105_v59 = vld [vmem:[#allocation7 + $0x170] sm:$0xf0] }
 0x3ef   : > { %12114 = vst [vmem:[#allocation44_spill] sm:$0xff] %v9303_v3  ;;  %3721 = vmatpush.bf16.msra.mxu2 %v9289_v45  ;;  %3735 = vmatpush.bf16.msra.mxu3 %v9305_v9  ;;  %v9331_v18 = vor.u32 %v6626_v10, %v6137_v16  ;;  %v9333_v49 = vor.u32 %v6690_v46, %v6393_v54  ;;  %v6682_v42 = vld [vmem:[#allocation7 + $0x354] sm:$0xf]  ;;  %v6071_v16 = vld [vmem:[#allocation7 + $0x110] sm:$0xf] }
 0x3f0   : > { %12115 = vst [vmem:[#allocation45_spill] sm:$0xff] %v9305_v9  ;;  %v6361_v25 = vld [vmem:[#allocation7 + $0x370] sm:$0xf0]  ;;  %v9335_v26 = vpack.c.b16 %v3809_v61, %v3807_v0  ;;  %v9337_v27 = vpack.c.b16 %v3810_v36, %v3808_v48  ;;  %v9340_v29 = vpack.c.bf16 %v4149_v23, %v9273_v20  ;;  %v9342_v8 = vpack.c.b16 %v4381_v6, %v4379_v39  ;;  %v6614_v61 = vld [vmem:[#allocation7 + $0x12c] sm:$0xf0] }
 0x3f1   : > { %12116 = vst [vmem:[#allocation46_spill] sm:$0xff] %v9309_v24  ;;  %v9344_v22 = vpack.c.b16 %v4382_v14, %v4380_v47  ;;  %v9348_v52 = vor.u32 %v6622_v58, %v6103_v21  ;;  %v9350_v10 = vor.u32 %v6686_v7, %v6359_v32  ;;  %v9354_v20 = vor.u32 %v6618_v53, %v6105_v59  ;;  %v6327_v36 = vld [vmem:[#allocation7 + $0x310] sm:$0xf]  ;;  %v6610_v54 = vld [vmem:[#allocation7 + $0x114] sm:$0xf] }
 0x3f2   : > { %12117 = vst [vmem:[#allocation47_spill] sm:$0xff] %v9311_v17  ;;  %3694 = vmatpush.bf16.msra.mxu0 %v9323_v60  ;;  %3708 = vmatpush.bf16.msra.mxu1 %v9325_v63  ;;  %v9356_v23 = vor.u32 %v6682_v42, %v6361_v25  ;;  %v6678_v46 = vld [vmem:[#allocation7 + $0x32c] sm:$0xf0]  ;;  %v6073_v6 = vld [vmem:[#allocation7 + $0x130] sm:$0xf0]  ;;  %v9360_v48 = vor.u32 %v6614_v61, %v6071_v16 }
 0x3f3   : > { %12118 = vst [vmem:[#allocation48_spill] sm:$0xff] %v9323_v60  ;;  %3722 = vmatpush.bf16.msra.mxu2 %v9331_v18  ;;  %3736 = vmatpush.bf16.msra.mxu3 %v9333_v49  ;;  %v6674_v14 = vld [vmem:[#allocation7 + $0x314] sm:$0xf]  ;;  %v9362_v21 = vor.u32 %v6678_v46, %v6327_v36  ;;  %v6039_v58 = vld [vmem:[#allocation7 + $0xd0] sm:$0xf]  ;;  %v9366_v47 = vor.u32 %v6610_v54, %v6073_v6 }
 0x3f4   : > { %12119 = vst [vmem:[#allocation49_spill] sm:$0xff] %v9325_v63  ;;  %v6329_v0 = vld [vmem:[#allocation7 + $0x330] sm:$0xf0]  ;;  %v6606_v39 = vld [vmem:[#allocation7 + $0xec] sm:$0xf0] }
 0x3f5   : > { %12120 = vst [vmem:[#allocation50_spill] sm:$0xff] %v9331_v18  ;;  %v9368_v32 = vor.u32 %v6674_v14, %v6329_v0  ;;  %v6295_v7 = vld [vmem:[#allocation7 + $0x2d0] sm:$0xf]  ;;  %v6602_v59 = vld [vmem:[#allocation7 + $0xd4] sm:$0xf]  ;;  %v9372_v16 = vor.u32 %v6606_v39, %v6039_v58 }
 0x3f6   : > { %12121 = vst [vmem:[#allocation51_spill] sm:$0xff] %v9333_v49  ;;  %3695 = vmatpush.bf16.msra.mxu0 %v9348_v52  ;;  %3709 = vmatpush.bf16.msra.mxu1 %v9350_v10  ;;  %v6670_v53 = vld [vmem:[#allocation7 + $0x2ec] sm:$0xf0]  ;;  %v6041_v42 = vld [vmem:[#allocation7 + $0xf0] sm:$0xf0] }
 0x3f7   : > { %12122 = vst [vmem:[#allocation52_spill] sm:$0xff] %v9340_v29  ;;  %3723 = vmatpush.bf16.msra.mxu2 %v9354_v20  ;;  %3737 = vmatpush.bf16.msra.mxu3 %v9356_v23  ;;  %v6666_v25 = vld [vmem:[#allocation7 + $0x2d4] sm:$0xf]  ;;  %v9374_v61 = vor.u32 %v6670_v53, %v6295_v7  ;;  %v6007_v36 = vld [vmem:[#allocation7 + $0x90] sm:$0xf]  ;;  %v9378_v54 = vor.u32 %v6602_v59, %v6041_v42 }
 0x3f8   : > { %12123 = vst [vmem:[#allocation53_spill] sm:$0xff] %v9342_v8  ;;  %v6297_v3 = vld [vmem:[#allocation7 + $0x2f0] sm:$0xf0]  ;;  %v6598_v46 = vld [vmem:[#allocation7 + $0xac] sm:$0xf0] }
 0x3f9   : > { %12124 = vst [vmem:[#allocation55_spill] sm:$0xff] %v9344_v22  ;;  %v9380_v6 = vor.u32 %v6666_v25, %v6297_v3  ;;  %v6263_v14 = vld [vmem:[#allocation7 + $0x290] sm:$0xf]  ;;  %v6594_v34 = vld [vmem:[#allocation7 + $0x94] sm:$0xf]  ;;  %v9388_v3 = vor.u32 %v6598_v46, %v6007_v36 }
 0x3fa   : > { %12125 = vst [vmem:[#allocation58_spill] sm:$0xff] %v9348_v52  ;;  %3696 = vmatpush.bf16.msra.mxu0 %v9360_v48  ;;  %3710 = vmatpush.bf16.msra.mxu1 %v9362_v21  ;;  %v6662_v0 = vld [vmem:[#allocation7 + $0x2ac] sm:$0xf0]  ;;  %v6009_v58 = vld [vmem:[#allocation7 + $0xb0] sm:$0xf0] }
 0x3fb   : > { %12126 = vst [vmem:[#allocation60_spill] sm:$0xff] %v9350_v10  ;;  %3724 = vmatpush.bf16.msra.mxu2 %v9366_v47  ;;  %3738 = vmatpush.bf16.msra.mxu3 %v9368_v32  ;;  %v6658_v39 = vld [vmem:[#allocation7 + $0x294] sm:$0xf]  ;;  %v9390_v53 = vor.u32 %v6662_v0, %v6263_v14  ;;  %v5975_v59 = vld [vmem:[#allocation7 + $0x50] sm:$0xf]  ;;  %v9394_v25 = vor.u32 %v6594_v34, %v6009_v58 }
 0x3fc   : > { %12127 = vst [vmem:[#allocation61_spill] sm:$0xff] %v9354_v20  ;;  %3645 = vmatmul.bf16.vlgmr.msrb.gmra.mxu0 %v9297_v55  ;;  %3659 = vmatmul.bf16.vlgmr.msrb.gmra.mxu1 %v9294_v15  ;;  %v6265_v7 = vld [vmem:[#allocation7 + $0x2b0] sm:$0xf0]  ;;  %v6590_v42 = vld [vmem:[#allocation7 + $0x6c] sm:$0xf0] }
 0x3fd   : > { %12128 = vst [vmem:[#allocation62_spill] sm:$0xff] %v9356_v23  ;;  %3673 = vmatmul.bf16.vlgmr.msrb.gmra.mxu2 %v9297_v55  ;;  %3687 = vmatmul.bf16.vlgmr.msrb.gmra.mxu3 %v9294_v15  ;;  %v9396_v17 = vor.u32 %v6658_v39, %v6265_v7  ;;  %v6231_v24 = vld [vmem:[#allocation7 + $0x250] sm:$0xf]  ;;  %v6586_v8 = vld [vmem:[#allocation7 + $0x54] sm:$0xf]  ;;  %v9400_v46 = vor.u32 %v6590_v42, %v5975_v59 }
 0x3fe   : > { %12129 = vst [vmem:[#allocation63_spill] sm:$0xff] %v9360_v48  ;;  %3697 = vmatpush.bf16.msra.mxu0 %v9372_v16  ;;  %3711 = vmatpush.bf16.msra.mxu1 %v9374_v61  ;;  %v6654_v22 = vld [vmem:[#allocation7 + $0x26c] sm:$0xf0]  ;;  %v6233_v44 = vld [vmem:[#allocation7 + $0x270] sm:$0xf0]  ;;  %v9406_v39 = vor.u32 %v6586_v8, %v5977_v56 }
 0x3ff   : > { %12130 = vst [vmem:[#allocation64_spill] sm:$0xff] %v9362_v21  ;;  %3725 = vmatpush.bf16.msra.mxu2 %v9378_v54  ;;  %3739 = vmatpush.bf16.msra.mxu3 %v9380_v6  ;;  %v5943_v36 = vld [vmem:[#allocation7 + $0x10] sm:$0xf]  ;;  %v9402_v14 = vor.u32 %v6654_v22, %v6231_v24  ;;  %v9408_v7 = vor.u32 %v6650_v50, %v6233_v44  ;;  %v6578_v29 = vld [vmem:[#allocation7 + $0x14] sm:$0xf] }
 0x400   : > { %12131 = vst [vmem:[#allocation65_spill] sm:$0xff] %v9366_v47  ;;  %v6582_v0 = vld [vmem:[#allocation7 + $0x2c] sm:$0xf0]  ;;  %v6639_v59 = vld [vmem:[#allocation7 + $0x1f4] sm:$0xf0] }
 0x401   : > { %12132 = vst [vmem:[#allocation66_spill] sm:$0xff] %v9368_v32  ;;  %v6199_v34 = vld [vmem:[#allocation7 + $0x210] sm:$0xf]  ;;  %v6431_v42 = vld [vmem:[#allocation7 + $0x3d8] sm:$0xf] }
 0x402   : > { %12133 = vst [vmem:[#allocation67_spill] sm:$0xff] %v9372_v16  ;;  %3698 = vmatpush.bf16.msra.mxu0 %v9388_v3  ;;  %3712 = vmatpush.bf16.msra.mxu1 %v9390_v53  ;;  %v6646_v58 = vld [vmem:[#allocation7 + $0x22c] sm:$0xf0]  ;;  %v6703_v24 = vld [vmem:[#allocation7 + $0x3f4] sm:$0xf0] }
 0x403   : > { %12134 = vst [vmem:[#allocation68_spill] sm:$0xff] %v9374_v61  ;;  %3726 = vmatpush.bf16.msra.mxu2 %v9394_v25  ;;  %3740 = vmatpush.bf16.msra.mxu3 %v9396_v17  ;;  %v6635_v22 = vld [vmem:[#allocation7 + $0x1dc] sm:$0xf]  ;;  %v6695_v32 = vld [vmem:[#allocation7 + $0x3b4] sm:$0xf0] }
 0x404   : > { %12135 = vst [vmem:[#allocation69_spill] sm:$0xff] %v9378_v54  ;;  %v6201_v54 = vld [vmem:[#allocation7 + $0x230] sm:$0xf0]  ;;  %v6177_v56 = vld [vmem:[#allocation7 + $0x1f8] sm:$0xf0] }
 0x405   : > { %12136 = vst [vmem:[#allocation70_spill] sm:$0xff] %v9380_v6  ;;  %v5945_v6 = vld [vmem:[#allocation7 + $0x30] sm:$0xf0]  ;;  %v6699_v50 = vld [vmem:[#allocation7 + $0x3dc] sm:$0xf] }
 0x406   : > { %12137 = vst [vmem:[#allocation71_spill] sm:$0xff] %v9388_v3  ;;  %v6642_v3 = vld [vmem:[#allocation7 + $0x214] sm:$0xf]  ;;  %3699 = vmatpush.bf16.msra.mxu0 %v9400_v46  ;;  %3713 = vmatpush.bf16.msra.mxu1 %v9402_v14  ;;  %v6433_v44 = vld [vmem:[#allocation7 + $0x3f8] sm:$0xf0]  ;;  %v9418_v8 = vor.u32 %v6578_v29, %v5945_v6 }
 0x407   : > { %12138 = vst [vmem:[#allocation72_spill] sm:$0xff] %v9390_v53  ;;  %v6175_v53 = vld [vmem:[#allocation7 + $0x1d8] sm:$0xf]  ;;  %3727 = vmatpush.bf16.msra.mxu2 %v9406_v39  ;;  %3741 = vmatpush.bf16.msra.mxu3 %v9408_v7  ;;  %v9420_v61 = vor.u32 %v6642_v3, %v6201_v54  ;;  %v6627_v47 = vld [vmem:[#allocation7 + $0x19c] sm:$0xf] }
 0x408   : > { %12139 = vst [vmem:[#allocation73_spill] sm:$0xff] %v9394_v25  ;;  %v9412_v25 = vor.u32 %v6582_v0, %v5943_v36  ;;  %v9422_v16 = vor.u32 %v6639_v59, %v6175_v53  ;;  %v6631_v36 = vld [vmem:[#allocation7 + $0x1b4] sm:$0xf0]  ;;  %v9426_v0 = vor.u32 %v6635_v22, %v6177_v56  ;;  %v6145_v29 = vld [vmem:[#allocation7 + $0x1b8] sm:$0xf0] }
 0x409   : > { %12140 = vst [vmem:[#allocation75_spill] sm:$0xff] %v9396_v17  ;;  %v9414_v17 = vor.u32 %v6646_v58, %v6199_v34  ;;  %v9428_v34 = vor.u32 %v6699_v50, %v6433_v44  ;;  %v6399_v58 = vld [vmem:[#allocation7 + $0x398] sm:$0xf]  ;;  %v6691_v54 = vld [vmem:[#allocation7 + $0x39c] sm:$0xf] }
 0x40a   : > { %12141 = vst [vmem:[#allocation56_spill] sm:$0xff] %v9400_v46  ;;  %v9424_v46 = vor.u32 %v6703_v24, %v6431_v42  ;;  %3700 = vmatpush.bf16.msra.mxu0 %v9412_v25  ;;  %v6401_v6 = vld [vmem:[#allocation7 + $0x3b8] sm:$0xf0]  ;;  %v9438_v53 = vor.u32 %v6695_v32, %v6399_v58  ;;  %v6111_v59 = vld [vmem:[#allocation7 + $0x158] sm:$0xf]  ;;  %v9442_v24 = vor.u32 %v6627_v47, %v6145_v29 }
 0x40b   : > { %12142 = vst [vmem:[#allocation57_spill] sm:$0xff] %v9402_v14  ;;  %v6143_v14 = vld [vmem:[#allocation7 + $0x198] sm:$0xf]  ;;  %3714 = vmatpush.bf16.msra.mxu1 %v9414_v17  ;;  %3728 = vmatpush.bf16.msra.mxu2 %v9418_v8  ;;  %v9444_v22 = vor.u32 %v6691_v54, %v6401_v6  ;;  %v6619_v44 = vld [vmem:[#allocation7 + $0x15c] sm:$0xf] }
 0x40c   : > { %12143 = vst [vmem:[#allocation59_spill] sm:$0xff] %v9406_v39  ;;  %3742 = vmatpush.bf16.msra.mxu3 %v9420_v61  ;;  %v9436_v3 = vor.u32 %v6631_v36, %v6143_v14  ;;  %v6623_v42 = vld [vmem:[#allocation7 + $0x174] sm:$0xf0]  ;;  %v6113_v14 = vld [vmem:[#allocation7 + $0x178] sm:$0xf0] }
 0x40d   : > { %12144 = vst [vmem:[#allocation167_spill] sm:$0xff] %v9408_v7  ;;  %v6367_v56 = vld [vmem:[#allocation7 + $0x358] sm:$0xf]  ;;  %3701 = vmatmul.bf16.vlgmr.msra.gmra.mxu0 %v9297_v55  ;;  %v6683_v32 = vld [vmem:[#allocation7 + $0x35c] sm:$0xf]  ;;  %v9452_v47 = vor.u32 %v6623_v42, %v6111_v59  ;;  %v9458_v6 = vor.u32 %v6619_v44, %v6113_v14 }
 0x40e   : > { %12145 = vst [vmem:[#allocation99_spill] sm:$0xff] %v9412_v25  ;;  %3749 = vmatpush.bf16.msrb.mxu0 %v9422_v16  ;;  %v6687_v50 = vld [vmem:[#allocation7 + $0x374] sm:$0xf0]  ;;  %3715 = vmatmul.bf16.vlgmr.msra.gmra.mxu1 %v9294_v15  ;;  %v6369_v36 = vld [vmem:[#allocation7 + $0x378] sm:$0xf0] }
 0x40f   : > { %12146 = vst [vmem:[#allocation100_spill] sm:$0xff] %v9414_v17  ;;  %3763 = vmatpush.bf16.msrb.mxu1 %v9424_v46  ;;  %3777 = vmatpush.bf16.msrb.mxu2 %v9426_v0  ;;  %v9454_v58 = vor.u32 %v6687_v50, %v6367_v56  ;;  %v6079_v29 = vld [vmem:[#allocation7 + $0x118] sm:$0xf] }
 0x410   : > { %12147 = vst [vmem:[#allocation101_spill] sm:$0xff] %v9418_v8  ;;  %3791 = vmatpush.bf16.msrb.mxu3 %v9428_v34  ;;  %3729 = vmatmul.bf16.vlgmr.msra.gmra.mxu2 %v9297_v55  ;;  %v6615_v54 = vld [vmem:[#allocation7 + $0x134] sm:$0xf0] }
 0x411   : > { %12148 = vst [vmem:[#allocation108_spill] sm:$0xff] %v9420_v61  ;;  %3743 = vmatmul.bf16.vlgmr.msra.gmra.mxu3 %v9294_v15  ;;  %v6675_v61 = vld [vmem:[#allocation7 + $0x31c] sm:$0xf]  ;;  %v9464_v59 = vor.u32 %v6615_v54, %v6079_v29  ;;  %v6047_v56 = vld [vmem:[#allocation7 + $0xd8] sm:$0xf] }
 0x412   : > { %12149 = vst [vmem:[#allocation109_spill] sm:$0xff] %v9422_v16  ;;  %3750 = vmatpush.bf16.msrb.mxu0 %v9436_v3  ;;  %v6611_v16 = vld [vmem:[#allocation7 + $0x11c] sm:$0xf]  ;;  %v6607_v50 = vld [vmem:[#allocation7 + $0xf4] sm:$0xf0] }
 0x413   : > { %12150 = vst [vmem:[#allocation110_spill] sm:$0xff] %v9424_v46  ;;  %3764 = vmatpush.bf16.msrb.mxu1 %v9438_v53  ;;  %3778 = vmatpush.bf16.msrb.mxu2 %v9442_v24  ;;  %v6679_v46 = vld [vmem:[#allocation7 + $0x334] sm:$0xf0] }
 0x414   : > { %12151 = vst [vmem:[#allocation111_spill] sm:$0xff] %v9426_v0  ;;  %3792 = vmatpush.bf16.msrb.mxu3 %v9444_v22  ;;  %v6335_v0 = vld [vmem:[#allocation7 + $0x318] sm:$0xf] }
 0x415   : > { %12152 = vst [vmem:[#allocation112_spill] sm:$0xff] %v9428_v34  ;;  %v9460_v34 = vor.u32 %v6683_v32, %v6369_v36  ;;  %v9466_v42 = vor.u32 %v6679_v46, %v6335_v0  ;;  %v6303_v32 = vld [vmem:[#allocation7 + $0x2d8] sm:$0xf]  ;;  %v9476_v46 = vor.u32 %v6607_v50, %v6047_v56 }
 0x416   : > { %12153 = vst [vmem:[#allocation113_spill] sm:$0xff] %v9436_v3  ;;  %v6081_v3 = vld [vmem:[#allocation7 + $0x138] sm:$0xf0]  ;;  %3751 = vmatpush.bf16.msrb.mxu0 %v9452_v47  ;;  %v6671_v36 = vld [vmem:[#allocation7 + $0x2f4] sm:$0xf0] }
 0x417   : > { %12154 = vst [vmem:[#allocation114_spill] sm:$0xff] %v9438_v53  ;;  %v6337_v53 = vld [vmem:[#allocation7 + $0x338] sm:$0xf0]  ;;  %3765 = vmatpush.bf16.msrb.mxu1 %v9454_v58  ;;  %3779 = vmatpush.bf16.msrb.mxu2 %v9458_v6  ;;  %v9470_v44 = vor.u32 %v6611_v16, %v6081_v3  ;;  %v9478_v0 = vor.u32 %v6671_v36, %v6303_v32  ;;  %v6015_v29 = vld [vmem:[#allocation7 + $0x98] sm:$0xf] }
 0x418   : > { %12155 = vst [vmem:[#allocation115_spill] sm:$0xff] %v9442_v24  ;;  %3793 = vmatpush.bf16.msrb.mxu3 %v9460_v34  ;;  %v9472_v14 = vor.u32 %v6675_v61, %v6337_v53  ;;  %v6667_v24 = vld [vmem:[#allocation7 + $0x2dc] sm:$0xf]  ;;  %v6599_v54 = vld [vmem:[#allocation7 + $0xb4] sm:$0xf0] }
 0x419   : > { %12156 = vst [vmem:[#allocation116_spill] sm:$0xff] %v9444_v22  ;;  %v6603_v22 = vld [vmem:[#allocation7 + $0xdc] sm:$0xf]  ;;  %v6271_v3 = vld [vmem:[#allocation7 + $0x298] sm:$0xf]  ;;  %v9488_v56 = vor.u32 %v6599_v54, %v6015_v29 }
 0x41a   : > { %12157 = vst [vmem:[#allocation117_spill] sm:$0xff] %v9452_v47  ;;  %v6049_v47 = vld [vmem:[#allocation7 + $0xf8] sm:$0xf0]  ;;  %3752 = vmatpush.bf16.msrb.mxu0 %v9464_v59  ;;  %v6663_v53 = vld [vmem:[#allocation7 + $0x2b4] sm:$0xf0] }
 0x41b   : > { %12158 = vst [vmem:[#allocation118_spill] sm:$0xff] %v9454_v58  ;;  %v6305_v58 = vld [vmem:[#allocation7 + $0x2f8] sm:$0xf0]  ;;  %3766 = vmatpush.bf16.msrb.mxu1 %v9466_v42  ;;  %3780 = vmatpush.bf16.msrb.mxu2 %v9470_v44  ;;  %v9482_v16 = vor.u32 %v6603_v22, %v6049_v47  ;;  %v9490_v50 = vor.u32 %v6663_v53, %v6271_v3  ;;  %v5983_v32 = vld [vmem:[#allocation7 + $0x58] sm:$0xf] }
 0x41c   : > { %12159 = vst [vmem:[#allocation119_spill] sm:$0xff] %v9458_v6  ;;  %3794 = vmatpush.bf16.msrb.mxu3 %v9472_v14  ;;  %v9484_v61 = vor.u32 %v6667_v24, %v6305_v58  ;;  %v6659_v6 = vld [vmem:[#allocation7 + $0x29c] sm:$0xf]  ;;  %v6591_v36 = vld [vmem:[#allocation7 + $0x74] sm:$0xf0] }
 0x41d   : > { %12160 = vst [vmem:[#allocation120_spill] sm:$0xff] %v9460_v34  ;;  %v6595_v34 = vld [vmem:[#allocation7 + $0x9c] sm:$0xf]  ;;  %v6239_v47 = vld [vmem:[#allocation7 + $0x258] sm:$0xf]  ;;  %v9500_v29 = vor.u32 %v6591_v36, %v5983_v32 }
 0x41e   : > { %12161 = vst [vmem:[#allocation121_spill] sm:$0xff] %v9464_v59  ;;  %v6017_v59 = vld [vmem:[#allocation7 + $0xb8] sm:$0xf0]  ;;  %3753 = vmatpush.bf16.msrb.mxu0 %v9476_v46  ;;  %v6655_v58 = vld [vmem:[#allocation7 + $0x274] sm:$0xf0] }
 0x41f   : > { %12162 = vst [vmem:[#allocation122_spill] sm:$0xff] %v9466_v42  ;;  %v6273_v42 = vld [vmem:[#allocation7 + $0x2b8] sm:$0xf0]  ;;  %3767 = vmatpush.bf16.msrb.mxu1 %v9478_v0  ;;  %3781 = vmatpush.bf16.msrb.mxu2 %v9482_v16  ;;  %v9494_v24 = vor.u32 %v6595_v34, %v6017_v59  ;;  %v9502_v54 = vor.u32 %v6655_v58, %v6239_v47  ;;  %v5951_v3 = vld [vmem:[#allocation7 + $0x18] sm:$0xf]  ;;  %v12189_v47 = vld [vmem:[#allocation150_spill] sm:$0xff] }
 0x420   : > { %12163 = vst [vmem:[#allocation123_spill] sm:$0xff] %v9470_v44  ;;  %3795 = vmatpush.bf16.msrb.mxu3 %v9484_v61  ;;  %v9496_v22 = vor.u32 %v6659_v6, %v6273_v42  ;;  %v6651_v44 = vld [vmem:[#allocation7 + $0x25c] sm:$0xf]  ;;  %v6583_v53 = vld [vmem:[#allocation7 + $0x34] sm:$0xf0] }
 0x421   : > { %12164 = vst [vmem:[#allocation124_spill] sm:$0xff] %v9472_v14  ;;  %v6587_v14 = vld [vmem:[#allocation7 + $0x5c] sm:$0xf]  ;;  %v6207_v59 = vld [vmem:[#allocation7 + $0x218] sm:$0xf]  ;;  %v9512_v32 = vor.u32 %v6583_v53, %v5951_v3  ;;  %v12191_v3 = vld [vmem:[#allocation137_spill] sm:$0xff] }
 0x422   : > { %12165 = vst [vmem:[#allocation125_spill] sm:$0xff] %v9476_v46  ;;  %v5985_v46 = vld [vmem:[#allocation7 + $0x78] sm:$0xf0]  ;;  %3754 = vmatpush.bf16.msrb.mxu0 %v9488_v56  ;;  %v6647_v42 = vld [vmem:[#allocation7 + $0x234] sm:$0xf0]  ;;  %v12192_v53 = vld [vmem:[#allocation152_spill] sm:$0xff] }
 0x423   : > { %12166 = vst [vmem:[#allocation126_spill] sm:$0xff] %v9478_v0  ;;  %v6241_v0 = vld [vmem:[#allocation7 + $0x278] sm:$0xf0]  ;;  %3768 = vmatpush.bf16.msrb.mxu1 %v9490_v50  ;;  %3782 = vmatpush.bf16.msrb.mxu2 %v9494_v24  ;;  %v9506_v34 = vor.u32 %v6587_v14, %v5985_v46  ;;  %v9514_v36 = vor.u32 %v6647_v42, %v6207_v59  ;;  %v12181_v46 = vld [vmem:[#allocation106_spill] sm:$0xff]  ;;  %v12193_v59 = vld [vmem:[#allocation165_spill] sm:$0xff] }
 0x424   : > { %12167 = vst [vmem:[#allocation127_spill] sm:$0xff] %v9482_v16  ;;  %3796 = vmatpush.bf16.msrb.mxu3 %v9496_v22  ;;  %v9508_v6 = vor.u32 %v6651_v44, %v6241_v0  ;;  %v6643_v16 = vld [vmem:[#allocation7 + $0x21c] sm:$0xf]  ;;  %v12194_v42 = vld [vmem:[#allocation166_spill] sm:$0xff] }
 0x425   : > { %12168 = vst [vmem:[#allocation128_spill] sm:$0xff] %v9484_v61  ;;  %v6579_v61 = vld [vmem:[#allocation7 + $0x1c] sm:$0xf] }
 0x426   : > { %12169 = vst [vmem:[#allocation131_spill] sm:$0xff] %v9488_v56  ;;  %v5953_v56 = vld [vmem:[#allocation7 + $0x38] sm:$0xf0]  ;;  %3755 = vmatpush.bf16.msrb.mxu0 %v9500_v29 }
 0x427   : > { %12170 = vst [vmem:[#allocation132_spill] sm:$0xff] %v9490_v50  ;;  %v6209_v50 = vld [vmem:[#allocation7 + $0x238] sm:$0xf0]  ;;  %3769 = vmatpush.bf16.msrb.mxu1 %v9502_v54  ;;  %3783 = vmatpush.bf16.msrb.mxu2 %v9506_v34  ;;  %v9518_v44 = vor.u32 %v6579_v61, %v5953_v56  ;;  %v12186_v61 = vld [vmem:[#allocation156_spill] sm:$0xff]  ;;  %v12187_v56 = vld [vmem:[#allocation129_spill] sm:$0xff] }
 0x428   : > { %12171 = vst [vmem:[#allocation133_spill] sm:$0xff] %v9494_v24  ;;  %3797 = vmatpush.bf16.msrb.mxu3 %v9508_v6  ;;  %v9520_v14 = vor.u32 %v6643_v16, %v6209_v50  ;;  %v12182_v0 = vld [vmem:[#allocation163_spill] sm:$0xff]  ;;  %v12185_v16 = vld [vmem:[#allocation97_spill] sm:$0xff] }
 0x429   : > { %12172 = vst [vmem:[#allocation134_spill] sm:$0xff] %v9496_v22  ;;  %v12188_v50 = vld [vmem:[#allocation145_spill] sm:$0xff]  ;;  %v12190_v58 = vld [vmem:[#allocation151_spill] sm:$0xff] }
 0x42a   : > { %12173 = vst [vmem:[#allocation135_spill] sm:$0xff] %v9500_v29  ;;  %3756 = vmatpush.bf16.msrb.mxu0 %v9512_v32 }
 0x42b   : > { %12174 = vst [vmem:[#allocation136_spill] sm:$0xff] %v9502_v54  ;;  %3770 = vmatpush.bf16.msrb.mxu1 %v9514_v36  ;;  %3784 = vmatpush.bf16.msrb.mxu2 %v9518_v44 }
 0x42c   : > { %12175 = vst [vmem:[#allocation138_spill] sm:$0xff] %v9506_v34  ;;  %3798 = vmatpush.bf16.msrb.mxu3 %v9520_v14 }
 0x42d   : > { %12176 = vst [vmem:[#allocation139_spill] sm:$0xff] %v9508_v6  ;;  %3757 = vmatmul.bf16.vlgmr.msrb.gmra.mxu0 %v9297_v55 }
 0x42e   : > { %12177 = vst [vmem:[#allocation140_spill] sm:$0xff] %v9512_v32  ;;  %3815 = vmatpush.bf16.msra.mxu0 %v8955_v13  ;;  %3771 = vmatmul.bf16.vlgmr.msrb.gmra.mxu1 %v9294_v15 }
 0x42f   : > { %12178 = vst [vmem:[#allocation141_spill] sm:$0xff] %v9514_v36  ;;  %3829 = vmatpush.bf16.msra.mxu1 %v8959_v35  ;;  %3843 = vmatpush.bf16.msra.mxu2 %v8961_v4 }
 0x430   : > { %12179 = vst [vmem:[#allocation142_spill] sm:$0xff] %v9518_v44  ;;  %3857 = vmatpush.bf16.msra.mxu3 %v8974_v30  ;;  %3785 = vmatmul.bf16.vlgmr.msrb.gmra.mxu2 %v9297_v55  ;;  %v12183_v55 = vld [vmem:[#allocation154_spill] sm:$0xff] }
 0x431   : > { %12180 = vst [vmem:[#allocation143_spill] sm:$0xff] %v9520_v14  ;;  %3799 = vmatmul.bf16.vlgmr.msrb.gmra.mxu3 %v9294_v15  ;;  %v12184_v15 = vld [vmem:[#allocation155_spill] sm:$0xff] }
 0x432   : > { %3816 = vmatpush.bf16.msra.mxu0 %v8982_v51 }
 0x433   : > { %3830 = vmatpush.bf16.msra.mxu1 %v8988_v5  ;;  %3844 = vmatpush.bf16.msra.mxu2 %v8990_v40 }
 0x434   : > { %3858 = vmatpush.bf16.msra.mxu3 %v8992_v12 }
 0x436   : > { %3817 = vmatpush.bf16.msra.mxu0 %v12181_v46 }
 0x437   : > { %3831 = vmatpush.bf16.msra.mxu1 %v9000_v11  ;;  %3845 = vmatpush.bf16.msra.mxu2 %v12182_v0 }
 0x438   : > { %3859 = vmatpush.bf16.msra.mxu3 %v9012_v19 }
 0x43a   : > { %3818 = vmatpush.bf16.msra.mxu0 %v9014_v33 }
 0x43b   : > { %3832 = vmatpush.bf16.msra.mxu1 %v12183_v55  ;;  %3846 = vmatpush.bf16.msra.mxu2 %v12184_v15 }
 0x43c   : > { %3860 = vmatpush.bf16.msra.mxu3 %v12185_v16 }
 0x43e   : > { %3819 = vmatpush.bf16.msra.mxu0 %v12186_v61  ;;  %v12195_v61 = vld [vmem:[#allocation153_spill] sm:$0xff] }
 0x43f   : > { %3833 = vmatpush.bf16.msra.mxu1 %v12187_v56  ;;  %3847 = vmatpush.bf16.msra.mxu2 %v12188_v50  ;;  %v12196_v56 = vld [vmem:[#allocation16_spill] sm:$0xff]  ;;  %v12197_v50 = vld [vmem:[#allocation90_spill] sm:$0xff] }
 0x440   : > { %3861 = vmatpush.bf16.msra.mxu3 %v9054_v1  ;;  %v12198_v1 = vld [vmem:[#allocation17_spill] sm:$0xff] }
 0x442   : > { %3820 = vmatpush.bf16.msra.mxu0 %v12189_v47  ;;  %v12199_v47 = vld [vmem:[#allocation18_spill] sm:$0xff] }
 0x443   : > { %3834 = vmatpush.bf16.msra.mxu1 %v9063_v28  ;;  %3848 = vmatpush.bf16.msra.mxu2 %v12190_v58  ;;  %v12200_v28 = vld [vmem:[#allocation54_spill] sm:$0xff]  ;;  %v12201_v58 = vld [vmem:[#allocation19_spill] sm:$0xff] }
 0x444   : > { %3862 = vmatpush.bf16.msra.mxu3 %v12191_v3  ;;  %v12202_v3 = vld [vmem:[#allocation20_spill] sm:$0xff] }
 0x446   : > { %3821 = vmatpush.bf16.msra.mxu0 %v12192_v53  ;;  %v12203_v53 = vld [vmem:[#allocation91_spill] sm:$0xff] }
 0x447   : > { %3835 = vmatpush.bf16.msra.mxu1 %v12193_v59  ;;  %3849 = vmatpush.bf16.msra.mxu2 %v12194_v42  ;;  %v12213_v42 = vld [vmem:[#allocation28_spill] sm:$0xff]  ;;  %v12214_v59 = vld [vmem:[#allocation146_spill] sm:$0xff] }
 0x448   : > { %3863 = vmatpush.bf16.msra.mxu3 %v12195_v61  ;;  %v12212_v61 = vld [vmem:[#allocation95_spill] sm:$0xff] }
 0x44a   : > { %3822 = vmatpush.bf16.msra.mxu0 %v12196_v56  ;;  %v12211_v56 = vld [vmem:[#allocation27_spill] sm:$0xff] }
 0x44b   : > { %3836 = vmatpush.bf16.msra.mxu1 %v12197_v50  ;;  %3850 = vmatpush.bf16.msra.mxu2 %v12198_v1  ;;  %v12204_v50 = vld [vmem:[#allocation21_spill] sm:$0xff]  ;;  %v12205_v1 = vld [vmem:[#allocation22_spill] sm:$0xff] }
 0x44c   : > { %3864 = vmatpush.bf16.msra.mxu3 %v12199_v47  ;;  %v12206_v47 = vld [vmem:[#allocation23_spill] sm:$0xff] }
 0x44d   : > { %3823 = vmatmul.bf16.vlgmr.msra.gmra.mxu0 %v9335_v26 }
 0x44e   : > { %3871 = vmatpush.bf16.msrb.mxu0 %v12200_v28  ;;  %3837 = vmatmul.bf16.vlgmr.msra.gmra.mxu1 %v9337_v27  ;;  %v12207_v28 = vld [vmem:[#allocation94_spill] sm:$0xff] }
 0x44f   : > { %3885 = vmatpush.bf16.msrb.mxu1 %v12201_v58  ;;  %3899 = vmatpush.bf16.msrb.mxu2 %v12202_v3  ;;  %v12208_v58 = vld [vmem:[#allocation24_spill] sm:$0xff]  ;;  %v12209_v3 = vld [vmem:[#allocation25_spill] sm:$0xff] }
 0x450   : > { %3913 = vmatpush.bf16.msrb.mxu3 %v12203_v53  ;;  %3851 = vmatmul.bf16.vlgmr.msra.gmra.mxu2 %v9335_v26  ;;  %v12210_v53 = vld [vmem:[#allocation26_spill] sm:$0xff] }
 0x451   : > { %3865 = vmatmul.bf16.vlgmr.msra.gmra.mxu3 %v9337_v27 }
 0x452   : > { %3872 = vmatpush.bf16.msrb.mxu0 %v12204_v50  ;;  %v12215_v50 = vld [vmem:[#allocation29_spill] sm:$0xff] }
 0x453   : > { %3886 = vmatpush.bf16.msrb.mxu1 %v12205_v1  ;;  %3900 = vmatpush.bf16.msrb.mxu2 %v12206_v47  ;;  %v12216_v1 = vld [vmem:[#allocation30_spill] sm:$0xff]  ;;  %v12217_v47 = vld [vmem:[#allocation31_spill] sm:$0xff] }
 0x454   : > { %3914 = vmatpush.bf16.msrb.mxu3 %v12207_v28  ;;  %v12218_v28 = vld [vmem:[#allocation32_spill] sm:$0xff] }
 0x456   : > { %3873 = vmatpush.bf16.msrb.mxu0 %v12208_v58  ;;  %v12219_v58 = vld [vmem:[#allocation147_spill] sm:$0xff] }
 0x457   : > { %3887 = vmatpush.bf16.msrb.mxu1 %v12209_v3  ;;  %3901 = vmatpush.bf16.msrb.mxu2 %v12210_v53  ;;  %v12220_v3 = vld [vmem:[#allocation33_spill] sm:$0xff]  ;;  %v12221_v53 = vld [vmem:[#allocation34_spill] sm:$0xff] }
 0x458   : > { %3915 = vmatpush.bf16.msrb.mxu3 %v12211_v56  ;;  %v12222_v56 = vld [vmem:[#allocation35_spill] sm:$0xff] }
 0x45a   : > { %3874 = vmatpush.bf16.msrb.mxu0 %v12212_v61  ;;  %v12223_v61 = vld [vmem:[#allocation148_spill] sm:$0xff] }
 0x45b   : > { %3888 = vmatpush.bf16.msrb.mxu1 %v12213_v42  ;;  %3902 = vmatpush.bf16.msrb.mxu2 %v12214_v59  ;;  %v12224_v42 = vld [vmem:[#allocation36_spill] sm:$0xff]  ;;  %v12225_v59 = vld [vmem:[#allocation37_spill] sm:$0xff] }
 0x45c   : > { %3916 = vmatpush.bf16.msrb.mxu3 %v12215_v50 }
 0x45e   : > { %3875 = vmatpush.bf16.msrb.mxu0 %v12216_v1 }
 0x45f   : > { %3889 = vmatpush.bf16.msrb.mxu1 %v12217_v47  ;;  %3903 = vmatpush.bf16.msrb.mxu2 %v12218_v28 }
 0x460   : > { %3917 = vmatpush.bf16.msrb.mxu3 %v12219_v58 }
 0x462   : > { %3876 = vmatpush.bf16.msrb.mxu0 %v12220_v3 }
 0x463   : > { %3890 = vmatpush.bf16.msrb.mxu1 %v12221_v53  ;;  %3904 = vmatpush.bf16.msrb.mxu2 %v12222_v56 }
 0x464   : > { %3918 = vmatpush.bf16.msrb.mxu3 %v12223_v61 }
 0x466   : > { %3877 = vmatpush.bf16.msrb.mxu0 %v12224_v42 }
 0x467   : > { %3891 = vmatpush.bf16.msrb.mxu1 %v12225_v59  ;;  %3905 = vmatpush.bf16.msrb.mxu2 %v9194_v57 }
 0x468   : > { %3919 = vmatpush.bf16.msrb.mxu3 %v9199_v62 }
 0x46a   : > { %3878 = vmatpush.bf16.msrb.mxu0 %v9216_v2  ;;  %v12232_v2 = vld [vmem:[#allocation71_spill] sm:$0xff] }
 0x46b   : > { %3892 = vmatpush.bf16.msrb.mxu1 %v9218_v37  ;;  %3906 = vmatpush.bf16.msrb.mxu2 %v9220_v43  ;;  %v9606_v37 = vpop.f32.mrf.mxu0  ;;  %v9608_v43 = vpop.f32.mrf.mxu1 }
 0x46c   : > { %3920 = vmatpush.bf16.msrb.mxu3 %v9226_v41 }
 0x46d   : > { %3879 = vmatmul.bf16.vlgmr.msrb.gmra.mxu0 %v9335_v26 }
 0x46e   : > { %3927 = vmatpush.bf16.msra.mxu0 %v9283_v38  ;;  %3893 = vmatmul.bf16.vlgmr.msrb.gmra.mxu1 %v9337_v27 }
 0x46f   : > { %3941 = vmatpush.bf16.msra.mxu1 %v9287_v31  ;;  %3955 = vmatpush.bf16.msra.mxu2 %v9289_v45 }
 0x470   : > { %3969 = vmatpush.bf16.msra.mxu3 %v9305_v9  ;;  %3907 = vmatmul.bf16.vlgmr.msrb.gmra.mxu2 %v9335_v26  ;;  %v9618_v9 = vpop.f32.mrf.mxu2  ;;  %v9620_v45 = vpop.f32.mrf.mxu3 }
 0x471   : > { %3921 = vmatmul.bf16.vlgmr.msrb.gmra.mxu3 %v9337_v27 }
 0x472   : > { %3928 = vmatpush.bf16.msra.mxu0 %v9323_v60 }
 0x473   : > { %3942 = vmatpush.bf16.msra.mxu1 %v9325_v63  ;;  %3956 = vmatpush.bf16.msra.mxu2 %v9331_v18  ;;  %v9622_v31 = vpop.f32.mrf.mxu0  ;;  %v9624_v60 = vpop.f32.mrf.mxu1  ;;  %v12231_v18 = vld [vmem:[#allocation70_spill] sm:$0xff] }
 0x474   : > { %3970 = vmatpush.bf16.msra.mxu3 %v9333_v49  ;;  %v12226_v49 = vld [vmem:[#allocation65_spill] sm:$0xff] }
 0x476   : > { %3929 = vmatpush.bf16.msra.mxu0 %v9348_v52  ;;  %v12227_v52 = vld [vmem:[#allocation66_spill] sm:$0xff] }
 0x477   : > { %3943 = vmatpush.bf16.msra.mxu1 %v9350_v10  ;;  %3957 = vmatpush.bf16.msra.mxu2 %v9354_v20  ;;  %v12228_v10 = vld [vmem:[#allocation67_spill] sm:$0xff]  ;;  %v12229_v20 = vld [vmem:[#allocation68_spill] sm:$0xff] }
 0x478   : > { %3971 = vmatpush.bf16.msra.mxu3 %v9356_v23  ;;  %v12230_v23 = vld [vmem:[#allocation69_spill] sm:$0xff]  ;;  %v9634_v63 = vpop.f32.mrf.mxu2  ;;  %v9636_v38 = vpop.f32.mrf.mxu3 }
 0x47a   : > { %3930 = vmatpush.bf16.msra.mxu0 %v9360_v48 }
 0x47b   : > { %3944 = vmatpush.bf16.msra.mxu1 %v9362_v21  ;;  %3958 = vmatpush.bf16.msra.mxu2 %v12226_v49  ;;  %v3646_v41 = vpop.f32.mrf.mxu0  ;;  %v3660_v48 = vpop.f32.mrf.mxu1  ;;  %v12233_v21 = vld [vmem:[#allocation72_spill] sm:$0xff] }
 0x47c   : > { %3972 = vmatpush.bf16.msra.mxu3 %v12227_v52  ;;  %v9640_v49 = vadd.f32 %v3660_v48, %v3646_v41  ;;  %v12234_v52 = vld [vmem:[#allocation73_spill] sm:$0xff]  ;;  %v12239_v48 = vld [vmem:[#allocation108_spill] sm:$0xff] }
 0x47e   : > { %3931 = vmatpush.bf16.msra.mxu0 %v12228_v10  ;;  %v12235_v10 = vld [vmem:[#allocation75_spill] sm:$0xff] }
 0x47f   : > { %3945 = vmatpush.bf16.msra.mxu1 %v12229_v20  ;;  %3959 = vmatpush.bf16.msra.mxu2 %v12230_v23  ;;  %v12236_v20 = vld [vmem:[#allocation56_spill] sm:$0xff]  ;;  %v12237_v23 = vld [vmem:[#allocation57_spill] sm:$0xff] }
 0x480   : > { %3973 = vmatpush.bf16.msra.mxu3 %v12231_v18  ;;  %v3674_v18 = vpop.f32.mrf.mxu2  ;;  %v3688_v62 = vpop.f32.mrf.mxu3 }
 0x481   : > { %v9648_v57 = vadd.f32 %v3688_v62, %v3674_v18  ;;  %v12243_v62 = vld [vmem:[#allocation112_spill] sm:$0xff]  ;;  %v12244_v18 = vld [vmem:[#allocation113_spill] sm:$0xff] }
 0x482   : > { %3932 = vmatpush.bf16.msra.mxu0 %v12232_v2 }
 0x483   : > { %3946 = vmatpush.bf16.msra.mxu1 %v12233_v21  ;;  %3960 = vmatpush.bf16.msra.mxu2 %v12234_v52  ;;  %12238 = vst [vmem:[#allocation144_spill] sm:$0xff] %v9648_v57  ;;  %v9650_v2 = vpop.f32.mrf.mxu0  ;;  %v9652_v41 = vpop.f32.mrf.mxu1  ;;  %v12252_v52 = vld [vmem:[#allocation119_spill] sm:$0xff] }
 0x484   : > { %3974 = vmatpush.bf16.msra.mxu3 %v12235_v10 }
 0x486   : > { %3933 = vmatpush.bf16.msra.mxu0 %v12236_v20  ;;  %v12251_v20 = vld [vmem:[#allocation118_spill] sm:$0xff] }
 0x487   : > { %3947 = vmatpush.bf16.msra.mxu1 %v12237_v23  ;;  %3961 = vmatpush.bf16.msra.mxu2 %v9406_v39  ;;  %v12240_v23 = vld [vmem:[#allocation109_spill] sm:$0xff]  ;;  %v12241_v39 = vld [vmem:[#allocation110_spill] sm:$0xff] }
 0x488   : > { %3975 = vmatpush.bf16.msra.mxu3 %v9408_v7  ;;  %v12242_v7 = vld [vmem:[#allocation111_spill] sm:$0xff] }
 0x48a   : > { %3934 = vmatpush.bf16.msra.mxu0 %v9412_v25  ;;  %v12250_v25 = vld [vmem:[#allocation117_spill] sm:$0xff] }
 0x48b   : > { %3948 = vmatpush.bf16.msra.mxu1 %v9414_v17  ;;  %3962 = vmatpush.bf16.msra.mxu2 %v9418_v8  ;;  %v12245_v8 = vld [vmem:[#allocation114_spill] sm:$0xff]  ;;  %v3716_v17 = vpop.f32.mrf.mxu1 }
 0x48c   : > { %3976 = vmatpush.bf16.msra.mxu3 %v12239_v48  ;;  %v9668_v48 = vpop.f32.mrf.mxu2 }
 0x48d   : > { %3935 = vmatmul.bf16.vlgmr.msra.gmra.mxu0 %v9335_v26  ;;  %12246 = vst [vmem:[#allocation76_spill] sm:$0xff] %v9668_v48  ;;  %v12255_v48 = vld [vmem:[#allocation122_spill] sm:$0xff] }
 0x48e   : > { %3983 = vmatpush.bf16.msrb.mxu0 %v12240_v23  ;;  %3949 = vmatmul.bf16.vlgmr.msra.gmra.mxu1 %v9337_v27  ;;  %v9670_v23 = vpop.f32.mrf.mxu3 }
 0x48f   : > { %3997 = vmatpush.bf16.msrb.mxu1 %v12241_v39  ;;  %4011 = vmatpush.bf16.msrb.mxu2 %v12242_v7  ;;  %12247 = vst [vmem:[#allocation78_spill] sm:$0xff] %v9670_v23  ;;  %v12248_v39 = vld [vmem:[#allocation115_spill] sm:$0xff]  ;;  %v12249_v7 = vld [vmem:[#allocation116_spill] sm:$0xff] }
 0x490   : > { %4025 = vmatpush.bf16.msrb.mxu3 %v12243_v62  ;;  %3963 = vmatmul.bf16.vlgmr.msra.gmra.mxu2 %v9335_v26  ;;  %v3702_v62 = vpop.f32.mrf.mxu0  ;;  %v12256_v23 = vld [vmem:[#allocation123_spill] sm:$0xff] }
 0x491   : > { %3977 = vmatmul.bf16.vlgmr.msra.gmra.mxu3 %v9337_v27  ;;  %v9676_v10 = vadd.f32 %v3716_v17, %v3702_v62  ;;  %v12259_v17 = vld [vmem:[#allocation126_spill] sm:$0xff]  ;;  %v12260_v62 = vld [vmem:[#allocation127_spill] sm:$0xff] }
 0x492   : > { %3984 = vmatpush.bf16.msrb.mxu0 %v12244_v18  ;;  %v12253_v18 = vld [vmem:[#allocation120_spill] sm:$0xff] }
 0x493   : > { %3998 = vmatpush.bf16.msrb.mxu1 %v12245_v8  ;;  %4012 = vmatpush.bf16.msrb.mxu2 %v12248_v39  ;;  %v12254_v8 = vld [vmem:[#allocation121_spill] sm:$0xff]  ;;  %v12257_v39 = vld [vmem:[#allocation124_spill] sm:$0xff] }
 0x494   : > { %4026 = vmatpush.bf16.msrb.mxu3 %v12249_v7  ;;  %v3730_v7 = vpop.f32.mrf.mxu2 }
 0x496   : > { %3985 = vmatpush.bf16.msrb.mxu0 %v12250_v25  ;;  %v3744_v21 = vpop.f32.mrf.mxu3  ;;  %v12258_v25 = vld [vmem:[#allocation125_spill] sm:$0xff] }
 0x497   : > { %3999 = vmatpush.bf16.msrb.mxu1 %v12251_v20  ;;  %4013 = vmatpush.bf16.msrb.mxu2 %v12252_v52  ;;  %v9684_v57 = vadd.f32 %v3744_v21, %v3730_v7  ;;  %v12261_v52 = vld [vmem:[#allocation128_spill] sm:$0xff]  ;;  %v9702_v7 = vpop.f32.mrf.mxu1 }
 0x498   : > { %4027 = vmatpush.bf16.msrb.mxu3 %v12253_v18  ;;  %v12262_v18 = vld [vmem:[#allocation131_spill] sm:$0xff]  ;;  %v9700_v21 = vpop.f32.mrf.mxu0 }
 0x49a   : > { %3986 = vmatpush.bf16.msrb.mxu0 %v12254_v8  ;;  %v12263_v8 = vld [vmem:[#allocation132_spill] sm:$0xff] }
 0x49b   : > { %4000 = vmatpush.bf16.msrb.mxu1 %v12255_v48  ;;  %4014 = vmatpush.bf16.msrb.mxu2 %v12256_v23 }
 0x49c   : > { %4028 = vmatpush.bf16.msrb.mxu3 %v12257_v39 }
 0x49e   : > { %3987 = vmatpush.bf16.msrb.mxu0 %v12258_v25 }
 0x49f   : > { %4001 = vmatpush.bf16.msrb.mxu1 %v12259_v17  ;;  %4015 = vmatpush.bf16.msrb.mxu2 %v12260_v62 }
 0x4a0   : > { %4029 = vmatpush.bf16.msrb.mxu3 %v12261_v52 }
 0x4a2   : > { %3988 = vmatpush.bf16.msrb.mxu0 %v12262_v18 }
 0x4a3   : > { %4002 = vmatpush.bf16.msrb.mxu1 %v12263_v8  ;;  %4016 = vmatpush.bf16.msrb.mxu2 %v9494_v24 }
 0x4a4   : > { %4030 = vmatpush.bf16.msrb.mxu3 %v9496_v22 }
 0x4a6   : > { %3989 = vmatpush.bf16.msrb.mxu0 %v9500_v29 }
 0x4a7   : > { %4003 = vmatpush.bf16.msrb.mxu1 %v9502_v54  ;;  %4017 = vmatpush.bf16.msrb.mxu2 %v9506_v34 }
 0x4a8   : > { %4031 = vmatpush.bf16.msrb.mxu3 %v9508_v6 }
 0x4aa   : > { %3990 = vmatpush.bf16.msrb.mxu0 %v9512_v32 }
 0x4ab   : > { %4004 = vmatpush.bf16.msrb.mxu1 %v9514_v36  ;;  %4018 = vmatpush.bf16.msrb.mxu2 %v9518_v44 }
 0x4ac   : > { %4032 = vmatpush.bf16.msrb.mxu3 %v9520_v14 }
 0x4ad   : > { %3991 = vmatmul.bf16.vlgmr.msrb.gmra.mxu0 %v9335_v26 }
 0x4ae   : > { %4153 = vmatpush.bf16.msra.mxu0 %v8955_v13  ;;  %4005 = vmatmul.bf16.vlgmr.msrb.gmra.mxu1 %v9337_v27  ;;  %v3772_v13 = vpop.f32.mrf.mxu1 }
 0x4af   : > { %4167 = vmatpush.bf16.msra.mxu1 %v8959_v35  ;;  %4181 = vmatpush.bf16.msra.mxu2 %v8961_v4  ;;  %v9718_v35 = vpop.f32.mrf.mxu2  ;;  %v9720_v4 = vpop.f32.mrf.mxu3 }
 0x4b0   : > { %4195 = vmatpush.bf16.msra.mxu3 %v8974_v30  ;;  %4019 = vmatmul.bf16.vlgmr.msrb.gmra.mxu2 %v9335_v26  ;;  %v3758_v30 = vpop.f32.mrf.mxu0 }
 0x4b1   : > { %4033 = vmatmul.bf16.vlgmr.msrb.gmra.mxu3 %v9337_v27  ;;  %v9724_v26 = vadd.f32 %v3772_v13, %v3758_v30  ;;  %v12267_v13 = vld [vmem:[#allocation129_spill] sm:$0xff] }
 0x4b2   : > { %4154 = vmatpush.bf16.msra.mxu0 %v8982_v51  ;;  %v12268_v30 = vld [vmem:[#allocation145_spill] sm:$0xff]  ;;  %v3633_v51 = vadd.f32 %v9620_v45, %v9618_v9 }
 0x4b3   : > { %4168 = vmatpush.bf16.msra.mxu1 %v8988_v5  ;;  %4182 = vmatpush.bf16.msra.mxu2 %v8990_v40  ;;  %12264 = vst [vmem:[#allocation77_spill] sm:$0xff] %v9724_v26  ;;  %v12297_v26 = vld [vmem:[#allocation25_spill] sm:$0xff]  ;;  %v12300_v5 = vld [vmem:[#allocation84_spill] sm:$0xff] }
 0x4b4   : > { %4196 = vmatpush.bf16.msra.mxu3 %v8992_v12  ;;  %v6829_v9 = vld [vmem:[%s7202_s17 + $0x8] sm:$0xff] }
 0x4b6   : > { %4155 = vmatpush.bf16.msra.mxu0 %v12181_v46  ;;  %v12266_v46 = vld [vmem:[#allocation156_spill] sm:$0xff] }
 0x4b7   : > { %4169 = vmatpush.bf16.msra.mxu1 %v9000_v11  ;;  %4183 = vmatpush.bf16.msra.mxu2 %v12182_v0  ;;  %v3786_v27 = vpop.f32.mrf.mxu2  ;;  %v3800_v12 = vpop.f32.mrf.mxu3  ;;  %v12269_v0 = vld [vmem:[#allocation130_spill] sm:$0xff]  ;;  %v6828_v11 = vld [vmem:[%s7202_s17] sm:$0xff] }
 0x4b8   : > { %4197 = vmatpush.bf16.msra.mxu3 %v9012_v19  ;;  %v9732_v40 = vadd.f32 %v3800_v12, %v3786_v27  ;;  %v12270_v19 = vld [vmem:[#allocation150_spill] sm:$0xff]  ;;  %v12275_v12 = vld [vmem:[#allocation165_spill] sm:$0xff] }
 0x4b9   : > { %v12276_v27 = vld [vmem:[#allocation166_spill] sm:$0xff] }
 0x4ba   : > { %4156 = vmatpush.bf16.msra.mxu0 %v9014_v33  ;;  %12265 = vst [vmem:[#allocation85_spill] sm:$0xff] %v9732_v40  ;;  %v12271_v33 = vld [vmem:[#allocation157_spill] sm:$0xff] }
 0x4bb   : > { %4170 = vmatpush.bf16.msra.mxu1 %v12183_v55  ;;  %4184 = vmatpush.bf16.msra.mxu2 %v12184_v15  ;;  %v12272_v55 = vld [vmem:[#allocation151_spill] sm:$0xff]  ;;  %v12273_v15 = vld [vmem:[#allocation137_spill] sm:$0xff] }
 0x4bc   : > { %4198 = vmatpush.bf16.msra.mxu3 %v12185_v16  ;;  %v12274_v16 = vld [vmem:[#allocation152_spill] sm:$0xff] }
 0x4be   : > { %4157 = vmatpush.bf16.msra.mxu0 %v12266_v46  ;;  %v12277_v46 = vld [vmem:[#allocation153_spill] sm:$0xff] }
 0x4bf   : > { %4171 = vmatpush.bf16.msra.mxu1 %v12267_v13  ;;  %4185 = vmatpush.bf16.msra.mxu2 %v12268_v30  ;;  %v12278_v13 = vld [vmem:[#allocation16_spill] sm:$0xff]  ;;  %v12279_v30 = vld [vmem:[#allocation90_spill] sm:$0xff] }
 0x4c0   : > { %4199 = vmatpush.bf16.msra.mxu3 %v12269_v0  ;;  %v9748_v0 = vpop.f32.mrf.mxu0 }
 0x4c1   : > { %12280 = vst [vmem:[#allocation82_spill] sm:$0xff] %v9748_v0  ;;  %v12296_v0 = vld [vmem:[#allocation24_spill] sm:$0xff] }
 0x4c2   : > { %4158 = vmatpush.bf16.msra.mxu0 %v12270_v19  ;;  %v9750_v19 = vpop.f32.mrf.mxu1 }
 0x4c3   : > { %4172 = vmatpush.bf16.msra.mxu1 %v12271_v33  ;;  %4186 = vmatpush.bf16.msra.mxu2 %v12272_v55  ;;  %12281 = vst [vmem:[#allocation79_spill] sm:$0xff] %v9750_v19  ;;  %v12282_v33 = vld [vmem:[#allocation17_spill] sm:$0xff]  ;;  %v12283_v55 = vld [vmem:[#allocation18_spill] sm:$0xff] }
 0x4c4   : > { %4200 = vmatpush.bf16.msra.mxu3 %v12273_v15  ;;  %v12284_v15 = vld [vmem:[#allocation54_spill] sm:$0xff] }
 0x4c6   : > { %4159 = vmatpush.bf16.msra.mxu0 %v12274_v16  ;;  %v12285_v16 = vld [vmem:[#allocation19_spill] sm:$0xff] }
 0x4c7   : > { %4173 = vmatpush.bf16.msra.mxu1 %v12275_v12  ;;  %4187 = vmatpush.bf16.msra.mxu2 %v12276_v27  ;;  %v12286_v12 = vld [vmem:[#allocation20_spill] sm:$0xff]  ;;  %v12287_v27 = vld [vmem:[#allocation91_spill] sm:$0xff] }
 0x4c8   : > { %4201 = vmatpush.bf16.msra.mxu3 %v12277_v46  ;;  %v12288_v46 = vld [vmem:[#allocation52_spill] sm:$0xff] }
 0x4ca   : > { %4160 = vmatpush.bf16.msra.mxu0 %v12278_v13  ;;  %v12289_v13 = vld [vmem:[#allocation42_spill] sm:$0xff]  ;;  %v3824_v40 = vpop.f32.mrf.mxu0 }
 0x4cb   : > { %4174 = vmatpush.bf16.msra.mxu1 %v12279_v30  ;;  %4188 = vmatpush.bf16.msra.mxu2 %v12282_v33  ;;  %v12290_v30 = vld [vmem:[#allocation21_spill] sm:$0xff]  ;;  %v9770_v33 = vpop.f32.mrf.mxu3  ;;  %v3838_v19 = vpop.f32.mrf.mxu1 }
 0x4cc   : > { %4202 = vmatpush.bf16.msra.mxu3 %v12283_v55  ;;  %v12291_v55 = vld [vmem:[#allocation22_spill] sm:$0xff]  ;;  %12295 = vst [vmem:[#allocation81_spill] sm:$0xff] %v9770_v33  ;;  %v12302_v33 = vld [vmem:[#allocation28_spill] sm:$0xff] }
 0x4cd   : > { %4161 = vmatmul.bf16.vlgmr.msra.gmra.mxu0 %v12288_v46 }
 0x4ce   : > { %4209 = vmatpush.bf16.msrb.mxu0 %v12284_v15  ;;  %4175 = vmatmul.bf16.vlgmr.msra.gmra.mxu1 %v12289_v13  ;;  %v12292_v15 = vld [vmem:[#allocation23_spill] sm:$0xff] }
 0x4cf   : > { %4223 = vmatpush.bf16.msrb.mxu1 %v12285_v16  ;;  %4237 = vmatpush.bf16.msrb.mxu2 %v12286_v12  ;;  %v12293_v16 = vld [vmem:[#allocation94_spill] sm:$0xff]  ;;  %v9768_v12 = vpop.f32.mrf.mxu2 }
 0x4d0   : > { %4251 = vmatpush.bf16.msrb.mxu3 %v12287_v27  ;;  %4189 = vmatmul.bf16.vlgmr.msra.gmra.mxu2 %v12288_v46  ;;  %v3605_v27 = vadd.f32 %v9608_v43, %v9606_v37  ;;  %12294 = vst [vmem:[#allocation74_spill] sm:$0xff] %v9768_v12  ;;  %v4039_v43 = vmul.f32 %v6828_v11, %v12300_v5  ;;  %v12301_v12 = vld [vmem:[#allocation95_spill] sm:$0xff] }
 0x4d1   : > { %4203 = vmatmul.bf16.vlgmr.msra.gmra.mxu3 %v12289_v13 }
 0x4d2   : > { %4210 = vmatpush.bf16.msrb.mxu0 %v12290_v30  ;;  %v3825_v30 = vadd.f32 %v3824_v40, %v3605_v27  ;;  %v3607_v40 = vadd.f32 %v9624_v60, %v9622_v31  ;;  %v4040_v60 = vmul.f32 %v6829_v9, %v12300_v5 }
 0x4d3   : > { %4224 = vmatpush.bf16.msrb.mxu1 %v12291_v55  ;;  %4238 = vmatpush.bf16.msrb.mxu2 %v12292_v15  ;;  %v12298_v55 = vld [vmem:[#allocation26_spill] sm:$0xff]  ;;  %v12299_v15 = vld [vmem:[#allocation27_spill] sm:$0xff]  ;;  %v3840_v27 = vpop.f32.mrf.mxu1 }
 0x4d4   : > { %4252 = vmatpush.bf16.msrb.mxu3 %v12293_v16  ;;  %v3839_v16 = vadd.f32 %v3838_v19, %v3825_v30  ;;  %v3866_v19 = vpop.f32.mrf.mxu3  ;;  %v3826_v30 = vpop.f32.mrf.mxu0 }
 0x4d5   : > { %v3827_v45 = vadd.f32 %v3826_v30, %v3607_v40  ;;  %v3635_v40 = vadd.f32 %v9636_v38, %v9634_v63  ;;  %v6831_v38 = vld [vmem:[%s7202_s17 + $0xc8] sm:$0xff] }
 0x4d6   : > { %4211 = vmatpush.bf16.msrb.mxu0 %v12296_v0  ;;  %v4055_v37 = vadd.f32 %v4039_v43, %v3839_v16  ;;  %v12303_v0 = vld [vmem:[#allocation146_spill] sm:$0xff] }
 0x4d7   : > { %4225 = vmatpush.bf16.msrb.mxu1 %v12297_v26  ;;  %4239 = vmatpush.bf16.msrb.mxu2 %v12298_v55  ;;  %v3852_v11 = vpop.f32.mrf.mxu2  ;;  %v3841_v43 = vadd.f32 %v3840_v27, %v3827_v45  ;;  %v12305_v45 = vld [vmem:[#allocation38_spill] sm:$0xff]  ;;  %v12308_v27 = vld [vmem:[#allocation40_spill] sm:$0xff] }
 0x4d8   : > { %4253 = vmatpush.bf16.msrb.mxu3 %v12299_v15  ;;  %4071 = vst [vmem:[%s9787_s24] sm:$0xff] %v4055_v37  ;;  %v3853_v16 = vadd.f32 %v3852_v11, %v3633_v51  ;;  %v6830_v37 = vld [vmem:[%s7202_s17 + $0xc0] sm:$0xff]  ;;  %v12304_v51 = vld [vmem:[#allocation102_spill] sm:$0xff] }
 0x4d9   : > { %v4047_v11 = vmul.f32 %v6830_v37, %v12304_v51  ;;  %v4048_v63 = vmul.f32 %v6831_v38, %v12304_v51  ;;  %v12311_v37 = vld [vmem:[#allocation162_spill] sm:$0xff]  ;;  %v12318_v38 = vld [vmem:[#allocation51_spill] sm:$0xff] }
 0x4da   : > { %4212 = vmatpush.bf16.msrb.mxu0 %v12301_v12  ;;  %v3867_v31 = vadd.f32 %v3866_v19, %v3853_v16 }
 0x4db   : > { %4226 = vmatpush.bf16.msrb.mxu1 %v12302_v33  ;;  %4240 = vmatpush.bf16.msrb.mxu2 %v12303_v0 }
 0x4dc   : > { %4254 = vmatpush.bf16.msrb.mxu3 %v12215_v50  ;;  %v4056_v50 = vadd.f32 %v4040_v60, %v3867_v31  ;;  %v3868_v30 = vpop.f32.mrf.mxu3  ;;  %v12306_v31 = vld [vmem:[#allocation39_spill] sm:$0xff]  ;;  %v12307_v60 = vld [vmem:[#allocation149_spill] sm:$0xff] }
 0x4de   : > { %4213 = vmatpush.bf16.msrb.mxu0 %v12216_v1  ;;  %v4063_v1 = vadd.f32 %v4047_v11, %v3841_v43  ;;  %4072 = vst [vmem:[%s9787_s24 + $0x8] sm:$0xff] %v4056_v50  ;;  %v12310_v43 = vld [vmem:[#allocation161_spill] sm:$0xff]  ;;  %v12312_v11 = vld [vmem:[#allocation164_spill] sm:$0xff] }
 0x4df   : > { %4227 = vmatpush.bf16.msrb.mxu1 %v12217_v47  ;;  %4241 = vmatpush.bf16.msrb.mxu2 %v12218_v28  ;;  %v3854_v19 = vpop.f32.mrf.mxu2 }
 0x4e0   : > { %4255 = vmatpush.bf16.msrb.mxu3 %v12219_v58  ;;  %4079 = vst [vmem:[%s9787_s24 + $0xc0] sm:$0xff] %v4063_v1  ;;  %v3855_v16 = vadd.f32 %v3854_v19, %v3635_v40  ;;  %v12309_v1 = vld [vmem:[#allocation160_spill] sm:$0xff]  ;;  %v12313_v40 = vld [vmem:[#allocation41_spill] sm:$0xff] }
 0x4e1   : > { %v12314_v19 = vld [vmem:[#allocation45_spill] sm:$0xff] }
 0x4e2   : > { %4214 = vmatpush.bf16.msrb.mxu0 %v12220_v3  ;;  %v3869_v9 = vadd.f32 %v3868_v30, %v3855_v16  ;;  %v12315_v16 = vld [vmem:[#allocation48_spill] sm:$0xff]  ;;  %v12316_v30 = vld [vmem:[#allocation49_spill] sm:$0xff] }
 0x4e3   : > { %4228 = vmatpush.bf16.msrb.mxu1 %v12221_v53  ;;  %4242 = vmatpush.bf16.msrb.mxu2 %v12222_v56 }
 0x4e4   : > { %4256 = vmatpush.bf16.msrb.mxu3 %v12223_v61  ;;  %v4064_v50 = vadd.f32 %v4048_v63, %v3869_v9  ;;  %v12317_v9 = vld [vmem:[#allocation50_spill] sm:$0xff] }
 0x4e6   : > { %4215 = vmatpush.bf16.msrb.mxu0 %v12224_v42  ;;  %4080 = vst [vmem:[%s9787_s24 + $0xc8] sm:$0xff] %v4064_v50 }
 0x4e7   : > { %4229 = vmatpush.bf16.msrb.mxu1 %v12225_v59  ;;  %4243 = vmatpush.bf16.msrb.mxu2 %v12305_v45 }
 0x4e8   : > { %4257 = vmatpush.bf16.msrb.mxu3 %v12306_v31  ;;  %v12332_v31 = vld [vmem:[#allocation71_spill] sm:$0xff] }
 0x4ea   : > { %4216 = vmatpush.bf16.msrb.mxu0 %v12307_v60  ;;  %v3880_v63 = vpop.f32.mrf.mxu0  ;;  %v12325_v60 = vld [vmem:[#allocation65_spill] sm:$0xff] }
 0x4eb   : > { %4230 = vmatpush.bf16.msrb.mxu1 %v12308_v27  ;;  %4244 = vmatpush.bf16.msrb.mxu2 %v12309_v1  ;;  %v3894_v50 = vpop.f32.mrf.mxu1  ;;  %v6832_v1 = vld [vmem:[%s7202_s17 + $0x10] sm:$0xff]  ;;  %v12323_v27 = vld [vmem:[#allocation63_spill] sm:$0xff] }
 0x4ec   : > { %4258 = vmatpush.bf16.msrb.mxu3 %v12310_v43  ;;  %v12322_v43 = vld [vmem:[#allocation62_spill] sm:$0xff] }
 0x4ed   : > { %4217 = vmatmul.bf16.vlgmr.msrb.gmra.mxu0 %v12288_v46 }
 0x4ee   : > { %4265 = vmatpush.bf16.msra.mxu0 %v12311_v37  ;;  %4231 = vmatmul.bf16.vlgmr.msrb.gmra.mxu1 %v12289_v13  ;;  %v12321_v37 = vld [vmem:[#allocation61_spill] sm:$0xff] }
 0x4ef   : > { %4279 = vmatpush.bf16.msra.mxu1 %v12312_v11  ;;  %4293 = vmatpush.bf16.msra.mxu2 %v12313_v40  ;;  %v12320_v40 = vld [vmem:[#allocation60_spill] sm:$0xff]  ;;  %v3881_v11 = vadd.f32 %v3880_v63, %v9640_v49  ;;  %v3663_v49 = vadd.f32 %v9652_v41, %v9650_v2  ;;  %v6833_v2 = vld [vmem:[%s7202_s17 + $0x18] sm:$0xff] }
 0x4f0   : > { %4307 = vmatpush.bf16.msra.mxu3 %v12314_v19  ;;  %4245 = vmatmul.bf16.vlgmr.msrb.gmra.mxu2 %v12288_v46  ;;  %v12319_v19 = vld [vmem:[#allocation58_spill] sm:$0xff]  ;;  %v4042_v41 = vmul.f32 %v6833_v2, %v12300_v5 }
 0x4f1   : > { %4259 = vmatmul.bf16.vlgmr.msrb.gmra.mxu3 %v12289_v13 }
 0x4f2   : > { %4266 = vmatpush.bf16.msra.mxu0 %v12315_v16  ;;  %v3895_v16 = vadd.f32 %v3894_v50, %v3881_v11  ;;  %v12327_v50 = vld [vmem:[#allocation144_spill] sm:$0xff] }
 0x4f3   : > { %4280 = vmatpush.bf16.msra.mxu1 %v12316_v30  ;;  %4294 = vmatpush.bf16.msra.mxu2 %v12317_v9  ;;  %v4041_v30 = vmul.f32 %v6832_v1, %v12300_v5  ;;  %v3908_v63 = vpop.f32.mrf.mxu2  ;;  %v3882_v1 = vpop.f32.mrf.mxu0 }
 0x4f4   : > { %4308 = vmatpush.bf16.msra.mxu3 %v12318_v38  ;;  %v12324_v38 = vld [vmem:[#allocation64_spill] sm:$0xff]  ;;  %v3922_v11 = vpop.f32.mrf.mxu3 }
 0x4f5   : > { %v4057_v9 = vadd.f32 %v4041_v30, %v3895_v16  ;;  %v12328_v16 = vld [vmem:[#allocation67_spill] sm:$0xff]  ;;  %v12329_v30 = vld [vmem:[#allocation68_spill] sm:$0xff] }
 0x4f6   : > { %4267 = vmatpush.bf16.msra.mxu0 %v12319_v19  ;;  %v12326_v19 = vld [vmem:[#allocation66_spill] sm:$0xff] }
 0x4f7   : > { %4281 = vmatpush.bf16.msra.mxu1 %v12320_v40  ;;  %4295 = vmatpush.bf16.msra.mxu2 %v12321_v37  ;;  %4073 = vst [vmem:[%s9787_s24 + $0x10] sm:$0xff] %v4057_v9  ;;  %v3896_v9 = vpop.f32.mrf.mxu1  ;;  %v6834_v40 = vld [vmem:[%s7202_s17 + $0xd0] sm:$0xff] }
 0x4f8   : > { %4309 = vmatpush.bf16.msra.mxu3 %v12322_v43  ;;  %v3909_v43 = vadd.f32 %v3908_v63, %v12327_v50  ;;  %v4049_v63 = vmul.f32 %v6834_v40, %v12304_v51  ;;  %v12338_v40 = vld [vmem:[#allocation56_spill] sm:$0xff] }
 0x4fa   : > { %4268 = vmatpush.bf16.msra.mxu0 %v12323_v27  ;;  %v12330_v27 = vld [vmem:[#allocation69_spill] sm:$0xff] }
 0x4fb   : > { %4282 = vmatpush.bf16.msra.mxu1 %v12324_v38  ;;  %4296 = vmatpush.bf16.msra.mxu2 %v12325_v60  ;;  %v3883_v38 = vadd.f32 %v3882_v1, %v3663_v49  ;;  %v12331_v60 = vld [vmem:[#allocation70_spill] sm:$0xff]  ;;  %v12333_v49 = vld [vmem:[#allocation72_spill] sm:$0xff] }
 0x4fc   : > { %4310 = vmatpush.bf16.msra.mxu3 %v12326_v19  ;;  %v3923_v19 = vadd.f32 %v3922_v11, %v3909_v43  ;;  %v12334_v1 = vld [vmem:[#allocation76_spill] sm:$0xff]  ;;  %v12336_v43 = vld [vmem:[#allocation73_spill] sm:$0xff]  ;;  %v12337_v11 = vld [vmem:[#allocation75_spill] sm:$0xff] }
 0x4fd   : > { %v3897_v37 = vadd.f32 %v3896_v9, %v3883_v38  ;;  %v3910_v38 = vpop.f32.mrf.mxu2  ;;  %v12341_v9 = vld [vmem:[#allocation167_spill] sm:$0xff] }
 0x4fe   : > { %4269 = vmatpush.bf16.msra.mxu0 %v12328_v16  ;;  %v4058_v50 = vadd.f32 %v4042_v41, %v3923_v19  ;;  %v3924_v19 = vpop.f32.mrf.mxu3  ;;  %v12340_v41 = vld [vmem:[#allocation59_spill] sm:$0xff] }
 0x4ff   : > { %4283 = vmatpush.bf16.msra.mxu1 %v12329_v30  ;;  %4297 = vmatpush.bf16.msra.mxu2 %v12330_v27  ;;  %v4065_v16 = vadd.f32 %v4049_v63, %v3897_v37  ;;  %v12335_v27 = vld [vmem:[#allocation78_spill] sm:$0xff]  ;;  %v12339_v37 = vld [vmem:[#allocation57_spill] sm:$0xff] }
 0x500   : > { %4311 = vmatpush.bf16.msra.mxu3 %v12331_v60  ;;  %v3691_v60 = vadd.f32 %v12335_v27, %v12334_v1  ;;  %4074 = vst [vmem:[%s9787_s24 + $0x18] sm:$0xff] %v4058_v50  ;;  %v6835_v27 = vld [vmem:[%s7202_s17 + $0xd8] sm:$0xff] }
 0x501   : > { %4081 = vst [vmem:[%s9787_s24 + $0xd0] sm:$0xff] %v4065_v16  ;;  %v4050_v50 = vmul.f32 %v6835_v27, %v12304_v51  ;;  %v12345_v16 = vld [vmem:[#allocation108_spill] sm:$0xff]  ;;  %v12352_v27 = vld [vmem:[#allocation115_spill] sm:$0xff] }
 0x502   : > { %4270 = vmatpush.bf16.msra.mxu0 %v12332_v31  ;;  %v3911_v2 = vadd.f32 %v3910_v38, %v3691_v60  ;;  %v12344_v60 = vld [vmem:[#allocation101_spill] sm:$0xff] }
 0x503   : > { %4284 = vmatpush.bf16.msra.mxu1 %v12333_v49  ;;  %4298 = vmatpush.bf16.msra.mxu2 %v12336_v43  ;;  %v12342_v43 = vld [vmem:[#allocation99_spill] sm:$0xff]  ;;  %v12346_v38 = vld [vmem:[#allocation109_spill] sm:$0xff] }
 0x504   : > { %4312 = vmatpush.bf16.msra.mxu3 %v12337_v11  ;;  %v3925_v63 = vadd.f32 %v3924_v19, %v3911_v2  ;;  %v12343_v11 = vld [vmem:[#allocation100_spill] sm:$0xff]  ;;  %v12350_v19 = vld [vmem:[#allocation113_spill] sm:$0xff] }
 0x505   : > { %v12349_v2 = vld [vmem:[#allocation112_spill] sm:$0xff] }
 0x506   : > { %4271 = vmatpush.bf16.msra.mxu0 %v12338_v40  ;;  %v4066_v1 = vadd.f32 %v4050_v50, %v3925_v63  ;;  %v12351_v63 = vld [vmem:[#allocation114_spill] sm:$0xff]  ;;  %v12353_v50 = vld [vmem:[#allocation116_spill] sm:$0xff] }
 0x507   : > { %4285 = vmatpush.bf16.msra.mxu1 %v12339_v37  ;;  %4299 = vmatpush.bf16.msra.mxu2 %v12340_v41  ;;  %v12347_v37 = vld [vmem:[#allocation110_spill] sm:$0xff]  ;;  %v12348_v41 = vld [vmem:[#allocation111_spill] sm:$0xff] }
 0x508   : > { %4313 = vmatpush.bf16.msra.mxu3 %v12341_v9  ;;  %4082 = vst [vmem:[%s9787_s24 + $0xd8] sm:$0xff] %v4066_v1 }
 0x50a   : > { %4272 = vmatpush.bf16.msra.mxu0 %v12342_v43  ;;  %v3936_v1 = vpop.f32.mrf.mxu0 }
 0x50b   : > { %4286 = vmatpush.bf16.msra.mxu1 %v12343_v11  ;;  %4300 = vmatpush.bf16.msra.mxu2 %v12344_v60  ;;  %v6836_v60 = vld [vmem:[%s7202_s17 + $0x20] sm:$0xff]  ;;  %v12357_v11 = vld [vmem:[#allocation121_spill] sm:$0xff] }
 0x50c   : > { %4314 = vmatpush.bf16.msra.mxu3 %v12345_v16  ;;  %v12356_v16 = vld [vmem:[#allocation120_spill] sm:$0xff] }
 0x50d   : > { %4273 = vmatmul.bf16.vlgmr.msra.gmra.mxu0 %v12288_v46 }
 0x50e   : > { %4321 = vmatpush.bf16.msrb.mxu0 %v12346_v38  ;;  %4287 = vmatmul.bf16.vlgmr.msra.gmra.mxu1 %v12289_v13  ;;  %v12355_v38 = vld [vmem:[#allocation119_spill] sm:$0xff] }
 0x50f   : > { %4335 = vmatpush.bf16.msrb.mxu1 %v12347_v37  ;;  %4349 = vmatpush.bf16.msrb.mxu2 %v12348_v41  ;;  %v12354_v41 = vld [vmem:[#allocation117_spill] sm:$0xff]  ;;  %v3937_v37 = vadd.f32 %v3936_v1, %v9676_v10  ;;  %v3719_v10 = vadd.f32 %v9702_v7, %v9700_v21 }
 0x510   : > { %4363 = vmatpush.bf16.msrb.mxu3 %v12349_v2  ;;  %4301 = vmatmul.bf16.vlgmr.msra.gmra.mxu2 %v12288_v46  ;;  %v3950_v2 = vpop.f32.mrf.mxu1  ;;  %v6837_v21 = vld [vmem:[%s7202_s17 + $0x28] sm:$0xff] }
 0x511   : > { %4315 = vmatmul.bf16.vlgmr.msra.gmra.mxu3 %v12289_v13  ;;  %v4044_v7 = vmul.f32 %v6837_v21, %v12300_v5  ;;  %v12361_v21 = vld [vmem:[#allocation88_spill] sm:$0xff] }
 0x512   : > { %4322 = vmatpush.bf16.msrb.mxu0 %v12350_v19  ;;  %v3951_v19 = vadd.f32 %v3950_v2, %v3937_v37 }
 0x513   : > { %4336 = vmatpush.bf16.msrb.mxu1 %v12351_v63  ;;  %4350 = vmatpush.bf16.msrb.mxu2 %v12352_v27  ;;  %v4043_v63 = vmul.f32 %v6836_v60, %v12300_v5  ;;  %v3964_v1 = vpop.f32.mrf.mxu2  ;;  %v3938_v60 = vpop.f32.mrf.mxu0 }
 0x514   : > { %4364 = vmatpush.bf16.msrb.mxu3 %v12353_v50  ;;  %v3978_v37 = vpop.f32.mrf.mxu3  ;;  %v3965_v2 = vadd.f32 %v3964_v1, %v9684_v57 }
 0x515   : > { %v4059_v27 = vadd.f32 %v4043_v63, %v3951_v19  ;;  %v3939_v19 = vadd.f32 %v3938_v60, %v3719_v10  ;;  %v3747_v10 = vadd.f32 %v9720_v4, %v9718_v35  ;;  %v6839_v35 = vld [vmem:[%s7202_s17 + $0xe8] sm:$0xff] }
 0x516   : > { %4323 = vmatpush.bf16.msrb.mxu0 %v12354_v41  ;;  %v3979_v63 = vadd.f32 %v3978_v37, %v3965_v2  ;;  %v4052_v4 = vmul.f32 %v6839_v35, %v12304_v51 }
 0x517   : > { %4337 = vmatpush.bf16.msrb.mxu1 %v12251_v20  ;;  %4351 = vmatpush.bf16.msrb.mxu2 %v12355_v38  ;;  %4075 = vst [vmem:[%s9787_s24 + $0x20] sm:$0xff] %v4059_v27 }
 0x518   : > { %4365 = vmatpush.bf16.msrb.mxu3 %v12356_v16  ;;  %v3952_v27 = vpop.f32.mrf.mxu1  ;;  %v4060_v1 = vadd.f32 %v4044_v7, %v3979_v63  ;;  %v12360_v63 = vld [vmem:[#allocation98_spill] sm:$0xff]  ;;  %v12362_v7 = vld [vmem:[#allocation103_spill] sm:$0xff] }
 0x51a   : > { %4324 = vmatpush.bf16.msrb.mxu0 %v12357_v11  ;;  %4076 = vst [vmem:[%s9787_s24 + $0x28] sm:$0xff] %v4060_v1  ;;  %v12365_v1 = vld [vmem:[#allocation105_spill] sm:$0xff] }
 0x51b   : > { %4338 = vmatpush.bf16.msrb.mxu1 %v12255_v48  ;;  %4352 = vmatpush.bf16.msrb.mxu2 %v12256_v23  ;;  %v6838_v23 = vld [vmem:[%s7202_s17 + $0xe0] sm:$0xff]  ;;  %v3966_v37 = vpop.f32.mrf.mxu2 }
 0x51c   : > { %4366 = vmatpush.bf16.msrb.mxu3 %v12257_v39  ;;  %v3953_v39 = vadd.f32 %v3952_v27, %v3939_v19  ;;  %v4051_v57 = vmul.f32 %v6838_v23, %v12304_v51  ;;  %v3967_v2 = vadd.f32 %v3966_v37, %v3747_v10  ;;  %v3980_v23 = vpop.f32.mrf.mxu3  ;;  %v12359_v19 = vld [vmem:[#allocation87_spill] sm:$0xff]  ;;  %v12363_v27 = vld [vmem:[#allocation104_spill] sm:$0xff] }
 0x51e   : > { %4325 = vmatpush.bf16.msrb.mxu0 %v12258_v25  ;;  %v4067_v25 = vadd.f32 %v4051_v57, %v3953_v39  ;;  %v3981_v39 = vadd.f32 %v3980_v23, %v3967_v2  ;;  %v12364_v57 = vld [vmem:[#allocation89_spill] sm:$0xff]  ;;  %v12366_v2 = vld [vmem:[#allocation106_spill] sm:$0xff]  ;;  %v12367_v23 = vld [vmem:[#allocation107_spill] sm:$0xff] }
 0x51f   : > { %4339 = vmatpush.bf16.msrb.mxu1 %v12259_v17  ;;  %4353 = vmatpush.bf16.msrb.mxu2 %v12260_v62 }
 0x520   : > { %4367 = vmatpush.bf16.msrb.mxu3 %v12261_v52  ;;  %4083 = vst [vmem:[%s9787_s24 + $0xe0] sm:$0xff] %v4067_v25  ;;  %v4068_v60 = vadd.f32 %v4052_v4, %v3981_v39  ;;  %v12358_v25 = vld [vmem:[#allocation86_spill] sm:$0xff]  ;;  %v12368_v39 = vld [vmem:[#allocation77_spill] sm:$0xff] }
 0x522   : > { %4326 = vmatpush.bf16.msrb.mxu0 %v12262_v18  ;;  %4084 = vst [vmem:[%s9787_s24 + $0xe8] sm:$0xff] %v4068_v60  ;;  %v6840_v60 = vld [vmem:[%s7202_s17 + $0x30] sm:$0xff] }
 0x523   : > { %4340 = vmatpush.bf16.msrb.mxu1 %v12263_v8  ;;  %4354 = vmatpush.bf16.msrb.mxu2 %v9494_v24 }
 0x524   : > { %4368 = vmatpush.bf16.msrb.mxu3 %v9496_v22 }
 0x526   : > { %4327 = vmatpush.bf16.msrb.mxu0 %v9500_v29 }
 0x527   : > { %4341 = vmatpush.bf16.msrb.mxu1 %v9502_v54  ;;  %4355 = vmatpush.bf16.msrb.mxu2 %v9506_v34 }
 0x528   : > { %4369 = vmatpush.bf16.msrb.mxu3 %v9508_v6 }
 0x52a   : > { %4328 = vmatpush.bf16.msrb.mxu0 %v9512_v32  ;;  %v3992_v10 = vpop.f32.mrf.mxu0 }
 0x52b   : > { %4342 = vmatpush.bf16.msrb.mxu1 %v9514_v36  ;;  %4356 = vmatpush.bf16.msrb.mxu2 %v9518_v44  ;;  %v4006_v37 = vpop.f32.mrf.mxu1  ;;  %v3993_v35 = vadd.f32 %v3992_v10, %v12368_v39  ;;  %v12376_v10 = vld [vmem:[#allocation79_spill] sm:$0xff] }
 0x52c   : > { %4370 = vmatpush.bf16.msrb.mxu3 %v9520_v14 }
 0x52d   : > { %4329 = vmatmul.bf16.vlgmr.msrb.gmra.mxu0 %v12288_v46  ;;  %v4007_v4 = vadd.f32 %v4006_v37, %v3993_v35  ;;  %v12377_v35 = vld [vmem:[#allocation85_spill] sm:$0xff] }
 0x52e   : > { %4387 = vmatpush.bf16.msra.mxu0 %v12358_v25  ;;  %4343 = vmatmul.bf16.vlgmr.msrb.gmra.mxu1 %v12289_v13  ;;  %v12382_v25 = vld [vmem:[#allocation150_spill] sm:$0xff] }
 0x52f   : > { %4401 = vmatpush.bf16.msra.mxu1 %v12359_v19  ;;  %4415 = vmatpush.bf16.msra.mxu2 %v12360_v63  ;;  %v6842_v19 = vld [vmem:[%s7202_s17 + $0xf0] sm:$0xff] }
 0x530   : > { %4429 = vmatpush.bf16.msra.mxu3 %v12361_v21  ;;  %4357 = vmatmul.bf16.vlgmr.msrb.gmra.mxu2 %v12288_v46  ;;  %v12369_v46 = vld [vmem:[#allocation163_spill] sm:$0xff] }
 0x531   : > { %4371 = vmatmul.bf16.vlgmr.msrb.gmra.mxu3 %v12289_v13  ;;  %v12370_v13 = vld [vmem:[#allocation92_spill] sm:$0xff]  ;;  %v12373_v21 = vld [vmem:[#allocation155_spill] sm:$0xff] }
 0x532   : > { %4388 = vmatpush.bf16.msra.mxu0 %v12362_v7  ;;  %v12371_v7 = vld [vmem:[#allocation93_spill] sm:$0xff] }
 0x533   : > { %4402 = vmatpush.bf16.msra.mxu1 %v12363_v27  ;;  %4416 = vmatpush.bf16.msra.mxu2 %v12364_v57  ;;  %v4045_v27 = vmul.f32 %v6840_v60, %v12300_v5  ;;  %v3994_v60 = vpop.f32.mrf.mxu0 }
 0x534   : > { %4430 = vmatpush.bf16.msra.mxu3 %v12365_v1  ;;  %v12372_v1 = vld [vmem:[#allocation154_spill] sm:$0xff]  ;;  %v4034_v37 = vpop.f32.mrf.mxu3 }
 0x535   : > { %v4061_v57 = vadd.f32 %v4045_v27, %v4007_v4  ;;  %v12378_v27 = vld [vmem:[#allocation156_spill] sm:$0xff]  ;;  %v12379_v4 = vld [vmem:[#allocation129_spill] sm:$0xff] }
 0x536   : > { %4389 = vmatpush.bf16.msra.mxu0 %v12366_v2  ;;  %v12374_v2 = vld [vmem:[#allocation97_spill] sm:$0xff] }
 0x537   : > { %4403 = vmatpush.bf16.msra.mxu1 %v12367_v23  ;;  %4417 = vmatpush.bf16.msra.mxu2 %v12369_v46  ;;  %v12375_v23 = vld [vmem:[#allocation82_spill] sm:$0xff]  ;;  %4077 = vst [vmem:[%s9787_s24 + $0x30] sm:$0xff] %v4061_v57 }
 0x538   : > { %4431 = vmatpush.bf16.msra.mxu3 %v12370_v13  ;;  %v3775_v39 = vadd.f32 %v12376_v10, %v12375_v23  ;;  %v4020_v13 = vpop.f32.mrf.mxu2  ;;  %v6841_v23 = vld [vmem:[%s7202_s17 + $0x38] sm:$0xff]  ;;  %v4008_v10 = vpop.f32.mrf.mxu1 }
 0x539   : > { %v4021_v46 = vadd.f32 %v4020_v13, %v12377_v35  ;;  %v4046_v57 = vmul.f32 %v6841_v23, %v12300_v5  ;;  %v4053_v13 = vmul.f32 %v6842_v19, %v12304_v51  ;;  %v12388_v19 = vld [vmem:[#allocation152_spill] sm:$0xff] }
 0x53a   : > { %4390 = vmatpush.bf16.msra.mxu0 %v12371_v7  ;;  %v12380_v7 = vld [vmem:[#allocation145_spill] sm:$0xff]  ;;  %v12392_v5 = vld [vmem:[#allocation16_spill] sm:$0xff] }
 0x53b   : > { %4404 = vmatpush.bf16.msra.mxu1 %v12372_v1  ;;  %4418 = vmatpush.bf16.msra.mxu2 %v12373_v21  ;;  %v3995_v1 = vadd.f32 %v3994_v60, %v3775_v39  ;;  %v12381_v21 = vld [vmem:[#allocation130_spill] sm:$0xff]  ;;  %v12383_v39 = vld [vmem:[#allocation157_spill] sm:$0xff] }
 0x53c   : > { %4432 = vmatpush.bf16.msra.mxu3 %v12374_v2  ;;  %v4035_v2 = vadd.f32 %v4034_v37, %v4021_v46  ;;  %v12384_v60 = vld [vmem:[#allocation74_spill] sm:$0xff]  ;;  %v12386_v46 = vld [vmem:[#allocation151_spill] sm:$0xff]  ;;  %v12387_v37 = vld [vmem:[#allocation137_spill] sm:$0xff] }
 0x53d   : > { %v4009_v63 = vadd.f32 %v4008_v10, %v3995_v1  ;;  %v12391_v10 = vld [vmem:[#allocation153_spill] sm:$0xff] }
 0x53e   : > { %4391 = vmatpush.bf16.msra.mxu0 %v12378_v27  ;;  %v4062_v35 = vadd.f32 %v4046_v57, %v4035_v2  ;;  %v4036_v2 = vpop.f32.mrf.mxu3  ;;  %v12390_v57 = vld [vmem:[#allocation166_spill] sm:$0xff] }
 0x53f   : > { %4405 = vmatpush.bf16.msra.mxu1 %v12379_v4  ;;  %4419 = vmatpush.bf16.msra.mxu2 %v12380_v7  ;;  %v4069_v27 = vadd.f32 %v4053_v13, %v4009_v63  ;;  %v12385_v7 = vld [vmem:[#allocation81_spill] sm:$0xff] }
 0x540   : > { %4433 = vmatpush.bf16.msra.mxu3 %v12381_v21  ;;  %v3803_v21 = vadd.f32 %v12385_v7, %v12384_v60  ;;  %4078 = vst [vmem:[%s9787_s24 + $0x38] sm:$0xff] %v4062_v35  ;;  %v4022_v1 = vpop.f32.mrf.mxu2  ;;  %v12389_v63 = vld [vmem:[#allocation165_spill] sm:$0xff]  ;;  %v6843_v7 = vld [vmem:[%s7202_s17 + $0xf8] sm:$0xff] }
 0x541   : > { %4085 = vst [vmem:[%s9787_s24 + $0xf0] sm:$0xff] %v4069_v27  ;;  %v4054_v35 = vmul.f32 %v6843_v7, %v12304_v51  ;;  %v12395_v27 = vld [vmem:[#allocation18_spill] sm:$0xff]  ;;  %v12402_v7 = vld [vmem:[#allocation21_spill] sm:$0xff] }
 0x542   : > { %4392 = vmatpush.bf16.msra.mxu0 %v12382_v25  ;;  %v4023_v23 = vadd.f32 %v4022_v1, %v3803_v21  ;;  %v12394_v21 = vld [vmem:[#allocation17_spill] sm:$0xff]  ;;  %v12396_v1 = vld [vmem:[#allocation54_spill] sm:$0xff] }
 0x543   : > { %4406 = vmatpush.bf16.msra.mxu1 %v12383_v39  ;;  %4420 = vmatpush.bf16.msra.mxu2 %v12386_v46  ;;  %v12405_v51 = vld [vmem:[#allocation94_spill] sm:$0xff] }
 0x544   : > { %4434 = vmatpush.bf16.msra.mxu3 %v12387_v37  ;;  %v4037_v13 = vadd.f32 %v4036_v2, %v4023_v23  ;;  %v12393_v37 = vld [vmem:[#allocation90_spill] sm:$0xff]  ;;  %v12399_v23 = vld [vmem:[#allocation91_spill] sm:$0xff]  ;;  %v12400_v2 = vld [vmem:[#allocation53_spill] sm:$0xff] }
 0x546   : > { %4393 = vmatpush.bf16.msra.mxu0 %v12388_v19  ;;  %v4070_v60 = vadd.f32 %v4054_v35, %v4037_v13  ;;  %v12401_v13 = vld [vmem:[#allocation55_spill] sm:$0xff]  ;;  %v12403_v35 = vld [vmem:[#allocation22_spill] sm:$0xff] }
 0x547   : > { %4407 = vmatpush.bf16.msra.mxu1 %v12389_v63  ;;  %4421 = vmatpush.bf16.msra.mxu2 %v12390_v57  ;;  %v12397_v63 = vld [vmem:[#allocation19_spill] sm:$0xff]  ;;  %v12398_v57 = vld [vmem:[#allocation20_spill] sm:$0xff] }
 0x548   : > { %4435 = vmatpush.bf16.msra.mxu3 %v12391_v10  ;;  %4086 = vst [vmem:[%s9787_s24 + $0xf8] sm:$0xff] %v4070_v60  ;;  %v12404_v60 = vld [vmem:[#allocation23_spill] sm:$0xff] }
 0x54a   : > { %4394 = vmatpush.bf16.msra.mxu0 %v12392_v5 }
 0x54b   : > { %4408 = vmatpush.bf16.msra.mxu1 %v12393_v37  ;;  %4422 = vmatpush.bf16.msra.mxu2 %v12394_v21 }
 0x54c   : > { %4436 = vmatpush.bf16.msra.mxu3 %v12395_v27 }
 0x54d   : > { %4395 = vmatmul.bf16.vlgmr.msra.gmra.mxu0 %v12400_v2 }
 0x54e   : > { %4443 = vmatpush.bf16.msrb.mxu0 %v12396_v1  ;;  %4409 = vmatmul.bf16.vlgmr.msra.gmra.mxu1 %v12401_v13 }
 0x54f   : > { %4457 = vmatpush.bf16.msrb.mxu1 %v12397_v63  ;;  %4471 = vmatpush.bf16.msrb.mxu2 %v12398_v57  ;;  %v12406_v63 = vld [vmem:[#allocation24_spill] sm:$0xff] }
 0x550   : > { %4485 = vmatpush.bf16.msrb.mxu3 %v12399_v23  ;;  %4423 = vmatmul.bf16.vlgmr.msra.gmra.mxu2 %v12400_v2 }
 0x551   : > { %4437 = vmatmul.bf16.vlgmr.msra.gmra.mxu3 %v12401_v13 }
 0x552   : > { %4444 = vmatpush.bf16.msrb.mxu0 %v12402_v7  ;;  %v12407_v7 = vld [vmem:[#allocation29_spill] sm:$0xff] }
 0x553   : > { %4458 = vmatpush.bf16.msrb.mxu1 %v12403_v35  ;;  %4472 = vmatpush.bf16.msrb.mxu2 %v12404_v60  ;;  %v12408_v35 = vld [vmem:[#allocation30_spill] sm:$0xff] }
 0x554   : > { %4486 = vmatpush.bf16.msrb.mxu3 %v12405_v51 }
 0x556   : > { %4445 = vmatpush.bf16.msrb.mxu0 %v12406_v63 }
 0x557   : > { %4459 = vmatpush.bf16.msrb.mxu1 %v12297_v26  ;;  %4473 = vmatpush.bf16.msrb.mxu2 %v12298_v55  ;;  %v10003_v26 = vpop.f32.mrf.mxu0  ;;  %v10005_v55 = vpop.f32.mrf.mxu1 }
 0x558   : > { %4487 = vmatpush.bf16.msrb.mxu3 %v12299_v15 }
 0x55a   : > { %4446 = vmatpush.bf16.msrb.mxu0 %v12301_v12 }
 0x55b   : > { %4460 = vmatpush.bf16.msrb.mxu1 %v12302_v33  ;;  %4474 = vmatpush.bf16.msrb.mxu2 %v12303_v0 }
 0x55c   : > { %4488 = vmatpush.bf16.msrb.mxu3 %v12407_v7  ;;  %v12421_v7 = vld [vmem:[#allocation45_spill] sm:$0xff] }
 0x55e   : > { %4447 = vmatpush.bf16.msrb.mxu0 %v12408_v35  ;;  %v12412_v35 = vld [vmem:[#allocation149_spill] sm:$0xff] }
 0x55f   : > { %4461 = vmatpush.bf16.msrb.mxu1 %v12217_v47  ;;  %4475 = vmatpush.bf16.msrb.mxu2 %v12218_v28  ;;  %v12409_v28 = vld [vmem:[#allocation39_spill] sm:$0xff]  ;;  %v10017_v47 = vpop.f32.mrf.mxu3 }
 0x560   : > { %4489 = vmatpush.bf16.msrb.mxu3 %v12219_v58  ;;  %v10015_v58 = vpop.f32.mrf.mxu2  ;;  %12411 = vst [vmem:[#allocation159_spill] sm:$0xff] %v10017_v47  ;;  %v12430_v47 = vld [vmem:[#allocation61_spill] sm:$0xff] }
 0x561   : > { %12410 = vst [vmem:[#allocation80_spill] sm:$0xff] %v10015_v58 }
 0x562   : > { %4448 = vmatpush.bf16.msrb.mxu0 %v12220_v3  ;;  %v12413_v3 = vld [vmem:[#allocation40_spill] sm:$0xff] }
 0x563   : > { %4462 = vmatpush.bf16.msrb.mxu1 %v12221_v53  ;;  %4476 = vmatpush.bf16.msrb.mxu2 %v12222_v56  ;;  %v10021_v53 = vpop.f32.mrf.mxu0  ;;  %v10023_v56 = vpop.f32.mrf.mxu1 }
 0x564   : > { %4490 = vmatpush.bf16.msrb.mxu3 %v12223_v61  ;;  %12414 = vst [vmem:[#allocation83_spill] sm:$0xff] %v10021_v53  ;;  %v12416_v61 = vld [vmem:[#allocation160_spill] sm:$0xff] }
 0x565   : > { %12415 = vst [vmem:[#allocation96_spill] sm:$0xff] %v10023_v56  ;;  %v12428_v56 = vld [vmem:[#allocation58_spill] sm:$0xff]  ;;  %v12429_v53 = vld [vmem:[#allocation60_spill] sm:$0xff] }
 0x566   : > { %4449 = vmatpush.bf16.msrb.mxu0 %v12224_v42  ;;  %v12417_v42 = vld [vmem:[#allocation161_spill] sm:$0xff] }
 0x567   : > { %4463 = vmatpush.bf16.msrb.mxu1 %v12225_v59  ;;  %4477 = vmatpush.bf16.msrb.mxu2 %v12305_v45  ;;  %v12418_v59 = vld [vmem:[#allocation162_spill] sm:$0xff]  ;;  %v12419_v45 = vld [vmem:[#allocation164_spill] sm:$0xff] }
 0x568   : > { %4491 = vmatpush.bf16.msrb.mxu3 %v12409_v28  ;;  %v12420_v28 = vld [vmem:[#allocation41_spill] sm:$0xff] }
 0x56a   : > { %4450 = vmatpush.bf16.msrb.mxu0 %v12412_v35 }
 0x56b   : > { %4464 = vmatpush.bf16.msrb.mxu1 %v12413_v3  ;;  %4478 = vmatpush.bf16.msrb.mxu2 %v12416_v61  ;;  %v12422_v3 = vld [vmem:[#allocation48_spill] sm:$0xff]  ;;  %v12423_v61 = vld [vmem:[#allocation49_spill] sm:$0xff]  ;;  %v4232_v35 = vpop.f32.mrf.mxu1 }
 0x56c   : > { %4492 = vmatpush.bf16.msrb.mxu3 %v12417_v42  ;;  %v12424_v42 = vld [vmem:[#allocation50_spill] sm:$0xff] }
 0x56d   : > { %4451 = vmatmul.bf16.vlgmr.msrb.gmra.mxu0 %v12400_v2 }
 0x56e   : > { %4499 = vmatpush.bf16.msra.mxu0 %v12418_v59  ;;  %4465 = vmatmul.bf16.vlgmr.msrb.gmra.mxu1 %v12401_v13  ;;  %v12425_v59 = vld [vmem:[#allocation51_spill] sm:$0xff] }
 0x56f   : > { %4513 = vmatpush.bf16.msra.mxu1 %v12419_v45  ;;  %4527 = vmatpush.bf16.msra.mxu2 %v12420_v28  ;;  %v10039_v45 = vpop.f32.mrf.mxu2  ;;  %v10041_v28 = vpop.f32.mrf.mxu3 }
 0x570   : > { %4541 = vmatpush.bf16.msra.mxu3 %v12421_v7  ;;  %4479 = vmatmul.bf16.vlgmr.msrb.gmra.mxu2 %v12400_v2  ;;  %12426 = vst [vmem:[#allocation158_spill] sm:$0xff] %v10039_v45  ;;  %v4218_v7 = vpop.f32.mrf.mxu0  ;;  %v12435_v45 = vld [vmem:[#allocation66_spill] sm:$0xff] }
 0x571   : > { %4493 = vmatmul.bf16.vlgmr.msrb.gmra.mxu3 %v12401_v13  ;;  %12427 = vst [vmem:[#allocation122_spill] sm:$0xff] %v10041_v28  ;;  %v10045_v0 = vadd.f32 %v4232_v35, %v4218_v7  ;;  %v12437_v7 = vld [vmem:[#allocation69_spill] sm:$0xff]  ;;  %v12438_v35 = vld [vmem:[#allocation70_spill] sm:$0xff] }
 0x572   : > { %4500 = vmatpush.bf16.msra.mxu0 %v12422_v3  ;;  %v12431_v3 = vld [vmem:[#allocation62_spill] sm:$0xff] }
 0x573   : > { %4514 = vmatpush.bf16.msra.mxu1 %v12423_v61  ;;  %4528 = vmatpush.bf16.msra.mxu2 %v12424_v42  ;;  %v12432_v61 = vld [vmem:[#allocation63_spill] sm:$0xff]  ;;  %v12433_v42 = vld [vmem:[#allocation64_spill] sm:$0xff] }
 0x574   : > { %4542 = vmatpush.bf16.msra.mxu3 %v12425_v59  ;;  %v12434_v59 = vld [vmem:[#allocation65_spill] sm:$0xff] }
 0x576   : > { %4501 = vmatpush.bf16.msra.mxu0 %v12428_v56  ;;  %v12436_v56 = vld [vmem:[#allocation67_spill] sm:$0xff] }
 0x577   : > { %4515 = vmatpush.bf16.msra.mxu1 %v12429_v53  ;;  %4529 = vmatpush.bf16.msra.mxu2 %v12430_v47  ;;  %v4246_v28 = vpop.f32.mrf.mxu2  ;;  %v4260_v58 = vpop.f32.mrf.mxu3 }
 0x578   : > { %4543 = vmatpush.bf16.msra.mxu3 %v12431_v3  ;;  %v10053_v33 = vadd.f32 %v4260_v58, %v4246_v28  ;;  %v12441_v28 = vld [vmem:[#allocation57_spill] sm:$0xff]  ;;  %v12442_v58 = vld [vmem:[#allocation59_spill] sm:$0xff] }
 0x57a   : > { %4502 = vmatpush.bf16.msra.mxu0 %v12432_v61 }
 0x57b   : > { %4516 = vmatpush.bf16.msra.mxu1 %v12433_v42  ;;  %4530 = vmatpush.bf16.msra.mxu2 %v12434_v59  ;;  %v12439_v42 = vld [vmem:[#allocation73_spill] sm:$0xff]  ;;  %v12440_v59 = vld [vmem:[#allocation75_spill] sm:$0xff] }
 0x57c   : > { %4544 = vmatpush.bf16.msra.mxu3 %v12435_v45 }
 0x57e   : > { %4503 = vmatpush.bf16.msra.mxu0 %v12436_v56 }
 0x57f   : > { %4517 = vmatpush.bf16.msra.mxu1 %v12329_v30  ;;  %4531 = vmatpush.bf16.msra.mxu2 %v12437_v7  ;;  %v12443_v7 = vld [vmem:[#allocation100_spill] sm:$0xff] }
 0x580   : > { %4545 = vmatpush.bf16.msra.mxu3 %v12438_v35  ;;  %v10069_v35 = vpop.f32.mrf.mxu0 }
 0x582   : > { %4504 = vmatpush.bf16.msra.mxu0 %v12332_v31  ;;  %v10071_v31 = vpop.f32.mrf.mxu1 }
 0x583   : > { %4518 = vmatpush.bf16.msra.mxu1 %v12333_v49  ;;  %4532 = vmatpush.bf16.msra.mxu2 %v12439_v42  ;;  %v12444_v49 = vld [vmem:[#allocation101_spill] sm:$0xff]  ;;  %v12445_v42 = vld [vmem:[#allocation108_spill] sm:$0xff] }
 0x584   : > { %4546 = vmatpush.bf16.msra.mxu3 %v12440_v59  ;;  %v12446_v59 = vld [vmem:[#allocation109_spill] sm:$0xff] }
 0x586   : > { %4505 = vmatpush.bf16.msra.mxu0 %v12338_v40  ;;  %v12447_v40 = vld [vmem:[#allocation110_spill] sm:$0xff] }
 0x587   : > { %4519 = vmatpush.bf16.msra.mxu1 %v12441_v28  ;;  %4533 = vmatpush.bf16.msra.mxu2 %v12442_v58  ;;  %v12448_v28 = vld [vmem:[#allocation111_spill] sm:$0xff]  ;;  %v12449_v58 = vld [vmem:[#allocation112_spill] sm:$0xff] }
 0x588   : > { %4547 = vmatpush.bf16.msra.mxu3 %v12341_v9 }
 0x58a   : > { %4506 = vmatpush.bf16.msra.mxu0 %v12342_v43 }
 0x58b   : > { %4520 = vmatpush.bf16.msra.mxu1 %v12443_v7  ;;  %4534 = vmatpush.bf16.msra.mxu2 %v12444_v49  ;;  %v12450_v7 = vld [vmem:[#allocation113_spill] sm:$0xff]  ;;  %v12451_v49 = vld [vmem:[#allocation114_spill] sm:$0xff] }
 0x58c   : > { %4548 = vmatpush.bf16.msra.mxu3 %v12445_v42  ;;  %v12452_v42 = vld [vmem:[#allocation115_spill] sm:$0xff] }
 0x58d   : > { %4507 = vmatmul.bf16.vlgmr.msra.gmra.mxu0 %v12400_v2 }
 0x58e   : > { %4555 = vmatpush.bf16.msrb.mxu0 %v12446_v59  ;;  %4521 = vmatmul.bf16.vlgmr.msra.gmra.mxu1 %v12401_v13  ;;  %v4288_v59 = vpop.f32.mrf.mxu1 }
 0x58f   : > { %4569 = vmatpush.bf16.msrb.mxu1 %v12447_v40  ;;  %4583 = vmatpush.bf16.msrb.mxu2 %v12448_v28  ;;  %v10087_v40 = vpop.f32.mrf.mxu2  ;;  %v10089_v28 = vpop.f32.mrf.mxu3 }
 0x590   : > { %4597 = vmatpush.bf16.msrb.mxu3 %v12449_v58  ;;  %4535 = vmatmul.bf16.vlgmr.msra.gmra.mxu2 %v12400_v2  ;;  %v4274_v58 = vpop.f32.mrf.mxu0 }
 0x591   : > { %4549 = vmatmul.bf16.vlgmr.msra.gmra.mxu3 %v12401_v13  ;;  %v10093_v43 = vadd.f32 %v4288_v59, %v4274_v58  ;;  %v12457_v58 = vld [vmem:[#allocation87_spill] sm:$0xff] }
 0x592   : > { %4556 = vmatpush.bf16.msrb.mxu0 %v12450_v7 }
 0x593   : > { %4570 = vmatpush.bf16.msrb.mxu1 %v12451_v49  ;;  %4584 = vmatpush.bf16.msrb.mxu2 %v12452_v42  ;;  %v12454_v42 = vld [vmem:[#allocation124_spill] sm:$0xff] }
 0x594   : > { %4598 = vmatpush.bf16.msrb.mxu3 %v12353_v50  ;;  %v12453_v50 = vld [vmem:[#allocation123_spill] sm:$0xff] }
 0x596   : > { %4557 = vmatpush.bf16.msrb.mxu0 %v12354_v41  ;;  %v12455_v41 = vld [vmem:[#allocation125_spill] sm:$0xff] }
 0x597   : > { %4571 = vmatpush.bf16.msrb.mxu1 %v12251_v20  ;;  %4585 = vmatpush.bf16.msrb.mxu2 %v12355_v38  ;;  %v4302_v49 = vpop.f32.mrf.mxu2  ;;  %v4316_v7 = vpop.f32.mrf.mxu3 }
 0x598   : > { %4599 = vmatpush.bf16.msrb.mxu3 %v12356_v16  ;;  %v10101_v9 = vadd.f32 %v4316_v7, %v4302_v49  ;;  %v10117_v59 = vpop.f32.mrf.mxu0  ;;  %v10119_v49 = vpop.f32.mrf.mxu1  ;;  %v12456_v7 = vld [vmem:[#allocation86_spill] sm:$0xff] }
 0x59a   : > { %4558 = vmatpush.bf16.msrb.mxu0 %v12357_v11 }
 0x59b   : > { %4572 = vmatpush.bf16.msrb.mxu1 %v12255_v48  ;;  %4586 = vmatpush.bf16.msrb.mxu2 %v12453_v50 }
 0x59c   : > { %4600 = vmatpush.bf16.msrb.mxu3 %v12454_v42 }
 0x59e   : > { %4559 = vmatpush.bf16.msrb.mxu0 %v12455_v41 }
 0x59f   : > { %4573 = vmatpush.bf16.msrb.mxu1 %v12259_v17  ;;  %4587 = vmatpush.bf16.msrb.mxu2 %v12260_v62 }
 0x5a0   : > { %4601 = vmatpush.bf16.msrb.mxu3 %v12261_v52 }
 0x5a2   : > { %4560 = vmatpush.bf16.msrb.mxu0 %v12262_v18 }
 0x5a3   : > { %4574 = vmatpush.bf16.msrb.mxu1 %v12263_v8  ;;  %4588 = vmatpush.bf16.msrb.mxu2 %v9494_v24 }
 0x5a4   : > { %4602 = vmatpush.bf16.msrb.mxu3 %v9496_v22  ;;  %v12473_v22 = vld [vmem:[#allocation97_spill] sm:$0xff] }
 0x5a6   : > { %4561 = vmatpush.bf16.msrb.mxu0 %v9500_v29  ;;  %v12467_v29 = vld [vmem:[#allocation107_spill] sm:$0xff] }
 0x5a7   : > { %4575 = vmatpush.bf16.msrb.mxu1 %v9502_v54  ;;  %4589 = vmatpush.bf16.msrb.mxu2 %v9506_v34  ;;  %v12458_v54 = vld [vmem:[#allocation98_spill] sm:$0xff]  ;;  %v12459_v34 = vld [vmem:[#allocation88_spill] sm:$0xff] }
 0x5a8   : > { %4603 = vmatpush.bf16.msrb.mxu3 %v9508_v6  ;;  %v12466_v6 = vld [vmem:[#allocation106_spill] sm:$0xff] }
 0x5aa   : > { %4562 = vmatpush.bf16.msrb.mxu0 %v9512_v32 }
 0x5ab   : > { %4576 = vmatpush.bf16.msrb.mxu1 %v9514_v36  ;;  %4590 = vmatpush.bf16.msrb.mxu2 %v9518_v44  ;;  %v12460_v36 = vld [vmem:[#allocation103_spill] sm:$0xff]  ;;  %v12461_v44 = vld [vmem:[#allocation104_spill] sm:$0xff]  ;;  %v4344_v32 = vpop.f32.mrf.mxu1 }
 0x5ac   : > { %4604 = vmatpush.bf16.msrb.mxu3 %v9520_v14  ;;  %v12462_v14 = vld [vmem:[#allocation89_spill] sm:$0xff] }
 0x5ad   : > { %4563 = vmatmul.bf16.vlgmr.msrb.gmra.mxu0 %v12400_v2 }
 0x5ae   : > { %4741 = vmatpush.bf16.msra.mxu0 %v12456_v7  ;;  %4577 = vmatmul.bf16.vlgmr.msrb.gmra.mxu1 %v12401_v13  ;;  %v12463_v7 = vld [vmem:[#allocation105_spill] sm:$0xff] }
 0x5af   : > { %4755 = vmatpush.bf16.msra.mxu1 %v12457_v58  ;;  %4769 = vmatpush.bf16.msra.mxu2 %v12458_v54  ;;  %v10135_v58 = vpop.f32.mrf.mxu2  ;;  %v10137_v54 = vpop.f32.mrf.mxu3 }
 0x5b0   : > { %4783 = vmatpush.bf16.msra.mxu3 %v12459_v34  ;;  %4591 = vmatmul.bf16.vlgmr.msrb.gmra.mxu2 %v12400_v2  ;;  %12464 = vst [vmem:[#allocation131_spill] sm:$0xff] %v10135_v58  ;;  %v4330_v34 = vpop.f32.mrf.mxu0 }
 0x5b1   : > { %4605 = vmatmul.bf16.vlgmr.msrb.gmra.mxu3 %v12401_v13  ;;  %12465 = vst [vmem:[#allocation132_spill] sm:$0xff] %v10137_v54  ;;  %v10141_v2 = vadd.f32 %v4344_v32, %v4330_v34  ;;  %v12468_v13 = vld [vmem:[#allocation163_spill] sm:$0xff]  ;;  %v12475_v34 = vld [vmem:[#allocation145_spill] sm:$0xff]  ;;  %v12476_v32 = vld [vmem:[#allocation130_spill] sm:$0xff] }
 0x5b2   : > { %4742 = vmatpush.bf16.msra.mxu0 %v12460_v36  ;;  %v12469_v36 = vld [vmem:[#allocation92_spill] sm:$0xff] }
 0x5b3   : > { %4756 = vmatpush.bf16.msra.mxu1 %v12461_v44  ;;  %4770 = vmatpush.bf16.msra.mxu2 %v12462_v14  ;;  %v12470_v44 = vld [vmem:[#allocation93_spill] sm:$0xff]  ;;  %v12471_v14 = vld [vmem:[#allocation154_spill] sm:$0xff] }
 0x5b4   : > { %4784 = vmatpush.bf16.msra.mxu3 %v12463_v7  ;;  %v12472_v7 = vld [vmem:[#allocation155_spill] sm:$0xff] }
 0x5b6   : > { %4743 = vmatpush.bf16.msra.mxu0 %v12466_v6  ;;  %v12474_v6 = vld [vmem:[#allocation156_spill] sm:$0xff] }
 0x5b7   : > { %4757 = vmatpush.bf16.msra.mxu1 %v12467_v29  ;;  %4771 = vmatpush.bf16.msra.mxu2 %v12468_v13  ;;  %v4358_v24 = vpop.f32.mrf.mxu2  ;;  %v4372_v54 = vpop.f32.mrf.mxu3 }
 0x5b8   : > { %4785 = vmatpush.bf16.msra.mxu3 %v12469_v36  ;;  %v10149_v58 = vadd.f32 %v4372_v54, %v4358_v24  ;;  %v12478_v24 = vld [vmem:[#allocation165_spill] sm:$0xff]  ;;  %v12479_v54 = vld [vmem:[#allocation166_spill] sm:$0xff] }
 0x5ba   : > { %4744 = vmatpush.bf16.msra.mxu0 %v12470_v44 }
 0x5bb   : > { %4758 = vmatpush.bf16.msra.mxu1 %v12471_v14  ;;  %4772 = vmatpush.bf16.msra.mxu2 %v12472_v7  ;;  %v12477_v7 = vld [vmem:[#allocation137_spill] sm:$0xff] }
 0x5bc   : > { %4786 = vmatpush.bf16.msra.mxu3 %v12473_v22 }
 0x5be   : > { %4745 = vmatpush.bf16.msra.mxu0 %v12474_v6 }
 0x5bf   : > { %4759 = vmatpush.bf16.msra.mxu1 %v12379_v4  ;;  %4773 = vmatpush.bf16.msra.mxu2 %v12475_v34  ;;  %v12502_v4 = vld [vmem:[#allocation33_spill] sm:$0xff] }
 0x5c0   : > { %4787 = vmatpush.bf16.msra.mxu3 %v12476_v32  ;;  %v10165_v32 = vpop.f32.mrf.mxu0 }
 0x5c2   : > { %4746 = vmatpush.bf16.msra.mxu0 %v12382_v25  ;;  %v10167_v25 = vpop.f32.mrf.mxu1 }
 0x5c3   : > { %4760 = vmatpush.bf16.msra.mxu1 %v12383_v39  ;;  %4774 = vmatpush.bf16.msra.mxu2 %v12386_v46  ;;  %v12491_v46 = vld [vmem:[#allocation80_spill] sm:$0xff] }
 0x5c4   : > { %4788 = vmatpush.bf16.msra.mxu3 %v12477_v7  ;;  %v12490_v7 = vld [vmem:[#allocation28_spill] sm:$0xff] }
 0x5c6   : > { %4747 = vmatpush.bf16.msra.mxu0 %v12388_v19  ;;  %v12480_v19 = vld [vmem:[#allocation19_spill] sm:$0xff] }
 0x5c7   : > { %4761 = vmatpush.bf16.msra.mxu1 %v12478_v24  ;;  %4775 = vmatpush.bf16.msra.mxu2 %v12479_v54  ;;  %v4611_v54 = vld [vmem:[%s7202_s17 + $0x40] sm:$0xff] }
 0x5c8   : > { %4789 = vmatpush.bf16.msra.mxu3 %v12391_v10 }
 0x5ca   : > { %4748 = vmatpush.bf16.msra.mxu0 %v12392_v5  ;;  %v12481_v5 = vld [vmem:[#allocation46_spill] sm:$0xff] }
 0x5cb   : > { %4762 = vmatpush.bf16.msra.mxu1 %v12393_v37  ;;  %4776 = vmatpush.bf16.msra.mxu2 %v12394_v21  ;;  %v12482_v37 = vld [vmem:[#allocation47_spill] sm:$0xff]  ;;  %v12483_v21 = vld [vmem:[#allocation21_spill] sm:$0xff]  ;;  %v4410_v10 = vpop.f32.mrf.mxu1 }
 0x5cc   : > { %4790 = vmatpush.bf16.msra.mxu3 %v12395_v27  ;;  %v12484_v27 = vld [vmem:[#allocation22_spill] sm:$0xff] }
 0x5cd   : > { %4749 = vmatmul.bf16.vlgmr.msra.gmra.mxu0 %v12481_v5 }
 0x5ce   : > { %4797 = vmatpush.bf16.msrb.mxu0 %v12396_v1  ;;  %4763 = vmatmul.bf16.vlgmr.msra.gmra.mxu1 %v12482_v37  ;;  %v4396_v1 = vpop.f32.mrf.mxu0 }
 0x5cf   : > { %4811 = vmatpush.bf16.msrb.mxu1 %v12480_v19  ;;  %4825 = vmatpush.bf16.msrb.mxu2 %v12398_v57  ;;  %v4177_v57 = vadd.f32 %v10005_v55, %v10003_v26  ;;  %v10187_v19 = vpop.f32.mrf.mxu3  ;;  %v12489_v26 = vld [vmem:[#allocation84_spill] sm:$0xff] }
 0x5d0   : > { %4839 = vmatpush.bf16.msrb.mxu3 %v12399_v23  ;;  %4777 = vmatmul.bf16.vlgmr.msra.gmra.mxu2 %v12481_v5  ;;  %v10185_v23 = vpop.f32.mrf.mxu2  ;;  %12486 = vst [vmem:[#allocation42_spill] sm:$0xff] %v10187_v19  ;;  %v12492_v19 = vld [vmem:[#allocation159_spill] sm:$0xff] }
 0x5d1   : > { %4791 = vmatmul.bf16.vlgmr.msra.gmra.mxu3 %v12482_v37  ;;  %12485 = vst [vmem:[#allocation52_spill] sm:$0xff] %v10185_v23  ;;  %v12493_v23 = vld [vmem:[#allocation146_spill] sm:$0xff] }
 0x5d2   : > { %4798 = vmatpush.bf16.msrb.mxu0 %v12483_v21  ;;  %v12487_v21 = vld [vmem:[#allocation25_spill] sm:$0xff] }
 0x5d3   : > { %4812 = vmatpush.bf16.msrb.mxu1 %v12484_v27  ;;  %4826 = vmatpush.bf16.msrb.mxu2 %v12404_v60  ;;  %v4397_v27 = vadd.f32 %v4396_v1, %v4177_v57  ;;  %v12488_v60 = vld [vmem:[#allocation26_spill] sm:$0xff]  ;;  %v12495_v57 = vld [vmem:[#allocation83_spill] sm:$0xff]  ;;  %v12496_v1 = vld [vmem:[#allocation96_spill] sm:$0xff] }
 0x5d4   : > { %4840 = vmatpush.bf16.msrb.mxu3 %v12405_v51  ;;  %v4627_v51 = vmul.f32 %v4611_v54, %v12489_v26 }
 0x5d5   : > { %v4411_v55 = vadd.f32 %v4410_v10, %v4397_v27  ;;  %v4612_v27 = vld [vmem:[%s7202_s17 + $0x48] sm:$0xff] }
 0x5d6   : > { %4799 = vmatpush.bf16.msrb.mxu0 %v12406_v63  ;;  %v4205_v63 = vadd.f32 %v12492_v19, %v12491_v46  ;;  %v12499_v19 = vld [vmem:[#allocation32_spill] sm:$0xff] }
 0x5d7   : > { %4813 = vmatpush.bf16.msrb.mxu1 %v12487_v21  ;;  %4827 = vmatpush.bf16.msrb.mxu2 %v12488_v60  ;;  %v4643_v24 = vadd.f32 %v4627_v51, %v4411_v55  ;;  %v12494_v21 = vld [vmem:[#allocation29_spill] sm:$0xff]  ;;  %v4179_v60 = vadd.f32 %v12496_v1, %v12495_v57  ;;  %v4438_v10 = vpop.f32.mrf.mxu3  ;;  %v4398_v51 = vpop.f32.mrf.mxu0  ;;  %v4619_v55 = vld [vmem:[%s7202_s17 + $0x100] sm:$0xff] }
 0x5d8   : > { %4841 = vmatpush.bf16.msrb.mxu3 %v12299_v15  ;;  %v4424_v15 = vpop.f32.mrf.mxu2  ;;  %v4412_v1 = vpop.f32.mrf.mxu1 }
 0x5d9   : > { %4659 = vst [vmem:[%s9787_s24 + $0x40] sm:$0xff] %v4643_v24  ;;  %v4425_v54 = vadd.f32 %v4424_v15, %v4205_v63  ;;  %v4399_v46 = vadd.f32 %v4398_v51, %v4179_v60  ;;  %v4628_v24 = vmul.f32 %v4612_v27, %v12489_v26  ;;  %v12501_v15 = vld [vmem:[#allocation102_spill] sm:$0xff]  ;;  %v4620_v27 = vld [vmem:[%s7202_s17 + $0x108] sm:$0xff] }
 0x5da   : > { %4800 = vmatpush.bf16.msrb.mxu0 %v12301_v12  ;;  %v12497_v12 = vld [vmem:[#allocation30_spill] sm:$0xff]  ;;  %v4635_v63 = vmul.f32 %v4619_v55, %v12501_v15  ;;  %v12508_v55 = vld [vmem:[#allocation36_spill] sm:$0xff] }
 0x5db   : > { %4814 = vmatpush.bf16.msrb.mxu1 %v12490_v7  ;;  %4828 = vmatpush.bf16.msrb.mxu2 %v12493_v23  ;;  %v12498_v7 = vld [vmem:[#allocation31_spill] sm:$0xff]  ;;  %v4439_v57 = vadd.f32 %v4438_v10, %v4425_v54  ;;  %v4413_v23 = vadd.f32 %v4412_v1, %v4399_v46  ;;  %v12504_v60 = vld [vmem:[#allocation158_spill] sm:$0xff] }
 0x5dc   : > { %4842 = vmatpush.bf16.msrb.mxu3 %v12494_v21  ;;  %v12500_v21 = vld [vmem:[#allocation147_spill] sm:$0xff]  ;;  %v12505_v51 = vld [vmem:[#allocation122_spill] sm:$0xff] }
 0x5dd   : > { %v4644_v39 = vadd.f32 %v4628_v24, %v4439_v57  ;;  %v4651_v34 = vadd.f32 %v4635_v63, %v4413_v23  ;;  %v12509_v23 = vld [vmem:[#allocation37_spill] sm:$0xff]  ;;  %v12510_v57 = vld [vmem:[#allocation38_spill] sm:$0xff]  ;;  %v12511_v24 = vld [vmem:[#allocation39_spill] sm:$0xff] }
 0x5de   : > { %4801 = vmatpush.bf16.msrb.mxu0 %v12497_v12  ;;  %v12503_v12 = vld [vmem:[#allocation34_spill] sm:$0xff] }
 0x5df   : > { %4815 = vmatpush.bf16.msrb.mxu1 %v12498_v7  ;;  %4829 = vmatpush.bf16.msrb.mxu2 %v12499_v19  ;;  %v4207_v7 = vadd.f32 %v12505_v51, %v12504_v60  ;;  %4660 = vst [vmem:[%s9787_s24 + $0x48] sm:$0xff] %v4644_v39  ;;  %v12506_v19 = vld [vmem:[#allocation35_spill] sm:$0xff]  ;;  %v4440_v46 = vpop.f32.mrf.mxu3  ;;  %v4636_v39 = vmul.f32 %v4620_v27, %v12501_v15  ;;  %v12512_v60 = vld [vmem:[#allocation149_spill] sm:$0xff]  ;;  %v12513_v51 = vld [vmem:[#allocation40_spill] sm:$0xff] }
 0x5e0   : > { %4843 = vmatpush.bf16.msrb.mxu3 %v12500_v21  ;;  %v12507_v21 = vld [vmem:[#allocation148_spill] sm:$0xff]  ;;  %4667 = vst [vmem:[%s9787_s24 + $0x100] sm:$0xff] %v4651_v34  ;;  %v4426_v10 = vpop.f32.mrf.mxu2 }
 0x5e1   : > { %v4427_v54 = vadd.f32 %v4426_v10, %v4207_v7  ;;  %v12514_v34 = vld [vmem:[#allocation160_spill] sm:$0xff]  ;;  %v12515_v7 = vld [vmem:[#allocation161_spill] sm:$0xff]  ;;  %v12516_v10 = vld [vmem:[#allocation162_spill] sm:$0xff] }
 0x5e2   : > { %4802 = vmatpush.bf16.msrb.mxu0 %v12502_v4  ;;  %v12520_v27 = vld [vmem:[#allocation48_spill] sm:$0xff] }
 0x5e3   : > { %4816 = vmatpush.bf16.msrb.mxu1 %v12503_v12  ;;  %4830 = vmatpush.bf16.msrb.mxu2 %v12506_v19  ;;  %v4441_v1 = vadd.f32 %v4440_v46, %v4427_v54  ;;  %v12519_v54 = vld [vmem:[#allocation45_spill] sm:$0xff] }
 0x5e4   : > { %4844 = vmatpush.bf16.msrb.mxu3 %v12507_v21  ;;  %v12521_v46 = vld [vmem:[#allocation49_spill] sm:$0xff] }
 0x5e5   : > { %v4652_v63 = vadd.f32 %v4636_v39, %v4441_v1  ;;  %v12522_v1 = vld [vmem:[#allocation50_spill] sm:$0xff]  ;;  %v12523_v39 = vld [vmem:[#allocation51_spill] sm:$0xff] }
 0x5e6   : > { %4803 = vmatpush.bf16.msrb.mxu0 %v12508_v55 }
 0x5e7   : > { %4817 = vmatpush.bf16.msrb.mxu1 %v12509_v23  ;;  %4831 = vmatpush.bf16.msrb.mxu2 %v12510_v57  ;;  %4668 = vst [vmem:[%s9787_s24 + $0x108] sm:$0xff] %v4652_v63  ;;  %v12517_v23 = vld [vmem:[#allocation164_spill] sm:$0xff]  ;;  %v12518_v57 = vld [vmem:[#allocation41_spill] sm:$0xff] }
 0x5e8   : > { %4845 = vmatpush.bf16.msrb.mxu3 %v12511_v24 }
 0x5ea   : > { %4804 = vmatpush.bf16.msrb.mxu0 %v12512_v60  ;;  %v4452_v63 = vpop.f32.mrf.mxu0 }
 0x5eb   : > { %4818 = vmatpush.bf16.msrb.mxu1 %v12513_v51  ;;  %4832 = vmatpush.bf16.msrb.mxu2 %v12514_v34 }
 0x5ec   : > { %4846 = vmatpush.bf16.msrb.mxu3 %v12515_v7  ;;  %v12526_v7 = vld [vmem:[#allocation65_spill] sm:$0xff] }
 0x5ed   : > { %4805 = vmatmul.bf16.vlgmr.msrb.gmra.mxu0 %v12481_v5 }
 0x5ee   : > { %4853 = vmatpush.bf16.msra.mxu0 %v12516_v10  ;;  %4819 = vmatmul.bf16.vlgmr.msrb.gmra.mxu1 %v12482_v37  ;;  %v4453_v10 = vadd.f32 %v4452_v63, %v10045_v0  ;;  %v4235_v0 = vadd.f32 %v10071_v31, %v10069_v35 }
 0x5ef   : > { %4867 = vmatpush.bf16.msra.mxu1 %v12517_v23  ;;  %4881 = vmatpush.bf16.msra.mxu2 %v12518_v57  ;;  %v4466_v57 = vpop.f32.mrf.mxu1  ;;  %v12524_v23 = vld [vmem:[#allocation58_spill] sm:$0xff] }
 0x5f0   : > { %4895 = vmatpush.bf16.msra.mxu3 %v12519_v54  ;;  %4833 = vmatmul.bf16.vlgmr.msrb.gmra.mxu2 %v12481_v5  ;;  %v4613_v54 = vld [vmem:[%s7202_s17 + $0x50] sm:$0xff] }
 0x5f1   : > { %4847 = vmatmul.bf16.vlgmr.msrb.gmra.mxu3 %v12482_v37 }
 0x5f2   : > { %4854 = vmatpush.bf16.msra.mxu0 %v12520_v27  ;;  %v12525_v27 = vld [vmem:[#allocation64_spill] sm:$0xff] }
 0x5f3   : > { %4868 = vmatpush.bf16.msra.mxu1 %v12521_v46  ;;  %4882 = vmatpush.bf16.msra.mxu2 %v12522_v1  ;;  %v4467_v46 = vadd.f32 %v4466_v57, %v4453_v10  ;;  %v4629_v1 = vmul.f32 %v4613_v54, %v12489_v26  ;;  %v4480_v63 = vpop.f32.mrf.mxu2  ;;  %v4454_v10 = vpop.f32.mrf.mxu0  ;;  %v4621_v54 = vld [vmem:[%s7202_s17 + $0x110] sm:$0xff] }
 0x5f4   : > { %4896 = vmatpush.bf16.msra.mxu3 %v12523_v39  ;;  %v4481_v57 = vadd.f32 %v4480_v63, %v10053_v33  ;;  %v4637_v33 = vmul.f32 %v4621_v54, %v12501_v15  ;;  %v12533_v54 = vld [vmem:[#allocation56_spill] sm:$0xff] }
 0x5f5   : > { %v4645_v39 = vadd.f32 %v4629_v1, %v4467_v46  ;;  %v4455_v46 = vadd.f32 %v4454_v10, %v4235_v0  ;;  %v12527_v1 = vld [vmem:[#allocation69_spill] sm:$0xff]  ;;  %v4263_v0 = vadd.f32 %v10089_v28, %v10087_v40 }
 0x5f6   : > { %4855 = vmatpush.bf16.msra.mxu0 %v12524_v23  ;;  %v12531_v10 = vld [vmem:[#allocation73_spill] sm:$0xff] }
 0x5f7   : > { %4869 = vmatpush.bf16.msra.mxu1 %v12429_v53  ;;  %4883 = vmatpush.bf16.msra.mxu2 %v12430_v47  ;;  %4661 = vst [vmem:[%s9787_s24 + $0x50] sm:$0xff] %v4645_v39  ;;  %v4494_v47 = vpop.f32.mrf.mxu3  ;;  %v4614_v53 = vld [vmem:[%s7202_s17 + $0x58] sm:$0xff]  ;;  %v4468_v39 = vpop.f32.mrf.mxu1 }
 0x5f8   : > { %4897 = vmatpush.bf16.msra.mxu3 %v12431_v3  ;;  %v4495_v31 = vadd.f32 %v4494_v47, %v4481_v57  ;;  %v4630_v35 = vmul.f32 %v4614_v53, %v12489_v26  ;;  %v4622_v53 = vld [vmem:[%s7202_s17 + $0x118] sm:$0xff] }
 0x5f9   : > { %v4638_v28 = vmul.f32 %v4622_v53, %v12501_v15  ;;  %v12545_v53 = vld [vmem:[#allocation113_spill] sm:$0xff] }
 0x5fa   : > { %4856 = vmatpush.bf16.msra.mxu0 %v12432_v61  ;;  %v4646_v63 = vadd.f32 %v4630_v35, %v4495_v31  ;;  %v12529_v61 = vld [vmem:[#allocation71_spill] sm:$0xff] }
 0x5fb   : > { %4870 = vmatpush.bf16.msra.mxu1 %v12525_v27  ;;  %4884 = vmatpush.bf16.msra.mxu2 %v12526_v7  ;;  %v4469_v7 = vadd.f32 %v4468_v39, %v4455_v46  ;;  %v4482_v47 = vpop.f32.mrf.mxu2  ;;  %v12535_v31 = vld [vmem:[#allocation59_spill] sm:$0xff] }
 0x5fc   : > { %4898 = vmatpush.bf16.msra.mxu3 %v12435_v45  ;;  %v12528_v45 = vld [vmem:[#allocation70_spill] sm:$0xff]  ;;  %4662 = vst [vmem:[%s9787_s24 + $0x58] sm:$0xff] %v4646_v63  ;;  %v4483_v57 = vadd.f32 %v4482_v47, %v4263_v0  ;;  %v12536_v35 = vld [vmem:[#allocation167_spill] sm:$0xff]  ;;  %v12538_v63 = vld [vmem:[#allocation100_spill] sm:$0xff] }
 0x5fd   : > { %v4653_v27 = vadd.f32 %v4637_v33, %v4469_v7  ;;  %v12534_v7 = vld [vmem:[#allocation57_spill] sm:$0xff]  ;;  %v12537_v33 = vld [vmem:[#allocation99_spill] sm:$0xff]  ;;  %v12540_v0 = vld [vmem:[#allocation108_spill] sm:$0xff] }
 0x5fe   : > { %4857 = vmatpush.bf16.msra.mxu0 %v12436_v56  ;;  %v12530_v56 = vld [vmem:[#allocation72_spill] sm:$0xff]  ;;  %v12541_v47 = vld [vmem:[#allocation109_spill] sm:$0xff] }
 0x5ff   : > { %4871 = vmatpush.bf16.msra.mxu1 %v12329_v30  ;;  %4885 = vmatpush.bf16.msra.mxu2 %v12527_v1  ;;  %4669 = vst [vmem:[%s9787_s24 + $0x110] sm:$0xff] %v4653_v27  ;;  %v4496_v46 = vpop.f32.mrf.mxu3  ;;  %v12539_v27 = vld [vmem:[#allocation101_spill] sm:$0xff] }
 0x600   : > { %4899 = vmatpush.bf16.msra.mxu3 %v12528_v45  ;;  %v12532_v45 = vld [vmem:[#allocation75_spill] sm:$0xff]  ;;  %v4497_v40 = vadd.f32 %v4496_v46, %v4483_v57  ;;  %v12544_v57 = vld [vmem:[#allocation112_spill] sm:$0xff]  ;;  %v12546_v46 = vld [vmem:[#allocation114_spill] sm:$0xff] }
 0x602   : > { %4858 = vmatpush.bf16.msra.mxu0 %v12529_v61  ;;  %v4654_v39 = vadd.f32 %v4638_v28, %v4497_v40  ;;  %v12547_v40 = vld [vmem:[#allocation115_spill] sm:$0xff]  ;;  %v12548_v28 = vld [vmem:[#allocation116_spill] sm:$0xff] }
 0x603   : > { %4872 = vmatpush.bf16.msra.mxu1 %v12530_v56  ;;  %4886 = vmatpush.bf16.msra.mxu2 %v12531_v10 }
 0x604   : > { %4900 = vmatpush.bf16.msra.mxu3 %v12532_v45  ;;  %4670 = vst [vmem:[%s9787_s24 + $0x118] sm:$0xff] %v4654_v39 }
 0x606   : > { %4859 = vmatpush.bf16.msra.mxu0 %v12533_v54 }
 0x607   : > { %4873 = vmatpush.bf16.msra.mxu1 %v12534_v7  ;;  %4887 = vmatpush.bf16.msra.mxu2 %v12535_v31  ;;  %v12542_v7 = vld [vmem:[#allocation110_spill] sm:$0xff]  ;;  %v12543_v31 = vld [vmem:[#allocation111_spill] sm:$0xff] }
 0x608   : > { %4901 = vmatpush.bf16.msra.mxu3 %v12536_v35 }
 0x60a   : > { %4860 = vmatpush.bf16.msra.mxu0 %v12537_v33  ;;  %v4508_v39 = vpop.f32.mrf.mxu0 }
 0x60b   : > { %4874 = vmatpush.bf16.msra.mxu1 %v12538_v63  ;;  %4888 = vmatpush.bf16.msra.mxu2 %v12539_v27 }
 0x60c   : > { %4902 = vmatpush.bf16.msra.mxu3 %v12540_v0 }
 0x60d   : > { %4861 = vmatmul.bf16.vlgmr.msra.gmra.mxu0 %v12481_v5 }
 0x60e   : > { %4909 = vmatpush.bf16.msrb.mxu0 %v12541_v47  ;;  %4875 = vmatmul.bf16.vlgmr.msra.gmra.mxu1 %v12482_v37  ;;  %v4509_v47 = vadd.f32 %v4508_v39, %v10093_v43  ;;  %v4291_v43 = vadd.f32 %v10119_v49, %v10117_v59 }
 0x60f   : > { %4923 = vmatpush.bf16.msrb.mxu1 %v12542_v7  ;;  %4937 = vmatpush.bf16.msrb.mxu2 %v12543_v31  ;;  %v4522_v31 = vpop.f32.mrf.mxu1  ;;  %v12549_v7 = vld [vmem:[#allocation117_spill] sm:$0xff] }
 0x610   : > { %4951 = vmatpush.bf16.msrb.mxu3 %v12544_v57  ;;  %4889 = vmatmul.bf16.vlgmr.msra.gmra.mxu2 %v12481_v5  ;;  %v4615_v57 = vld [vmem:[%s7202_s17 + $0x60] sm:$0xff] }
 0x611   : > { %4903 = vmatmul.bf16.vlgmr.msra.gmra.mxu3 %v12482_v37 }
 0x612   : > { %4910 = vmatpush.bf16.msrb.mxu0 %v12545_v53 }
 0x613   : > { %4924 = vmatpush.bf16.msrb.mxu1 %v12546_v46  ;;  %4938 = vmatpush.bf16.msrb.mxu2 %v12547_v40  ;;  %v4523_v46 = vadd.f32 %v4522_v31, %v4509_v47  ;;  %v4631_v40 = vmul.f32 %v4615_v57, %v12489_v26  ;;  %v4536_v39 = vpop.f32.mrf.mxu2  ;;  %v4510_v47 = vpop.f32.mrf.mxu0  ;;  %v4623_v57 = vld [vmem:[%s7202_s17 + $0x120] sm:$0xff] }
 0x614   : > { %4952 = vmatpush.bf16.msrb.mxu3 %v12548_v28  ;;  %v4537_v31 = vadd.f32 %v4536_v39, %v10101_v9  ;;  %v4639_v9 = vmul.f32 %v4623_v57, %v12501_v15  ;;  %v12554_v57 = vld [vmem:[#allocation135_spill] sm:$0xff] }
 0x615   : > { %v4647_v28 = vadd.f32 %v4631_v40, %v4523_v46  ;;  %v4511_v46 = vadd.f32 %v4510_v47, %v4291_v43  ;;  %v12550_v43 = vld [vmem:[#allocation131_spill] sm:$0xff]  ;;  %v12551_v47 = vld [vmem:[#allocation132_spill] sm:$0xff] }
 0x616   : > { %4911 = vmatpush.bf16.msrb.mxu0 %v12549_v7 }
 0x617   : > { %4925 = vmatpush.bf16.msrb.mxu1 %v12251_v20  ;;  %4939 = vmatpush.bf16.msrb.mxu2 %v12355_v38  ;;  %4663 = vst [vmem:[%s9787_s24 + $0x60] sm:$0xff] %v4647_v28  ;;  %v4550_v38 = vpop.f32.mrf.mxu3  ;;  %v4616_v20 = vld [vmem:[%s7202_s17 + $0x68] sm:$0xff]  ;;  %v4524_v40 = vpop.f32.mrf.mxu1 }
 0x618   : > { %4953 = vmatpush.bf16.msrb.mxu3 %v12356_v16  ;;  %v4551_v59 = vadd.f32 %v4550_v38, %v4537_v31  ;;  %v4632_v49 = vmul.f32 %v4616_v20, %v12489_v26  ;;  %v4525_v28 = vadd.f32 %v4524_v40, %v4511_v46  ;;  %v4624_v38 = vld [vmem:[%s7202_s17 + $0x128] sm:$0xff]  ;;  %v12555_v46 = vld [vmem:[#allocation136_spill] sm:$0xff]  ;;  %v12557_v40 = vld [vmem:[#allocation139_spill] sm:$0xff] }
 0x61a   : > { %4912 = vmatpush.bf16.msrb.mxu0 %v12357_v11  ;;  %v4648_v39 = vadd.f32 %v4632_v49, %v4551_v59  ;;  %v12556_v49 = vld [vmem:[#allocation138_spill] sm:$0xff] }
 0x61b   : > { %4926 = vmatpush.bf16.msrb.mxu1 %v12255_v48  ;;  %4940 = vmatpush.bf16.msrb.mxu2 %v12453_v50  ;;  %v4538_v20 = vpop.f32.mrf.mxu2 }
 0x61c   : > { %4954 = vmatpush.bf16.msrb.mxu3 %v12454_v42  ;;  %v4655_v42 = vadd.f32 %v4639_v9, %v4525_v28  ;;  %4664 = vst [vmem:[%s9787_s24 + $0x68] sm:$0xff] %v4648_v39  ;;  %v4640_v9 = vmul.f32 %v4624_v38, %v12501_v15  ;;  %v12566_v38 = vld [vmem:[#allocation103_spill] sm:$0xff] }
 0x61e   : > { %4913 = vmatpush.bf16.msrb.mxu0 %v12455_v41  ;;  %4671 = vst [vmem:[%s9787_s24 + $0x120] sm:$0xff] %v4655_v42  ;;  %v12560_v42 = vld [vmem:[#allocation142_spill] sm:$0xff] }
 0x61f   : > { %4927 = vmatpush.bf16.msrb.mxu1 %v12259_v17  ;;  %4941 = vmatpush.bf16.msrb.mxu2 %v12260_v62  ;;  %v4319_v17 = vadd.f32 %v12551_v47, %v12550_v43  ;;  %v12552_v62 = vld [vmem:[#allocation133_spill] sm:$0xff]  ;;  %v4552_v59 = vpop.f32.mrf.mxu3  ;;  %v12558_v43 = vld [vmem:[#allocation140_spill] sm:$0xff] }
 0x620   : > { %4955 = vmatpush.bf16.msrb.mxu3 %v12261_v52  ;;  %v12553_v52 = vld [vmem:[#allocation134_spill] sm:$0xff]  ;;  %v12559_v47 = vld [vmem:[#allocation141_spill] sm:$0xff] }
 0x621   : > { %v4539_v31 = vadd.f32 %v4538_v20, %v4319_v17  ;;  %v12561_v17 = vld [vmem:[#allocation143_spill] sm:$0xff]  ;;  %v12562_v20 = vld [vmem:[#allocation86_spill] sm:$0xff] }
 0x622   : > { %4914 = vmatpush.bf16.msrb.mxu0 %v12262_v18 }
 0x623   : > { %4928 = vmatpush.bf16.msrb.mxu1 %v12263_v8  ;;  %4942 = vmatpush.bf16.msrb.mxu2 %v12552_v62  ;;  %v4553_v28 = vadd.f32 %v4552_v59, %v4539_v31  ;;  %v12565_v31 = vld [vmem:[#allocation88_spill] sm:$0xff] }
 0x624   : > { %4956 = vmatpush.bf16.msrb.mxu3 %v12553_v52  ;;  %v12567_v59 = vld [vmem:[#allocation104_spill] sm:$0xff] }
 0x625   : > { %v4656_v39 = vadd.f32 %v4640_v9, %v4553_v28  ;;  %v12568_v28 = vld [vmem:[#allocation89_spill] sm:$0xff] }
 0x626   : > { %4915 = vmatpush.bf16.msrb.mxu0 %v12554_v57  ;;  %v12569_v9 = vld [vmem:[#allocation105_spill] sm:$0xff] }
 0x627   : > { %4929 = vmatpush.bf16.msrb.mxu1 %v12555_v46  ;;  %4943 = vmatpush.bf16.msrb.mxu2 %v12556_v49  ;;  %4672 = vst [vmem:[%s9787_s24 + $0x128] sm:$0xff] %v4656_v39  ;;  %v12563_v46 = vld [vmem:[#allocation87_spill] sm:$0xff]  ;;  %v12564_v49 = vld [vmem:[#allocation98_spill] sm:$0xff] }
 0x628   : > { %4957 = vmatpush.bf16.msrb.mxu3 %v12557_v40  ;;  %v4617_v39 = vld [vmem:[%s7202_s17 + $0x70] sm:$0xff] }
 0x62a   : > { %4916 = vmatpush.bf16.msrb.mxu0 %v12558_v43 }
 0x62b   : > { %4930 = vmatpush.bf16.msrb.mxu1 %v12559_v47  ;;  %4944 = vmatpush.bf16.msrb.mxu2 %v12560_v42 }
 0x62c   : > { %4958 = vmatpush.bf16.msrb.mxu3 %v12561_v17 }
 0x62d   : > { %4917 = vmatmul.bf16.vlgmr.msrb.gmra.mxu0 %v12481_v5 }
 0x62e   : > { %4975 = vmatpush.bf16.msra.mxu0 %v12562_v20  ;;  %4931 = vmatmul.bf16.vlgmr.msrb.gmra.mxu1 %v12482_v37  ;;  %v12570_v20 = vld [vmem:[#allocation106_spill] sm:$0xff] }
 0x62f   : > { %4989 = vmatpush.bf16.msra.mxu1 %v12563_v46  ;;  %5003 = vmatpush.bf16.msra.mxu2 %v12564_v49  ;;  %v4564_v46 = vpop.f32.mrf.mxu0  ;;  %v4578_v49 = vpop.f32.mrf.mxu1 }
 0x630   : > { %5017 = vmatpush.bf16.msra.mxu3 %v12565_v31  ;;  %4945 = vmatmul.bf16.vlgmr.msrb.gmra.mxu2 %v12481_v5  ;;  %v4565_v5 = vadd.f32 %v4564_v46, %v10141_v2  ;;  %v4633_v31 = vmul.f32 %v4617_v39, %v12489_v26  ;;  %v4625_v46 = vld [vmem:[%s7202_s17 + $0x130] sm:$0xff] }
 0x631   : > { %4959 = vmatmul.bf16.vlgmr.msrb.gmra.mxu3 %v12482_v37 }
 0x632   : > { %4976 = vmatpush.bf16.msra.mxu0 %v12566_v38  ;;  %v4579_v37 = vadd.f32 %v4578_v49, %v4565_v5  ;;  %v12573_v49 = vld [vmem:[#allocation145_spill] sm:$0xff] }
 0x633   : > { %4990 = vmatpush.bf16.msra.mxu1 %v12567_v59  ;;  %5004 = vmatpush.bf16.msra.mxu2 %v12568_v28  ;;  %v12571_v59 = vld [vmem:[#allocation155_spill] sm:$0xff]  ;;  %v4592_v2 = vpop.f32.mrf.mxu2 }
 0x634   : > { %5018 = vmatpush.bf16.msra.mxu3 %v12569_v9  ;;  %v4649_v38 = vadd.f32 %v4633_v31, %v4579_v37  ;;  %v4618_v28 = vld [vmem:[%s7202_s17 + $0x78] sm:$0xff]  ;;  %v12575_v31 = vld [vmem:[#allocation150_spill] sm:$0xff] }
 0x636   : > { %4977 = vmatpush.bf16.msra.mxu0 %v12570_v20  ;;  %4665 = vst [vmem:[%s9787_s24 + $0x70] sm:$0xff] %v4649_v38  ;;  %v12577_v38 = vld [vmem:[#allocation52_spill] sm:$0xff] }
 0x637   : > { %4991 = vmatpush.bf16.msra.mxu1 %v12467_v29  ;;  %5005 = vmatpush.bf16.msra.mxu2 %v12468_v13  ;;  %v4347_v29 = vadd.f32 %v10167_v25, %v10165_v32  ;;  %v4606_v13 = vpop.f32.mrf.mxu3  ;;  %v4566_v9 = vpop.f32.mrf.mxu0  ;;  %v4634_v32 = vmul.f32 %v4618_v28, %v12489_v26  ;;  %v4626_v28 = vld [vmem:[%s7202_s17 + $0x138] sm:$0xff] }
 0x638   : > { %5019 = vmatpush.bf16.msra.mxu3 %v12469_v36  ;;  %v4593_v36 = vadd.f32 %v4592_v2, %v10149_v58  ;;  %v4580_v39 = vpop.f32.mrf.mxu1  ;;  %v4641_v58 = vmul.f32 %v4625_v46, %v12501_v15  ;;  %v12579_v2 = vld [vmem:[#allocation151_spill] sm:$0xff]  ;;  %v12581_v46 = vld [vmem:[#allocation152_spill] sm:$0xff] }
 0x63a   : > { %4978 = vmatpush.bf16.msra.mxu0 %v12470_v44  ;;  %v12572_v44 = vld [vmem:[#allocation129_spill] sm:$0xff]  ;;  %v4607_v25 = vadd.f32 %v4606_v13, %v4593_v36 }
 0x63b   : > { %4992 = vmatpush.bf16.msra.mxu1 %v12471_v14  ;;  %5006 = vmatpush.bf16.msra.mxu2 %v12571_v59  ;;  %v4567_v14 = vadd.f32 %v4566_v9, %v4347_v29  ;;  %v12578_v59 = vld [vmem:[#allocation42_spill] sm:$0xff]  ;;  %v12580_v9 = vld [vmem:[#allocation137_spill] sm:$0xff]  ;;  %v4594_v13 = vpop.f32.mrf.mxu2 }
 0x63c   : > { %5020 = vmatpush.bf16.msra.mxu3 %v12473_v22  ;;  %v12574_v22 = vld [vmem:[#allocation130_spill] sm:$0xff]  ;;  %v4650_v5 = vadd.f32 %v4634_v32, %v4607_v25  ;;  %v4375_v29 = vadd.f32 %v12578_v59, %v12577_v38  ;;  %v4642_v32 = vmul.f32 %v4626_v28, %v12501_v15  ;;  %v12591_v38 = vld [vmem:[#allocation20_spill] sm:$0xff]  ;;  %v12592_v59 = vld [vmem:[#allocation91_spill] sm:$0xff] }
 0x63d   : > { %v4581_v20 = vadd.f32 %v4580_v39, %v4567_v14  ;;  %v12597_v28 = vld [vmem:[#allocation23_spill] sm:$0xff] }
 0x63e   : > { %4979 = vmatpush.bf16.msra.mxu0 %v12474_v6  ;;  %v12576_v6 = vld [vmem:[#allocation157_spill] sm:$0xff]  ;;  %4666 = vst [vmem:[%s9787_s24 + $0x78] sm:$0xff] %v4650_v5  ;;  %v4595_v36 = vadd.f32 %v4594_v13, %v4375_v29  ;;  %v12593_v29 = vld [vmem:[#allocation43_spill] sm:$0xff]  ;;  %v12596_v13 = vld [vmem:[#allocation22_spill] sm:$0xff] }
 0x63f   : > { %4993 = vmatpush.bf16.msra.mxu1 %v12572_v44  ;;  %5007 = vmatpush.bf16.msra.mxu2 %v12573_v49  ;;  %v4657_v37 = vadd.f32 %v4641_v58, %v4581_v20  ;;  %v12582_v44 = vld [vmem:[#allocation165_spill] sm:$0xff]  ;;  %v4608_v14 = vpop.f32.mrf.mxu3  ;;  %v12583_v49 = vld [vmem:[#allocation166_spill] sm:$0xff]  ;;  %v12585_v20 = vld [vmem:[#allocation16_spill] sm:$0xff] }
 0x640   : > { %5021 = vmatpush.bf16.msra.mxu3 %v12574_v22  ;;  %v12584_v22 = vld [vmem:[#allocation153_spill] sm:$0xff]  ;;  %v4609_v25 = vadd.f32 %v4608_v14, %v4595_v36  ;;  %v12586_v58 = vld [vmem:[#allocation90_spill] sm:$0xff] }
 0x641   : > { %4673 = vst [vmem:[%s9787_s24 + $0x130] sm:$0xff] %v4657_v37  ;;  %v12587_v5 = vld [vmem:[#allocation17_spill] sm:$0xff]  ;;  %v12588_v37 = vld [vmem:[#allocation18_spill] sm:$0xff] }
 0x642   : > { %4980 = vmatpush.bf16.msra.mxu0 %v12575_v31  ;;  %v4658_v39 = vadd.f32 %v4642_v32, %v4609_v25  ;;  %v12589_v31 = vld [vmem:[#allocation54_spill] sm:$0xff]  ;;  %v12604_v25 = vld [vmem:[#allocation28_spill] sm:$0xff] }
 0x643   : > { %4994 = vmatpush.bf16.msra.mxu1 %v12576_v6  ;;  %5008 = vmatpush.bf16.msra.mxu2 %v12579_v2  ;;  %v12590_v6 = vld [vmem:[#allocation19_spill] sm:$0xff]  ;;  %v12594_v2 = vld [vmem:[#allocation44_spill] sm:$0xff]  ;;  %v12598_v36 = vld [vmem:[#allocation94_spill] sm:$0xff] }
 0x644   : > { %5022 = vmatpush.bf16.msra.mxu3 %v12580_v9  ;;  %4674 = vst [vmem:[%s9787_s24 + $0x138] sm:$0xff] %v4658_v39  ;;  %v12595_v9 = vld [vmem:[#allocation21_spill] sm:$0xff]  ;;  %v12601_v14 = vld [vmem:[#allocation26_spill] sm:$0xff] }
 0x645   : > { %v12605_v32 = vld [vmem:[#allocation146_spill] sm:$0xff]  ;;  %v12606_v39 = vld [vmem:[#allocation29_spill] sm:$0xff] }
 0x646   : > { %4981 = vmatpush.bf16.msra.mxu0 %v12581_v46  ;;  %v12599_v46 = vld [vmem:[#allocation24_spill] sm:$0xff] }
 0x647   : > { %4995 = vmatpush.bf16.msra.mxu1 %v12582_v44  ;;  %5009 = vmatpush.bf16.msra.mxu2 %v12583_v49  ;;  %v12600_v44 = vld [vmem:[#allocation25_spill] sm:$0xff]  ;;  %v12602_v49 = vld [vmem:[#allocation27_spill] sm:$0xff] }
 0x648   : > { %5023 = vmatpush.bf16.msra.mxu3 %v12584_v22  ;;  %v12603_v22 = vld [vmem:[#allocation95_spill] sm:$0xff] }
 0x64a   : > { %4982 = vmatpush.bf16.msra.mxu0 %v12585_v20  ;;  %v12607_v20 = vld [vmem:[#allocation30_spill] sm:$0xff] }
 0x64b   : > { %4996 = vmatpush.bf16.msra.mxu1 %v12586_v58  ;;  %5010 = vmatpush.bf16.msra.mxu2 %v12587_v5  ;;  %v12608_v58 = vld [vmem:[#allocation31_spill] sm:$0xff]  ;;  %v12609_v5 = vld [vmem:[#allocation32_spill] sm:$0xff] }
 0x64c   : > { %5024 = vmatpush.bf16.msra.mxu3 %v12588_v37  ;;  %v12610_v37 = vld [vmem:[#allocation147_spill] sm:$0xff] }
 0x64d   : > { %4983 = vmatmul.bf16.vlgmr.msra.gmra.mxu0 %v12593_v29 }
 0x64e   : > { %5031 = vmatpush.bf16.msrb.mxu0 %v12589_v31  ;;  %4997 = vmatmul.bf16.vlgmr.msra.gmra.mxu1 %v12594_v2  ;;  %v10417_v31 = vpop.f32.mrf.mxu0 }
 0x64f   : > { %5045 = vmatpush.bf16.msrb.mxu1 %v12590_v6  ;;  %5059 = vmatpush.bf16.msrb.mxu2 %v12591_v38  ;;  %v10419_v6 = vpop.f32.mrf.mxu1  ;;  %v12611_v38 = vld [vmem:[#allocation37_spill] sm:$0xff] }
 0x650   : > { %5073 = vmatpush.bf16.msrb.mxu3 %v12592_v59  ;;  %5011 = vmatmul.bf16.vlgmr.msra.gmra.mxu2 %v12593_v29  ;;  %v12612_v59 = vld [vmem:[#allocation38_spill] sm:$0xff] }
 0x651   : > { %5025 = vmatmul.bf16.vlgmr.msra.gmra.mxu3 %v12594_v2 }
 0x652   : > { %5032 = vmatpush.bf16.msrb.mxu0 %v12595_v9 }
 0x653   : > { %5046 = vmatpush.bf16.msrb.mxu1 %v12596_v13  ;;  %5060 = vmatpush.bf16.msrb.mxu2 %v12597_v28  ;;  %v10429_v9 = vpop.f32.mrf.mxu2  ;;  %v12617_v28 = vld [vmem:[#allocation45_spill] sm:$0xff] }
 0x654   : > { %5074 = vmatpush.bf16.msrb.mxu3 %v12598_v36  ;;  %v10431_v13 = vpop.f32.mrf.mxu3  ;;  %v12621_v36 = vld [vmem:[#allocation51_spill] sm:$0xff] }
 0x656   : > { %5033 = vmatpush.bf16.msrb.mxu0 %v12599_v46 }
 0x657   : > { %5047 = vmatpush.bf16.msrb.mxu1 %v12600_v44  ;;  %5061 = vmatpush.bf16.msrb.mxu2 %v12601_v14 }
 0x658   : > { %5075 = vmatpush.bf16.msrb.mxu3 %v12602_v49 }
 0x65a   : > { %5034 = vmatpush.bf16.msrb.mxu0 %v12603_v22  ;;  %v12622_v22 = vld [vmem:[#allocation60_spill] sm:$0xff] }
 0x65b   : > { %5048 = vmatpush.bf16.msrb.mxu1 %v12604_v25  ;;  %5062 = vmatpush.bf16.msrb.mxu2 %v12605_v32  ;;  %v10453_v46 = vpop.f32.mrf.mxu2  ;;  %v12623_v32 = vld [vmem:[#allocation61_spill] sm:$0xff] }
 0x65c   : > { %5076 = vmatpush.bf16.msrb.mxu3 %v12606_v39  ;;  %v10455_v44 = vpop.f32.mrf.mxu3  ;;  %v12624_v39 = vld [vmem:[#allocation63_spill] sm:$0xff] }
 0x65e   : > { %5035 = vmatpush.bf16.msrb.mxu0 %v12607_v20  ;;  %v12625_v20 = vld [vmem:[#allocation64_spill] sm:$0xff] }
 0x65f   : > { %5049 = vmatpush.bf16.msrb.mxu1 %v12608_v58  ;;  %5063 = vmatpush.bf16.msrb.mxu2 %v12609_v5  ;;  %v12626_v58 = vld [vmem:[#allocation65_spill] sm:$0xff]  ;;  %v12627_v5 = vld [vmem:[#allocation66_spill] sm:$0xff] }
 0x660   : > { %5077 = vmatpush.bf16.msrb.mxu3 %v12610_v37 }
 0x662   : > { %5036 = vmatpush.bf16.msrb.mxu0 %v12502_v4  ;;  %v10437_v4 = vpop.f32.mrf.mxu1 }
 0x663   : > { %5050 = vmatpush.bf16.msrb.mxu1 %v12503_v12  ;;  %5064 = vmatpush.bf16.msrb.mxu2 %v12506_v19  ;;  %v10435_v12 = vpop.f32.mrf.mxu0  ;;  %v12614_v19 = vld [vmem:[#allocation162_spill] sm:$0xff] }
 0x664   : > { %5078 = vmatpush.bf16.msrb.mxu3 %v12507_v21  ;;  %v12613_v21 = vld [vmem:[#allocation161_spill] sm:$0xff] }
 0x666   : > { %5037 = vmatpush.bf16.msrb.mxu0 %v12508_v55  ;;  %v12615_v55 = vld [vmem:[#allocation164_spill] sm:$0xff] }
 0x667   : > { %5051 = vmatpush.bf16.msrb.mxu1 %v12611_v38  ;;  %5065 = vmatpush.bf16.msrb.mxu2 %v12612_v59 }
 0x668   : > { %5079 = vmatpush.bf16.msrb.mxu3 %v12511_v24  ;;  %v12616_v24 = vld [vmem:[#allocation41_spill] sm:$0xff] }
 0x66a   : > { %5038 = vmatpush.bf16.msrb.mxu0 %v12512_v60  ;;  %v12618_v60 = vld [vmem:[#allocation48_spill] sm:$0xff] }
 0x66b   : > { %5052 = vmatpush.bf16.msrb.mxu1 %v12513_v51  ;;  %5066 = vmatpush.bf16.msrb.mxu2 %v12514_v34  ;;  %v12619_v51 = vld [vmem:[#allocation49_spill] sm:$0xff]  ;;  %v12620_v34 = vld [vmem:[#allocation50_spill] sm:$0xff]  ;;  %v4806_v14 = vpop.f32.mrf.mxu0  ;;  %v4820_v49 = vpop.f32.mrf.mxu1 }
 0x66c   : > { %5080 = vmatpush.bf16.msrb.mxu3 %v12613_v21  ;;  %v10459_v25 = vadd.f32 %v4820_v49, %v4806_v14 }
 0x66d   : > { %5039 = vmatmul.bf16.vlgmr.msrb.gmra.mxu0 %v12593_v29 }
 0x66e   : > { %5087 = vmatpush.bf16.msra.mxu0 %v12614_v19  ;;  %5053 = vmatmul.bf16.vlgmr.msrb.gmra.mxu1 %v12594_v2  ;;  %v12628_v19 = vld [vmem:[#allocation67_spill] sm:$0xff] }
 0x66f   : > { %5101 = vmatpush.bf16.msra.mxu1 %v12615_v55  ;;  %5115 = vmatpush.bf16.msra.mxu2 %v12616_v24 }
 0x670   : > { %5129 = vmatpush.bf16.msra.mxu3 %v12617_v28  ;;  %5067 = vmatmul.bf16.vlgmr.msrb.gmra.mxu2 %v12593_v29 }
 0x671   : > { %5081 = vmatmul.bf16.vlgmr.msrb.gmra.mxu3 %v12594_v2 }
 0x672   : > { %5088 = vmatpush.bf16.msra.mxu0 %v12618_v60 }
 0x673   : > { %5102 = vmatpush.bf16.msra.mxu1 %v12619_v51  ;;  %5116 = vmatpush.bf16.msra.mxu2 %v12620_v34  ;;  %v4834_v37 = vpop.f32.mrf.mxu2  ;;  %v4822_v21 = vpop.f32.mrf.mxu1  ;;  %v12631_v51 = vld [vmem:[#allocation59_spill] sm:$0xff] }
 0x674   : > { %5130 = vmatpush.bf16.msra.mxu3 %v12621_v36  ;;  %v4848_v38 = vpop.f32.mrf.mxu3  ;;  %v12640_v34 = vld [vmem:[#allocation119_spill] sm:$0xff] }
 0x675   : > { %v10467_v59 = vadd.f32 %v4848_v38, %v4834_v37 }
 0x676   : > { %5089 = vmatpush.bf16.msra.mxu0 %v12524_v23  ;;  %v4808_v23 = vpop.f32.mrf.mxu0 }
 0x677   : > { %5103 = vmatpush.bf16.msra.mxu1 %v12622_v22  ;;  %5117 = vmatpush.bf16.msra.mxu2 %v12623_v32  ;;  %v10471_v55 = vadd.f32 %v4822_v21, %v4808_v23  ;;  %v12642_v32 = vld [vmem:[#allocation126_spill] sm:$0xff]  ;;  %v5199_v23 = vld [vmem:[%s7202_s17 + $0x80] sm:$0xff] }
 0x678   : > { %5131 = vmatpush.bf16.msra.mxu3 %v12431_v3  ;;  %v12629_v3 = vld [vmem:[#allocation70_spill] sm:$0xff] }
 0x67a   : > { %5090 = vmatpush.bf16.msra.mxu0 %v12624_v39 }
 0x67b   : > { %5104 = vmatpush.bf16.msra.mxu1 %v12625_v20  ;;  %5118 = vmatpush.bf16.msra.mxu2 %v12626_v58  ;;  %v4836_v24 = vpop.f32.mrf.mxu2  ;;  %v12646_v58 = vld [vmem:[#allocation138_spill] sm:$0xff] }
 0x67c   : > { %5132 = vmatpush.bf16.msra.mxu3 %v12627_v5  ;;  %v4850_v28 = vpop.f32.mrf.mxu3 }
 0x67d   : > { %v10479_v60 = vadd.f32 %v4850_v28, %v4836_v24  ;;  %v4793_v28 = vadd.f32 %v10431_v13, %v10429_v9 }
 0x67e   : > { %5091 = vmatpush.bf16.msra.mxu0 %v12628_v19 }
 0x67f   : > { %5105 = vmatpush.bf16.msra.mxu1 %v12329_v30  ;;  %5119 = vmatpush.bf16.msra.mxu2 %v12527_v1  ;;  %v12630_v30 = vld [vmem:[#allocation57_spill] sm:$0xff]  ;;  %v12635_v1 = vld [vmem:[#allocation112_spill] sm:$0xff] }
 0x680   : > { %5133 = vmatpush.bf16.msra.mxu3 %v12629_v3  ;;  %v5215_v3 = vmul.f32 %v5199_v23, %v12489_v26 }
 0x682   : > { %5092 = vmatpush.bf16.msra.mxu0 %v12529_v61  ;;  %v12632_v61 = vld [vmem:[#allocation109_spill] sm:$0xff] }
 0x683   : > { %5106 = vmatpush.bf16.msra.mxu1 %v12530_v56  ;;  %5120 = vmatpush.bf16.msra.mxu2 %v12531_v10  ;;  %v12633_v56 = vld [vmem:[#allocation110_spill] sm:$0xff] }
 0x684   : > { %5134 = vmatpush.bf16.msra.mxu3 %v12532_v45  ;;  %v12634_v45 = vld [vmem:[#allocation111_spill] sm:$0xff]  ;;  %v12636_v10 = vld [vmem:[#allocation114_spill] sm:$0xff] }
 0x686   : > { %5093 = vmatpush.bf16.msra.mxu0 %v12533_v54  ;;  %v12637_v54 = vld [vmem:[#allocation115_spill] sm:$0xff] }
 0x687   : > { %5107 = vmatpush.bf16.msra.mxu1 %v12630_v30  ;;  %5121 = vmatpush.bf16.msra.mxu2 %v12631_v51  ;;  %v4767_v30 = vadd.f32 %v10437_v4, %v10435_v12 }
 0x688   : > { %5135 = vmatpush.bf16.msra.mxu3 %v12536_v35  ;;  %v12638_v35 = vld [vmem:[#allocation116_spill] sm:$0xff] }
 0x68a   : > { %5094 = vmatpush.bf16.msra.mxu0 %v12537_v33  ;;  %v4862_v33 = vpop.f32.mrf.mxu0 }
 0x68b   : > { %5108 = vmatpush.bf16.msra.mxu1 %v12538_v63  ;;  %5122 = vmatpush.bf16.msra.mxu2 %v12539_v27  ;;  %v4876_v63 = vpop.f32.mrf.mxu1  ;;  %v12639_v27 = vld [vmem:[#allocation118_spill] sm:$0xff] }
 0x68c   : > { %5136 = vmatpush.bf16.msra.mxu3 %v12540_v0  ;;  %v10503_v0 = vadd.f32 %v4876_v63, %v4862_v33  ;;  %v4795_v33 = vadd.f32 %v10455_v44, %v10453_v46 }
 0x68d   : > { %5095 = vmatmul.bf16.vlgmr.msra.gmra.mxu0 %v12593_v29 }
 0x68e   : > { %5143 = vmatpush.bf16.msrb.mxu0 %v12632_v61  ;;  %5109 = vmatmul.bf16.vlgmr.msra.gmra.mxu1 %v12594_v2 }
 0x68f   : > { %5157 = vmatpush.bf16.msrb.mxu1 %v12633_v56  ;;  %5171 = vmatpush.bf16.msrb.mxu2 %v12634_v45  ;;  %v5207_v45 = vld [vmem:[%s7202_s17 + $0x140] sm:$0xff] }
 0x690   : > { %5185 = vmatpush.bf16.msrb.mxu3 %v12635_v1  ;;  %5123 = vmatmul.bf16.vlgmr.msra.gmra.mxu2 %v12593_v29  ;;  %v5223_v13 = vmul.f32 %v5207_v45, %v12501_v15  ;;  %v5204_v45 = vld [vmem:[%s7202_s17 + $0xa8] sm:$0xff] }
 0x691   : > { %5137 = vmatmul.bf16.vlgmr.msra.gmra.mxu3 %v12594_v2 }
 0x692   : > { %5144 = vmatpush.bf16.msrb.mxu0 %v12545_v53  ;;  %v12641_v53 = vld [vmem:[#allocation124_spill] sm:$0xff] }
 0x693   : > { %5158 = vmatpush.bf16.msrb.mxu1 %v12636_v10  ;;  %5172 = vmatpush.bf16.msrb.mxu2 %v12637_v54  ;;  %v4890_v36 = vpop.f32.mrf.mxu2  ;;  %v4878_v22 = vpop.f32.mrf.mxu1 }
 0x694   : > { %5186 = vmatpush.bf16.msrb.mxu3 %v12638_v35  ;;  %v4904_v14 = vpop.f32.mrf.mxu3 }
 0x695   : > { %v10511_v49 = vadd.f32 %v4904_v14, %v4890_v36 }
 0x696   : > { %5145 = vmatpush.bf16.msrb.mxu0 %v12549_v7  ;;  %v4864_v7 = vpop.f32.mrf.mxu0 }
 0x697   : > { %5159 = vmatpush.bf16.msrb.mxu1 %v12639_v27  ;;  %5173 = vmatpush.bf16.msrb.mxu2 %v12640_v34  ;;  %v10515_v39 = vadd.f32 %v4878_v22, %v4864_v7  ;;  %v5208_v27 = vld [vmem:[%s7202_s17 + $0x148] sm:$0xff] }
 0x698   : > { %5187 = vmatpush.bf16.msrb.mxu3 %v12356_v16  ;;  %v12643_v16 = vld [vmem:[#allocation127_spill] sm:$0xff]  ;;  %v5224_v14 = vmul.f32 %v5208_v27, %v12501_v15 }
 0x69a   : > { %5146 = vmatpush.bf16.msrb.mxu0 %v12357_v11  ;;  %v12644_v11 = vld [vmem:[#allocation128_spill] sm:$0xff] }
 0x69b   : > { %5160 = vmatpush.bf16.msrb.mxu1 %v12255_v48  ;;  %5174 = vmatpush.bf16.msrb.mxu2 %v12453_v50  ;;  %v4892_v48 = vpop.f32.mrf.mxu2 }
 0x69c   : > { %5188 = vmatpush.bf16.msrb.mxu3 %v12641_v53  ;;  %v4906_v50 = vpop.f32.mrf.mxu3 }
 0x69d   : > { %v10523_v20 = vadd.f32 %v4906_v50, %v4892_v48 }
 0x69e   : > { %5147 = vmatpush.bf16.msrb.mxu0 %v12455_v41  ;;  %v12645_v41 = vld [vmem:[#allocation136_spill] sm:$0xff] }
 0x69f   : > { %5161 = vmatpush.bf16.msrb.mxu1 %v12642_v32  ;;  %5175 = vmatpush.bf16.msrb.mxu2 %v12643_v16  ;;  %v5201_v16 = vld [vmem:[%s7202_s17 + $0x90] sm:$0xff] }
 0x6a0   : > { %5189 = vmatpush.bf16.msrb.mxu3 %v12644_v11  ;;  %v5217_v44 = vmul.f32 %v5201_v16, %v12489_v26 }
 0x6a2   : > { %5148 = vmatpush.bf16.msrb.mxu0 %v12262_v18 }
 0x6a3   : > { %5162 = vmatpush.bf16.msrb.mxu1 %v12263_v8  ;;  %5176 = vmatpush.bf16.msrb.mxu2 %v12552_v62 }
 0x6a4   : > { %5190 = vmatpush.bf16.msrb.mxu3 %v12553_v52 }
 0x6a6   : > { %5149 = vmatpush.bf16.msrb.mxu0 %v12554_v57 }
 0x6a7   : > { %5163 = vmatpush.bf16.msrb.mxu1 %v12645_v41  ;;  %5177 = vmatpush.bf16.msrb.mxu2 %v12646_v58  ;;  %v5202_v58 = vld [vmem:[%s7202_s17 + $0x98] sm:$0xff] }
 0x6a8   : > { %5191 = vmatpush.bf16.msrb.mxu3 %v12557_v40 }
 0x6aa   : > { %5150 = vmatpush.bf16.msrb.mxu0 %v12558_v43  ;;  %v4918_v52 = vpop.f32.mrf.mxu0 }
 0x6ab   : > { %5164 = vmatpush.bf16.msrb.mxu1 %v12559_v47  ;;  %5178 = vmatpush.bf16.msrb.mxu2 %v12560_v42  ;;  %v4932_v8 = vpop.f32.mrf.mxu1 }
 0x6ac   : > { %5192 = vmatpush.bf16.msrb.mxu3 %v12561_v17  ;;  %v10537_v18 = vadd.f32 %v4932_v8, %v4918_v52 }
 0x6ad   : > { %5151 = vmatmul.bf16.vlgmr.msrb.gmra.mxu0 %v12593_v29 }
 0x6ae   : > { %5165 = vmatmul.bf16.vlgmr.msrb.gmra.mxu1 %v12594_v2  ;;  %5179 = vmatmul.bf16.vlgmr.msrb.gmra.mxu2 %v12593_v29 }
 0x6af   : > { %5193 = vmatmul.bf16.vlgmr.msrb.gmra.mxu3 %v12594_v2  ;;  %v4765_v2 = vadd.f32 %v10419_v6, %v10417_v31  ;;  %v5200_v6 = vld [vmem:[%s7202_s17 + $0x88] sm:$0xff] }
 0x6b0   : > { %v5216_v54 = vmul.f32 %v5200_v6, %v12489_v26 }
 0x6b2   : > { %v4920_v43 = vpop.f32.mrf.mxu0 }
 0x6b3   : > { %v4946_v62 = vpop.f32.mrf.mxu2  ;;  %v4934_v47 = vpop.f32.mrf.mxu1 }
 0x6b4   : > { %v4960_v57 = vpop.f32.mrf.mxu3  ;;  %v10541_v42 = vadd.f32 %v4934_v47, %v4920_v43 }
 0x6b5   : > { %v10539_v40 = vadd.f32 %v4960_v57, %v4946_v62  ;;  %v5209_v62 = vld [vmem:[%s7202_s17 + $0x150] sm:$0xff] }
 0x6bb   : > { %v4948_v17 = vpop.f32.mrf.mxu2 }
 0x6bc   : > { %v4962_v5 = vpop.f32.mrf.mxu3 }
 0x6bd   : > { %v10543_v29 = vadd.f32 %v4962_v5, %v4948_v17  ;;  %v5225_v5 = vmul.f32 %v5209_v62, %v12501_v15 }
 0x6ca   : > { %v4984_v37 = vpop.f32.mrf.mxu0 }
 0x6cb   : > { %v4998_v38 = vpop.f32.mrf.mxu1  ;;  %v4985_v21 = vadd.f32 %v4984_v37, %v4765_v2 }
 0x6cd   : > { %v4999_v19 = vadd.f32 %v4998_v38, %v4985_v21 }
 0x6cf   : > { %v5231_v24 = vadd.f32 %v5215_v3, %v4999_v19 }
 0x6d1   : > { %5247 = vst [vmem:[%s9787_s24 + $0x80] sm:$0xff] %v5231_v24 }
 0x6d2   : > { %v4986_v56 = vpop.f32.mrf.mxu0 }
 0x6d3   : > { %v5012_v51 = vpop.f32.mrf.mxu2  ;;  %v4987_v1 = vadd.f32 %v4986_v56, %v4767_v30  ;;  %v5000_v35 = vpop.f32.mrf.mxu1  ;;  %v5203_v30 = vld [vmem:[%s7202_s17 + $0xa0] sm:$0xff] }
 0x6d4   : > { %v5026_v31 = vpop.f32.mrf.mxu3  ;;  %v5013_v61 = vadd.f32 %v5012_v51, %v4793_v28  ;;  %v5219_v6 = vmul.f32 %v5203_v30, %v12489_v26 }
 0x6d5   : > { %v5001_v9 = vadd.f32 %v5000_v35, %v4987_v1 }
 0x6d6   : > { %v5027_v10 = vadd.f32 %v5026_v31, %v5013_v61 }
 0x6d7   : > { %v5239_v4 = vadd.f32 %v5223_v13, %v5001_v9 }
 0x6d8   : > { %v5232_v12 = vadd.f32 %v5216_v54, %v5027_v10  ;;  %v5211_v54 = vld [vmem:[%s7202_s17 + $0x160] sm:$0xff] }
 0x6d9   : > { %5255 = vst [vmem:[%s9787_s24 + $0x140] sm:$0xff] %v5239_v4  ;;  %v5227_v4 = vmul.f32 %v5211_v54, %v12501_v15 }
 0x6da   : > { %5248 = vst [vmem:[%s9787_s24 + $0x88] sm:$0xff] %v5232_v12 }
 0x6db   : > { %v5014_v63 = vpop.f32.mrf.mxu2 }
 0x6dc   : > { %v5015_v34 = vadd.f32 %v5014_v63, %v4795_v33  ;;  %v5028_v53 = vpop.f32.mrf.mxu3 }
 0x6de   : > { %v5029_v36 = vadd.f32 %v5028_v53, %v5015_v34 }
 0x6e0   : > { %v5240_v7 = vadd.f32 %v5224_v14, %v5029_v36 }
 0x6e2   : > { %5256 = vst [vmem:[%s9787_s24 + $0x148] sm:$0xff] %v5240_v7 }
 0x6ea   : > { %v5040_v22 = vpop.f32.mrf.mxu0 }
 0x6eb   : > { %v5054_v32 = vpop.f32.mrf.mxu1  ;;  %v5041_v11 = vadd.f32 %v5040_v22, %v10459_v25  ;;  %v5218_v25 = vmul.f32 %v5202_v58, %v12489_v26 }
 0x6ed   : > { %v5055_v46 = vadd.f32 %v5054_v32, %v5041_v11  ;;  %v5205_v32 = vld [vmem:[%s7202_s17 + $0xb0] sm:$0xff] }
 0x6ef   : > { %v5233_v48 = vadd.f32 %v5217_v44, %v5055_v46  ;;  %v5221_v46 = vmul.f32 %v5205_v32, %v12489_v26 }
 0x6f1   : > { %5249 = vst [vmem:[%s9787_s24 + $0x90] sm:$0xff] %v5233_v48 }
 0x6f2   : > { %v5042_v8 = vpop.f32.mrf.mxu0 }
 0x6f3   : > { %v5068_v50 = vpop.f32.mrf.mxu2  ;;  %v5043_v57 = vadd.f32 %v5042_v8, %v10471_v55  ;;  %v5056_v47 = vpop.f32.mrf.mxu1 }
 0x6f4   : > { %v5082_v41 = vpop.f32.mrf.mxu3  ;;  %v5069_v52 = vadd.f32 %v5068_v50, %v10467_v59  ;;  %v5210_v59 = vld [vmem:[%s7202_s17 + $0x158] sm:$0xff] }
 0x6f5   : > { %v5057_v17 = vadd.f32 %v5056_v47, %v5043_v57  ;;  %v5226_v19 = vmul.f32 %v5210_v59, %v12501_v15  ;;  %v5206_v50 = vld [vmem:[%s7202_s17 + $0xb8] sm:$0xff] }
 0x6f6   : > { %v5083_v43 = vadd.f32 %v5082_v41, %v5069_v52  ;;  %v5213_v52 = vld [vmem:[%s7202_s17 + $0x170] sm:$0xff] }
 0x6f7   : > { %v5241_v37 = vadd.f32 %v5225_v5, %v5057_v17 }
 0x6f8   : > { %v5234_v2 = vadd.f32 %v5218_v25, %v5083_v43  ;;  %v5229_v25 = vmul.f32 %v5213_v52, %v12501_v15 }
 0x6f9   : > { %5257 = vst [vmem:[%s9787_s24 + $0x150] sm:$0xff] %v5241_v37 }
 0x6fa   : > { %5250 = vst [vmem:[%s9787_s24 + $0x98] sm:$0xff] %v5234_v2 }
 0x6fb   : > { %v5070_v38 = vpop.f32.mrf.mxu2 }
 0x6fc   : > { %v5071_v23 = vadd.f32 %v5070_v38, %v10479_v60  ;;  %v5084_v55 = vpop.f32.mrf.mxu3 }
 0x6fe   : > { %v5085_v21 = vadd.f32 %v5084_v55, %v5071_v23 }
 0x700   : > { %v5242_v3 = vadd.f32 %v5226_v19, %v5085_v21 }
 0x702   : > { %5258 = vst [vmem:[%s9787_s24 + $0x158] sm:$0xff] %v5242_v3 }
 0x70a   : > { %v5096_v24 = vpop.f32.mrf.mxu0 }
 0x70b   : > { %v5110_v28 = vpop.f32.mrf.mxu1  ;;  %v5097_v51 = vadd.f32 %v5096_v24, %v10503_v0  ;;  %v5220_v0 = vmul.f32 %v5204_v45, %v12489_v26 }
 0x70d   : > { %v5111_v31 = vadd.f32 %v5110_v28, %v5097_v51 }
 0x70f   : > { %v5235_v61 = vadd.f32 %v5219_v6, %v5111_v31 }
 0x711   : > { %5251 = vst [vmem:[%s9787_s24 + $0xa0] sm:$0xff] %v5235_v61 }
 0x712   : > { %v5098_v10 = vpop.f32.mrf.mxu0 }
 0x713   : > { %v5124_v60 = vpop.f32.mrf.mxu2  ;;  %v5099_v35 = vadd.f32 %v5098_v10, %v10515_v39  ;;  %v5112_v13 = vpop.f32.mrf.mxu1 }
 0x714   : > { %v5138_v56 = vpop.f32.mrf.mxu3  ;;  %v5125_v1 = vadd.f32 %v5124_v60, %v10511_v49  ;;  %v5212_v49 = vld [vmem:[%s7202_s17 + $0x168] sm:$0xff] }
 0x715   : > { %v5113_v12 = vadd.f32 %v5112_v13, %v5099_v35  ;;  %v5228_v36 = vmul.f32 %v5212_v49, %v12501_v15 }
 0x716   : > { %v5139_v9 = vadd.f32 %v5138_v56, %v5125_v1 }
 0x717   : > { %v5243_v63 = vadd.f32 %v5227_v4, %v5113_v12 }
 0x718   : > { %v5236_v33 = vadd.f32 %v5220_v0, %v5139_v9 }
 0x719   : > { %5259 = vst [vmem:[%s9787_s24 + $0x160] sm:$0xff] %v5243_v63 }
 0x71a   : > { %5252 = vst [vmem:[%s9787_s24 + $0xa8] sm:$0xff] %v5236_v33 }
 0x71b   : > { %v5126_v27 = vpop.f32.mrf.mxu2 }
 0x71c   : > { %v5127_v34 = vadd.f32 %v5126_v27, %v10523_v20  ;;  %v5140_v39 = vpop.f32.mrf.mxu3 }
 0x71e   : > { %v5141_v53 = vadd.f32 %v5140_v39, %v5127_v34 }
 0x720   : > { %v5244_v14 = vadd.f32 %v5228_v36, %v5141_v53 }
 0x722   : > { %5260 = vst [vmem:[%s9787_s24 + $0x168] sm:$0xff] %v5244_v14 }
 0x72a   : > { %v5152_v7 = vpop.f32.mrf.mxu0 }
 0x72b   : > { %v5166_v22 = vpop.f32.mrf.mxu1  ;;  %v5153_v16 = vadd.f32 %v5152_v7, %v10537_v18  ;;  %v5222_v18 = vmul.f32 %v5206_v50, %v12489_v26 }
 0x72d   : > { %v5167_v11 = vadd.f32 %v5166_v22, %v5153_v16 }
 0x72f   : > { %v5237_v44 = vadd.f32 %v5221_v46, %v5167_v11 }
 0x731   : > { %5253 = vst [vmem:[%s9787_s24 + $0xb0] sm:$0xff] %v5237_v44  ;;  %v5180_v20 = vpop.f32.mrf.mxu2 }
 0x732   : > { %v5194_v48 = vpop.f32.mrf.mxu3  ;;  %v5181_v41 = vadd.f32 %v5180_v20, %v10539_v40  ;;  %v5154_v58 = vpop.f32.mrf.mxu0 }
 0x733   : > { %v5155_v8 = vadd.f32 %v5154_v58, %v10541_v42  ;;  %v5168_v57 = vpop.f32.mrf.mxu1  ;;  %v5214_v42 = vld [vmem:[%s7202_s17 + $0x178] sm:$0xff] }
 0x734   : > { %v5195_v62 = vadd.f32 %v5194_v48, %v5181_v41  ;;  %v5230_v37 = vmul.f32 %v5214_v42, %v12501_v15 }
 0x735   : > { %v5169_v43 = vadd.f32 %v5168_v57, %v5155_v8 }
 0x736   : > { %v5238_v47 = vadd.f32 %v5222_v18, %v5195_v62 }
 0x737   : > { %v5245_v17 = vadd.f32 %v5229_v25, %v5169_v43 }
 0x738   : > { %5254 = vst [vmem:[%s9787_s24 + $0xb8] sm:$0xff] %v5238_v47 }
 0x739   : > { %5261 = vst [vmem:[%s9787_s24 + $0x170] sm:$0xff] %v5245_v17  ;;  %v5182_v40 = vpop.f32.mrf.mxu2 }
 0x73a   : > { %v5183_v26 = vadd.f32 %v5182_v40, %v10543_v29  ;;  %v5196_v5 = vpop.f32.mrf.mxu3 }
 0x73c   : > { %v5197_v2 = vadd.f32 %v5196_v5, %v5183_v26 }
 0x73e   : > { %v5246_v38 = vadd.f32 %v5230_v37, %v5197_v2 }
 0x740   : > { %5262 = vst [vmem:[%s9787_s24 + $0x178] sm:$0xff] %v5246_v38 }
 0x741   : > { %6976 = shalt.err (!%p6973_p12)
}
 0x742   : > { %s7042_s29 = smov 3072   ;;  %s7043_s0 = smov 192  }
 0x743   : > { %6722 = dma.vmem_to_hbm [thread:$0]  (%p7157_p7), %s5278_s30, 6144, %s5280_s22, %s5264_s6, %s7042_s29, %s7042_s29, %s7043_s0  }
 0x744 PF: > { %s5294_s16 = sand.u32 1, %s7015_s18   ;;  %p12647_p13 = scmp.ge.s32.totalorder %s7027_s21, 2 }
 0x745   : > { %s5295_s24 = scalar_lea.sflag [#allocation4], %s5294_s16 }
 0x746   : > { %p6739_p0 = pnand %p12647_p13, %p7109_p6 }
 0x748   : > { %p6740_p3 = pneg %p6739_p0 }
 0x74a   : > { %7010 = dma.done.wait (%p6740_p3), %s5295_s24, 6144  }
 0x74b   : > { %7012 = vsyncadd (%p6740_p3), %s5295_s24, 4294961152  ;;  %p18_p5 = scmp.ge.s32.totalorder %s7143_s28, 4   ;;  %s12648_s18 = smov %s7019_s19 }
 0x74c   : > { %s12649_s19 = smov %s7023_s20  ;;  %s12650_s20 = smov %s7153_s8 }
 0x74d   : > { %s12651_s21 = smov %s7143_s28  ;;  %20 = sbr.rel (!%p18_p5) target bundleno = 8 (0x8), region = 100 }
 0x752   :  { %5301 = vsyncpa [#allocation3], 1 }
 0x753   :  { %5303 = vsyncpa [#allocation3 + $0x1], 1 }
 0x754   :  { %5304 = vsyncpa [#allocation8], 1 }
 0x755   :  { %5305 = vsyncpa [#allocation4], 1 }
 0x756   :  { %5307 = vsyncpa [#allocation4 + $0x1], 1 }
 0x757   :  { %5308 = vsyncpa [#allocation5], 1 }
 0x758   :  { %5310 = vsyncpa [#allocation5 + $0x1], 1 }

</bundles_post_ra>
